<compile_context>
chip_gen: v6e
topology: v6e:2x2x1
jax: 0.10.0
libtpu: 0.0.40
codegen_flags: <defaults>
</compile_context>

<pallas_src>
import jax
import jax.numpy as jnp
from jax import lax
from jax.experimental import pallas as pl
from jax.experimental.pallas import tpu as pltpu

EPS = 1e-5


# ============================================================================
# Fused kernel: the whole CAPreActBasicBlock for one batch image per grid step.
# ============================================================================
def _fused_block_kernel(x_ref, s1_ref, b1_ref, w1_ref, s2_ref, b2_ref, w2_ref,
                        bhw_ref, bcw_ref, bhc_ref,
                        out_ref,
                        pad_ref, col_ref, phw_ref, pcw_ref, phc_ref,
                        ahw_ref, acw_ref, ahc_ref):
    _, H, W, C = out_ref.shape
    x = x_ref[0]                                            # (H, W, C) f32

    # ---- conv pad scratch: zero only the 1-wide halo strips -----------------
    pad_ref[0:1, :, :] = jnp.zeros((1, W + 2, C), jnp.float32)
    pad_ref[H + 1:H + 2, :, :] = jnp.zeros((1, W + 2, C), jnp.float32)
    pad_ref[:, 0:1, :] = jnp.zeros((H + 2, 1, C), jnp.float32)
    pad_ref[:, W + 1:W + 2, :] = jnp.zeros((H + 2, 1, C), jnp.float32)

    def conv3x3(act, w_ref):
        # act: (H, W, C) f32 (already BN+ReLU'd).  One im2col matmul with
        # K = 9*C, bf16 MXU operands, f32 accumulation.  Returns (H*W, Cout).
        pad_ref[1:1 + H, 1:1 + W, :] = act
        for kh in range(3):
            for kw in range(3):
                k = kh * 3 + kw
                col_ref[:, k * C:(k + 1) * C] = (
                    pad_ref[kh:kh + H, kw:kw + W, :].reshape(H * W, C))
        return jnp.dot(col_ref[...].astype(jnp.bfloat16), w_ref[...],
                       preferred_element_type=jnp.float32)

    # ---- pre-activation residual trunk ---------------------------------------
    a1 = jnp.maximum(x * s1_ref[0] + b1_ref[0], 0.0)                # relu(bn1(x))
    h1 = conv3x3(a1, w1_ref)                                        # conv1
    a2 = jnp.maximum(h1 * s2_ref[0] + b2_ref[0], 0.0)               # relu(bn2(.))
    h2 = conv3x3(a2.reshape(H, W, C), w2_ref).reshape(H, W, C)      # conv2

    # ---- TripletAttention: gate = ZPool + 7x7 conv(2->1) + BN + sigmoid ------
    # The 7x7 conv is a banded MXU matmul: 14 row-shifted slices of the padded
    # pooled planes contracted against a host-built (14*(Q+6)+1, Q) matrix that
    # folds the conv taps, the gate-BN scale, and (via a ones column) its bias.
    def gate(pref, aref, bref, pmax, pmean, P, Q):
        Qp = Q + 6
        # zero only the 3-wide halo strips of the pooled-pad scratch
        pref[:, 0:3, :] = jnp.zeros((2, 3, Qp), jnp.float32)
        pref[:, P + 3:P + 6, :] = jnp.zeros((2, 3, Qp), jnp.float32)
        pref[:, :, 0:3] = jnp.zeros((2, P + 6, 3), jnp.float32)
        pref[:, :, Q + 3:Q + 6] = jnp.zeros((2, P + 6, 3), jnp.float32)
        pref[0, 3:3 + P, 3:3 + Q] = pmax
        pref[1, 3:3 + P, 3:3 + Q] = pmean
        for i in range(2):
            for r in range(7):
                j = i * 7 + r
                aref[:, j * Qp:(j + 1) * Qp] = pref[i, r:r + P, :]
        aref[:, 14 * Qp:14 * Qp + 1] = jnp.ones((P, 1), jnp.float32)
        g = jnp.dot(aref[...], bref[...], preferred_element_type=jnp.float32)
        return 1.0 / (1.0 + jnp.exp(-g))                            # (P, Q)

    s_hw = gate(phw_ref, ahw_ref, bhw_ref,
                jnp.max(h2, axis=2), jnp.mean(h2, axis=2), H, W)    # (H, W)
    s_cw = gate(pcw_ref, acw_ref, bcw_ref,
                jnp.max(h2, axis=0), jnp.mean(h2, axis=0), W, C)    # (W, C)
    s_hc = gate(phc_ref, ahc_ref, bhc_ref,
                jnp.max(h2, axis=1), jnp.mean(h2, axis=1), H, C)    # (H, C)

    comb = (s_hw[:, :, None] + s_cw[None, :, :] + s_hc[:, None, :]) * (1.0 / 3.0)
    out_ref[0, :, :, :] = jnp.maximum(h2 * comb + x, 0.0)


# ============================================================================
# Host-side parameter folding.
# ============================================================================
def _bn_affine(gamma, beta, mean, var):
    scale = gamma / jnp.sqrt(var + EPS)
    return scale, beta - mean * scale


def _band_matrix(taps7, Q):
    # taps7: (7,) weights along the banded (lane) axis of a (P, Q) plane padded
    # by 3.  Returns B of shape (Q+6, Q) with B[c, q] = taps7[c - q] inside band.
    Qp = Q + 6
    c = jnp.arange(Qp)[:, None]
    q = jnp.arange(Q)[None, :]
    d = c - q
    valid = (d >= 0) & (d < 7)
    return jnp.where(valid, taps7[jnp.clip(d, 0, 6)], 0.0).astype(jnp.float32)


def _gate_band(w_2x7x7, bn4, Q):
    # w_2x7x7[i, r, d]: i = ZPool channel (0=max, 1=mean), r pairs with the plane
    # row (sublane) shift, d with the banded (lane) shift.  Gate-BN scale is
    # folded into the matrix; the bias enters via an extra all-bias row that the
    # kernel matches with a ones column in its A matrix.
    gamma, beta, mean, var = bn4
    scale, bias = _bn_affine(gamma, beta, mean, var)
    blocks = [_band_matrix(w_2x7x7[i, r], Q) for i in range(2) for r in range(7)]
    band = jnp.concatenate(blocks, axis=0) * scale                  # (14*(Q+6), Q)
    bias_row = jnp.broadcast_to(bias, (1, Q)).astype(jnp.float32)
    return jnp.concatenate([band, bias_row], axis=0)                # (14*(Q+6)+1, Q)


def _prepare_kernel_params(p, W, C):
    kp = {}
    s1, b1 = _bn_affine(*p['bn1'])
    s2, b2 = _bn_affine(*p['bn2'])
    kp['bn1_s'], kp['bn1_b'] = s1.reshape(1, C), b1.reshape(1, C)
    kp['bn2_s'], kp['bn2_b'] = s2.reshape(1, C), b2.reshape(1, C)

    def conv_mat(w_oihw):      # (Cout, Cin, 3, 3) -> (9*Cin, Cout), bf16
        cout, cin = w_oihw.shape[0], w_oihw.shape[1]
        return (jnp.transpose(w_oihw, (2, 3, 1, 0))
                .reshape(9 * cin, cout).astype(jnp.bfloat16))

    kp['w1'] = conv_mat(p['conv1_w'])
    kp['w2'] = conv_mat(p['conv2_w'])
    # hw gate: plane (H, W) -> kernel kh pairs with rows (H), kw with lanes (W).
    kp['band_hw'] = _gate_band(p['w_hw_t'][0], p['bn_hw'], W)
    # cw gate: plane (W, C) -> kernel kw pairs with rows (W), kh with lanes (C);
    # handled by transposing the 7x7 taps on the host (no in-kernel lane shifts).
    kp['band_cw'] = _gate_band(jnp.transpose(p['w_cw_t'][0], (0, 2, 1)), p['bn_cw'], C)
    # hc gate: plane (H, C) -> kernel kh pairs with rows (H), kw with lanes (C).
    kp['band_hc'] = _gate_band(p['w_hc_t'][0], p['bn_hc'], C)
    return kp


# ============================================================================
# Module wrapper (NCHW in / NCHW out, matching PyTorch).
# ============================================================================
def ca_preact_basic_block(x_nchw, p):
    x = jnp.transpose(x_nchw, (0, 2, 3, 1)).astype(jnp.float32)     # -> NHWC
    N, H, W, C = x.shape
    Wp, Cp = W + 6, C + 6
    kp = _prepare_kernel_params(p, W, C)

    bcast = lambda n: (0, 0)
    img = lambda n: (n, 0, 0, 0)

    conv_flops = 2 * (2 * (H * W) * (9 * C) * C)
    gate_flops = 2 * (H * (14 * Wp + 1) * W
                      + W * (14 * Cp + 1) * C
                      + H * (14 * Cp + 1) * C)
    cost = pl.CostEstimate(
        flops=N * (conv_flops + gate_flops + 12 * H * W * C),
        transcendentals=N * (H * W + W * C + H * C),
        bytes_accessed=(8 * N * H * W * C + 4 * 9 * C * C + 16 * C
                        + 4 * ((14 * Wp + 1) * W + 2 * (14 * Cp + 1) * C)))

    out = pl.pallas_call(
        _fused_block_kernel,
        grid=(N,),
        out_shape=jax.ShapeDtypeStruct((N, H, W, C), jnp.float32),
        in_specs=[
            pl.BlockSpec((1, H, W, C), img),            # x (trunk input + residual)
            pl.BlockSpec((1, C), bcast),                # bn1 scale
            pl.BlockSpec((1, C), bcast),                # bn1 bias
            pl.BlockSpec((9 * C, C), bcast),            # conv1 im2col weight (bf16)
            pl.BlockSpec((1, C), bcast),                # bn2 scale
            pl.BlockSpec((1, C), bcast),                # bn2 bias
            pl.BlockSpec((9 * C, C), bcast),            # conv2 im2col weight (bf16)
            pl.BlockSpec((14 * Wp + 1, W), bcast),      # hw gate band matrix
            pl.BlockSpec((14 * Cp + 1, C), bcast),      # cw gate band matrix
            pl.BlockSpec((14 * Cp + 1, C), bcast),      # hc gate band matrix
        ],
        out_specs=pl.BlockSpec((1, H, W, C), img),
        scratch_shapes=[
            pltpu.VMEM((H + 2, W + 2, C), jnp.float32),     # padded activation
            pltpu.VMEM((H * W, 9 * C), jnp.float32),        # conv im2col buffer
            pltpu.VMEM((2, H + 6, W + 6), jnp.float32),     # hw pooled planes (padded)
            pltpu.VMEM((2, W + 6, C + 6), jnp.float32),     # cw pooled planes (padded)
            pltpu.VMEM((2, H + 6, C + 6), jnp.float32),     # hc pooled planes (padded)
            pltpu.VMEM((H, 14 * Wp + 1), jnp.float32),      # hw gate A matrix
            pltpu.VMEM((W, 14 * Cp + 1), jnp.float32),      # cw gate A matrix
            pltpu.VMEM((H, 14 * Cp + 1), jnp.float32),      # hc gate A matrix
        ],
        compiler_params=pltpu.CompilerParams(
            dimension_semantics=("parallel",),              # v7x: 2 TCs split the batch
            vmem_limit_bytes=32 * 1024 * 1024),
        cost_estimate=cost,
    )(x, kp['bn1_s'], kp['bn1_b'], kp['w1'], kp['bn2_s'], kp['bn2_b'], kp['w2'],
      kp['band_hw'], kp['band_cw'], kp['band_hc'])
    return jnp.transpose(out, (0, 3, 1, 2))                 # -> NCHW


# ============================================================================
# Pure-JAX reference (NCHW, PyTorch-style ops) for validation.
# ============================================================================
def reference_forward(x, p):
    def bn_nchw(h, g, b, m, v):
        g = g[None, :, None, None]; b = b[None, :, None, None]
        m = m[None, :, None, None]; v = v[None, :, None, None]
        return (h - m) * (g / jnp.sqrt(v + EPS)) + b

    def conv(h, w, pad):
        return lax.conv_general_dilated(
            h, w, window_strides=(1, 1), padding=[(pad, pad), (pad, pad)],
            dimension_numbers=('NCHW', 'OIHW', 'NCHW'))

    def gate(hp, w, bn4):
        pooled = jnp.concatenate(
            [jnp.max(hp, axis=1, keepdims=True),
             jnp.mean(hp, axis=1, keepdims=True)], axis=1)
        y = conv(pooled, w, 3)
        g, b, m, v = bn4
        y = (y - m) * (g / jnp.sqrt(v + EPS)) + b
        return hp * jax.nn.sigmoid(y)

    branch = x
    h = jax.nn.relu(bn_nchw(x, *p['bn1']))
    h = conv(h, p['conv1_w'], 1)
    h = conv(jax.nn.relu(bn_nchw(h, *p['bn2'])), p['conv2_w'], 1)
    # TripletAttention
    o_cw = jnp.transpose(gate(jnp.transpose(h, (0, 2, 1, 3)), p['w_cw_t'], p['bn_cw']),
                         (0, 2, 1, 3))
    o_hc = jnp.transpose(gate(jnp.transpose(h, (0, 3, 2, 1)), p['w_hc_t'], p['bn_hc']),
                         (0, 3, 2, 1))
    o_hw = gate(h, p['w_hw_t'], p['bn_hw'])
    h = (o_hw + o_cw + o_hc) / 3.0
    return jax.nn.relu(h + branch)


# ============================================================================
# Deterministic parameter construction.
# ============================================================================
def make_params(key, dim):
    keys = jax.random.split(key, 10)

    def bn_c(k):
        k1, k2, k3, k4 = jax.random.split(k, 4)
        return (1.0 + 0.1 * jax.random.normal(k1, (dim,), jnp.float32),
                0.1 * jax.random.normal(k2, (dim,), jnp.float32),
                0.1 * jax.random.normal(k3, (dim,), jnp.float32),
                1.0 + 0.2 * jax.random.uniform(k4, (dim,), jnp.float32))

    def bn_1(k):
        k1, k2, k3, k4 = jax.random.split(k, 4)
        return (1.0 + 0.1 * jax.random.normal(k1, (), jnp.float32),
                0.1 * jax.random.normal(k2, (), jnp.float32),
                0.1 * jax.random.normal(k3, (), jnp.float32),
                1.0 + 0.2 * jax.random.uniform(k4, (), jnp.float32))

    p = {}
    p['bn1'] = bn_c(keys[0])
    p['bn2'] = bn_c(keys[1])
    p['conv1_w'] = 0.1 * jax.random.normal(keys[2], (dim, dim, 3, 3), jnp.float32)  # OIHW
    p['conv2_w'] = 0.1 * jax.random.normal(keys[3], (dim, dim, 3, 3), jnp.float32)
    p['w_hw_t'] = 0.1 * jax.random.normal(keys[4], (1, 2, 7, 7), jnp.float32)       # OIHW
    p['w_cw_t'] = 0.1 * jax.random.normal(keys[5], (1, 2, 7, 7), jnp.float32)
    p['w_hc_t'] = 0.1 * jax.random.normal(keys[6], (1, 2, 7, 7), jnp.float32)
    p['bn_hw'] = bn_1(keys[7])
    p['bn_cw'] = bn_1(keys[8])
    p['bn_hc'] = bn_1(keys[9])
    return p


if __name__ == "__main__":
    key = jax.random.PRNGKey(0)
    kx, kparams = jax.random.split(key)
    N, C, H, W = 2, 8, 16, 16
    x = jax.random.normal(kx, (N, C, H, W), jnp.float32)
    params = make_params(kparams, C)

    out = jax.block_until_ready(ca_preact_basic_block(x, params))
    ref = jax.block_until_ready(reference_forward(x, params))

    assert out.shape == (N, C, H, W), out.shape
    if not bool(jnp.allclose(out, ref, atol=5e-2, rtol=5e-2)):
        max_err = float(jnp.max(jnp.abs(out - ref)))
        raise AssertionError(f"Pallas kernel mismatch vs reference, max abs err {max_err}")
    print("KERNEL_OK")
</pallas_src>

<mosaic_0001>
module attributes {stable_mosaic.version = 11 : i64} {
  func.func @_fused_block_kernel(%arg0: i32, %arg1: memref<1x16x16x8xf32, #tpu.memory_space<vmem>>, %arg2: memref<1x8xf32, #tpu.memory_space<vmem>>, %arg3: memref<1x8xf32, #tpu.memory_space<vmem>>, %arg4: memref<72x8xbf16, #tpu.memory_space<vmem>>, %arg5: memref<1x8xf32, #tpu.memory_space<vmem>>, %arg6: memref<1x8xf32, #tpu.memory_space<vmem>>, %arg7: memref<72x8xbf16, #tpu.memory_space<vmem>>, %arg8: memref<309x16xf32, #tpu.memory_space<vmem>>, %arg9: memref<197x8xf32, #tpu.memory_space<vmem>>, %arg10: memref<197x8xf32, #tpu.memory_space<vmem>>, %arg11: memref<1x16x16x8xf32, #tpu.memory_space<vmem>>, %arg12: memref<18x18x8xf32, #tpu.memory_space<vmem>>, %arg13: memref<256x72xf32, #tpu.memory_space<vmem>>, %arg14: memref<2x22x22xf32, #tpu.memory_space<vmem>>, %arg15: memref<2x22x14xf32, #tpu.memory_space<vmem>>, %arg16: memref<2x22x14xf32, #tpu.memory_space<vmem>>, %arg17: memref<16x309xf32, #tpu.memory_space<vmem>>, %arg18: memref<16x197xf32, #tpu.memory_space<vmem>>, %arg19: memref<16x197xf32, #tpu.memory_space<vmem>>) attributes {dimension_semantics = [#tpu.dimension_semantics<parallel>], iteration_bounds = array<i64: 2>, scalar_prefetch = 0 : i64, scratch_operands = 8 : i64, tpu.core_type = #tpu.core_type<tc>, window_params = [{transform_indices = @transform_0, window_bounds = array<i64: 1, 16, 16, 8>}, {pipeline_mode = #tpu.pipeline_mode<synchronous>, transform_indices = @transform_1, window_bounds = array<i64: 1, 8>}, {pipeline_mode = #tpu.pipeline_mode<synchronous>, transform_indices = @transform_2, window_bounds = array<i64: 1, 8>}, {pipeline_mode = #tpu.pipeline_mode<synchronous>, transform_indices = @transform_3, window_bounds = array<i64: 72, 8>}, {pipeline_mode = #tpu.pipeline_mode<synchronous>, transform_indices = @transform_4, window_bounds = array<i64: 1, 8>}, {pipeline_mode = #tpu.pipeline_mode<synchronous>, transform_indices = @transform_5, window_bounds = array<i64: 1, 8>}, {pipeline_mode = #tpu.pipeline_mode<synchronous>, transform_indices = @transform_6, window_bounds = array<i64: 72, 8>}, {pipeline_mode = #tpu.pipeline_mode<synchronous>, transform_indices = @transform_7, window_bounds = array<i64: 309, 16>}, {pipeline_mode = #tpu.pipeline_mode<synchronous>, transform_indices = @transform_8, window_bounds = array<i64: 197, 8>}, {pipeline_mode = #tpu.pipeline_mode<synchronous>, transform_indices = @transform_9, window_bounds = array<i64: 197, 8>}, {transform_indices = @transform_10, window_bounds = array<i64: 1, 16, 16, 8>}]} {
    %c0 = arith.constant 0 : index
    %c0_0 = arith.constant 0 : index
    %c0_1 = arith.constant 0 : index
    %c0_2 = arith.constant 0 : index
    %0 = vector.load %arg1[%c0, %c0_0, %c0_1, %c0_2] : memref<1x16x16x8xf32, #tpu.memory_space<vmem>>, vector<1x16x16x8xf32>
    %1 = vector.shape_cast %0 : vector<1x16x16x8xf32> to vector<16x16x8xf32>
    %cst = arith.constant 0.000000e+00 : f32
    %2 = vector.broadcast %cst : f32 to vector<1x18x8xf32>
    %c0_3 = arith.constant 0 : index
    %c0_4 = arith.constant 0 : index
    %c0_5 = arith.constant 0 : index
    %3 = vector.load %arg12[%c0_3, %c0_4, %c0_5] : memref<18x18x8xf32, #tpu.memory_space<vmem>>, vector<1x18x8xf32>
    tpu.vector_store %arg12[%c0_3, %c0_4, %c0_5], %2 {strides = array<i32>} : memref<18x18x8xf32, #tpu.memory_space<vmem>>, vector<1x18x8xf32>,
    %cst_6 = arith.constant 0.000000e+00 : f32
    %4 = vector.broadcast %cst_6 : f32 to vector<1x18x8xf32>
    %c17 = arith.constant 17 : index
    %c0_7 = arith.constant 0 : index
    %c0_8 = arith.constant 0 : index
    %5 = vector.load %arg12[%c17, %c0_7, %c0_8] : memref<18x18x8xf32, #tpu.memory_space<vmem>>, vector<1x18x8xf32>
    tpu.vector_store %arg12[%c17, %c0_7, %c0_8], %4 {strides = array<i32>} : memref<18x18x8xf32, #tpu.memory_space<vmem>>, vector<1x18x8xf32>,
    %cst_9 = arith.constant 0.000000e+00 : f32
    %6 = vector.broadcast %cst_9 : f32 to vector<18x1x8xf32>
    %c0_10 = arith.constant 0 : index
    %c0_11 = arith.constant 0 : index
    %c0_12 = arith.constant 0 : index
    %7 = vector.load %arg12[%c0_10, %c0_11, %c0_12] : memref<18x18x8xf32, #tpu.memory_space<vmem>>, vector<18x1x8xf32>
    tpu.vector_store %arg12[%c0_10, %c0_11, %c0_12], %6 {strides = array<i32>} : memref<18x18x8xf32, #tpu.memory_space<vmem>>, vector<18x1x8xf32>,
    %cst_13 = arith.constant 0.000000e+00 : f32
    %8 = vector.broadcast %cst_13 : f32 to vector<18x1x8xf32>
    %c0_14 = arith.constant 0 : index
    %c17_15 = arith.constant 17 : index
    %c0_16 = arith.constant 0 : index
    %9 = vector.load %arg12[%c0_14, %c17_15, %c0_16] : memref<18x18x8xf32, #tpu.memory_space<vmem>>, vector<18x1x8xf32>
    tpu.vector_store %arg12[%c0_14, %c17_15, %c0_16], %8 {strides = array<i32>} : memref<18x18x8xf32, #tpu.memory_space<vmem>>, vector<18x1x8xf32>,
    %c0_17 = arith.constant 0 : index
    %c0_18 = arith.constant 0 : index
    %10 = vector.load %arg2[%c0_17, %c0_18] : memref<1x8xf32, #tpu.memory_space<vmem>>, vector<1x8xf32>
    %11 = vector.shape_cast %10 : vector<1x8xf32> to vector<8xf32>
    %12 = vector.shape_cast %11 : vector<8xf32> to vector<1x1x8xf32>
    %13 = vector.broadcast %12 : vector<1x1x8xf32> to vector<16x16x8xf32>
    %14 = arith.mulf %1, %13 : vector<16x16x8xf32>
    %c0_19 = arith.constant 0 : index
    %c0_20 = arith.constant 0 : index
    %15 = vector.load %arg3[%c0_19, %c0_20] : memref<1x8xf32, #tpu.memory_space<vmem>>, vector<1x8xf32>
    %16 = vector.shape_cast %15 : vector<1x8xf32> to vector<8xf32>
    %17 = vector.shape_cast %16 : vector<8xf32> to vector<1x1x8xf32>
    %18 = vector.broadcast %17 : vector<1x1x8xf32> to vector<16x16x8xf32>
    %19 = arith.addf %14, %18 : vector<16x16x8xf32>
    %cst_21 = arith.constant 0.000000e+00 : f32
    %20 = vector.broadcast %cst_21 : f32 to vector<16x16x8xf32>
    %21 = arith.maximumf %19, %20 : vector<16x16x8xf32>
    %c1 = arith.constant 1 : index
    %c1_22 = arith.constant 1 : index
    %c0_23 = arith.constant 0 : index
    %22 = vector.load %arg12[%c1, %c1_22, %c0_23] : memref<18x18x8xf32, #tpu.memory_space<vmem>>, vector<16x16x8xf32>
    tpu.vector_store %arg12[%c1, %c1_22, %c0_23], %21 {strides = array<i32>} : memref<18x18x8xf32, #tpu.memory_space<vmem>>, vector<16x16x8xf32>,
    %c0_24 = arith.constant 0 : index
    %c0_25 = arith.constant 0 : index
    %c0_26 = arith.constant 0 : index
    %23 = vector.load %arg12[%c0_24, %c0_25, %c0_26] : memref<18x18x8xf32, #tpu.memory_space<vmem>>, vector<16x16x8xf32>
    %24 = vector.shape_cast %23 : vector<16x16x8xf32> to vector<256x8xf32>
    %c0_27 = arith.constant 0 : index
    %c0_28 = arith.constant 0 : index
    %25 = vector.load %arg13[%c0_27, %c0_28] : memref<256x72xf32, #tpu.memory_space<vmem>>, vector<256x8xf32>
    tpu.vector_store %arg13[%c0_27, %c0_28], %24 {strides = array<i32>} : memref<256x72xf32, #tpu.memory_space<vmem>>, vector<256x8xf32>,
    %c0_29 = arith.constant 0 : index
    %c1_30 = arith.constant 1 : index
    %c0_31 = arith.constant 0 : index
    %26 = vector.load %arg12[%c0_29, %c1_30, %c0_31] : memref<18x18x8xf32, #tpu.memory_space<vmem>>, vector<16x16x8xf32>
    %27 = vector.shape_cast %26 : vector<16x16x8xf32> to vector<256x8xf32>
    %c0_32 = arith.constant 0 : index
    %c8 = arith.constant 8 : index
    %28 = vector.load %arg13[%c0_32, %c8] : memref<256x72xf32, #tpu.memory_space<vmem>>, vector<256x8xf32>
    tpu.vector_store %arg13[%c0_32, %c8], %27 {strides = array<i32>} : memref<256x72xf32, #tpu.memory_space<vmem>>, vector<256x8xf32>,
    %c0_33 = arith.constant 0 : index
    %c2 = arith.constant 2 : index
    %c0_34 = arith.constant 0 : index
    %29 = vector.load %arg12[%c0_33, %c2, %c0_34] : memref<18x18x8xf32, #tpu.memory_space<vmem>>, vector<16x16x8xf32>
    %30 = vector.shape_cast %29 : vector<16x16x8xf32> to vector<256x8xf32>
    %c0_35 = arith.constant 0 : index
    %c16 = arith.constant 16 : index
    %31 = vector.load %arg13[%c0_35, %c16] : memref<256x72xf32, #tpu.memory_space<vmem>>, vector<256x8xf32>
    tpu.vector_store %arg13[%c0_35, %c16], %30 {strides = array<i32>} : memref<256x72xf32, #tpu.memory_space<vmem>>, vector<256x8xf32>,
    %c1_36 = arith.constant 1 : index
    %c0_37 = arith.constant 0 : index
    %c0_38 = arith.constant 0 : index
    %32 = vector.load %arg12[%c1_36, %c0_37, %c0_38] : memref<18x18x8xf32, #tpu.memory_space<vmem>>, vector<16x16x8xf32>
    %33 = vector.shape_cast %32 : vector<16x16x8xf32> to vector<256x8xf32>
    %c0_39 = arith.constant 0 : index
    %c24 = arith.constant 24 : index
    %34 = vector.load %arg13[%c0_39, %c24] : memref<256x72xf32, #tpu.memory_space<vmem>>, vector<256x8xf32>
    tpu.vector_store %arg13[%c0_39, %c24], %33 {strides = array<i32>} : memref<256x72xf32, #tpu.memory_space<vmem>>, vector<256x8xf32>,
    %c1_40 = arith.constant 1 : index
    %c1_41 = arith.constant 1 : index
    %c0_42 = arith.constant 0 : index
    %35 = vector.load %arg12[%c1_40, %c1_41, %c0_42] : memref<18x18x8xf32, #tpu.memory_space<vmem>>, vector<16x16x8xf32>
    %36 = vector.shape_cast %35 : vector<16x16x8xf32> to vector<256x8xf32>
    %c0_43 = arith.constant 0 : index
    %c32 = arith.constant 32 : index
    %37 = vector.load %arg13[%c0_43, %c32] : memref<256x72xf32, #tpu.memory_space<vmem>>, vector<256x8xf32>
    tpu.vector_store %arg13[%c0_43, %c32], %36 {strides = array<i32>} : memref<256x72xf32, #tpu.memory_space<vmem>>, vector<256x8xf32>,
    %c1_44 = arith.constant 1 : index
    %c2_45 = arith.constant 2 : index
    %c0_46 = arith.constant 0 : index
    %38 = vector.load %arg12[%c1_44, %c2_45, %c0_46] : memref<18x18x8xf32, #tpu.memory_space<vmem>>, vector<16x16x8xf32>
    %39 = vector.shape_cast %38 : vector<16x16x8xf32> to vector<256x8xf32>
    %c0_47 = arith.constant 0 : index
    %c40 = arith.constant 40 : index
    %40 = vector.load %arg13[%c0_47, %c40] : memref<256x72xf32, #tpu.memory_space<vmem>>, vector<256x8xf32>
    tpu.vector_store %arg13[%c0_47, %c40], %39 {strides = array<i32>} : memref<256x72xf32, #tpu.memory_space<vmem>>, vector<256x8xf32>,
    %c2_48 = arith.constant 2 : index
    %c0_49 = arith.constant 0 : index
    %c0_50 = arith.constant 0 : index
    %41 = vector.load %arg12[%c2_48, %c0_49, %c0_50] : memref<18x18x8xf32, #tpu.memory_space<vmem>>, vector<16x16x8xf32>
    %42 = vector.shape_cast %41 : vector<16x16x8xf32> to vector<256x8xf32>
    %c0_51 = arith.constant 0 : index
    %c48 = arith.constant 48 : index
    %43 = vector.load %arg13[%c0_51, %c48] : memref<256x72xf32, #tpu.memory_space<vmem>>, vector<256x8xf32>
    tpu.vector_store %arg13[%c0_51, %c48], %42 {strides = array<i32>} : memref<256x72xf32, #tpu.memory_space<vmem>>, vector<256x8xf32>,
    %c2_52 = arith.constant 2 : index
    %c1_53 = arith.constant 1 : index
    %c0_54 = arith.constant 0 : index
    %44 = vector.load %arg12[%c2_52, %c1_53, %c0_54] : memref<18x18x8xf32, #tpu.memory_space<vmem>>, vector<16x16x8xf32>
    %45 = vector.shape_cast %44 : vector<16x16x8xf32> to vector<256x8xf32>
    %c0_55 = arith.constant 0 : index
    %c56 = arith.constant 56 : index
    %46 = vector.load %arg13[%c0_55, %c56] : memref<256x72xf32, #tpu.memory_space<vmem>>, vector<256x8xf32>
    tpu.vector_store %arg13[%c0_55, %c56], %45 {strides = array<i32>} : memref<256x72xf32, #tpu.memory_space<vmem>>, vector<256x8xf32>,
    %c2_56 = arith.constant 2 : index
    %c2_57 = arith.constant 2 : index
    %c0_58 = arith.constant 0 : index
    %47 = vector.load %arg12[%c2_56, %c2_57, %c0_58] : memref<18x18x8xf32, #tpu.memory_space<vmem>>, vector<16x16x8xf32>
    %48 = vector.shape_cast %47 : vector<16x16x8xf32> to vector<256x8xf32>
    %c0_59 = arith.constant 0 : index
    %c64 = arith.constant 64 : index
    %49 = vector.load %arg13[%c0_59, %c64] : memref<256x72xf32, #tpu.memory_space<vmem>>, vector<256x8xf32>
    tpu.vector_store %arg13[%c0_59, %c64], %48 {strides = array<i32>} : memref<256x72xf32, #tpu.memory_space<vmem>>, vector<256x8xf32>,
    %c0_60 = arith.constant 0 : index
    %c0_61 = arith.constant 0 : index
    %50 = vector.load %arg13[%c0_60, %c0_61] : memref<256x72xf32, #tpu.memory_space<vmem>>, vector<256x72xf32>
    %51 = arith.truncf %50 : vector<256x72xf32> to vector<256x72xbf16>
    %c0_62 = arith.constant 0 : index
    %c0_63 = arith.constant 0 : index
    %52 = vector.load %arg4[%c0_62, %c0_63] : memref<72x8xbf16, #tpu.memory_space<vmem>>, vector<72x8xbf16>
    %cst_64 = arith.constant dense<0.000000e+00> : vector<256x8xf32>
    %53 = tpu.matmul %51, %52, %cst_64 {dimension_numbers = #tpu.dot_dimension_numbers<[1], [0], [0], [1], [0, 0, 1, 1], [], []>} : vector<256x72xbf16>, vector<72x8xbf16>, vector<256x8xf32> -> vector<256x8xf32>
    %c0_65 = arith.constant 0 : index
    %c0_66 = arith.constant 0 : index
    %54 = vector.load %arg5[%c0_65, %c0_66] : memref<1x8xf32, #tpu.memory_space<vmem>>, vector<1x8xf32>
    %55 = vector.shape_cast %54 : vector<1x8xf32> to vector<8xf32>
    %56 = vector.shape_cast %55 : vector<8xf32> to vector<1x8xf32>
    %57 = vector.broadcast %56 : vector<1x8xf32> to vector<256x8xf32>
    %58 = arith.mulf %53, %57 : vector<256x8xf32>
    %c0_67 = arith.constant 0 : index
    %c0_68 = arith.constant 0 : index
    %59 = vector.load %arg6[%c0_67, %c0_68] : memref<1x8xf32, #tpu.memory_space<vmem>>, vector<1x8xf32>
    %60 = vector.shape_cast %59 : vector<1x8xf32> to vector<8xf32>
    %61 = vector.shape_cast %60 : vector<8xf32> to vector<1x8xf32>
    %62 = vector.broadcast %61 : vector<1x8xf32> to vector<256x8xf32>
    %63 = arith.addf %58, %62 : vector<256x8xf32>
    %cst_69 = arith.constant 0.000000e+00 : f32
    %64 = vector.broadcast %cst_69 : f32 to vector<256x8xf32>
    %65 = arith.maximumf %63, %64 : vector<256x8xf32>
    %66 = vector.shape_cast %65 : vector<256x8xf32> to vector<16x16x8xf32>
    %c1_70 = arith.constant 1 : index
    %c1_71 = arith.constant 1 : index
    %c0_72 = arith.constant 0 : index
    %67 = vector.load %arg12[%c1_70, %c1_71, %c0_72] : memref<18x18x8xf32, #tpu.memory_space<vmem>>, vector<16x16x8xf32>
    tpu.vector_store %arg12[%c1_70, %c1_71, %c0_72], %66 {strides = array<i32>} : memref<18x18x8xf32, #tpu.memory_space<vmem>>, vector<16x16x8xf32>,
    %c0_73 = arith.constant 0 : index
    %c0_74 = arith.constant 0 : index
    %c0_75 = arith.constant 0 : index
    %68 = vector.load %arg12[%c0_73, %c0_74, %c0_75] : memref<18x18x8xf32, #tpu.memory_space<vmem>>, vector<16x16x8xf32>
    %69 = vector.shape_cast %68 : vector<16x16x8xf32> to vector<256x8xf32>
    %c0_76 = arith.constant 0 : index
    %c0_77 = arith.constant 0 : index
    %70 = vector.load %arg13[%c0_76, %c0_77] : memref<256x72xf32, #tpu.memory_space<vmem>>, vector<256x8xf32>
    tpu.vector_store %arg13[%c0_76, %c0_77], %69 {strides = array<i32>} : memref<256x72xf32, #tpu.memory_space<vmem>>, vector<256x8xf32>,
    %c0_78 = arith.constant 0 : index
    %c1_79 = arith.constant 1 : index
    %c0_80 = arith.constant 0 : index
    %71 = vector.load %arg12[%c0_78, %c1_79, %c0_80] : memref<18x18x8xf32, #tpu.memory_space<vmem>>, vector<16x16x8xf32>
    %72 = vector.shape_cast %71 : vector<16x16x8xf32> to vector<256x8xf32>
    %c0_81 = arith.constant 0 : index
    %c8_82 = arith.constant 8 : index
    %73 = vector.load %arg13[%c0_81, %c8_82] : memref<256x72xf32, #tpu.memory_space<vmem>>, vector<256x8xf32>
    tpu.vector_store %arg13[%c0_81, %c8_82], %72 {strides = array<i32>} : memref<256x72xf32, #tpu.memory_space<vmem>>, vector<256x8xf32>,
    %c0_83 = arith.constant 0 : index
    %c2_84 = arith.constant 2 : index
    %c0_85 = arith.constant 0 : index
    %74 = vector.load %arg12[%c0_83, %c2_84, %c0_85] : memref<18x18x8xf32, #tpu.memory_space<vmem>>, vector<16x16x8xf32>
    %75 = vector.shape_cast %74 : vector<16x16x8xf32> to vector<256x8xf32>
    %c0_86 = arith.constant 0 : index
    %c16_87 = arith.constant 16 : index
    %76 = vector.load %arg13[%c0_86, %c16_87] : memref<256x72xf32, #tpu.memory_space<vmem>>, vector<256x8xf32>
    tpu.vector_store %arg13[%c0_86, %c16_87], %75 {strides = array<i32>} : memref<256x72xf32, #tpu.memory_space<vmem>>, vector<256x8xf32>,
    %c1_88 = arith.constant 1 : index
    %c0_89 = arith.constant 0 : index
    %c0_90 = arith.constant 0 : index
    %77 = vector.load %arg12[%c1_88, %c0_89, %c0_90] : memref<18x18x8xf32, #tpu.memory_space<vmem>>, vector<16x16x8xf32>
    %78 = vector.shape_cast %77 : vector<16x16x8xf32> to vector<256x8xf32>
    %c0_91 = arith.constant 0 : index
    %c24_92 = arith.constant 24 : index
    %79 = vector.load %arg13[%c0_91, %c24_92] : memref<256x72xf32, #tpu.memory_space<vmem>>, vector<256x8xf32>
    tpu.vector_store %arg13[%c0_91, %c24_92], %78 {strides = array<i32>} : memref<256x72xf32, #tpu.memory_space<vmem>>, vector<256x8xf32>,
    %c1_93 = arith.constant 1 : index
    %c1_94 = arith.constant 1 : index
    %c0_95 = arith.constant 0 : index
    %80 = vector.load %arg12[%c1_93, %c1_94, %c0_95] : memref<18x18x8xf32, #tpu.memory_space<vmem>>, vector<16x16x8xf32>
    %81 = vector.shape_cast %80 : vector<16x16x8xf32> to vector<256x8xf32>
    %c0_96 = arith.constant 0 : index
    %c32_97 = arith.constant 32 : index
    %82 = vector.load %arg13[%c0_96, %c32_97] : memref<256x72xf32, #tpu.memory_space<vmem>>, vector<256x8xf32>
    tpu.vector_store %arg13[%c0_96, %c32_97], %81 {strides = array<i32>} : memref<256x72xf32, #tpu.memory_space<vmem>>, vector<256x8xf32>,
    %c1_98 = arith.constant 1 : index
    %c2_99 = arith.constant 2 : index
    %c0_100 = arith.constant 0 : index
    %83 = vector.load %arg12[%c1_98, %c2_99, %c0_100] : memref<18x18x8xf32, #tpu.memory_space<vmem>>, vector<16x16x8xf32>
    %84 = vector.shape_cast %83 : vector<16x16x8xf32> to vector<256x8xf32>
    %c0_101 = arith.constant 0 : index
    %c40_102 = arith.constant 40 : index
    %85 = vector.load %arg13[%c0_101, %c40_102] : memref<256x72xf32, #tpu.memory_space<vmem>>, vector<256x8xf32>
    tpu.vector_store %arg13[%c0_101, %c40_102], %84 {strides = array<i32>} : memref<256x72xf32, #tpu.memory_space<vmem>>, vector<256x8xf32>,
    %c2_103 = arith.constant 2 : index
    %c0_104 = arith.constant 0 : index
    %c0_105 = arith.constant 0 : index
    %86 = vector.load %arg12[%c2_103, %c0_104, %c0_105] : memref<18x18x8xf32, #tpu.memory_space<vmem>>, vector<16x16x8xf32>
    %87 = vector.shape_cast %86 : vector<16x16x8xf32> to vector<256x8xf32>
    %c0_106 = arith.constant 0 : index
    %c48_107 = arith.constant 48 : index
    %88 = vector.load %arg13[%c0_106, %c48_107] : memref<256x72xf32, #tpu.memory_space<vmem>>, vector<256x8xf32>
    tpu.vector_store %arg13[%c0_106, %c48_107], %87 {strides = array<i32>} : memref<256x72xf32, #tpu.memory_space<vmem>>, vector<256x8xf32>,
    %c2_108 = arith.constant 2 : index
    %c1_109 = arith.constant 1 : index
    %c0_110 = arith.constant 0 : index
    %89 = vector.load %arg12[%c2_108, %c1_109, %c0_110] : memref<18x18x8xf32, #tpu.memory_space<vmem>>, vector<16x16x8xf32>
    %90 = vector.shape_cast %89 : vector<16x16x8xf32> to vector<256x8xf32>
    %c0_111 = arith.constant 0 : index
    %c56_112 = arith.constant 56 : index
    %91 = vector.load %arg13[%c0_111, %c56_112] : memref<256x72xf32, #tpu.memory_space<vmem>>, vector<256x8xf32>
    tpu.vector_store %arg13[%c0_111, %c56_112], %90 {strides = array<i32>} : memref<256x72xf32, #tpu.memory_space<vmem>>, vector<256x8xf32>,
    %c2_113 = arith.constant 2 : index
    %c2_114 = arith.constant 2 : index
    %c0_115 = arith.constant 0 : index
    %92 = vector.load %arg12[%c2_113, %c2_114, %c0_115] : memref<18x18x8xf32, #tpu.memory_space<vmem>>, vector<16x16x8xf32>
    %93 = vector.shape_cast %92 : vector<16x16x8xf32> to vector<256x8xf32>
    %c0_116 = arith.constant 0 : index
    %c64_117 = arith.constant 64 : index
    %94 = vector.load %arg13[%c0_116, %c64_117] : memref<256x72xf32, #tpu.memory_space<vmem>>, vector<256x8xf32>
    tpu.vector_store %arg13[%c0_116, %c64_117], %93 {strides = array<i32>} : memref<256x72xf32, #tpu.memory_space<vmem>>, vector<256x8xf32>,
    %c0_118 = arith.constant 0 : index
    %c0_119 = arith.constant 0 : index
    %95 = vector.load %arg13[%c0_118, %c0_119] : memref<256x72xf32, #tpu.memory_space<vmem>>, vector<256x72xf32>
    %96 = arith.truncf %95 : vector<256x72xf32> to vector<256x72xbf16>
    %c0_120 = arith.constant 0 : index
    %c0_121 = arith.constant 0 : index
    %97 = vector.load %arg7[%c0_120, %c0_121] : memref<72x8xbf16, #tpu.memory_space<vmem>>, vector<72x8xbf16>
    %cst_122 = arith.constant dense<0.000000e+00> : vector<256x8xf32>
    %98 = tpu.matmul %96, %97, %cst_122 {dimension_numbers = #tpu.dot_dimension_numbers<[1], [0], [0], [1], [0, 0, 1, 1], [], []>} : vector<256x72xbf16>, vector<72x8xbf16>, vector<256x8xf32> -> vector<256x8xf32>
    %99 = vector.shape_cast %98 : vector<256x8xf32> to vector<16x16x8xf32>
    %cst_123 = arith.constant dense<0xFF800000> : vector<16x16xf32>
    %100 = vector.multi_reduction <maximumf>, %99, %cst_123 [2] : vector<16x16x8xf32> to vector<16x16xf32>
    %cst_124 = arith.constant dense<0.000000e+00> : vector<16x16xf32>
    %101 = vector.multi_reduction <add>, %99, %cst_124 [2] : vector<16x16x8xf32> to vector<16x16xf32>
    %cst_125 = arith.constant 8.000000e+00 : f32
    %102 = vector.broadcast %cst_125 : f32 to vector<16x16xf32>
    %103 = arith.divf %101, %102 : vector<16x16xf32>
    %cst_126 = arith.constant 0.000000e+00 : f32
    %104 = vector.broadcast %cst_126 : f32 to vector<2x3x22xf32>
    %c0_127 = arith.constant 0 : index
    %c0_128 = arith.constant 0 : index
    %c0_129 = arith.constant 0 : index
    %105 = vector.load %arg14[%c0_127, %c0_128, %c0_129] : memref<2x22x22xf32, #tpu.memory_space<vmem>>, vector<2x3x22xf32>
    tpu.vector_store %arg14[%c0_127, %c0_128, %c0_129], %104 {strides = array<i32>} : memref<2x22x22xf32, #tpu.memory_space<vmem>>, vector<2x3x22xf32>,
    %cst_130 = arith.constant 0.000000e+00 : f32
    %106 = vector.broadcast %cst_130 : f32 to vector<2x3x22xf32>
    %c0_131 = arith.constant 0 : index
    %c19 = arith.constant 19 : index
    %c0_132 = arith.constant 0 : index
    %107 = vector.load %arg14[%c0_131, %c19, %c0_132] : memref<2x22x22xf32, #tpu.memory_space<vmem>>, vector<2x3x22xf32>
    tpu.vector_store %arg14[%c0_131, %c19, %c0_132], %106 {strides = array<i32>} : memref<2x22x22xf32, #tpu.memory_space<vmem>>, vector<2x3x22xf32>,
    %cst_133 = arith.constant 0.000000e+00 : f32
    %108 = vector.broadcast %cst_133 : f32 to vector<2x22x3xf32>
    %c0_134 = arith.constant 0 : index
    %c0_135 = arith.constant 0 : index
    %c0_136 = arith.constant 0 : index
    %109 = vector.load %arg14[%c0_134, %c0_135, %c0_136] : memref<2x22x22xf32, #tpu.memory_space<vmem>>, vector<2x22x3xf32>
    tpu.vector_store %arg14[%c0_134, %c0_135, %c0_136], %108 {strides = array<i32>} : memref<2x22x22xf32, #tpu.memory_space<vmem>>, vector<2x22x3xf32>,
    %cst_137 = arith.constant 0.000000e+00 : f32
    %110 = vector.broadcast %cst_137 : f32 to vector<2x22x3xf32>
    %c0_138 = arith.constant 0 : index
    %c0_139 = arith.constant 0 : index
    %c19_140 = arith.constant 19 : index
    %111 = vector.load %arg14[%c0_138, %c0_139, %c19_140] : memref<2x22x22xf32, #tpu.memory_space<vmem>>, vector<2x22x3xf32>
    tpu.vector_store %arg14[%c0_138, %c0_139, %c19_140], %110 {strides = array<i32>} : memref<2x22x22xf32, #tpu.memory_space<vmem>>, vector<2x22x3xf32>,
    %c0_141 = arith.constant 0 : index
    %c3 = arith.constant 3 : index
    %c3_142 = arith.constant 3 : index
    %112 = vector.load %arg14[%c0_141, %c3, %c3_142] : memref<2x22x22xf32, #tpu.memory_space<vmem>>, vector<1x16x16xf32>
    %113 = vector.shape_cast %112 : vector<1x16x16xf32> to vector<16x16xf32>
    %114 = vector.shape_cast %100 : vector<16x16xf32> to vector<1x16x16xf32>
    tpu.vector_store %arg14[%c0_141, %c3, %c3_142], %114 {strides = array<i32>} : memref<2x22x22xf32, #tpu.memory_space<vmem>>, vector<1x16x16xf32>,
    %c1_143 = arith.constant 1 : index
    %c3_144 = arith.constant 3 : index
    %c3_145 = arith.constant 3 : index
    %115 = vector.load %arg14[%c1_143, %c3_144, %c3_145] : memref<2x22x22xf32, #tpu.memory_space<vmem>>, vector<1x16x16xf32>
    %116 = vector.shape_cast %115 : vector<1x16x16xf32> to vector<16x16xf32>
    %117 = vector.shape_cast %103 : vector<16x16xf32> to vector<1x16x16xf32>
    tpu.vector_store %arg14[%c1_143, %c3_144, %c3_145], %117 {strides = array<i32>} : memref<2x22x22xf32, #tpu.memory_space<vmem>>, vector<1x16x16xf32>,
    %c0_146 = arith.constant 0 : index
    %c0_147 = arith.constant 0 : index
    %c0_148 = arith.constant 0 : index
    %118 = vector.load %arg14[%c0_146, %c0_147, %c0_148] : memref<2x22x22xf32, #tpu.memory_space<vmem>>, vector<1x16x22xf32>
    %119 = vector.shape_cast %118 : vector<1x16x22xf32> to vector<16x22xf32>
    %c0_149 = arith.constant 0 : index
    %c0_150 = arith.constant 0 : index
    %120 = vector.load %arg17[%c0_149, %c0_150] : memref<16x309xf32, #tpu.memory_space<vmem>>, vector<16x22xf32>
    tpu.vector_store %arg17[%c0_149, %c0_150], %119 {strides = array<i32>} : memref<16x309xf32, #tpu.memory_space<vmem>>, vector<16x22xf32>,
    %c0_151 = arith.constant 0 : index
    %c1_152 = arith.constant 1 : index
    %c0_153 = arith.constant 0 : index
    %121 = vector.load %arg14[%c0_151, %c1_152, %c0_153] : memref<2x22x22xf32, #tpu.memory_space<vmem>>, vector<1x16x22xf32>
    %122 = vector.shape_cast %121 : vector<1x16x22xf32> to vector<16x22xf32>
    %c0_154 = arith.constant 0 : index
    %c22 = arith.constant 22 : index
    %123 = vector.load %arg17[%c0_154, %c22] : memref<16x309xf32, #tpu.memory_space<vmem>>, vector<16x22xf32>
    tpu.vector_store %arg17[%c0_154, %c22], %122 {strides = array<i32>} : memref<16x309xf32, #tpu.memory_space<vmem>>, vector<16x22xf32>,
    %c0_155 = arith.constant 0 : index
    %c2_156 = arith.constant 2 : index
    %c0_157 = arith.constant 0 : index
    %124 = vector.load %arg14[%c0_155, %c2_156, %c0_157] : memref<2x22x22xf32, #tpu.memory_space<vmem>>, vector<1x16x22xf32>
    %125 = vector.shape_cast %124 : vector<1x16x22xf32> to vector<16x22xf32>
    %c0_158 = arith.constant 0 : index
    %c44 = arith.constant 44 : index
    %126 = vector.load %arg17[%c0_158, %c44] : memref<16x309xf32, #tpu.memory_space<vmem>>, vector<16x22xf32>
    tpu.vector_store %arg17[%c0_158, %c44], %125 {strides = array<i32>} : memref<16x309xf32, #tpu.memory_space<vmem>>, vector<16x22xf32>,
    %c0_159 = arith.constant 0 : index
    %c3_160 = arith.constant 3 : index
    %c0_161 = arith.constant 0 : index
    %127 = vector.load %arg14[%c0_159, %c3_160, %c0_161] : memref<2x22x22xf32, #tpu.memory_space<vmem>>, vector<1x16x22xf32>
    %128 = vector.shape_cast %127 : vector<1x16x22xf32> to vector<16x22xf32>
    %c0_162 = arith.constant 0 : index
    %c66 = arith.constant 66 : index
    %129 = vector.load %arg17[%c0_162, %c66] : memref<16x309xf32, #tpu.memory_space<vmem>>, vector<16x22xf32>
    tpu.vector_store %arg17[%c0_162, %c66], %128 {strides = array<i32>} : memref<16x309xf32, #tpu.memory_space<vmem>>, vector<16x22xf32>,
    %c0_163 = arith.constant 0 : index
    %c4 = arith.constant 4 : index
    %c0_164 = arith.constant 0 : index
    %130 = vector.load %arg14[%c0_163, %c4, %c0_164] : memref<2x22x22xf32, #tpu.memory_space<vmem>>, vector<1x16x22xf32>
    %131 = vector.shape_cast %130 : vector<1x16x22xf32> to vector<16x22xf32>
    %c0_165 = arith.constant 0 : index
    %c88 = arith.constant 88 : index
    %132 = vector.load %arg17[%c0_165, %c88] : memref<16x309xf32, #tpu.memory_space<vmem>>, vector<16x22xf32>
    tpu.vector_store %arg17[%c0_165, %c88], %131 {strides = array<i32>} : memref<16x309xf32, #tpu.memory_space<vmem>>, vector<16x22xf32>,
    %c0_166 = arith.constant 0 : index
    %c5 = arith.constant 5 : index
    %c0_167 = arith.constant 0 : index
    %133 = vector.load %arg14[%c0_166, %c5, %c0_167] : memref<2x22x22xf32, #tpu.memory_space<vmem>>, vector<1x16x22xf32>
    %134 = vector.shape_cast %133 : vector<1x16x22xf32> to vector<16x22xf32>
    %c0_168 = arith.constant 0 : index
    %c110 = arith.constant 110 : index
    %135 = vector.load %arg17[%c0_168, %c110] : memref<16x309xf32, #tpu.memory_space<vmem>>, vector<16x22xf32>
    tpu.vector_store %arg17[%c0_168, %c110], %134 {strides = array<i32>} : memref<16x309xf32, #tpu.memory_space<vmem>>, vector<16x22xf32>,
    %c0_169 = arith.constant 0 : index
    %c6 = arith.constant 6 : index
    %c0_170 = arith.constant 0 : index
    %136 = vector.load %arg14[%c0_169, %c6, %c0_170] : memref<2x22x22xf32, #tpu.memory_space<vmem>>, vector<1x16x22xf32>
    %137 = vector.shape_cast %136 : vector<1x16x22xf32> to vector<16x22xf32>
    %c0_171 = arith.constant 0 : index
    %c132 = arith.constant 132 : index
    %138 = vector.load %arg17[%c0_171, %c132] : memref<16x309xf32, #tpu.memory_space<vmem>>, vector<16x22xf32>
    tpu.vector_store %arg17[%c0_171, %c132], %137 {strides = array<i32>} : memref<16x309xf32, #tpu.memory_space<vmem>>, vector<16x22xf32>,
    %c1_172 = arith.constant 1 : index
    %c0_173 = arith.constant 0 : index
    %c0_174 = arith.constant 0 : index
    %139 = vector.load %arg14[%c1_172, %c0_173, %c0_174] : memref<2x22x22xf32, #tpu.memory_space<vmem>>, vector<1x16x22xf32>
    %140 = vector.shape_cast %139 : vector<1x16x22xf32> to vector<16x22xf32>
    %c0_175 = arith.constant 0 : index
    %c154 = arith.constant 154 : index
    %141 = vector.load %arg17[%c0_175, %c154] : memref<16x309xf32, #tpu.memory_space<vmem>>, vector<16x22xf32>
    tpu.vector_store %arg17[%c0_175, %c154], %140 {strides = array<i32>} : memref<16x309xf32, #tpu.memory_space<vmem>>, vector<16x22xf32>,
    %c1_176 = arith.constant 1 : index
    %c1_177 = arith.constant 1 : index
    %c0_178 = arith.constant 0 : index
    %142 = vector.load %arg14[%c1_176, %c1_177, %c0_178] : memref<2x22x22xf32, #tpu.memory_space<vmem>>, vector<1x16x22xf32>
    %143 = vector.shape_cast %142 : vector<1x16x22xf32> to vector<16x22xf32>
    %c0_179 = arith.constant 0 : index
    %c176 = arith.constant 176 : index
    %144 = vector.load %arg17[%c0_179, %c176] : memref<16x309xf32, #tpu.memory_space<vmem>>, vector<16x22xf32>
    tpu.vector_store %arg17[%c0_179, %c176], %143 {strides = array<i32>} : memref<16x309xf32, #tpu.memory_space<vmem>>, vector<16x22xf32>,
    %c1_180 = arith.constant 1 : index
    %c2_181 = arith.constant 2 : index
    %c0_182 = arith.constant 0 : index
    %145 = vector.load %arg14[%c1_180, %c2_181, %c0_182] : memref<2x22x22xf32, #tpu.memory_space<vmem>>, vector<1x16x22xf32>
    %146 = vector.shape_cast %145 : vector<1x16x22xf32> to vector<16x22xf32>
    %c0_183 = arith.constant 0 : index
    %c198 = arith.constant 198 : index
    %147 = vector.load %arg17[%c0_183, %c198] : memref<16x309xf32, #tpu.memory_space<vmem>>, vector<16x22xf32>
    tpu.vector_store %arg17[%c0_183, %c198], %146 {strides = array<i32>} : memref<16x309xf32, #tpu.memory_space<vmem>>, vector<16x22xf32>,
    %c1_184 = arith.constant 1 : index
    %c3_185 = arith.constant 3 : index
    %c0_186 = arith.constant 0 : index
    %148 = vector.load %arg14[%c1_184, %c3_185, %c0_186] : memref<2x22x22xf32, #tpu.memory_space<vmem>>, vector<1x16x22xf32>
    %149 = vector.shape_cast %148 : vector<1x16x22xf32> to vector<16x22xf32>
    %c0_187 = arith.constant 0 : index
    %c220 = arith.constant 220 : index
    %150 = vector.load %arg17[%c0_187, %c220] : memref<16x309xf32, #tpu.memory_space<vmem>>, vector<16x22xf32>
    tpu.vector_store %arg17[%c0_187, %c220], %149 {strides = array<i32>} : memref<16x309xf32, #tpu.memory_space<vmem>>, vector<16x22xf32>,
    %c1_188 = arith.constant 1 : index
    %c4_189 = arith.constant 4 : index
    %c0_190 = arith.constant 0 : index
    %151 = vector.load %arg14[%c1_188, %c4_189, %c0_190] : memref<2x22x22xf32, #tpu.memory_space<vmem>>, vector<1x16x22xf32>
    %152 = vector.shape_cast %151 : vector<1x16x22xf32> to vector<16x22xf32>
    %c0_191 = arith.constant 0 : index
    %c242 = arith.constant 242 : index
    %153 = vector.load %arg17[%c0_191, %c242] : memref<16x309xf32, #tpu.memory_space<vmem>>, vector<16x22xf32>
    tpu.vector_store %arg17[%c0_191, %c242], %152 {strides = array<i32>} : memref<16x309xf32, #tpu.memory_space<vmem>>, vector<16x22xf32>,
    %c1_192 = arith.constant 1 : index
    %c5_193 = arith.constant 5 : index
    %c0_194 = arith.constant 0 : index
    %154 = vector.load %arg14[%c1_192, %c5_193, %c0_194] : memref<2x22x22xf32, #tpu.memory_space<vmem>>, vector<1x16x22xf32>
    %155 = vector.shape_cast %154 : vector<1x16x22xf32> to vector<16x22xf32>
    %c0_195 = arith.constant 0 : index
    %c264 = arith.constant 264 : index
    %156 = vector.load %arg17[%c0_195, %c264] : memref<16x309xf32, #tpu.memory_space<vmem>>, vector<16x22xf32>
    tpu.vector_store %arg17[%c0_195, %c264], %155 {strides = array<i32>} : memref<16x309xf32, #tpu.memory_space<vmem>>, vector<16x22xf32>,
    %c1_196 = arith.constant 1 : index
    %c6_197 = arith.constant 6 : index
    %c0_198 = arith.constant 0 : index
    %157 = vector.load %arg14[%c1_196, %c6_197, %c0_198] : memref<2x22x22xf32, #tpu.memory_space<vmem>>, vector<1x16x22xf32>
    %158 = vector.shape_cast %157 : vector<1x16x22xf32> to vector<16x22xf32>
    %c0_199 = arith.constant 0 : index
    %c286 = arith.constant 286 : index
    %159 = vector.load %arg17[%c0_199, %c286] : memref<16x309xf32, #tpu.memory_space<vmem>>, vector<16x22xf32>
    tpu.vector_store %arg17[%c0_199, %c286], %158 {strides = array<i32>} : memref<16x309xf32, #tpu.memory_space<vmem>>, vector<16x22xf32>,
    %cst_200 = arith.constant 1.000000e+00 : f32
    %160 = vector.broadcast %cst_200 : f32 to vector<16x1xf32>
    %c0_201 = arith.constant 0 : index
    %c308 = arith.constant 308 : index
    %161 = vector.load %arg17[%c0_201, %c308] : memref<16x309xf32, #tpu.memory_space<vmem>>, vector<16x1xf32>
    tpu.vector_store %arg17[%c0_201, %c308], %160 {strides = array<i32>} : memref<16x309xf32, #tpu.memory_space<vmem>>, vector<16x1xf32>,
    %c0_202 = arith.constant 0 : index
    %c0_203 = arith.constant 0 : index
    %162 = vector.load %arg17[%c0_202, %c0_203] : memref<16x309xf32, #tpu.memory_space<vmem>>, vector<16x309xf32>
    %c0_204 = arith.constant 0 : index
    %c0_205 = arith.constant 0 : index
    %163 = vector.load %arg8[%c0_204, %c0_205] : memref<309x16xf32, #tpu.memory_space<vmem>>, vector<309x16xf32>
    %cst_206 = arith.constant dense<0.000000e+00> : vector<16x16xf32>
    %164 = tpu.matmul %162, %163, %cst_206 {dimension_numbers = #tpu.dot_dimension_numbers<[1], [0], [0], [1], [0, 0, 1, 1], [], []>} : vector<16x309xf32>, vector<309x16xf32>, vector<16x16xf32> -> vector<16x16xf32>
    %cst_207 = arith.constant 0.000000e+00 : f32
    %165 = vector.broadcast %cst_207 : f32 to vector<16x16xf32>
    %166 = arith.subf %165, %164 : vector<16x16xf32>
    %167 = math.exp %166 : vector<16x16xf32>
    %cst_208 = arith.constant 1.000000e+00 : f32
    %168 = vector.broadcast %cst_208 : f32 to vector<16x16xf32>
    %169 = arith.addf %168, %167 : vector<16x16xf32>
    %cst_209 = arith.constant 1.000000e+00 : f32
    %170 = vector.broadcast %cst_209 : f32 to vector<16x16xf32>
    %171 = arith.divf %170, %169 : vector<16x16xf32>
    %cst_210 = arith.constant dense<0xFF800000> : vector<16x8xf32>
    %172 = vector.multi_reduction <maximumf>, %99, %cst_210 [0] : vector<16x16x8xf32> to vector<16x8xf32>
    %cst_211 = arith.constant dense<0.000000e+00> : vector<16x8xf32>
    %173 = vector.multi_reduction <add>, %99, %cst_211 [0] : vector<16x16x8xf32> to vector<16x8xf32>
    %cst_212 = arith.constant 1.600000e+01 : f32
    %174 = vector.broadcast %cst_212 : f32 to vector<16x8xf32>
    %175 = arith.divf %173, %174 : vector<16x8xf32>
    %cst_213 = arith.constant 0.000000e+00 : f32
    %176 = vector.broadcast %cst_213 : f32 to vector<2x3x14xf32>
    %c0_214 = arith.constant 0 : index
    %c0_215 = arith.constant 0 : index
    %c0_216 = arith.constant 0 : index
    %177 = vector.load %arg15[%c0_214, %c0_215, %c0_216] : memref<2x22x14xf32, #tpu.memory_space<vmem>>, vector<2x3x14xf32>
    tpu.vector_store %arg15[%c0_214, %c0_215, %c0_216], %176 {strides = array<i32>} : memref<2x22x14xf32, #tpu.memory_space<vmem>>, vector<2x3x14xf32>,
    %cst_217 = arith.constant 0.000000e+00 : f32
    %178 = vector.broadcast %cst_217 : f32 to vector<2x3x14xf32>
    %c0_218 = arith.constant 0 : index
    %c19_219 = arith.constant 19 : index
    %c0_220 = arith.constant 0 : index
    %179 = vector.load %arg15[%c0_218, %c19_219, %c0_220] : memref<2x22x14xf32, #tpu.memory_space<vmem>>, vector<2x3x14xf32>
    tpu.vector_store %arg15[%c0_218, %c19_219, %c0_220], %178 {strides = array<i32>} : memref<2x22x14xf32, #tpu.memory_space<vmem>>, vector<2x3x14xf32>,
    %cst_221 = arith.constant 0.000000e+00 : f32
    %180 = vector.broadcast %cst_221 : f32 to vector<2x22x3xf32>
    %c0_222 = arith.constant 0 : index
    %c0_223 = arith.constant 0 : index
    %c0_224 = arith.constant 0 : index
    %181 = vector.load %arg15[%c0_222, %c0_223, %c0_224] : memref<2x22x14xf32, #tpu.memory_space<vmem>>, vector<2x22x3xf32>
    tpu.vector_store %arg15[%c0_222, %c0_223, %c0_224], %180 {strides = array<i32>} : memref<2x22x14xf32, #tpu.memory_space<vmem>>, vector<2x22x3xf32>,
    %cst_225 = arith.constant 0.000000e+00 : f32
    %182 = vector.broadcast %cst_225 : f32 to vector<2x22x3xf32>
    %c0_226 = arith.constant 0 : index
    %c0_227 = arith.constant 0 : index
    %c11 = arith.constant 11 : index
    %183 = vector.load %arg15[%c0_226, %c0_227, %c11] : memref<2x22x14xf32, #tpu.memory_space<vmem>>, vector<2x22x3xf32>
    tpu.vector_store %arg15[%c0_226, %c0_227, %c11], %182 {strides = array<i32>} : memref<2x22x14xf32, #tpu.memory_space<vmem>>, vector<2x22x3xf32>,
    %c0_228 = arith.constant 0 : index
    %c3_229 = arith.constant 3 : index
    %c3_230 = arith.constant 3 : index
    %184 = vector.load %arg15[%c0_228, %c3_229, %c3_230] : memref<2x22x14xf32, #tpu.memory_space<vmem>>, vector<1x16x8xf32>
    %185 = vector.shape_cast %184 : vector<1x16x8xf32> to vector<16x8xf32>
    %186 = vector.shape_cast %172 : vector<16x8xf32> to vector<1x16x8xf32>
    tpu.vector_store %arg15[%c0_228, %c3_229, %c3_230], %186 {strides = array<i32>} : memref<2x22x14xf32, #tpu.memory_space<vmem>>, vector<1x16x8xf32>,
    %c1_231 = arith.constant 1 : index
    %c3_232 = arith.constant 3 : index
    %c3_233 = arith.constant 3 : index
    %187 = vector.load %arg15[%c1_231, %c3_232, %c3_233] : memref<2x22x14xf32, #tpu.memory_space<vmem>>, vector<1x16x8xf32>
    %188 = vector.shape_cast %187 : vector<1x16x8xf32> to vector<16x8xf32>
    %189 = vector.shape_cast %175 : vector<16x8xf32> to vector<1x16x8xf32>
    tpu.vector_store %arg15[%c1_231, %c3_232, %c3_233], %189 {strides = array<i32>} : memref<2x22x14xf32, #tpu.memory_space<vmem>>, vector<1x16x8xf32>,
    %c0_234 = arith.constant 0 : index
    %c0_235 = arith.constant 0 : index
    %c0_236 = arith.constant 0 : index
    %190 = vector.load %arg15[%c0_234, %c0_235, %c0_236] : memref<2x22x14xf32, #tpu.memory_space<vmem>>, vector<1x16x14xf32>
    %191 = vector.shape_cast %190 : vector<1x16x14xf32> to vector<16x14xf32>
    %c0_237 = arith.constant 0 : index
    %c0_238 = arith.constant 0 : index
    %192 = vector.load %arg18[%c0_237, %c0_238] : memref<16x197xf32, #tpu.memory_space<vmem>>, vector<16x14xf32>
    tpu.vector_store %arg18[%c0_237, %c0_238], %191 {strides = array<i32>} : memref<16x197xf32, #tpu.memory_space<vmem>>, vector<16x14xf32>,
    %c0_239 = arith.constant 0 : index
    %c1_240 = arith.constant 1 : index
    %c0_241 = arith.constant 0 : index
    %193 = vector.load %arg15[%c0_239, %c1_240, %c0_241] : memref<2x22x14xf32, #tpu.memory_space<vmem>>, vector<1x16x14xf32>
    %194 = vector.shape_cast %193 : vector<1x16x14xf32> to vector<16x14xf32>
    %c0_242 = arith.constant 0 : index
    %c14 = arith.constant 14 : index
    %195 = vector.load %arg18[%c0_242, %c14] : memref<16x197xf32, #tpu.memory_space<vmem>>, vector<16x14xf32>
    tpu.vector_store %arg18[%c0_242, %c14], %194 {strides = array<i32>} : memref<16x197xf32, #tpu.memory_space<vmem>>, vector<16x14xf32>,
    %c0_243 = arith.constant 0 : index
    %c2_244 = arith.constant 2 : index
    %c0_245 = arith.constant 0 : index
    %196 = vector.load %arg15[%c0_243, %c2_244, %c0_245] : memref<2x22x14xf32, #tpu.memory_space<vmem>>, vector<1x16x14xf32>
    %197 = vector.shape_cast %196 : vector<1x16x14xf32> to vector<16x14xf32>
    %c0_246 = arith.constant 0 : index
    %c28 = arith.constant 28 : index
    %198 = vector.load %arg18[%c0_246, %c28] : memref<16x197xf32, #tpu.memory_space<vmem>>, vector<16x14xf32>
    tpu.vector_store %arg18[%c0_246, %c28], %197 {strides = array<i32>} : memref<16x197xf32, #tpu.memory_space<vmem>>, vector<16x14xf32>,
    %c0_247 = arith.constant 0 : index
    %c3_248 = arith.constant 3 : index
    %c0_249 = arith.constant 0 : index
    %199 = vector.load %arg15[%c0_247, %c3_248, %c0_249] : memref<2x22x14xf32, #tpu.memory_space<vmem>>, vector<1x16x14xf32>
    %200 = vector.shape_cast %199 : vector<1x16x14xf32> to vector<16x14xf32>
    %c0_250 = arith.constant 0 : index
    %c42 = arith.constant 42 : index
    %201 = vector.load %arg18[%c0_250, %c42] : memref<16x197xf32, #tpu.memory_space<vmem>>, vector<16x14xf32>
    tpu.vector_store %arg18[%c0_250, %c42], %200 {strides = array<i32>} : memref<16x197xf32, #tpu.memory_space<vmem>>, vector<16x14xf32>,
    %c0_251 = arith.constant 0 : index
    %c4_252 = arith.constant 4 : index
    %c0_253 = arith.constant 0 : index
    %202 = vector.load %arg15[%c0_251, %c4_252, %c0_253] : memref<2x22x14xf32, #tpu.memory_space<vmem>>, vector<1x16x14xf32>
    %203 = vector.shape_cast %202 : vector<1x16x14xf32> to vector<16x14xf32>
    %c0_254 = arith.constant 0 : index
    %c56_255 = arith.constant 56 : index
    %204 = vector.load %arg18[%c0_254, %c56_255] : memref<16x197xf32, #tpu.memory_space<vmem>>, vector<16x14xf32>
    tpu.vector_store %arg18[%c0_254, %c56_255], %203 {strides = array<i32>} : memref<16x197xf32, #tpu.memory_space<vmem>>, vector<16x14xf32>,
    %c0_256 = arith.constant 0 : index
    %c5_257 = arith.constant 5 : index
    %c0_258 = arith.constant 0 : index
    %205 = vector.load %arg15[%c0_256, %c5_257, %c0_258] : memref<2x22x14xf32, #tpu.memory_space<vmem>>, vector<1x16x14xf32>
    %206 = vector.shape_cast %205 : vector<1x16x14xf32> to vector<16x14xf32>
    %c0_259 = arith.constant 0 : index
    %c70 = arith.constant 70 : index
    %207 = vector.load %arg18[%c0_259, %c70] : memref<16x197xf32, #tpu.memory_space<vmem>>, vector<16x14xf32>
    tpu.vector_store %arg18[%c0_259, %c70], %206 {strides = array<i32>} : memref<16x197xf32, #tpu.memory_space<vmem>>, vector<16x14xf32>,
    %c0_260 = arith.constant 0 : index
    %c6_261 = arith.constant 6 : index
    %c0_262 = arith.constant 0 : index
    %208 = vector.load %arg15[%c0_260, %c6_261, %c0_262] : memref<2x22x14xf32, #tpu.memory_space<vmem>>, vector<1x16x14xf32>
    %209 = vector.shape_cast %208 : vector<1x16x14xf32> to vector<16x14xf32>
    %c0_263 = arith.constant 0 : index
    %c84 = arith.constant 84 : index
    %210 = vector.load %arg18[%c0_263, %c84] : memref<16x197xf32, #tpu.memory_space<vmem>>, vector<16x14xf32>
    tpu.vector_store %arg18[%c0_263, %c84], %209 {strides = array<i32>} : memref<16x197xf32, #tpu.memory_space<vmem>>, vector<16x14xf32>,
    %c1_264 = arith.constant 1 : index
    %c0_265 = arith.constant 0 : index
    %c0_266 = arith.constant 0 : index
    %211 = vector.load %arg15[%c1_264, %c0_265, %c0_266] : memref<2x22x14xf32, #tpu.memory_space<vmem>>, vector<1x16x14xf32>
    %212 = vector.shape_cast %211 : vector<1x16x14xf32> to vector<16x14xf32>
    %c0_267 = arith.constant 0 : index
    %c98 = arith.constant 98 : index
    %213 = vector.load %arg18[%c0_267, %c98] : memref<16x197xf32, #tpu.memory_space<vmem>>, vector<16x14xf32>
    tpu.vector_store %arg18[%c0_267, %c98], %212 {strides = array<i32>} : memref<16x197xf32, #tpu.memory_space<vmem>>, vector<16x14xf32>,
    %c1_268 = arith.constant 1 : index
    %c1_269 = arith.constant 1 : index
    %c0_270 = arith.constant 0 : index
    %214 = vector.load %arg15[%c1_268, %c1_269, %c0_270] : memref<2x22x14xf32, #tpu.memory_space<vmem>>, vector<1x16x14xf32>
    %215 = vector.shape_cast %214 : vector<1x16x14xf32> to vector<16x14xf32>
    %c0_271 = arith.constant 0 : index
    %c112 = arith.constant 112 : index
    %216 = vector.load %arg18[%c0_271, %c112] : memref<16x197xf32, #tpu.memory_space<vmem>>, vector<16x14xf32>
    tpu.vector_store %arg18[%c0_271, %c112], %215 {strides = array<i32>} : memref<16x197xf32, #tpu.memory_space<vmem>>, vector<16x14xf32>,
    %c1_272 = arith.constant 1 : index
    %c2_273 = arith.constant 2 : index
    %c0_274 = arith.constant 0 : index
    %217 = vector.load %arg15[%c1_272, %c2_273, %c0_274] : memref<2x22x14xf32, #tpu.memory_space<vmem>>, vector<1x16x14xf32>
    %218 = vector.shape_cast %217 : vector<1x16x14xf32> to vector<16x14xf32>
    %c0_275 = arith.constant 0 : index
    %c126 = arith.constant 126 : index
    %219 = vector.load %arg18[%c0_275, %c126] : memref<16x197xf32, #tpu.memory_space<vmem>>, vector<16x14xf32>
    tpu.vector_store %arg18[%c0_275, %c126], %218 {strides = array<i32>} : memref<16x197xf32, #tpu.memory_space<vmem>>, vector<16x14xf32>,
    %c1_276 = arith.constant 1 : index
    %c3_277 = arith.constant 3 : index
    %c0_278 = arith.constant 0 : index
    %220 = vector.load %arg15[%c1_276, %c3_277, %c0_278] : memref<2x22x14xf32, #tpu.memory_space<vmem>>, vector<1x16x14xf32>
    %221 = vector.shape_cast %220 : vector<1x16x14xf32> to vector<16x14xf32>
    %c0_279 = arith.constant 0 : index
    %c140 = arith.constant 140 : index
    %222 = vector.load %arg18[%c0_279, %c140] : memref<16x197xf32, #tpu.memory_space<vmem>>, vector<16x14xf32>
    tpu.vector_store %arg18[%c0_279, %c140], %221 {strides = array<i32>} : memref<16x197xf32, #tpu.memory_space<vmem>>, vector<16x14xf32>,
    %c1_280 = arith.constant 1 : index
    %c4_281 = arith.constant 4 : index
    %c0_282 = arith.constant 0 : index
    %223 = vector.load %arg15[%c1_280, %c4_281, %c0_282] : memref<2x22x14xf32, #tpu.memory_space<vmem>>, vector<1x16x14xf32>
    %224 = vector.shape_cast %223 : vector<1x16x14xf32> to vector<16x14xf32>
    %c0_283 = arith.constant 0 : index
    %c154_284 = arith.constant 154 : index
    %225 = vector.load %arg18[%c0_283, %c154_284] : memref<16x197xf32, #tpu.memory_space<vmem>>, vector<16x14xf32>
    tpu.vector_store %arg18[%c0_283, %c154_284], %224 {strides = array<i32>} : memref<16x197xf32, #tpu.memory_space<vmem>>, vector<16x14xf32>,
    %c1_285 = arith.constant 1 : index
    %c5_286 = arith.constant 5 : index
    %c0_287 = arith.constant 0 : index
    %226 = vector.load %arg15[%c1_285, %c5_286, %c0_287] : memref<2x22x14xf32, #tpu.memory_space<vmem>>, vector<1x16x14xf32>
    %227 = vector.shape_cast %226 : vector<1x16x14xf32> to vector<16x14xf32>
    %c0_288 = arith.constant 0 : index
    %c168 = arith.constant 168 : index
    %228 = vector.load %arg18[%c0_288, %c168] : memref<16x197xf32, #tpu.memory_space<vmem>>, vector<16x14xf32>
    tpu.vector_store %arg18[%c0_288, %c168], %227 {strides = array<i32>} : memref<16x197xf32, #tpu.memory_space<vmem>>, vector<16x14xf32>,
    %c1_289 = arith.constant 1 : index
    %c6_290 = arith.constant 6 : index
    %c0_291 = arith.constant 0 : index
    %229 = vector.load %arg15[%c1_289, %c6_290, %c0_291] : memref<2x22x14xf32, #tpu.memory_space<vmem>>, vector<1x16x14xf32>
    %230 = vector.shape_cast %229 : vector<1x16x14xf32> to vector<16x14xf32>
    %c0_292 = arith.constant 0 : index
    %c182 = arith.constant 182 : index
    %231 = vector.load %arg18[%c0_292, %c182] : memref<16x197xf32, #tpu.memory_space<vmem>>, vector<16x14xf32>
    tpu.vector_store %arg18[%c0_292, %c182], %230 {strides = array<i32>} : memref<16x197xf32, #tpu.memory_space<vmem>>, vector<16x14xf32>,
    %cst_293 = arith.constant 1.000000e+00 : f32
    %232 = vector.broadcast %cst_293 : f32 to vector<16x1xf32>
    %c0_294 = arith.constant 0 : index
    %c196 = arith.constant 196 : index
    %233 = vector.load %arg18[%c0_294, %c196] : memref<16x197xf32, #tpu.memory_space<vmem>>, vector<16x1xf32>
    tpu.vector_store %arg18[%c0_294, %c196], %232 {strides = array<i32>} : memref<16x197xf32, #tpu.memory_space<vmem>>, vector<16x1xf32>,
    %c0_295 = arith.constant 0 : index
    %c0_296 = arith.constant 0 : index
    %234 = vector.load %arg18[%c0_295, %c0_296] : memref<16x197xf32, #tpu.memory_space<vmem>>, vector<16x197xf32>
    %c0_297 = arith.constant 0 : index
    %c0_298 = arith.constant 0 : index
    %235 = vector.load %arg9[%c0_297, %c0_298] : memref<197x8xf32, #tpu.memory_space<vmem>>, vector<197x8xf32>
    %cst_299 = arith.constant dense<0.000000e+00> : vector<16x8xf32>
    %236 = tpu.matmul %234, %235, %cst_299 {dimension_numbers = #tpu.dot_dimension_numbers<[1], [0], [0], [1], [0, 0, 1, 1], [], []>} : vector<16x197xf32>, vector<197x8xf32>, vector<16x8xf32> -> vector<16x8xf32>
    %cst_300 = arith.constant 0.000000e+00 : f32
    %237 = vector.broadcast %cst_300 : f32 to vector<16x8xf32>
    %238 = arith.subf %237, %236 : vector<16x8xf32>
    %239 = math.exp %238 : vector<16x8xf32>
    %cst_301 = arith.constant 1.000000e+00 : f32
    %240 = vector.broadcast %cst_301 : f32 to vector<16x8xf32>
    %241 = arith.addf %240, %239 : vector<16x8xf32>
    %cst_302 = arith.constant 1.000000e+00 : f32
    %242 = vector.broadcast %cst_302 : f32 to vector<16x8xf32>
    %243 = arith.divf %242, %241 : vector<16x8xf32>
    %cst_303 = arith.constant dense<0xFF800000> : vector<16x8xf32>
    %244 = vector.multi_reduction <maximumf>, %99, %cst_303 [1] : vector<16x16x8xf32> to vector<16x8xf32>
    %cst_304 = arith.constant dense<0.000000e+00> : vector<16x8xf32>
    %245 = vector.multi_reduction <add>, %99, %cst_304 [1] : vector<16x16x8xf32> to vector<16x8xf32>
    %cst_305 = arith.constant 1.600000e+01 : f32
    %246 = vector.broadcast %cst_305 : f32 to vector<16x8xf32>
    %247 = arith.divf %245, %246 : vector<16x8xf32>
    %cst_306 = arith.constant 0.000000e+00 : f32
    %248 = vector.broadcast %cst_306 : f32 to vector<2x3x14xf32>
    %c0_307 = arith.constant 0 : index
    %c0_308 = arith.constant 0 : index
    %c0_309 = arith.constant 0 : index
    %249 = vector.load %arg16[%c0_307, %c0_308, %c0_309] : memref<2x22x14xf32, #tpu.memory_space<vmem>>, vector<2x3x14xf32>
    tpu.vector_store %arg16[%c0_307, %c0_308, %c0_309], %248 {strides = array<i32>} : memref<2x22x14xf32, #tpu.memory_space<vmem>>, vector<2x3x14xf32>,
    %cst_310 = arith.constant 0.000000e+00 : f32
    %250 = vector.broadcast %cst_310 : f32 to vector<2x3x14xf32>
    %c0_311 = arith.constant 0 : index
    %c19_312 = arith.constant 19 : index
    %c0_313 = arith.constant 0 : index
    %251 = vector.load %arg16[%c0_311, %c19_312, %c0_313] : memref<2x22x14xf32, #tpu.memory_space<vmem>>, vector<2x3x14xf32>
    tpu.vector_store %arg16[%c0_311, %c19_312, %c0_313], %250 {strides = array<i32>} : memref<2x22x14xf32, #tpu.memory_space<vmem>>, vector<2x3x14xf32>,
    %cst_314 = arith.constant 0.000000e+00 : f32
    %252 = vector.broadcast %cst_314 : f32 to vector<2x22x3xf32>
    %c0_315 = arith.constant 0 : index
    %c0_316 = arith.constant 0 : index
    %c0_317 = arith.constant 0 : index
    %253 = vector.load %arg16[%c0_315, %c0_316, %c0_317] : memref<2x22x14xf32, #tpu.memory_space<vmem>>, vector<2x22x3xf32>
    tpu.vector_store %arg16[%c0_315, %c0_316, %c0_317], %252 {strides = array<i32>} : memref<2x22x14xf32, #tpu.memory_space<vmem>>, vector<2x22x3xf32>,
    %cst_318 = arith.constant 0.000000e+00 : f32
    %254 = vector.broadcast %cst_318 : f32 to vector<2x22x3xf32>
    %c0_319 = arith.constant 0 : index
    %c0_320 = arith.constant 0 : index
    %c11_321 = arith.constant 11 : index
    %255 = vector.load %arg16[%c0_319, %c0_320, %c11_321] : memref<2x22x14xf32, #tpu.memory_space<vmem>>, vector<2x22x3xf32>
    tpu.vector_store %arg16[%c0_319, %c0_320, %c11_321], %254 {strides = array<i32>} : memref<2x22x14xf32, #tpu.memory_space<vmem>>, vector<2x22x3xf32>,
    %c0_322 = arith.constant 0 : index
    %c3_323 = arith.constant 3 : index
    %c3_324 = arith.constant 3 : index
    %256 = vector.load %arg16[%c0_322, %c3_323, %c3_324] : memref<2x22x14xf32, #tpu.memory_space<vmem>>, vector<1x16x8xf32>
    %257 = vector.shape_cast %256 : vector<1x16x8xf32> to vector<16x8xf32>
    %258 = vector.shape_cast %244 : vector<16x8xf32> to vector<1x16x8xf32>
    tpu.vector_store %arg16[%c0_322, %c3_323, %c3_324], %258 {strides = array<i32>} : memref<2x22x14xf32, #tpu.memory_space<vmem>>, vector<1x16x8xf32>,
    %c1_325 = arith.constant 1 : index
    %c3_326 = arith.constant 3 : index
    %c3_327 = arith.constant 3 : index
    %259 = vector.load %arg16[%c1_325, %c3_326, %c3_327] : memref<2x22x14xf32, #tpu.memory_space<vmem>>, vector<1x16x8xf32>
    %260 = vector.shape_cast %259 : vector<1x16x8xf32> to vector<16x8xf32>
    %261 = vector.shape_cast %247 : vector<16x8xf32> to vector<1x16x8xf32>
    tpu.vector_store %arg16[%c1_325, %c3_326, %c3_327], %261 {strides = array<i32>} : memref<2x22x14xf32, #tpu.memory_space<vmem>>, vector<1x16x8xf32>,
    %c0_328 = arith.constant 0 : index
    %c0_329 = arith.constant 0 : index
    %c0_330 = arith.constant 0 : index
    %262 = vector.load %arg16[%c0_328, %c0_329, %c0_330] : memref<2x22x14xf32, #tpu.memory_space<vmem>>, vector<1x16x14xf32>
    %263 = vector.shape_cast %262 : vector<1x16x14xf32> to vector<16x14xf32>
    %c0_331 = arith.constant 0 : index
    %c0_332 = arith.constant 0 : index
    %264 = vector.load %arg19[%c0_331, %c0_332] : memref<16x197xf32, #tpu.memory_space<vmem>>, vector<16x14xf32>
    tpu.vector_store %arg19[%c0_331, %c0_332], %263 {strides = array<i32>} : memref<16x197xf32, #tpu.memory_space<vmem>>, vector<16x14xf32>,
    %c0_333 = arith.constant 0 : index
    %c1_334 = arith.constant 1 : index
    %c0_335 = arith.constant 0 : index
    %265 = vector.load %arg16[%c0_333, %c1_334, %c0_335] : memref<2x22x14xf32, #tpu.memory_space<vmem>>, vector<1x16x14xf32>
    %266 = vector.shape_cast %265 : vector<1x16x14xf32> to vector<16x14xf32>
    %c0_336 = arith.constant 0 : index
    %c14_337 = arith.constant 14 : index
    %267 = vector.load %arg19[%c0_336, %c14_337] : memref<16x197xf32, #tpu.memory_space<vmem>>, vector<16x14xf32>
    tpu.vector_store %arg19[%c0_336, %c14_337], %266 {strides = array<i32>} : memref<16x197xf32, #tpu.memory_space<vmem>>, vector<16x14xf32>,
    %c0_338 = arith.constant 0 : index
    %c2_339 = arith.constant 2 : index
    %c0_340 = arith.constant 0 : index
    %268 = vector.load %arg16[%c0_338, %c2_339, %c0_340] : memref<2x22x14xf32, #tpu.memory_space<vmem>>, vector<1x16x14xf32>
    %269 = vector.shape_cast %268 : vector<1x16x14xf32> to vector<16x14xf32>
    %c0_341 = arith.constant 0 : index
    %c28_342 = arith.constant 28 : index
    %270 = vector.load %arg19[%c0_341, %c28_342] : memref<16x197xf32, #tpu.memory_space<vmem>>, vector<16x14xf32>
    tpu.vector_store %arg19[%c0_341, %c28_342], %269 {strides = array<i32>} : memref<16x197xf32, #tpu.memory_space<vmem>>, vector<16x14xf32>,
    %c0_343 = arith.constant 0 : index
    %c3_344 = arith.constant 3 : index
    %c0_345 = arith.constant 0 : index
    %271 = vector.load %arg16[%c0_343, %c3_344, %c0_345] : memref<2x22x14xf32, #tpu.memory_space<vmem>>, vector<1x16x14xf32>
    %272 = vector.shape_cast %271 : vector<1x16x14xf32> to vector<16x14xf32>
    %c0_346 = arith.constant 0 : index
    %c42_347 = arith.constant 42 : index
    %273 = vector.load %arg19[%c0_346, %c42_347] : memref<16x197xf32, #tpu.memory_space<vmem>>, vector<16x14xf32>
    tpu.vector_store %arg19[%c0_346, %c42_347], %272 {strides = array<i32>} : memref<16x197xf32, #tpu.memory_space<vmem>>, vector<16x14xf32>,
    %c0_348 = arith.constant 0 : index
    %c4_349 = arith.constant 4 : index
    %c0_350 = arith.constant 0 : index
    %274 = vector.load %arg16[%c0_348, %c4_349, %c0_350] : memref<2x22x14xf32, #tpu.memory_space<vmem>>, vector<1x16x14xf32>
    %275 = vector.shape_cast %274 : vector<1x16x14xf32> to vector<16x14xf32>
    %c0_351 = arith.constant 0 : index
    %c56_352 = arith.constant 56 : index
    %276 = vector.load %arg19[%c0_351, %c56_352] : memref<16x197xf32, #tpu.memory_space<vmem>>, vector<16x14xf32>
    tpu.vector_store %arg19[%c0_351, %c56_352], %275 {strides = array<i32>} : memref<16x197xf32, #tpu.memory_space<vmem>>, vector<16x14xf32>,
    %c0_353 = arith.constant 0 : index
    %c5_354 = arith.constant 5 : index
    %c0_355 = arith.constant 0 : index
    %277 = vector.load %arg16[%c0_353, %c5_354, %c0_355] : memref<2x22x14xf32, #tpu.memory_space<vmem>>, vector<1x16x14xf32>
    %278 = vector.shape_cast %277 : vector<1x16x14xf32> to vector<16x14xf32>
    %c0_356 = arith.constant 0 : index
    %c70_357 = arith.constant 70 : index
    %279 = vector.load %arg19[%c0_356, %c70_357] : memref<16x197xf32, #tpu.memory_space<vmem>>, vector<16x14xf32>
    tpu.vector_store %arg19[%c0_356, %c70_357], %278 {strides = array<i32>} : memref<16x197xf32, #tpu.memory_space<vmem>>, vector<16x14xf32>,
    %c0_358 = arith.constant 0 : index
    %c6_359 = arith.constant 6 : index
    %c0_360 = arith.constant 0 : index
    %280 = vector.load %arg16[%c0_358, %c6_359, %c0_360] : memref<2x22x14xf32, #tpu.memory_space<vmem>>, vector<1x16x14xf32>
    %281 = vector.shape_cast %280 : vector<1x16x14xf32> to vector<16x14xf32>
    %c0_361 = arith.constant 0 : index
    %c84_362 = arith.constant 84 : index
    %282 = vector.load %arg19[%c0_361, %c84_362] : memref<16x197xf32, #tpu.memory_space<vmem>>, vector<16x14xf32>
    tpu.vector_store %arg19[%c0_361, %c84_362], %281 {strides = array<i32>} : memref<16x197xf32, #tpu.memory_space<vmem>>, vector<16x14xf32>,
    %c1_363 = arith.constant 1 : index
    %c0_364 = arith.constant 0 : index
    %c0_365 = arith.constant 0 : index
    %283 = vector.load %arg16[%c1_363, %c0_364, %c0_365] : memref<2x22x14xf32, #tpu.memory_space<vmem>>, vector<1x16x14xf32>
    %284 = vector.shape_cast %283 : vector<1x16x14xf32> to vector<16x14xf32>
    %c0_366 = arith.constant 0 : index
    %c98_367 = arith.constant 98 : index
    %285 = vector.load %arg19[%c0_366, %c98_367] : memref<16x197xf32, #tpu.memory_space<vmem>>, vector<16x14xf32>
    tpu.vector_store %arg19[%c0_366, %c98_367], %284 {strides = array<i32>} : memref<16x197xf32, #tpu.memory_space<vmem>>, vector<16x14xf32>,
    %c1_368 = arith.constant 1 : index
    %c1_369 = arith.constant 1 : index
    %c0_370 = arith.constant 0 : index
    %286 = vector.load %arg16[%c1_368, %c1_369, %c0_370] : memref<2x22x14xf32, #tpu.memory_space<vmem>>, vector<1x16x14xf32>
    %287 = vector.shape_cast %286 : vector<1x16x14xf32> to vector<16x14xf32>
    %c0_371 = arith.constant 0 : index
    %c112_372 = arith.constant 112 : index
    %288 = vector.load %arg19[%c0_371, %c112_372] : memref<16x197xf32, #tpu.memory_space<vmem>>, vector<16x14xf32>
    tpu.vector_store %arg19[%c0_371, %c112_372], %287 {strides = array<i32>} : memref<16x197xf32, #tpu.memory_space<vmem>>, vector<16x14xf32>,
    %c1_373 = arith.constant 1 : index
    %c2_374 = arith.constant 2 : index
    %c0_375 = arith.constant 0 : index
    %289 = vector.load %arg16[%c1_373, %c2_374, %c0_375] : memref<2x22x14xf32, #tpu.memory_space<vmem>>, vector<1x16x14xf32>
    %290 = vector.shape_cast %289 : vector<1x16x14xf32> to vector<16x14xf32>
    %c0_376 = arith.constant 0 : index
    %c126_377 = arith.constant 126 : index
    %291 = vector.load %arg19[%c0_376, %c126_377] : memref<16x197xf32, #tpu.memory_space<vmem>>, vector<16x14xf32>
    tpu.vector_store %arg19[%c0_376, %c126_377], %290 {strides = array<i32>} : memref<16x197xf32, #tpu.memory_space<vmem>>, vector<16x14xf32>,
    %c1_378 = arith.constant 1 : index
    %c3_379 = arith.constant 3 : index
    %c0_380 = arith.constant 0 : index
    %292 = vector.load %arg16[%c1_378, %c3_379, %c0_380] : memref<2x22x14xf32, #tpu.memory_space<vmem>>, vector<1x16x14xf32>
    %293 = vector.shape_cast %292 : vector<1x16x14xf32> to vector<16x14xf32>
    %c0_381 = arith.constant 0 : index
    %c140_382 = arith.constant 140 : index
    %294 = vector.load %arg19[%c0_381, %c140_382] : memref<16x197xf32, #tpu.memory_space<vmem>>, vector<16x14xf32>
    tpu.vector_store %arg19[%c0_381, %c140_382], %293 {strides = array<i32>} : memref<16x197xf32, #tpu.memory_space<vmem>>, vector<16x14xf32>,
    %c1_383 = arith.constant 1 : index
    %c4_384 = arith.constant 4 : index
    %c0_385 = arith.constant 0 : index
    %295 = vector.load %arg16[%c1_383, %c4_384, %c0_385] : memref<2x22x14xf32, #tpu.memory_space<vmem>>, vector<1x16x14xf32>
    %296 = vector.shape_cast %295 : vector<1x16x14xf32> to vector<16x14xf32>
    %c0_386 = arith.constant 0 : index
    %c154_387 = arith.constant 154 : index
    %297 = vector.load %arg19[%c0_386, %c154_387] : memref<16x197xf32, #tpu.memory_space<vmem>>, vector<16x14xf32>
    tpu.vector_store %arg19[%c0_386, %c154_387], %296 {strides = array<i32>} : memref<16x197xf32, #tpu.memory_space<vmem>>, vector<16x14xf32>,
    %c1_388 = arith.constant 1 : index
    %c5_389 = arith.constant 5 : index
    %c0_390 = arith.constant 0 : index
    %298 = vector.load %arg16[%c1_388, %c5_389, %c0_390] : memref<2x22x14xf32, #tpu.memory_space<vmem>>, vector<1x16x14xf32>
    %299 = vector.shape_cast %298 : vector<1x16x14xf32> to vector<16x14xf32>
    %c0_391 = arith.constant 0 : index
    %c168_392 = arith.constant 168 : index
    %300 = vector.load %arg19[%c0_391, %c168_392] : memref<16x197xf32, #tpu.memory_space<vmem>>, vector<16x14xf32>
    tpu.vector_store %arg19[%c0_391, %c168_392], %299 {strides = array<i32>} : memref<16x197xf32, #tpu.memory_space<vmem>>, vector<16x14xf32>,
    %c1_393 = arith.constant 1 : index
    %c6_394 = arith.constant 6 : index
    %c0_395 = arith.constant 0 : index
    %301 = vector.load %arg16[%c1_393, %c6_394, %c0_395] : memref<2x22x14xf32, #tpu.memory_space<vmem>>, vector<1x16x14xf32>
    %302 = vector.shape_cast %301 : vector<1x16x14xf32> to vector<16x14xf32>
    %c0_396 = arith.constant 0 : index
    %c182_397 = arith.constant 182 : index
    %303 = vector.load %arg19[%c0_396, %c182_397] : memref<16x197xf32, #tpu.memory_space<vmem>>, vector<16x14xf32>
    tpu.vector_store %arg19[%c0_396, %c182_397], %302 {strides = array<i32>} : memref<16x197xf32, #tpu.memory_space<vmem>>, vector<16x14xf32>,
    %cst_398 = arith.constant 1.000000e+00 : f32
    %304 = vector.broadcast %cst_398 : f32 to vector<16x1xf32>
    %c0_399 = arith.constant 0 : index
    %c196_400 = arith.constant 196 : index
    %305 = vector.load %arg19[%c0_399, %c196_400] : memref<16x197xf32, #tpu.memory_space<vmem>>, vector<16x1xf32>
    tpu.vector_store %arg19[%c0_399, %c196_400], %304 {strides = array<i32>} : memref<16x197xf32, #tpu.memory_space<vmem>>, vector<16x1xf32>,
    %c0_401 = arith.constant 0 : index
    %c0_402 = arith.constant 0 : index
    %306 = vector.load %arg19[%c0_401, %c0_402] : memref<16x197xf32, #tpu.memory_space<vmem>>, vector<16x197xf32>
    %c0_403 = arith.constant 0 : index
    %c0_404 = arith.constant 0 : index
    %307 = vector.load %arg10[%c0_403, %c0_404] : memref<197x8xf32, #tpu.memory_space<vmem>>, vector<197x8xf32>
    %cst_405 = arith.constant dense<0.000000e+00> : vector<16x8xf32>
    %308 = tpu.matmul %306, %307, %cst_405 {dimension_numbers = #tpu.dot_dimension_numbers<[1], [0], [0], [1], [0, 0, 1, 1], [], []>} : vector<16x197xf32>, vector<197x8xf32>, vector<16x8xf32> -> vector<16x8xf32>
    %cst_406 = arith.constant 0.000000e+00 : f32
    %309 = vector.broadcast %cst_406 : f32 to vector<16x8xf32>
    %310 = arith.subf %309, %308 : vector<16x8xf32>
    %311 = math.exp %310 : vector<16x8xf32>
    %cst_407 = arith.constant 1.000000e+00 : f32
    %312 = vector.broadcast %cst_407 : f32 to vector<16x8xf32>
    %313 = arith.addf %312, %311 : vector<16x8xf32>
    %cst_408 = arith.constant 1.000000e+00 : f32
    %314 = vector.broadcast %cst_408 : f32 to vector<16x8xf32>
    %315 = arith.divf %314, %313 : vector<16x8xf32>
    %316 = vector.shape_cast %171 : vector<16x16xf32> to vector<16x16x1xf32>
    %317 = vector.shape_cast %243 : vector<16x8xf32> to vector<1x16x8xf32>
    %318 = vector.broadcast %316 : vector<16x16x1xf32> to vector<16x16x8xf32>
    %319 = vector.broadcast %317 : vector<1x16x8xf32> to vector<16x16x8xf32>
    %320 = arith.addf %318, %319 : vector<16x16x8xf32>
    %321 = vector.shape_cast %315 : vector<16x8xf32> to vector<16x1x8xf32>
    %322 = vector.broadcast %321 : vector<16x1x8xf32> to vector<16x16x8xf32>
    %323 = arith.addf %320, %322 : vector<16x16x8xf32>
    %cst_409 = arith.constant 0.333333343 : f32
    %324 = vector.broadcast %cst_409 : f32 to vector<16x16x8xf32>
    %325 = arith.mulf %323, %324 : vector<16x16x8xf32>
    %326 = arith.mulf %99, %325 : vector<16x16x8xf32>
    %327 = arith.addf %326, %1 : vector<16x16x8xf32>
    %cst_410 = arith.constant 0.000000e+00 : f32
    %328 = vector.broadcast %cst_410 : f32 to vector<16x16x8xf32>
    %329 = arith.maximumf %327, %328 : vector<16x16x8xf32>
    %c0_411 = arith.constant 0 : index
    %c0_412 = arith.constant 0 : index
    %c0_413 = arith.constant 0 : index
    %c0_414 = arith.constant 0 : index
    %330 = vector.load %arg11[%c0_411, %c0_412, %c0_413, %c0_414] : memref<1x16x16x8xf32, #tpu.memory_space<vmem>>, vector<1x16x16x8xf32>
    %331 = vector.shape_cast %330 : vector<1x16x16x8xf32> to vector<16x16x8xf32>
    %332 = vector.shape_cast %329 : vector<16x16x8xf32> to vector<1x16x16x8xf32>
    tpu.vector_store %arg11[%c0_411, %c0_412, %c0_413, %c0_414], %332 {strides = array<i32>} : memref<1x16x16x8xf32, #tpu.memory_space<vmem>>, vector<1x16x16x8xf32>,
    return
  }
  func.func @transform_0(%arg0: i32) -> (i32, i32, i32, i32) {
    %c0_i32 = arith.constant 0 : i32
    %c0_i32_0 = arith.constant 0 : i32
    %c0_i32_1 = arith.constant 0 : i32
    %c0_i32_2 = arith.constant 0 : i32
    return %arg0, %c0_i32, %c0_i32_0, %c0_i32_1 : i32, i32, i32, i32
  }
  func.func @transform_1(%arg0: i32) -> (i32, i32) {
    %c0_i32 = arith.constant 0 : i32
    %c0_i32_0 = arith.constant 0 : i32
    %c0_i32_1 = arith.constant 0 : i32
    return %c0_i32, %c0_i32_0 : i32, i32
  }
  func.func @transform_2(%arg0: i32) -> (i32, i32) {
    %c0_i32 = arith.constant 0 : i32
    %c0_i32_0 = arith.constant 0 : i32
    %c0_i32_1 = arith.constant 0 : i32
    return %c0_i32, %c0_i32_0 : i32, i32
  }
  func.func @transform_3(%arg0: i32) -> (i32, i32) {
    %c0_i32 = arith.constant 0 : i32
    %c0_i32_0 = arith.constant 0 : i32
    %c0_i32_1 = arith.constant 0 : i32
    return %c0_i32, %c0_i32_0 : i32, i32
  }
  func.func @transform_4(%arg0: i32) -> (i32, i32) {
    %c0_i32 = arith.constant 0 : i32
    %c0_i32_0 = arith.constant 0 : i32
    %c0_i32_1 = arith.constant 0 : i32
    return %c0_i32, %c0_i32_0 : i32, i32
  }
  func.func @transform_5(%arg0: i32) -> (i32, i32) {
    %c0_i32 = arith.constant 0 : i32
    %c0_i32_0 = arith.constant 0 : i32
    %c0_i32_1 = arith.constant 0 : i32
    return %c0_i32, %c0_i32_0 : i32, i32
  }
  func.func @transform_6(%arg0: i32) -> (i32, i32) {
    %c0_i32 = arith.constant 0 : i32
    %c0_i32_0 = arith.constant 0 : i32
    %c0_i32_1 = arith.constant 0 : i32
    return %c0_i32, %c0_i32_0 : i32, i32
  }
  func.func @transform_7(%arg0: i32) -> (i32, i32) {
    %c0_i32 = arith.constant 0 : i32
    %c0_i32_0 = arith.constant 0 : i32
    %c0_i32_1 = arith.constant 0 : i32
    return %c0_i32, %c0_i32_0 : i32, i32
  }
  func.func @transform_8(%arg0: i32) -> (i32, i32) {
    %c0_i32 = arith.constant 0 : i32
    %c0_i32_0 = arith.constant 0 : i32
    %c0_i32_1 = arith.constant 0 : i32
    return %c0_i32, %c0_i32_0 : i32, i32
  }
  func.func @transform_9(%arg0: i32) -> (i32, i32) {
    %c0_i32 = arith.constant 0 : i32
    %c0_i32_0 = arith.constant 0 : i32
    %c0_i32_1 = arith.constant 0 : i32
    return %c0_i32, %c0_i32_0 : i32, i32
  }
  func.func @transform_10(%arg0: i32) -> (i32, i32, i32, i32) {
    %c0_i32 = arith.constant 0 : i32
    %c0_i32_0 = arith.constant 0 : i32
    %c0_i32_1 = arith.constant 0 : i32
    %c0_i32_2 = arith.constant 0 : i32
    return %arg0, %c0_i32, %c0_i32_0, %c0_i32_1 : i32, i32, i32, i32
  }
}

</mosaic_0001>

<bundles_post_ra>
// kernel: tpu_custom_call.1
= control target key start
LH: loop header
LB: loop body
LE: loop exit
PB: predicated region body
PF: predicated region fallthrough
CT: control target
= control target key end

     0   :  { %s7703_s13 = smov 0   ;;  %s11541_s0 = inlined_call_operand.vmem [shape: f32[2,16,16,8], index: 0, kind: input, shape index: {}]   ;;  %s11542_s1 = inlined_call_operand.vmem [shape: f32[1,8], index: 1, kind: input, shape index: {}]   ;;  %s11543_s2 = inlined_call_operand.vmem [shape: f32[1,8], index: 2, kind: input, shape index: {}]   ;;  %s11544_s3 = inlined_call_operand.vmem [shape: bf16[72,8], index: 3, kind: input, shape index: {}]   ;;  %s11545_s4 = inlined_call_operand.vmem [shape: f32[1,8], index: 4, kind: input, shape index: {}]   ;;  %s11546_s5 = inlined_call_operand.vmem [shape: f32[1,8], index: 5, kind: input, shape index: {}]   ;;  %s11547_s6 = inlined_call_operand.vmem [shape: bf16[72,8], index: 6, kind: input, shape index: {}]   ;;  %s11548_s7 = inlined_call_operand.vmem [shape: f32[309,16], index: 7, kind: input, shape index: {}]   ;;  %s11549_s8 = inlined_call_operand.vmem [shape: f32[197,8], index: 8, kind: input, shape index: {}]   ;;  %s11550_s9 = inlined_call_operand.vmem [shape: f32[197,8], index: 9, kind: input, shape index: {}]   ;;  %s11551_s10 = inlined_call_operand.vmem [shape: f32[2,16,16,8], index: 10, kind: output, shape index: {}]  }
   0x1 LB: > { %s7242_s14 = sadd.s32 4294967295, %s7614_s13   ;;  %p7246_p0 = scmp.ge.s32.totalorder %s7614_s13, 1  ;;  %s7614_s13 = sphi %s7703_s13, %s20_s13  }
   0x2   : > { %p312_p1 = scmp.lt.s32.totalorder %s7614_s13, 3 }
   0x4   : > { %p313_p2 = pnand %p7246_p0, %p312_p1 }
   0x6   : > { %316 = sbr.rel (%p313_p2) target bundleno = 2429 (0x97d), region = 60 }
   0xb   : > { %vm11622_vm0 = vcmask 64512   ;;  %vm396_vm1 = vcmask 58368   ;;  %p7713_p3 = scmp.lt.s32.totalorder %s7242_s14, 1  ;;  %vm402_vm2 = vcmask 57344   ;;  %v11552_v0 = vmov 0.0   ;;  %s11620_s24 = smov 8  }
   0xc   : > { %394 = vst.msk [vmem:[#allocation2] sm:$0xff] %vm11622_vm0, %v11552_v0  ;;  %395 = vst.msk [vmem:[#allocation2 + $0x8] sm:$0xff] %vm11622_vm0, %v11552_v0  ;;  %v7800_v1 = vld [vmem:[%s11542_s1] ss:$0 sm:$0xff]  ;;  %s7618_s25 = smov 16   ;;  %vm806_vm3 = vcmask 130112  }
   0xd   : > { %399 = vst.msk [vmem:[#allocation2 + $0x198] sm:$0xff] %vm11622_vm0, %v11552_v0  ;;  %400 = vst.msk [vmem:[#allocation2 + $0x1a0] sm:$0xff] %vm11622_vm0, %v11552_v0  ;;  %s11792_s14 = smov (!%p7713_p3, %s7242_s14), 1  ;;  %v7814_v2 = vld [vmem:[%s11543_s2] ss:$0 sm:$0xff]  ;;  %s7619_s26 = smov 24  }
   0xe   : > { %397 = vst.msk [vmem:[#allocation2 + $0x10] sm:$0x3] %vm396_vm1, %v11552_v0  ;;  %401 = vst.msk [vmem:[#allocation2 + $0x1a8] sm:$0x3] %vm396_vm1, %v11552_v0  ;;  %s11613_s18 = sshll.u32 %s11792_s14, 8  ;;  %vm999_vm4 = vcmask 195712  }
   0xf   : > { %404 = vst.msk [vmem:[#allocation2 + $0x18] sm:$0x1] %vm402_vm2, %v11552_v0  ;;  %405 = vst.msk [vmem:[#allocation2 + $0x30] sm:$0x1] %vm402_vm2, %v11552_v0  ;;  %s7821_s23 = scalar_lea.vmem %s11541_s0, %s11613_s18  ;;  %s7620_s27 = smov 32   ;;  %vm1192_vm5 = vcmask 261312  }
  0x10   : > { %406 = vst.msk [vmem:[#allocation2 + $0x48] sm:$0x1] %vm402_vm2, %v11552_v0  ;;  %407 = vst.msk [vmem:[#allocation2 + $0x60] sm:$0x1] %vm402_vm2, %v11552_v0  ;;  %v361_v3 = vld [vmem:[%s7821_s23] sm:$0xff]  ;;  %v363_v4 = vld [vmem:[%s7821_s23 + $0x10] sm:$0xff] }
  0x11   : > { %408 = vst.msk [vmem:[#allocation2 + $0x78] sm:$0x1] %vm402_vm2, %v11552_v0  ;;  %409 = vst.msk [vmem:[#allocation2 + $0x90] sm:$0x1] %vm402_vm2, %v11552_v0  ;;  %v362_v5 = vld [vmem:[%s7821_s23 + $0x8] sm:$0xff]  ;;  %v446_v6 = vmul.f32 %v7800_v1, %v361_v3  ;;  %v448_v7 = vmul.f32 %v7800_v1, %v363_v4  ;;  %v365_v9 = vld [vmem:[%s7821_s23 + $0x20] sm:$0xff] }
  0x12   : > { %410 = vst.msk [vmem:[#allocation2 + $0xa8] sm:$0x1] %vm402_vm2, %v11552_v0  ;;  %411 = vst.msk [vmem:[#allocation2 + $0xc0] sm:$0x1] %vm402_vm2, %v11552_v0  ;;  %v447_v8 = vmul.f32 %v7800_v1, %v362_v5  ;;  %v364_v10 = vld [vmem:[%s7821_s23 + $0x18] sm:$0xff]  ;;  %v367_v11 = vld [vmem:[%s7821_s23 + $0x30] sm:$0xff]  ;;  %v450_v13 = vmul.f32 %v7800_v1, %v365_v9 }
  0x13   : > { %412 = vst.msk [vmem:[#allocation2 + $0xd8] sm:$0x1] %vm402_vm2, %v11552_v0  ;;  %413 = vst.msk [vmem:[#allocation2 + $0xf0] sm:$0x1] %vm402_vm2, %v11552_v0  ;;  %v646_v12 = vld [vmem:[#allocation2 + $0x1] sm:$0xff]  ;;  %v449_v14 = vmul.f32 %v7800_v1, %v364_v10  ;;  %v452_v15 = vmul.f32 %v7800_v1, %v367_v11  ;;  %v485_v18 = vadd.f32 %v7814_v2, %v446_v6  ;;  %v368_v27 = vld [vmem:[%s7821_s23 + $0x38] sm:$0xff] }
  0x14   : > { %414 = vst.msk [vmem:[#allocation2 + $0x108] sm:$0x1] %vm402_vm2, %v11552_v0  ;;  %415 = vst.msk [vmem:[#allocation2 + $0x120] sm:$0x1] %vm402_vm2, %v11552_v0  ;;  %v366_v16 = vld [vmem:[%s7821_s23 + $0x28] sm:$0xff]  ;;  %710 = vrot.lane.b32.xlu0 %v646_v12, %s11620_s24  ;;  %v487_v19 = vadd.f32 %v7814_v2, %v448_v7  ;;  %v486_v20 = vadd.f32 %v7814_v2, %v447_v8  ;;  %v369_v22 = vld [vmem:[%s7821_s23 + $0x40] sm:$0xff]  ;;  %v489_v23 = vadd.f32 %v7814_v2, %v450_v13 }
  0x15   : > { %416 = vst.msk [vmem:[#allocation2 + $0x138] sm:$0x1] %vm402_vm2, %v11552_v0  ;;  %417 = vst.msk [vmem:[#allocation2 + $0x150] sm:$0x1] %vm402_vm2, %v11552_v0  ;;  %v647_v17 = vld [vmem:[#allocation2 + $0x9] sm:$0xff]  ;;  %v451_v21 = vmul.f32 %v7800_v1, %v366_v16  ;;  %v488_v24 = vadd.f32 %v7814_v2, %v449_v14  ;;  %v491_v25 = vadd.f32 %v7814_v2, %v452_v15  ;;  %v517_v30 = vmax.f32 %v485_v18, 0.0 }
  0x16   : > { %418 = vst.msk [vmem:[#allocation2 + $0x168] sm:$0x1] %vm402_vm2, %v11552_v0  ;;  %419 = vst.msk [vmem:[#allocation2 + $0x180] sm:$0x1] %vm402_vm2, %v11552_v0  ;;  %v454_v26 = vmul.f32 %v7800_v1, %v369_v22  ;;  %v371_v28 = vld [vmem:[%s7821_s23 + $0x50] sm:$0xff]  ;;  %v370_v29 = vld [vmem:[%s7821_s23 + $0x48] sm:$0xff]  ;;  %v453_v43 = vmul.f32 %v7800_v1, %v368_v27 }
  0x17   : > { %422 = vst.msk [vmem:[#allocation2 + $0x29] sm:$0x1] %vm402_vm2, %v11552_v0  ;;  %423 = vst.msk [vmem:[#allocation2 + $0x41] sm:$0x1] %vm402_vm2, %v11552_v0  ;;  %v519_v31 = vmax.f32 %v487_v19, 0.0  ;;  %v518_v32 = vmax.f32 %v486_v20, 0.0  ;;  %v490_v33 = vadd.f32 %v7814_v2, %v451_v21  ;;  %v456_v44 = vmul.f32 %v7800_v1, %v371_v28 }
  0x18   : > { %424 = vst.msk [vmem:[#allocation2 + $0x59] sm:$0x1] %vm402_vm2, %v11552_v0  ;;  %425 = vst.msk [vmem:[#allocation2 + $0x71] sm:$0x1] %vm402_vm2, %v11552_v0  ;;  %v373_v34 = vld [vmem:[%s7821_s23 + $0x60] sm:$0xff]  ;;  %v372_v35 = vld [vmem:[%s7821_s23 + $0x58] sm:$0xff]  ;;  %v493_v40 = vadd.f32 %v7814_v2, %v454_v26  ;;  %712 = vrot.lane.b32.xlu0 %v647_v17, %s11620_s24  ;;  %v455_v45 = vmul.f32 %v7800_v1, %v370_v29  ;;  %v492_v51 = vadd.f32 %v7814_v2, %v453_v43 }
  0x19   : > { %426 = vst.msk [vmem:[#allocation2 + $0x89] sm:$0x1] %vm402_vm2, %v11552_v0  ;;  %427 = vst.msk [vmem:[#allocation2 + $0xa1] sm:$0x1] %vm402_vm2, %v11552_v0  ;;  %v375_v36 = vld [vmem:[%s7821_s23 + $0x70] sm:$0xff]  ;;  %v521_v37 = vmax.f32 %v489_v23, 0.0  ;;  %v458_v48 = vmul.f32 %v7800_v1, %v373_v34  ;;  %v457_v49 = vmul.f32 %v7800_v1, %v372_v35  ;;  %v495_v52 = vadd.f32 %v7814_v2, %v456_v44 }
  0x1a   : > { %428 = vst.msk [vmem:[#allocation2 + $0xb9] sm:$0x1] %vm402_vm2, %v11552_v0  ;;  %429 = vst.msk [vmem:[#allocation2 + $0xd1] sm:$0x1] %vm402_vm2, %v11552_v0  ;;  %v520_v38 = vmax.f32 %v488_v24, 0.0  ;;  %v523_v39 = vmax.f32 %v491_v25, 0.0  ;;  %v460_v50 = vmul.f32 %v7800_v1, %v375_v36  ;;  %v494_v53 = vadd.f32 %v7814_v2, %v455_v45 }
  0x1b   : > { %430 = vst.msk [vmem:[#allocation2 + $0xe9] sm:$0x1] %vm402_vm2, %v11552_v0  ;;  %431 = vst.msk [vmem:[#allocation2 + $0x101] sm:$0x1] %vm402_vm2, %v11552_v0  ;;  %v374_v41 = vld [vmem:[%s7821_s23 + $0x68] sm:$0xff]  ;;  %v522_v42 = vmax.f32 %v490_v33, 0.0  ;;  %v497_v57 = vadd.f32 %v7814_v2, %v458_v48  ;;  %v496_v58 = vadd.f32 %v7814_v2, %v457_v49 }
  0x1c   : > { %432 = vst.msk [vmem:[#allocation2 + $0x119] sm:$0x1] %vm402_vm2, %v11552_v0  ;;  %433 = vst.msk [vmem:[#allocation2 + $0x131] sm:$0x1] %vm402_vm2, %v11552_v0  ;;  %v377_v46 = vld [vmem:[%s7821_s23 + $0x80] sm:$0xff]  ;;  %v525_v47 = vmax.f32 %v493_v40, 0.0  ;;  %v459_v54 = vmul.f32 %v7800_v1, %v374_v41  ;;  %v499_v59 = vadd.f32 %v7814_v2, %v460_v50 }
  0x1d   : > { %434 = vst.msk [vmem:[#allocation2 + $0x149] sm:$0x1] %vm402_vm2, %v11552_v0  ;;  %435 = vst.msk [vmem:[#allocation2 + $0x161] sm:$0x1] %vm402_vm2, %v11552_v0  ;;  %v376_v55 = vld [vmem:[%s7821_s23 + $0x78] sm:$0xff]  ;;  %v379_v56 = vld [vmem:[%s7821_s23 + $0x90] sm:$0xff]  ;;  %v462_v60 = vmul.f32 %v7800_v1, %v377_v46 }
  0x1e   : > { %436 = vst.msk [vmem:[#allocation2 + $0x179] sm:$0x1] %vm402_vm2, %v11552_v0  ;;  %437 = vst.msk [vmem:[#allocation2 + $0x191] sm:$0x1] %vm402_vm2, %v11552_v0  ;;  %v378_v61 = vld [vmem:[%s7821_s23 + $0x88] sm:$0xff]  ;;  %v381_v62 = vld [vmem:[%s7821_s23 + $0xa0] sm:$0xff]  ;;  %v498_v6 = vadd.f32 %v7814_v2, %v459_v54  ;;  %v461_v15 = vmul.f32 %v7800_v1, %v376_v55  ;;  %v464_v16 = vmul.f32 %v7800_v1, %v379_v56 }
  0x1f   : > { %421 = vst.msk [vmem:[#allocation2 + $0x11] sm:$0x1] %vm402_vm2, %v11552_v0  ;;  %403 = vst.msk [vmem:[#allocation2] sm:$0x1] %vm402_vm2, %v11552_v0  ;;  %v380_v63 = vld [vmem:[%s7821_s23 + $0x98] sm:$0xff]  ;;  %v524_v3 = vmax.f32 %v492_v51, 0.0  ;;  %v501_v13 = vadd.f32 %v7814_v2, %v462_v60  ;;  %v463_v17 = vmul.f32 %v7800_v1, %v378_v61  ;;  %v466_v22 = vmul.f32 %v7800_v1, %v381_v62 }
  0x20   : > { %420 = vst.msk [vmem:[#allocation2 + $0x198] sm:$0x1] %vm402_vm2, %v11552_v0  ;;  %438 = vst.msk [vmem:[#allocation2 + $0x1a9] sm:$0x1] %vm402_vm2, %v11552_v0  ;;  %v527_v4 = vmax.f32 %v495_v52, 0.0  ;;  %v526_v5 = vmax.f32 %v494_v53, 0.0  ;;  %v465_v23 = vmul.f32 %v7800_v1, %v380_v63  ;;  %v500_v26 = vadd.f32 %v7814_v2, %v461_v15 }
  0x21   : > { %550 = vst.msk [vmem:[#allocation2 + $0x19] sm:$0xff] %vm11622_vm0, %v517_v30  ;;  %552 = vst.msk [vmem:[#allocation2 + $0x31] sm:$0xff] %vm11622_vm0, %v519_v31  ;;  %v383_v7 = vld [vmem:[%s7821_s23 + $0xb0] sm:$0xff]  ;;  %v583_v9 = vld [vmem:[#allocation2 + $0x8] sm:$0xff]  ;;  %v529_v10 = vmax.f32 %v497_v57, 0.0  ;;  %v528_v11 = vmax.f32 %v496_v58, 0.0  ;;  %v503_v27 = vadd.f32 %v7814_v2, %v464_v16  ;;  %v502_v28 = vadd.f32 %v7814_v2, %v463_v17 }
  0x22   : > { %551 = vst.msk [vmem:[#allocation2 + $0x21] sm:$0xff] %vm11622_vm0, %v518_v32  ;;  %554 = vst.msk [vmem:[#allocation2 + $0x49] sm:$0xff] %vm11622_vm0, %v521_v37  ;;  %v531_v12 = vmax.f32 %v499_v59, 0.0  ;;  %v530_v14 = vmax.f32 %v498_v6, 0.0  ;;  %v382_v18 = vld [vmem:[%s7821_s23 + $0xa8] sm:$0xff]  ;;  %v533_v21 = vmax.f32 %v501_v13, 0.0  ;;  %v468_v24 = vmul.f32 %v7800_v1, %v383_v7 }
  0x23   : > { %553 = vst.msk [vmem:[#allocation2 + $0x39] sm:$0xff] %vm11622_vm0, %v520_v38  ;;  %556 = vst.msk [vmem:[#allocation2 + $0x61] sm:$0xff] %vm11622_vm0, %v523_v39  ;;  %v385_v25 = vld [vmem:[%s7821_s23 + $0xc0] sm:$0xff]  ;;  %v384_v29 = vld [vmem:[%s7821_s23 + $0xb8] sm:$0xff]  ;;  %v505_v32 = vadd.f32 %v7814_v2, %v466_v22  ;;  %v504_v33 = vadd.f32 %v7814_v2, %v465_v23  ;;  %v467_v35 = vmul.f32 %v7800_v1, %v382_v18  ;;  %v532_v37 = vmax.f32 %v500_v26, 0.0  ;;  %s11614_s28 = smov 40  }
  0x24   : > { %555 = vst.msk [vmem:[#allocation2 + $0x51] sm:$0xff] %vm11622_vm0, %v522_v42  ;;  %558 = vst.msk [vmem:[#allocation2 + $0x79] sm:$0xff] %vm11622_vm0, %v525_v47  ;;  %v507_v34 = vadd.f32 %v7814_v2, %v468_v24  ;;  %v387_v36 = vld [vmem:[%s7821_s23 + $0xd0] sm:$0xff]  ;;  %v535_v38 = vmax.f32 %v503_v27, 0.0  ;;  %v534_v39 = vmax.f32 %v502_v28, 0.0  ;;  %v470_v40 = vmul.f32 %v7800_v1, %v385_v25  ;;  %v386_v41 = vld [vmem:[%s7821_s23 + $0xc8] sm:$0xff] }
  0x25   : > { %615 = vst.msk [vmem:[#allocation3 + $0x8] sm:$0xff] %vm11622_vm0, %v583_v9  ;;  %557 = vst.msk [vmem:[#allocation2 + $0x69] sm:$0xff] %vm11622_vm0, %v524_v3  ;;  %v389_v42 = vld [vmem:[%s7821_s23 + $0xe0] sm:$0xff]  ;;  %v388_v43 = vld [vmem:[%s7821_s23 + $0xd8] sm:$0xff]  ;;  %v537_v44 = vmax.f32 %v505_v32, 0.0  ;;  %v536_v45 = vmax.f32 %v504_v33, 0.0  ;;  %v506_v47 = vadd.f32 %v7814_v2, %v467_v35  ;;  %v469_v51 = vmul.f32 %v7800_v1, %v384_v29 }
  0x26   : > { %v582_v8 = vld [vmem:[#allocation2] sm:$0xff]  ;;  %560 = vst.msk [vmem:[#allocation2 + $0x91] sm:$0xff] %vm11622_vm0, %v527_v4  ;;  %559 = vst.msk [vmem:[#allocation2 + $0x81] sm:$0xff] %vm11622_vm0, %v526_v5  ;;  %v539_v46 = vmax.f32 %v507_v34, 0.0  ;;  %v390_v48 = vld [vmem:[%s7821_s23 + $0xe8] sm:$0xff]  ;;  %v509_v50 = vadd.f32 %v7814_v2, %v470_v40  ;;  %v472_v52 = vmul.f32 %v7800_v1, %v387_v36  ;;  %v471_v59 = vmul.f32 %v7800_v1, %v386_v41  ;;  %s7622_s29 = smov 48  }
  0x27   : > { %614 = vst.msk [vmem:[#allocation3] sm:$0xff] %vm11622_vm0, %v582_v8  ;;  %562 = vst.msk [vmem:[#allocation2 + $0xa9] sm:$0xff] %vm11622_vm0, %v529_v10  ;;  %v538_v58 = vmax.f32 %v506_v47, 0.0  ;;  %v474_v60 = vmul.f32 %v7800_v1, %v389_v42  ;;  %v473_v61 = vmul.f32 %v7800_v1, %v388_v43  ;;  %v508_v63 = vadd.f32 %v7814_v2, %v469_v51  ;;  %s11618_s19 = smov 56   ;;  %s7624_s11 = smov 64  }
  0x28   : > { %v648_v19 = vld [vmem:[#allocation2 + $0x19] sm:$0xff]  ;;  %v650_v20 = vld [vmem:[#allocation2 + $0x31] sm:$0xff]  ;;  %561 = vst.msk [vmem:[#allocation2 + $0x99] sm:$0xff] %vm11622_vm0, %v528_v11  ;;  %564 = vst.msk [vmem:[#allocation2 + $0xc1] sm:$0xff] %vm11622_vm0, %v531_v12  ;;  %v541_v62 = vmax.f32 %v509_v50, 0.0  ;;  %v511_v3 = vadd.f32 %v7814_v2, %v472_v52  ;;  %v475_v4 = vmul.f32 %v7800_v1, %v390_v48  ;;  %v510_v5 = vadd.f32 %v7814_v2, %v471_v59  ;;  %s7626_s20 = smov 4  }
  0x29   : > { %714 = vrot.lane.b32.xlu1 %v648_v19, %s11620_s24  ;;  %718 = vrot.lane.b32.xlu0 %v650_v20, %s11620_s24  ;;  %563 = vst.msk [vmem:[#allocation2 + $0xb1] sm:$0xff] %vm11622_vm0, %v530_v14  ;;  %v649_v30 = vld [vmem:[#allocation2 + $0x21] sm:$0xff]  ;;  %v652_v31 = vld [vmem:[#allocation2 + $0x49] sm:$0xff]  ;;  %566 = vst.msk [vmem:[#allocation2 + $0xd9] sm:$0xff] %vm11622_vm0, %v533_v21  ;;  %v513_v6 = vadd.f32 %v7814_v2, %v474_v60  ;;  %v512_v7 = vadd.f32 %v7814_v2, %v473_v61  ;;  %v540_v8 = vmax.f32 %v508_v63, 0.0  ;;  %vm1385_vm6 = vcmask 326912  }
  0x2a   : > { %v7922_v49 = vld [vmem:[#allocation2 + $0x18] sm:$0xff]  ;;  %565 = vst.msk [vmem:[#allocation2 + $0xc9] sm:$0xff] %vm11622_vm0, %v532_v37  ;;  %568 = vst.msk [vmem:[#allocation2 + $0xf1] sm:$0xff] %vm11622_vm0, %v535_v38  ;;  %v7934_v53 = vld [vmem:[#allocation2 + $0x30] sm:$0xff]  ;;  %v543_v9 = vmax.f32 %v511_v3, 0.0  ;;  %v514_v10 = vadd.f32 %v7814_v2, %v475_v4  ;;  %v542_v13 = vmax.f32 %v510_v5, 0.0 }
  0x2b   : > { %567 = vst.msk [vmem:[#allocation2 + $0xe1] sm:$0xff] %vm11622_vm0, %v534_v39  ;;  %616 = vst.msk [vmem:[#allocation3 + $0x10] sm:$0xff] %vm11622_vm0, %v7922_v49  ;;  %v7936_v54 = vld [vmem:[#allocation2 + $0x20] sm:$0xff]  ;;  %v7938_v55 = vld [vmem:[#allocation2 + $0x48] sm:$0xff]  ;;  %v545_v14 = vmax.f32 %v513_v6, 0.0  ;;  %v544_v15 = vmax.f32 %v512_v7, 0.0 }
  0x2c   : > { %v651_v56 = vld [vmem:[#allocation2 + $0x39] sm:$0xff]  ;;  %v654_v57 = vld [vmem:[#allocation2 + $0x61] sm:$0xff]  ;;  %570 = vst.msk [vmem:[#allocation2 + $0x109] sm:$0xff] %vm11622_vm0, %v537_v44  ;;  %569 = vst.msk [vmem:[#allocation2 + $0xf9] sm:$0xff] %vm11622_vm0, %v536_v45  ;;  %v546_v16 = vmax.f32 %v514_v10, 0.0  ;;  %vm2324_vm7 = vcmask 1043456  }
  0x2d   : > { %716 = vrot.lane.b32.xlu1 %v649_v30, %s11620_s24  ;;  %722 = vrot.lane.b32.xlu0 %v652_v31, %s11620_s24  ;;  %572 = vst.msk [vmem:[#allocation2 + $0x121] sm:$0xff] %vm11622_vm0, %v539_v46  ;;  %618 = vst.msk [vmem:[#allocation3 + $0x20] sm:$0xff] %vm11622_vm0, %v7934_v53  ;;  %v7963_v11 = vld [vmem:[#allocation2 + $0x51] sm:$0xff]  ;;  %v7965_v12 = vld [vmem:[#allocation2 + $0x79] sm:$0xff]  ;;  %vm1578_vm8 = vcmask 392512   ;;  %vm1772_vm9 = vcmask 458112  }
  0x2e   : > { %617 = vst.msk [vmem:[#allocation3 + $0x18] sm:$0xff] %vm11622_vm0, %v7936_v54  ;;  %620 = vst.msk [vmem:[#allocation3 + $0x30] sm:$0xff] %vm11622_vm0, %v7938_v55  ;;  %v7969_v17 = vld [vmem:[#allocation2 + $0x38] sm:$0xff]  ;;  %v7971_v18 = vld [vmem:[#allocation2 + $0x60] sm:$0xff]  ;;  %vm1965_vm10 = vcmask 523712   ;;  %vm2158_vm11 = vcmask 589312  }
  0x2f   : > { %571 = vst.msk [vmem:[#allocation2 + $0x111] sm:$0xff] %vm11622_vm0, %v538_v58  ;;  %574 = vst.msk [vmem:[#allocation2 + $0x139] sm:$0xff] %vm11622_vm0, %v541_v62  ;;  %v7985_v19 = vld [vmem:[#allocation2 + $0x69] sm:$0xff]  ;;  %v7987_v20 = vld [vmem:[#allocation2 + $0x91] sm:$0xff]  ;;  %vm2275_vm12 = vcmask 588800   ;;  %vm4954_vm13 = vcmask 1041409  }
  0x30   : > { %573 = vst.msk [vmem:[#allocation2 + $0x129] sm:$0xff] %vm11622_vm0, %v540_v8  ;;  %576 = vst.msk [vmem:[#allocation2 + $0x151] sm:$0xff] %vm11622_vm0, %v543_v9  ;;  %v7993_v21 = vld [vmem:[#allocation2 + $0x50] sm:$0xff]  ;;  %v7995_v22 = vld [vmem:[#allocation2 + $0x78] sm:$0xff]  ;;  %vm4956_vm14 = vcmask 1042434   ;;  %vm4958_vm15 = vcmask 1043459  }
  0x31   : > { %720 = vrot.lane.b32.xlu1 %v651_v56, %s11620_s24  ;;  %726 = vrot.lane.b32.xlu0 %v654_v57, %s11620_s24  ;;  %575 = vst.msk [vmem:[#allocation2 + $0x141] sm:$0xff] %vm11622_vm0, %v542_v13  ;;  %578 = vst.msk [vmem:[#allocation2 + $0x169] sm:$0xff] %vm11622_vm0, %v545_v14  ;;  %v7997_v23 = vld [vmem:[#allocation2 + $0x81] sm:$0xff]  ;;  %v7999_v24 = vld [vmem:[#allocation2 + $0xa9] sm:$0xff]  ;;  %vm4960_vm1 = vcmask 1044484   ;;  %vm4962_vm2 = vcmask 1045509  }
  0x32   : > { %577 = vst.msk [vmem:[#allocation2 + $0x159] sm:$0xff] %vm11622_vm0, %v544_v15  ;;  %619 = vst.msk [vmem:[#allocation3 + $0x28] sm:$0xff] %vm11622_vm0, %v7969_v17  ;;  %v8009_v25 = vld [vmem:[#allocation2 + $0x99] sm:$0xff]  ;;  %v8011_v26 = vld [vmem:[#allocation2 + $0xc1] sm:$0xff]  ;;  %s7627_s21 = smov 110   ;;  %s11616_s30 = smov 26  }
  0x33   : > { %622 = vst.msk [vmem:[#allocation3 + $0x40] sm:$0xff] %vm11622_vm0, %v7971_v18  ;;  %579 = vst.msk [vmem:[#allocation2 + $0x171] sm:$0xff] %vm11622_vm0, %v546_v16  ;;  %v8013_v27 = vld [vmem:[#allocation2 + $0x68] sm:$0xff]  ;;  %v8017_v28 = vld [vmem:[#allocation2 + $0x90] sm:$0xff]  ;;  %s7631_s18 = smov 70   ;;  %s7634_s22 = smov 88  }
  0x34   : > { %621 = vst.msk [vmem:[#allocation3 + $0x38] sm:$0xff] %vm11622_vm0, %v7993_v21  ;;  %624 = vst.msk [vmem:[#allocation3 + $0x50] sm:$0xff] %vm11622_vm0, %v7995_v22  ;;  %v8019_v29 = vld [vmem:[#allocation2 + $0x80] sm:$0xff]  ;;  %v8021_v30 = vld [vmem:[#allocation2 + $0xa8] sm:$0xff]  ;;  %s11722_s16 = smov 56   ;;  %s7641_s17 = smov 12  }
  0x35   : > { %724 = vrot.lane.b32.xlu1 %v7963_v11, %s11620_s24  ;;  %730 = vrot.lane.b32.xlu0 %v7965_v12, %s11620_s24  ;;  %623 = vst.msk [vmem:[#allocation3 + $0x48] sm:$0xff] %vm11622_vm0, %v8013_v27  ;;  %v8023_v31 = vld [vmem:[#allocation2 + $0xb1] sm:$0xff]  ;;  %v8025_v32 = vld [vmem:[#allocation2 + $0xd9] sm:$0xff]  ;;  %626 = vst.msk [vmem:[#allocation3 + $0x60] sm:$0xff] %vm11622_vm0, %v8017_v28  ;;  %s7643_s12 = smov 98   ;;  %s7645_s15 = smov 112  }
  0x36   : > { %625 = vst.msk [vmem:[#allocation3 + $0x58] sm:$0xff] %vm11622_vm0, %v8019_v29  ;;  %628 = vst.msk [vmem:[#allocation3 + $0x70] sm:$0xff] %vm11622_vm0, %v8021_v30  ;;  %v8033_v33 = vld [vmem:[#allocation2 + $0x98] sm:$0xff]  ;;  %v8035_v34 = vld [vmem:[#allocation2 + $0xc0] sm:$0xff] }
  0x37   : > { %v8037_v35 = vld [vmem:[#allocation2 + $0xb0] sm:$0xff]  ;;  %627 = vst.msk [vmem:[#allocation3 + $0x68] sm:$0xff] %vm11622_vm0, %v8033_v33  ;;  %630 = vst.msk [vmem:[#allocation3 + $0x80] sm:$0xff] %vm11622_vm0, %v8035_v34  ;;  %v8049_v36 = vld [vmem:[#allocation2 + $0xd8] sm:$0xff] }
  0x38   : > { %629 = vst.msk [vmem:[#allocation3 + $0x78] sm:$0xff] %vm11622_vm0, %v8037_v35  ;;  %v8051_v37 = vld [vmem:[#allocation2 + $0xc8] sm:$0xff]  ;;  %v8053_v38 = vld [vmem:[#allocation2 + $0xf0] sm:$0xff]  ;;  %632 = vst.msk [vmem:[#allocation3 + $0x90] sm:$0xff] %vm11622_vm0, %v8049_v36 }
  0x39   : > { %728 = vrot.lane.b32.xlu1 %v7985_v19, %s11620_s24  ;;  %734 = vrot.lane.b32.xlu0 %v7987_v20, %s11620_s24  ;;  %631 = vst.msk [vmem:[#allocation3 + $0x88] sm:$0xff] %vm11622_vm0, %v8051_v37  ;;  %634 = vst.msk [vmem:[#allocation3 + $0xa0] sm:$0xff] %vm11622_vm0, %v8053_v38  ;;  %v8061_v39 = vld [vmem:[#allocation2 + $0xe0] sm:$0xff]  ;;  %v8063_v40 = vld [vmem:[#allocation2 + $0x108] sm:$0xff] }
  0x3a   : > { %v8065_v41 = vld [vmem:[#allocation2 + $0xf8] sm:$0xff]  ;;  %633 = vst.msk [vmem:[#allocation3 + $0x98] sm:$0xff] %vm11622_vm0, %v8061_v39  ;;  %636 = vst.msk [vmem:[#allocation3 + $0xb0] sm:$0xff] %vm11622_vm0, %v8063_v40  ;;  %v8077_v42 = vld [vmem:[#allocation2 + $0x120] sm:$0xff] }
  0x3b   : > { %635 = vst.msk [vmem:[#allocation3 + $0xa8] sm:$0xff] %vm11622_vm0, %v8065_v41  ;;  %v8079_v43 = vld [vmem:[#allocation2 + $0x110] sm:$0xff]  ;;  %638 = vst.msk [vmem:[#allocation3 + $0xc0] sm:$0xff] %vm11622_vm0, %v8077_v42  ;;  %v8093_v46 = vld [vmem:[#allocation2 + $0x138] sm:$0xff] }
  0x3c   : > { %v8081_v44 = vld [vmem:[#allocation2 + $0xc9] sm:$0xff]  ;;  %v8083_v45 = vld [vmem:[#allocation2 + $0xf1] sm:$0xff]  ;;  %637 = vst.msk [vmem:[#allocation3 + $0xb8] sm:$0xff] %vm11622_vm0, %v8079_v43  ;;  %v8097_v48 = vld [vmem:[#allocation2 + $0xe1] sm:$0xff] }
  0x3d   : > { %732 = vrot.lane.b32.xlu1 %v7997_v23, %s11620_s24  ;;  %738 = vrot.lane.b32.xlu0 %v7999_v24, %s11620_s24  ;;  %v8095_v47 = vld [vmem:[#allocation2 + $0x128] sm:$0xff]  ;;  %640 = vst.msk [vmem:[#allocation3 + $0xd0] sm:$0xff] %vm11622_vm0, %v8093_v46  ;;  %v8109_v51 = vld [vmem:[#allocation2 + $0x150] sm:$0xff]  ;;  %v8111_v52 = vld [vmem:[#allocation2 + $0x140] sm:$0xff] }
  0x3e   : > { %v8099_v50 = vld [vmem:[#allocation2 + $0x109] sm:$0xff]  ;;  %639 = vst.msk [vmem:[#allocation3 + $0xc8] sm:$0xff] %vm11622_vm0, %v8095_v47  ;;  %v8113_v56 = vld [vmem:[#allocation2 + $0xf9] sm:$0xff]  ;;  %v8115_v57 = vld [vmem:[#allocation2 + $0x121] sm:$0xff] }
  0x3f   : > { %642 = vst.msk [vmem:[#allocation3 + $0xe0] sm:$0xff] %vm11622_vm0, %v8109_v51  ;;  %641 = vst.msk [vmem:[#allocation3 + $0xd8] sm:$0xff] %vm11622_vm0, %v8111_v52  ;;  %v8125_v58 = vld [vmem:[#allocation2 + $0x168] sm:$0xff]  ;;  %v8127_v59 = vld [vmem:[#allocation2 + $0x158] sm:$0xff] }
  0x40   : > { %v8129_v60 = vld [vmem:[#allocation2 + $0x111] sm:$0xff]  ;;  %v8131_v61 = vld [vmem:[#allocation2 + $0x139] sm:$0xff]  ;;  %644 = vst.msk [vmem:[#allocation3 + $0xf0] sm:$0xff] %vm11622_vm0, %v8125_v58  ;;  %643 = vst.msk [vmem:[#allocation3 + $0xe8] sm:$0xff] %vm11622_vm0, %v8127_v59 }
  0x41   : > { %736 = vrot.lane.b32.xlu1 %v8009_v25, %s11620_s24  ;;  %742 = vrot.lane.b32.xlu0 %v8011_v26, %s11620_s24  ;;  %v391_v62 = vld [vmem:[%s7821_s23 + $0xf0] sm:$0xff]  ;;  %v392_v7 = vld [vmem:[%s7821_s23 + $0xf8] sm:$0xff]  ;;  %v8160_v13 = vld [vmem:[#allocation2 + $0x141] sm:$0xff] }
  0x42   : > { %v476_v63 = vmul.f32 %v7800_v1, %v391_v62  ;;  %v8143_v3 = vld [vmem:[#allocation2 + $0x170] sm:$0xff]  ;;  %v477_v9 = vmul.f32 %v7800_v1, %v392_v7  ;;  %v8169_v1 = vld [vmem:[#allocation2 + $0x159] sm:$0xff]  ;;  %v839_v16 = vld [vmem:[#allocation2 + $0x2] sm:$0xff] }
  0x43   : > { %v8146_v5 = vld [vmem:[#allocation2 + $0x129] sm:$0xff]  ;;  %v8148_v6 = vld [vmem:[#allocation2 + $0x151] sm:$0xff]  ;;  %645 = vst.msk [vmem:[#allocation3 + $0xf8] sm:$0xff] %vm11622_vm0, %v8143_v3  ;;  %v8176_v62 = vld [vmem:[#allocation2 + $0x1a] sm:$0xff] }
  0x44   : > { %v515_v4 = vadd.f32 %v7814_v2, %v476_v63  ;;  %v516_v10 = vadd.f32 %v7814_v2, %v477_v9  ;;  %v8162_v14 = vld [vmem:[#allocation2 + $0x169] sm:$0xff]  ;;  %v8174_v2 = vld [vmem:[#allocation2 + $0x171] sm:$0xff]  ;;  %v8195_v9 = vld [vmem:[#allocation2 + $0x3a] sm:$0xff] }
  0x45   : > { %740 = vrot.lane.b32.xlu1 %v8023_v31, %s11620_s24  ;;  %746 = vrot.lane.b32.xlu0 %v8025_v32, %s11620_s24  ;;  %v840_v63 = vld [vmem:[#allocation2 + $0xa] sm:$0xff]  ;;  %v8187_v7 = vld [vmem:[#allocation2 + $0x22] sm:$0xff]  ;;  %11627 = vst [vmem:[#allocation12_spill] sm:$0xff] %v8195_v9  ;;  %v8213_v0 = vld [vmem:[#allocation2 + $0x92] sm:$0xff] }
  0x46   : > { %v547_v8 = vmax.f32 %v515_v4, 0.0  ;;  %v548_v15 = vmax.f32 %v516_v10, 0.0  ;;  %v8182_v4 = vld [vmem:[#allocation2 + $0x32] sm:$0xff]  ;;  %11625 = vst [vmem:[#allocation10_spill] sm:$0xff] %v8187_v7  ;;  %v8197_v10 = vld [vmem:[#allocation2 + $0x62] sm:$0xff]  ;;  %11632 = vst [vmem:[#allocation17_spill] sm:$0xff] %v8213_v0 }
  0x47   : > { %11628 = vst [vmem:[#allocation13_spill] sm:$0xff] %v8197_v10 }
  0x48   : > { %580 = vst.msk [vmem:[#allocation2 + $0x181] sm:$0xff] %vm11622_vm0, %v547_v8  ;;  %581 = vst.msk [vmem:[#allocation2 + $0x189] sm:$0xff] %vm11622_vm0, %v548_v15  ;;  %v8189_v8 = vld [vmem:[#allocation2 + $0x4a] sm:$0xff]  ;;  %v8203_v15 = vld [vmem:[#allocation2 + $0x52] sm:$0xff] }
  0x49   : > { %744 = vrot.lane.b32.xlu1 %v8081_v44, %s11620_s24  ;;  %750 = vrot.lane.b32.xlu0 %v8083_v45, %s11620_s24  ;;  %11626 = vst [vmem:[#allocation11_spill] sm:$0xff] %v8189_v8  ;;  %11629 = vst [vmem:[#allocation14_spill] sm:$0xff] %v8203_v15 }
  0x4d   : > { %748 = vrot.lane.b32.xlu1 %v8097_v48, %s11620_s24  ;;  %754 = vrot.lane.b32.xlu0 %v8099_v50, %s11620_s24 }
  0x51   : > { %752 = vrot.lane.b32.xlu1 %v8113_v56, %s11620_s24  ;;  %758 = vrot.lane.b32.xlu0 %v8115_v57, %s11620_s24 }
  0x55   : > { %756 = vrot.lane.b32.xlu1 %v8129_v60, %s11620_s24  ;;  %762 = vrot.lane.b32.xlu0 %v8131_v61, %s11620_s24 }
  0x59   : > { %760 = vrot.lane.b32.xlu1 %v8146_v5, %s11620_s24  ;;  %766 = vrot.lane.b32.xlu0 %v8148_v6, %s11620_s24 }
  0x5d   : > { %764 = vrot.lane.b32.xlu1 %v8160_v13, %s11620_s24  ;;  %770 = vrot.lane.b32.xlu0 %v8162_v14, %s11620_s24 }
  0x61   : > { %768 = vrot.lane.b32.xlu1 %v8169_v1, %s11620_s24  ;;  %903 = vrot.lane.b32.xlu0 %v839_v16, %s7618_s25  ;;  %v8205_v16 = vld [vmem:[#allocation2 + $0x7a] sm:$0xff] }
  0x62   : > { %11630 = vst [vmem:[#allocation15_spill] sm:$0xff] %v8205_v16 }
  0x65   : > { %772 = vrot.lane.b32.xlu1 %v8174_v2, %s11620_s24  ;;  %907 = vrot.lane.b32.xlu0 %v8176_v62, %s7618_s25 }
  0x69   : > { %905 = vrot.lane.b32.xlu1 %v840_v63, %s7618_s25  ;;  %911 = vrot.lane.b32.xlu0 %v8182_v4, %s7618_s25  ;;  %v8211_v63 = vld [vmem:[#allocation2 + $0x6a] sm:$0xff] }
  0x6a   : > { %11631 = vst [vmem:[#allocation16_spill] sm:$0xff] %v8211_v63 }
  0x6d   : > { %909 = vrot.lane.b32.xlu1 %v8187_v7, %s7618_s25  ;;  %915 = vrot.lane.b32.xlu0 %v8189_v8, %s7618_s25 }
  0x71   : > { %913 = vrot.lane.b32.xlu1 %v8195_v9, %s7618_s25  ;;  %919 = vrot.lane.b32.xlu0 %v8197_v10, %s7618_s25  ;;  %v8219_v10 = vld [vmem:[#allocation2 + $0x82] sm:$0xff]  ;;  %v8221_v9 = vld [vmem:[#allocation2 + $0xaa] sm:$0xff] }
  0x72   : > { %11633 = vst [vmem:[#allocation18_spill] sm:$0xff] %v8219_v10  ;;  %11634 = vst [vmem:[#allocation19_spill] sm:$0xff] %v8221_v9 }
  0x75   : > { %917 = vrot.lane.b32.xlu1 %v8203_v15, %s7618_s25  ;;  %923 = vrot.lane.b32.xlu0 %v8205_v16, %s7618_s25  ;;  %v8227_v16 = vld [vmem:[#allocation2 + $0x9a] sm:$0xff]  ;;  %v8229_v15 = vld [vmem:[#allocation2 + $0xc2] sm:$0xff] }
  0x76   : > { %11635 = vst [vmem:[#allocation20_spill] sm:$0xff] %v8227_v16  ;;  %11636 = vst [vmem:[#allocation21_spill] sm:$0xff] %v8229_v15 }
  0x79   : > { %921 = vrot.lane.b32.xlu1 %v8211_v63, %s7618_s25  ;;  %927 = vrot.lane.b32.xlu0 %v8213_v0, %s7618_s25  ;;  %v8235_v0 = vld [vmem:[#allocation2 + $0xb2] sm:$0xff]  ;;  %v8237_v63 = vld [vmem:[#allocation2 + $0xda] sm:$0xff] }
  0x7a   : > { %11637 = vst [vmem:[#allocation22_spill] sm:$0xff] %v8235_v0  ;;  %11638 = vst [vmem:[#allocation23_spill] sm:$0xff] %v8237_v63 }
  0x7d   : > { %925 = vrot.lane.b32.xlu1 %v8219_v10, %s7618_s25  ;;  %931 = vrot.lane.b32.xlu0 %v8221_v9, %s7618_s25  ;;  %v8243_v9 = vld [vmem:[#allocation2 + $0xca] sm:$0xff]  ;;  %v8245_v10 = vld [vmem:[#allocation2 + $0xf2] sm:$0xff] }
  0x7e   : > { %11639 = vst [vmem:[#allocation24_spill] sm:$0xff] %v8243_v9  ;;  %11640 = vst [vmem:[#allocation25_spill] sm:$0xff] %v8245_v10 }
  0x81   : > { %929 = vrot.lane.b32.xlu1 %v8227_v16, %s7618_s25  ;;  %935 = vrot.lane.b32.xlu0 %v8229_v15, %s7618_s25  ;;  %v8251_v15 = vld [vmem:[#allocation2 + $0xe2] sm:$0xff]  ;;  %v8253_v16 = vld [vmem:[#allocation2 + $0x10a] sm:$0xff] }
  0x82   : > { %11641 = vst [vmem:[#allocation26_spill] sm:$0xff] %v8251_v15  ;;  %11642 = vst [vmem:[#allocation27_spill] sm:$0xff] %v8253_v16 }
  0x85   : > { %933 = vrot.lane.b32.xlu1 %v8235_v0, %s7618_s25  ;;  %939 = vrot.lane.b32.xlu0 %v8237_v63, %s7618_s25  ;;  %v8259_v63 = vld [vmem:[#allocation2 + $0xfa] sm:$0xff]  ;;  %v8261_v0 = vld [vmem:[#allocation2 + $0x122] sm:$0xff] }
  0x86   : > { %11643 = vst [vmem:[#allocation28_spill] sm:$0xff] %v8259_v63  ;;  %11644 = vst [vmem:[#allocation29_spill] sm:$0xff] %v8261_v0  ;;  %v711_v8 = vpop.permute.xlu0 %710 }
  0x87   : > { %807 = vst.msk [vmem:[#allocation3] sm:$0xff] %vm806_vm3, %v711_v8  ;;  %v8277_v8 = vld [vmem:[#allocation2 + $0x12a] sm:$0xff] }
  0x88   : > { %11646 = vst [vmem:[#allocation31_spill] sm:$0xff] %v8277_v8 }
  0x89   : > { %937 = vrot.lane.b32.xlu1 %v8243_v9, %s7618_s25  ;;  %943 = vrot.lane.b32.xlu0 %v8245_v10, %s7618_s25  ;;  %v8268_v10 = vld [vmem:[#allocation2 + $0x112] sm:$0xff] }
  0x8a   : > { %v713_v9 = vpop.permute.xlu0 %712 }
  0x8b   : > { %808 = vst.msk [vmem:[#allocation3 + $0x8] sm:$0xff] %vm806_vm3, %v713_v9 }
  0x8d   : > { %941 = vrot.lane.b32.xlu1 %v8251_v15, %s7618_s25  ;;  %947 = vrot.lane.b32.xlu0 %v8253_v16, %s7618_s25  ;;  %v8270_v15 = vld [vmem:[#allocation2 + $0x13a] sm:$0xff]  ;;  %v8279_v16 = vld [vmem:[#allocation2 + $0x152] sm:$0xff] }
  0x8e   : > { %11645 = vst [vmem:[#allocation30_spill] sm:$0xff] %v8270_v15  ;;  %11647 = vst [vmem:[#allocation32_spill] sm:$0xff] %v8279_v16 }
  0x91   : > { %945 = vrot.lane.b32.xlu1 %v8259_v63, %s7618_s25  ;;  %951 = vrot.lane.b32.xlu0 %v8261_v0, %s7618_s25  ;;  %v8285_v0 = vld [vmem:[#allocation2 + $0x142] sm:$0xff]  ;;  %v8287_v63 = vld [vmem:[#allocation2 + $0x16a] sm:$0xff] }
  0x92   : > { %11648 = vst [vmem:[#allocation33_spill] sm:$0xff] %v8285_v0 }
  0x95   : > { %949 = vrot.lane.b32.xlu1 %v8268_v10, %s7618_s25  ;;  %955 = vrot.lane.b32.xlu0 %v8270_v15, %s7618_s25 }
  0x99   : > { %953 = vrot.lane.b32.xlu1 %v8277_v8, %s7618_s25  ;;  %959 = vrot.lane.b32.xlu0 %v8279_v16, %s7618_s25  ;;  %v8295_v8 = vld [vmem:[#allocation2 + $0x15a] sm:$0xff] }
  0x9b   : > { %v715_v9 = vpop.permute.xlu1 %714  ;;  %v719_v7 = vpop.permute.xlu0 %718 }
  0x9c   : > { %809 = vst.msk [vmem:[#allocation3 + $0x10] sm:$0xff] %vm806_vm3, %v715_v9  ;;  %811 = vst.msk [vmem:[#allocation3 + $0x20] sm:$0xff] %vm806_vm3, %v719_v7  ;;  %v8303_v7 = vld [vmem:[#allocation2 + $0x172] sm:$0xff] }
  0x9d   : > { %957 = vrot.lane.b32.xlu1 %v8285_v0, %s7618_s25  ;;  %963 = vrot.lane.b32.xlu0 %v8287_v63, %s7618_s25 }
  0x9f   : > { %v717_v15 = vpop.permute.xlu1 %716  ;;  %v723_v16 = vpop.permute.xlu0 %722 }
  0xa0   : > { %810 = vst.msk [vmem:[#allocation3 + $0x18] sm:$0xff] %vm806_vm3, %v717_v15  ;;  %813 = vst.msk [vmem:[#allocation3 + $0x30] sm:$0xff] %vm806_vm3, %v723_v16 }
  0xa1   : > { %961 = vrot.lane.b32.xlu1 %v8295_v8, %s7618_s25  ;;  %1096 = vrot.lane.b32.xlu0 %v7922_v49, %s7619_s26 }
  0xa3   : > { %v721_v9 = vpop.permute.xlu1 %720  ;;  %v727_v0 = vpop.permute.xlu0 %726 }
  0xa4   : > { %812 = vst.msk [vmem:[#allocation3 + $0x28] sm:$0xff] %vm806_vm3, %v721_v9  ;;  %815 = vst.msk [vmem:[#allocation3 + $0x40] sm:$0xff] %vm806_vm3, %v727_v0 }
  0xa5   : > { %965 = vrot.lane.b32.xlu1 %v8303_v7, %s7618_s25  ;;  %1100 = vrot.lane.b32.xlu0 %v7934_v53, %s7619_s26 }
  0xa7   : > { %v725_v15 = vpop.permute.xlu1 %724  ;;  %v731_v16 = vpop.permute.xlu0 %730 }
  0xa8   : > { %814 = vst.msk [vmem:[#allocation3 + $0x38] sm:$0xff] %vm806_vm3, %v725_v15  ;;  %817 = vst.msk [vmem:[#allocation3 + $0x50] sm:$0xff] %vm806_vm3, %v731_v16 }
  0xa9   : > { %1098 = vrot.lane.b32.xlu1 %v7936_v54, %s7619_s26  ;;  %1104 = vrot.lane.b32.xlu0 %v7938_v55, %s7619_s26 }
  0xab   : > { %v729_v49 = vpop.permute.xlu1 %728  ;;  %v735_v0 = vpop.permute.xlu0 %734 }
  0xac   : > { %816 = vst.msk [vmem:[#allocation3 + $0x48] sm:$0xff] %vm806_vm3, %v729_v49  ;;  %819 = vst.msk [vmem:[#allocation3 + $0x60] sm:$0xff] %vm806_vm3, %v735_v0 }
  0xad   : > { %1102 = vrot.lane.b32.xlu1 %v7969_v17, %s7619_s26  ;;  %1108 = vrot.lane.b32.xlu0 %v7971_v18, %s7619_s26 }
  0xaf   : > { %v733_v9 = vpop.permute.xlu1 %732  ;;  %v739_v15 = vpop.permute.xlu0 %738 }
  0xb0   : > { %818 = vst.msk [vmem:[#allocation3 + $0x58] sm:$0xff] %vm806_vm3, %v733_v9  ;;  %821 = vst.msk [vmem:[#allocation3 + $0x70] sm:$0xff] %vm806_vm3, %v739_v15 }
  0xb1   : > { %1106 = vrot.lane.b32.xlu1 %v7993_v21, %s7619_s26  ;;  %1112 = vrot.lane.b32.xlu0 %v7995_v22, %s7619_s26 }
  0xb3   : > { %v737_v54 = vpop.permute.xlu1 %736  ;;  %v743_v16 = vpop.permute.xlu0 %742 }
  0xb4   : > { %820 = vst.msk [vmem:[#allocation3 + $0x68] sm:$0xff] %vm806_vm3, %v737_v54  ;;  %823 = vst.msk [vmem:[#allocation3 + $0x80] sm:$0xff] %vm806_vm3, %v743_v16 }
  0xb5   : > { %1110 = vrot.lane.b32.xlu1 %v8013_v27, %s7619_s26  ;;  %1116 = vrot.lane.b32.xlu0 %v8017_v28, %s7619_s26 }
  0xb7   : > { %v741_v49 = vpop.permute.xlu1 %740  ;;  %v747_v0 = vpop.permute.xlu0 %746 }
  0xb8   : > { %822 = vst.msk [vmem:[#allocation3 + $0x78] sm:$0xff] %vm806_vm3, %v741_v49  ;;  %825 = vst.msk [vmem:[#allocation3 + $0x90] sm:$0xff] %vm806_vm3, %v747_v0 }
  0xb9   : > { %1114 = vrot.lane.b32.xlu1 %v8019_v29, %s7619_s26  ;;  %1120 = vrot.lane.b32.xlu0 %v8021_v30, %s7619_s26 }
  0xbb   : > { %v745_v9 = vpop.permute.xlu1 %744  ;;  %v751_v15 = vpop.permute.xlu0 %750 }
  0xbc   : > { %824 = vst.msk [vmem:[#allocation3 + $0x88] sm:$0xff] %vm806_vm3, %v745_v9  ;;  %827 = vst.msk [vmem:[#allocation3 + $0xa0] sm:$0xff] %vm806_vm3, %v751_v15 }
  0xbd   : > { %1118 = vrot.lane.b32.xlu1 %v8033_v33, %s7619_s26  ;;  %1124 = vrot.lane.b32.xlu0 %v8035_v34, %s7619_s26 }
  0xbf   : > { %v749_v28 = vpop.permute.xlu1 %748  ;;  %v755_v54 = vpop.permute.xlu0 %754 }
  0xc0   : > { %826 = vst.msk [vmem:[#allocation3 + $0x98] sm:$0xff] %vm806_vm3, %v749_v28  ;;  %829 = vst.msk [vmem:[#allocation3 + $0xb0] sm:$0xff] %vm806_vm3, %v755_v54  ;;  %v1226_v28 = vld [vmem:[#allocation2 + $0x21] sm:$0xff]  ;;  %v8406_v54 = vld [vmem:[#allocation2 + $0x49] sm:$0xff] }
  0xc1   : > { %1122 = vrot.lane.b32.xlu1 %v8037_v35, %s7619_s26  ;;  %1128 = vrot.lane.b32.xlu0 %v8049_v36, %s7619_s26 }
  0xc3   : > { %v753_v30 = vpop.permute.xlu1 %752  ;;  %v759_v16 = vpop.permute.xlu0 %758 }
  0xc4   : > { %828 = vst.msk [vmem:[#allocation3 + $0xa8] sm:$0xff] %vm806_vm3, %v753_v30  ;;  %831 = vst.msk [vmem:[#allocation3 + $0xc0] sm:$0xff] %vm806_vm3, %v759_v16  ;;  %v8413_v16 = vld [vmem:[#allocation2 + $0x39] sm:$0xff] }
  0xc5   : > { %1126 = vrot.lane.b32.xlu1 %v8051_v37, %s7619_s26  ;;  %1132 = vrot.lane.b32.xlu0 %v8053_v38, %s7619_s26 }
  0xc7   : > { %v757_v33 = vpop.permute.xlu1 %756  ;;  %v763_v34 = vpop.permute.xlu0 %762 }
  0xc8   : > { %830 = vst.msk [vmem:[#allocation3 + $0xb8] sm:$0xff] %vm806_vm3, %v757_v33  ;;  %833 = vst.msk [vmem:[#allocation3 + $0xd0] sm:$0xff] %vm806_vm3, %v763_v34  ;;  %v8415_v33 = vld [vmem:[#allocation2 + $0x61] sm:$0xff] }
  0xc9   : > { %1130 = vrot.lane.b32.xlu1 %v8061_v39, %s7619_s26  ;;  %1136 = vrot.lane.b32.xlu0 %v8063_v40, %s7619_s26 }
  0xcb   : > { %v761_v36 = vpop.permute.xlu1 %760  ;;  %v767_v49 = vpop.permute.xlu0 %766 }
  0xcc   : > { %832 = vst.msk [vmem:[#allocation3 + $0xc8] sm:$0xff] %vm806_vm3, %v761_v36  ;;  %835 = vst.msk [vmem:[#allocation3 + $0xe0] sm:$0xff] %vm806_vm3, %v767_v49 }
  0xcd   : > { %1134 = vrot.lane.b32.xlu1 %v8065_v41, %s7619_s26  ;;  %1140 = vrot.lane.b32.xlu0 %v8077_v42, %s7619_s26 }
  0xcf   : > { %v765_v37 = vpop.permute.xlu1 %764  ;;  %v771_v38 = vpop.permute.xlu0 %770 }
  0xd0   : > { %834 = vst.msk [vmem:[#allocation3 + $0xd8] sm:$0xff] %vm806_vm3, %v765_v37  ;;  %837 = vst.msk [vmem:[#allocation3 + $0xf0] sm:$0xff] %vm806_vm3, %v771_v38 }
  0xd1   : > { %1138 = vrot.lane.b32.xlu1 %v8079_v43, %s7619_s26  ;;  %1144 = vrot.lane.b32.xlu0 %v8093_v46, %s7619_s26  ;;  %v1062_v43 = vld [vmem:[#allocation2 + $0x180] sm:$0xff] }
  0xd3   : > { %v769_v39 = vpop.permute.xlu1 %768  ;;  %v904_v40 = vpop.permute.xlu0 %903 }
  0xd4   : > { %836 = vst.msk [vmem:[#allocation3 + $0xe8] sm:$0xff] %vm806_vm3, %v769_v39 }
  0xd5   : > { %1000 = vst.msk [vmem:[#allocation3] sm:$0xff] %vm999_vm4, %v904_v40  ;;  %1142 = vrot.lane.b32.xlu1 %v8095_v47, %s7619_s26  ;;  %1148 = vrot.lane.b32.xlu0 %v8109_v51, %s7619_s26  ;;  %v1225_v47 = vld [vmem:[#allocation2 + $0x19] sm:$0xff] }
  0xd7   : > { %v773_v41 = vpop.permute.xlu1 %772  ;;  %v908_v42 = vpop.permute.xlu0 %907 }
  0xd8   : > { %838 = vst.msk [vmem:[#allocation3 + $0xf8] sm:$0xff] %vm806_vm3, %v773_v41 }
  0xd9   : > { %1002 = vst.msk [vmem:[#allocation3 + $0x10] sm:$0xff] %vm999_vm4, %v908_v42  ;;  %1146 = vrot.lane.b32.xlu1 %v8111_v52, %s7619_s26  ;;  %1152 = vrot.lane.b32.xlu0 %v8125_v58, %s7619_s26  ;;  %v1063_v52 = vld [vmem:[#allocation2 + $0x188] sm:$0xff]  ;;  %v8399_v58 = vld [vmem:[#allocation2 + $0x31] sm:$0xff] }
  0xdb   : > { %v906_v46 = vpop.permute.xlu1 %905  ;;  %v912_v0 = vpop.permute.xlu0 %911 }
  0xdc   : > { %1001 = vst.msk [vmem:[#allocation3 + $0x8] sm:$0xff] %vm999_vm4, %v906_v46  ;;  %1004 = vst.msk [vmem:[#allocation3 + $0x20] sm:$0xff] %vm999_vm4, %v912_v0 }
  0xdd   : > { %1150 = vrot.lane.b32.xlu1 %v8127_v59, %s7619_s26  ;;  %1156 = vrot.lane.b32.xlu0 %v1062_v43, %s7619_s26 }
  0xdf   : > { %v910_v51 = vpop.permute.xlu1 %909  ;;  %v916_v9 = vpop.permute.xlu0 %915 }
  0xe0   : > { %1003 = vst.msk [vmem:[#allocation3 + $0x18] sm:$0xff] %vm999_vm4, %v910_v51  ;;  %1006 = vst.msk [vmem:[#allocation3 + $0x30] sm:$0xff] %vm999_vm4, %v916_v9  ;;  %v11652_v51 = vld [vmem:[#allocation13_spill] sm:$0xff] }
  0xe1   : > { %1154 = vrot.lane.b32.xlu1 %v8143_v3, %s7619_s26  ;;  %1289 = vrot.lane.b32.xlu0 %v1225_v47, %s7620_s27 }
  0xe3   : > { %v914_v15 = vpop.permute.xlu1 %913  ;;  %v920_v59 = vpop.permute.xlu0 %919 }
  0xe4   : > { %1005 = vst.msk [vmem:[#allocation3 + $0x28] sm:$0xff] %vm999_vm4, %v914_v15  ;;  %1008 = vst.msk [vmem:[#allocation3 + $0x40] sm:$0xff] %vm999_vm4, %v920_v59  ;;  %v11653_v15 = vld [vmem:[#allocation14_spill] sm:$0xff]  ;;  %v11654_v59 = vld [vmem:[#allocation15_spill] sm:$0xff] }
  0xe5   : > { %1158 = vrot.lane.b32.xlu1 %v1063_v52, %s7619_s26  ;;  %1293 = vrot.lane.b32.xlu0 %v8399_v58, %s7620_s27 }
  0xe7   : > { %v918_v3 = vpop.permute.xlu1 %917  ;;  %v924_v30 = vpop.permute.xlu0 %923 }
  0xe8   : > { %1007 = vst.msk [vmem:[#allocation3 + $0x38] sm:$0xff] %vm999_vm4, %v918_v3  ;;  %1010 = vst.msk [vmem:[#allocation3 + $0x50] sm:$0xff] %vm999_vm4, %v924_v30  ;;  %v11655_v30 = vld [vmem:[#allocation16_spill] sm:$0xff] }
  0xe9   : > { %1291 = vrot.lane.b32.xlu1 %v1226_v28, %s7620_s27  ;;  %1297 = vrot.lane.b32.xlu0 %v8406_v54, %s7620_s27 }
  0xeb   : > { %v922_v34 = vpop.permute.xlu1 %921  ;;  %v928_v36 = vpop.permute.xlu0 %927 }
  0xec   : > { %1009 = vst.msk [vmem:[#allocation3 + $0x48] sm:$0xff] %vm999_vm4, %v922_v34  ;;  %1012 = vst.msk [vmem:[#allocation3 + $0x60] sm:$0xff] %vm999_vm4, %v928_v36  ;;  %v11656_v34 = vld [vmem:[#allocation17_spill] sm:$0xff] }
  0xed   : > { %1295 = vrot.lane.b32.xlu1 %v8413_v16, %s7620_s27  ;;  %1301 = vrot.lane.b32.xlu0 %v8415_v33, %s7620_s27 }
  0xef   : > { %v926_v49 = vpop.permute.xlu1 %925  ;;  %v932_v37 = vpop.permute.xlu0 %931 }
  0xf0   : > { %1011 = vst.msk [vmem:[#allocation3 + $0x58] sm:$0xff] %vm999_vm4, %v926_v49  ;;  %1014 = vst.msk [vmem:[#allocation3 + $0x70] sm:$0xff] %vm999_vm4, %v932_v37  ;;  %v11657_v37 = vld [vmem:[#allocation18_spill] sm:$0xff] }
  0xf1   : > { %1299 = vrot.lane.b32.xlu1 %v7963_v11, %s7620_s27  ;;  %1305 = vrot.lane.b32.xlu0 %v7965_v12, %s7620_s27 }
  0xf3   : > { %v930_v38 = vpop.permute.xlu1 %929  ;;  %v936_v39 = vpop.permute.xlu0 %935 }
  0xf4   : > { %1013 = vst.msk [vmem:[#allocation3 + $0x68] sm:$0xff] %vm999_vm4, %v930_v38  ;;  %1016 = vst.msk [vmem:[#allocation3 + $0x80] sm:$0xff] %vm999_vm4, %v936_v39  ;;  %v11658_v38 = vld [vmem:[#allocation19_spill] sm:$0xff] }
  0xf5   : > { %1303 = vrot.lane.b32.xlu1 %v7985_v19, %s7620_s27  ;;  %1309 = vrot.lane.b32.xlu0 %v7987_v20, %s7620_s27 }
  0xf7   : > { %v934_v40 = vpop.permute.xlu1 %933  ;;  %v940_v41 = vpop.permute.xlu0 %939 }
  0xf8   : > { %1015 = vst.msk [vmem:[#allocation3 + $0x78] sm:$0xff] %vm999_vm4, %v934_v40  ;;  %1018 = vst.msk [vmem:[#allocation3 + $0x90] sm:$0xff] %vm999_vm4, %v940_v41  ;;  %v11659_v41 = vld [vmem:[#allocation20_spill] sm:$0xff] }
  0xf9   : > { %1307 = vrot.lane.b32.xlu1 %v7997_v23, %s7620_s27  ;;  %1313 = vrot.lane.b32.xlu0 %v7999_v24, %s7620_s27 }
  0xfb   : > { %v938_v11 = vpop.permute.xlu1 %937  ;;  %v944_v12 = vpop.permute.xlu0 %943 }
  0xfc   : > { %1017 = vst.msk [vmem:[#allocation3 + $0x88] sm:$0xff] %vm999_vm4, %v938_v11  ;;  %1020 = vst.msk [vmem:[#allocation3 + $0xa0] sm:$0xff] %vm999_vm4, %v944_v12  ;;  %v11660_v11 = vld [vmem:[#allocation21_spill] sm:$0xff] }
  0xfd   : > { %1311 = vrot.lane.b32.xlu1 %v8009_v25, %s7620_s27  ;;  %1317 = vrot.lane.b32.xlu0 %v8011_v26, %s7620_s27 }
  0xff   : > { %v942_v19 = vpop.permute.xlu1 %941  ;;  %v948_v20 = vpop.permute.xlu0 %947 }
 0x100   : > { %1019 = vst.msk [vmem:[#allocation3 + $0x98] sm:$0xff] %vm999_vm4, %v942_v19  ;;  %1022 = vst.msk [vmem:[#allocation3 + $0xb0] sm:$0xff] %vm999_vm4, %v948_v20  ;;  %v11661_v20 = vld [vmem:[#allocation22_spill] sm:$0xff] }
 0x101   : > { %1315 = vrot.lane.b32.xlu1 %v8023_v31, %s7620_s27  ;;  %1321 = vrot.lane.b32.xlu0 %v8025_v32, %s7620_s27 }
 0x103   : > { %v946_v23 = vpop.permute.xlu1 %945  ;;  %v952_v24 = vpop.permute.xlu0 %951 }
 0x104   : > { %1021 = vst.msk [vmem:[#allocation3 + $0xa8] sm:$0xff] %vm999_vm4, %v946_v23  ;;  %1024 = vst.msk [vmem:[#allocation3 + $0xc0] sm:$0xff] %vm999_vm4, %v952_v24  ;;  %v11662_v23 = vld [vmem:[#allocation23_spill] sm:$0xff] }
 0x105   : > { %1319 = vrot.lane.b32.xlu1 %v8081_v44, %s7620_s27  ;;  %1325 = vrot.lane.b32.xlu0 %v8083_v45, %s7620_s27 }
 0x107   : > { %v950_v25 = vpop.permute.xlu1 %949  ;;  %v956_v26 = vpop.permute.xlu0 %955 }
 0x108   : > { %1023 = vst.msk [vmem:[#allocation3 + $0xb8] sm:$0xff] %vm999_vm4, %v950_v25  ;;  %1026 = vst.msk [vmem:[#allocation3 + $0xd0] sm:$0xff] %vm999_vm4, %v956_v26  ;;  %v11663_v26 = vld [vmem:[#allocation24_spill] sm:$0xff] }
 0x109   : > { %1323 = vrot.lane.b32.xlu1 %v8097_v48, %s7620_s27  ;;  %1329 = vrot.lane.b32.xlu0 %v8099_v50, %s7620_s27 }
 0x10b   : > { %v954_v31 = vpop.permute.xlu1 %953  ;;  %v960_v32 = vpop.permute.xlu0 %959 }
 0x10c   : > { %1025 = vst.msk [vmem:[#allocation3 + $0xc8] sm:$0xff] %vm999_vm4, %v954_v31  ;;  %1028 = vst.msk [vmem:[#allocation3 + $0xe0] sm:$0xff] %vm999_vm4, %v960_v32  ;;  %v11664_v31 = vld [vmem:[#allocation25_spill] sm:$0xff] }
 0x10d   : > { %1327 = vrot.lane.b32.xlu1 %v8113_v56, %s7620_s27  ;;  %1333 = vrot.lane.b32.xlu0 %v8115_v57, %s7620_s27 }
 0x10f   : > { %v958_v44 = vpop.permute.xlu1 %957  ;;  %v964_v45 = vpop.permute.xlu0 %963 }
 0x110   : > { %1027 = vst.msk [vmem:[#allocation3 + $0xd8] sm:$0xff] %vm999_vm4, %v958_v44  ;;  %1030 = vst.msk [vmem:[#allocation3 + $0xf0] sm:$0xff] %vm999_vm4, %v964_v45  ;;  %v11665_v45 = vld [vmem:[#allocation26_spill] sm:$0xff] }
 0x111   : > { %1331 = vrot.lane.b32.xlu1 %v8129_v60, %s7620_s27  ;;  %1337 = vrot.lane.b32.xlu0 %v8131_v61, %s7620_s27  ;;  %v1255_v60 = vld [vmem:[#allocation2 + $0x181] sm:$0xff] }
 0x113   : > { %v962_v48 = vpop.permute.xlu1 %961  ;;  %v1097_v50 = vpop.permute.xlu0 %1096 }
 0x114   : > { %1029 = vst.msk [vmem:[#allocation3 + $0xe8] sm:$0xff] %vm999_vm4, %v962_v48  ;;  %v11666_v48 = vld [vmem:[#allocation27_spill] sm:$0xff] }
 0x115   : > { %1193 = vst.msk [vmem:[#allocation3] sm:$0xff] %vm1192_vm5, %v1097_v50  ;;  %1335 = vrot.lane.b32.xlu1 %v8146_v5, %s7620_s27  ;;  %1341 = vrot.lane.b32.xlu0 %v8148_v6, %s7620_s27 }
 0x117   : > { %v966_v56 = vpop.permute.xlu1 %965  ;;  %v1101_v57 = vpop.permute.xlu0 %1100 }
 0x118   : > { %1031 = vst.msk [vmem:[#allocation3 + $0xf8] sm:$0xff] %vm999_vm4, %v966_v56 }
 0x119   : > { %1195 = vst.msk [vmem:[#allocation3 + $0x10] sm:$0xff] %vm1192_vm5, %v1101_v57  ;;  %1339 = vrot.lane.b32.xlu1 %v8160_v13, %s7620_s27  ;;  %1345 = vrot.lane.b32.xlu0 %v8162_v14, %s7620_s27  ;;  %v1256_v13 = vld [vmem:[#allocation2 + $0x189] sm:$0xff]  ;;  %v11667_v57 = vld [vmem:[#allocation28_spill] sm:$0xff] }
 0x11b   : > { %v1099_v61 = vpop.permute.xlu1 %1098  ;;  %v1105_v42 = vpop.permute.xlu0 %1104 }
 0x11c   : > { %1194 = vst.msk [vmem:[#allocation3 + $0x8] sm:$0xff] %vm1192_vm5, %v1099_v61  ;;  %1197 = vst.msk [vmem:[#allocation3 + $0x20] sm:$0xff] %vm1192_vm5, %v1105_v42 }
 0x11d   : > { %1343 = vrot.lane.b32.xlu1 %v8169_v1, %s7620_s27  ;;  %1349 = vrot.lane.b32.xlu0 %v1255_v60, %s7620_s27  ;;  %v11668_v60 = vld [vmem:[#allocation29_spill] sm:$0xff] }
 0x11f   : > { %v1103_v5 = vpop.permute.xlu1 %1102  ;;  %v1109_v6 = vpop.permute.xlu0 %1108 }
 0x120   : > { %1196 = vst.msk [vmem:[#allocation3 + $0x18] sm:$0xff] %vm1192_vm5, %v1103_v5  ;;  %1199 = vst.msk [vmem:[#allocation3 + $0x30] sm:$0xff] %vm1192_vm5, %v1109_v6  ;;  %v11669_v5 = vld [vmem:[#allocation30_spill] sm:$0xff] }
 0x121   : > { %1347 = vrot.lane.b32.xlu1 %v8174_v2, %s7620_s27  ;;  %1482 = vrot.lane.b32.xlu0 %v8176_v62, %s11614_s28  ;;  %v11649_v2 = vld [vmem:[#allocation10_spill] sm:$0xff]  ;;  %v11650_v62 = vld [vmem:[#allocation11_spill] sm:$0xff] }
 0x123   : > { %v1107_v14 = vpop.permute.xlu1 %1106  ;;  %v1113_v43 = vpop.permute.xlu0 %1112 }
 0x124   : > { %1198 = vst.msk [vmem:[#allocation3 + $0x28] sm:$0xff] %vm1192_vm5, %v1107_v14  ;;  %1201 = vst.msk [vmem:[#allocation3 + $0x40] sm:$0xff] %vm1192_vm5, %v1113_v43  ;;  %v11670_v14 = vld [vmem:[#allocation31_spill] sm:$0xff]  ;;  %v11671_v43 = vld [vmem:[#allocation32_spill] sm:$0xff] }
 0x125   : > { %1351 = vrot.lane.b32.xlu1 %v1256_v13, %s7620_s27  ;;  %1486 = vrot.lane.b32.xlu0 %v8182_v4, %s11614_s28  ;;  %v11651_v4 = vld [vmem:[#allocation12_spill] sm:$0xff] }
 0x127   : > { %v1111_v1 = vpop.permute.xlu1 %1110  ;;  %v1117_v46 = vpop.permute.xlu0 %1116 }
 0x128   : > { %1200 = vst.msk [vmem:[#allocation3 + $0x38] sm:$0xff] %vm1192_vm5, %v1111_v1  ;;  %1203 = vst.msk [vmem:[#allocation3 + $0x50] sm:$0xff] %vm1192_vm5, %v1117_v46 }
 0x129   : > { %1484 = vrot.lane.b32.xlu1 %v11649_v2, %s11614_s28  ;;  %1490 = vrot.lane.b32.xlu0 %v11650_v62, %s11614_s28  ;;  %v8583_v2 = vld [vmem:[#allocation2 + $0x182] sm:$0xff] }
 0x12b   : > { %v1115_v0 = vpop.permute.xlu1 %1114  ;;  %v1121_v47 = vpop.permute.xlu0 %1120 }
 0x12c   : > { %1202 = vst.msk [vmem:[#allocation3 + $0x48] sm:$0xff] %vm1192_vm5, %v1115_v0  ;;  %1205 = vst.msk [vmem:[#allocation3 + $0x60] sm:$0xff] %vm1192_vm5, %v1121_v47 }
 0x12d   : > { %1488 = vrot.lane.b32.xlu1 %v11651_v4, %s11614_s28  ;;  %1494 = vrot.lane.b32.xlu0 %v11652_v51, %s11614_s28 }
 0x12f   : > { %v1119_v9 = vpop.permute.xlu1 %1118  ;;  %v1125_v52 = vpop.permute.xlu0 %1124 }
 0x130   : > { %1204 = vst.msk [vmem:[#allocation3 + $0x58] sm:$0xff] %vm1192_vm5, %v1119_v9  ;;  %1207 = vst.msk [vmem:[#allocation3 + $0x70] sm:$0xff] %vm1192_vm5, %v1125_v52  ;;  %v7542_v9 = vld [vmem:[%s11544_s3 + $0x20] ss:$0 sps:$4 sm:$0xff]  }
 0x131   : > { %1492 = vrot.lane.b32.xlu1 %v11653_v15, %s11614_s28  ;;  %1498 = vrot.lane.b32.xlu0 %v11654_v59, %s11614_s28  ;;  %v7543_v15 = vld [vmem:[%s11544_s3 + $0x18] sm:$0xff]  }
 0x132   : > { %7500 = vmatprep.subr.msk.bf16.mxu0 %vm2324_vm7, %v7542_v9 }
 0x133   : > { %v1123_v28 = vpop.permute.xlu1 %1122  ;;  %v1129_v3 = vpop.permute.xlu0 %1128 }
 0x134   : > { %1206 = vst.msk [vmem:[#allocation3 + $0x68] sm:$0xff] %vm1192_vm5, %v1123_v28  ;;  %1209 = vst.msk [vmem:[#allocation3 + $0x80] sm:$0xff] %vm1192_vm5, %v1129_v3  ;;  %v7544_v28 = vld [vmem:[%s11544_s3 + $0x10] sm:$0xff]  }
 0x135   : > { %1496 = vrot.lane.b32.xlu1 %v11655_v30, %s11614_s28  ;;  %1502 = vrot.lane.b32.xlu0 %v11656_v34, %s11614_s28  ;;  %v7545_v30 = vld [vmem:[%s11544_s3 + $0x8] sm:$0xff]  }
 0x137   : > { %v1127_v36 = vpop.permute.xlu1 %1126  ;;  %v1133_v49 = vpop.permute.xlu0 %1132 }
 0x138   : > { %1208 = vst.msk [vmem:[#allocation3 + $0x78] sm:$0xff] %vm1192_vm5, %v1127_v36  ;;  %1211 = vst.msk [vmem:[#allocation3 + $0x90] sm:$0xff] %vm1192_vm5, %v1133_v49  ;;  %v7546_v36 = vld [vmem:[%s11544_s3] sm:$0xff]   ;;  %v2001_v49 = vld [vmem:[#allocation2 + $0x52] sm:$0xff] }
 0x139   : > { %1500 = vrot.lane.b32.xlu1 %v11657_v37, %s11614_s28  ;;  %1506 = vrot.lane.b32.xlu0 %v11658_v38, %s11614_s28 }
 0x13b   : > { %v1131_v39 = vpop.permute.xlu1 %1130  ;;  %v1137_v40 = vpop.permute.xlu0 %1136 }
 0x13c   : > { %1210 = vst.msk [vmem:[#allocation3 + $0x88] sm:$0xff] %vm1192_vm5, %v1131_v39  ;;  %1213 = vst.msk [vmem:[#allocation3 + $0xa0] sm:$0xff] %vm1192_vm5, %v1137_v40  ;;  %v2000_v39 = vld [vmem:[#allocation2 + $0x4a] sm:$0xff] }
 0x13d   : > { %1504 = vrot.lane.b32.xlu1 %v11659_v41, %s11614_s28  ;;  %1510 = vrot.lane.b32.xlu0 %v11660_v11, %s11614_s28 }
 0x13f   : > { %v1135_v12 = vpop.permute.xlu1 %1134  ;;  %v1141_v19 = vpop.permute.xlu0 %1140 }
 0x140   : > { %1212 = vst.msk [vmem:[#allocation3 + $0x98] sm:$0xff] %vm1192_vm5, %v1135_v12  ;;  %1215 = vst.msk [vmem:[#allocation3 + $0xb0] sm:$0xff] %vm1192_vm5, %v1141_v19  ;;  %v1811_v12 = vld [vmem:[#allocation2 + $0x79] sm:$0xff] }
 0x141   : > { %1508 = vrot.lane.b32.xlu1 %v11661_v20, %s11614_s28  ;;  %1514 = vrot.lane.b32.xlu0 %v11662_v23, %s11614_s28  ;;  %v2002_v23 = vld [vmem:[#allocation2 + $0x62] sm:$0xff] }
 0x143   : > { %v1139_v24 = vpop.permute.xlu1 %1138  ;;  %v1145_v25 = vpop.permute.xlu0 %1144 }
 0x144   : > { %1214 = vst.msk [vmem:[#allocation3 + $0xa8] sm:$0xff] %vm1192_vm5, %v1139_v24  ;;  %1217 = vst.msk [vmem:[#allocation3 + $0xc0] sm:$0xff] %vm1192_vm5, %v1145_v25 }
 0x145   : > { %1512 = vrot.lane.b32.xlu1 %v11663_v26, %s11614_s28  ;;  %1518 = vrot.lane.b32.xlu0 %v11664_v31, %s11614_s28 }
 0x147   : > { %v1143_v32 = vpop.permute.xlu1 %1142  ;;  %v1149_v44 = vpop.permute.xlu0 %1148 }
 0x148   : > { %1216 = vst.msk [vmem:[#allocation3 + $0xb8] sm:$0xff] %vm1192_vm5, %v1143_v32  ;;  %1219 = vst.msk [vmem:[#allocation3 + $0xd0] sm:$0xff] %vm1192_vm5, %v1149_v44  ;;  %v1620_v32 = vld [vmem:[#allocation2 + $0x90] sm:$0xff] }
 0x149   : > { %1516 = vrot.lane.b32.xlu1 %v11665_v45, %s11614_s28  ;;  %1522 = vrot.lane.b32.xlu0 %v11666_v48, %s11614_s28  ;;  %v2005_v48 = vld [vmem:[#allocation2 + $0x82] sm:$0xff] }
 0x14b   : > { %v1147_v50 = vpop.permute.xlu1 %1146  ;;  %v1153_v56 = vpop.permute.xlu0 %1152 }
 0x14c   : > { %1218 = vst.msk [vmem:[#allocation3 + $0xc8] sm:$0xff] %vm1192_vm5, %v1147_v50  ;;  %1221 = vst.msk [vmem:[#allocation3 + $0xe0] sm:$0xff] %vm1192_vm5, %v1153_v56  ;;  %v1622_v50 = vld [vmem:[#allocation2 + $0xa8] sm:$0xff] }
 0x14d   : > { %1520 = vrot.lane.b32.xlu1 %v11667_v57, %s11614_s28  ;;  %1526 = vrot.lane.b32.xlu0 %v11668_v60, %s11614_s28  ;;  %v1621_v60 = vld [vmem:[#allocation2 + $0x98] sm:$0xff] }
 0x14f   : > { %v1151_v61 = vpop.permute.xlu1 %1150  ;;  %v1157_v42 = vpop.permute.xlu0 %1156 }
 0x150   : > { %1220 = vst.msk [vmem:[#allocation3 + $0xd8] sm:$0xff] %vm1192_vm5, %v1151_v61  ;;  %1223 = vst.msk [vmem:[#allocation3 + $0xf0] sm:$0xff] %vm1192_vm5, %v1157_v42  ;;  %v1813_v61 = vld [vmem:[#allocation2 + $0x91] sm:$0xff] }
 0x151   : > { %1524 = vrot.lane.b32.xlu1 %v8268_v10, %s11614_s28  ;;  %1530 = vrot.lane.b32.xlu0 %v11669_v5, %s11614_s28  ;;  %v11672_v10 = vld [vmem:[#allocation33_spill] sm:$0xff] }
 0x153   : > { %v1155_v6 = vpop.permute.xlu1 %1154  ;;  %v1290_v13 = vpop.permute.xlu0 %1289 }
 0x154   : > { %1222 = vst.msk [vmem:[#allocation3 + $0xe8] sm:$0xff] %vm1192_vm5, %v1155_v6  ;;  %v1815_v6 = vld [vmem:[#allocation2 + $0xa9] sm:$0xff] }
 0x155   : > { %1386 = vst.msk [vmem:[#allocation3] sm:$0xff] %vm1385_vm6, %v1290_v13  ;;  %1528 = vrot.lane.b32.xlu1 %v11670_v14, %s11614_s28  ;;  %1534 = vrot.lane.b32.xlu0 %v11671_v43, %s11614_s28  ;;  %v1814_v43 = vld [vmem:[#allocation2 + $0x99] sm:$0xff] }
 0x157   : > { %v1159_v1 = vpop.permute.xlu1 %1158  ;;  %v1294_v46 = vpop.permute.xlu0 %1293 }
 0x158   : > { %1224 = vst.msk [vmem:[#allocation3 + $0xf8] sm:$0xff] %vm1192_vm5, %v1159_v1  ;;  %v2006_v1 = vld [vmem:[#allocation2 + $0x92] sm:$0xff] }
 0x159   : > { %1388 = vst.msk [vmem:[#allocation3 + $0x10] sm:$0xff] %vm1385_vm6, %v1294_v46  ;;  %1532 = vrot.lane.b32.xlu1 %v11672_v10, %s11614_s28  ;;  %1538 = vrot.lane.b32.xlu0 %v8287_v63, %s11614_s28  ;;  %v8597_v63 = vld [vmem:[#allocation2 + $0x18a] sm:$0xff] }
 0x15b   : > { %v1292_v62 = vpop.permute.xlu1 %1291  ;;  %v1298_v0 = vpop.permute.xlu0 %1297 }
 0x15c   : > { %1387 = vst.msk [vmem:[#allocation3 + $0x8] sm:$0xff] %vm1385_vm6, %v1292_v62  ;;  %1390 = vst.msk [vmem:[#allocation3 + $0x20] sm:$0xff] %vm1385_vm6, %v1298_v0  ;;  %v1816_v62 = vld [vmem:[#allocation2 + $0xb1] sm:$0xff] }
 0x15d   : > { %1536 = vrot.lane.b32.xlu1 %v8295_v8, %s11614_s28  ;;  %1542 = vrot.lane.b32.xlu0 %v8583_v2, %s11614_s28  ;;  %v2008_v0 = vld [vmem:[#allocation2 + $0xaa] sm:$0xff] }
 0x15f   : > { %v1296_v47 = vpop.permute.xlu1 %1295  ;;  %v1302_v4 = vpop.permute.xlu0 %1301 }
 0x160   : > { %1389 = vst.msk [vmem:[#allocation3 + $0x18] sm:$0xff] %vm1385_vm6, %v1296_v47  ;;  %1392 = vst.msk [vmem:[#allocation3 + $0x30] sm:$0xff] %vm1385_vm6, %v1302_v4 }
 0x161   : > { %1540 = vrot.lane.b32.xlu1 %v8303_v7, %s11614_s28  ;;  %1676 = vrot.lane.b32.xlu0 %v7934_v53, %s7622_s29  ;;  %v2326_v53 = vsel %vm2324_vm7, %v7542_v9, 0 }
 0x162   : > { %7400 = vmatpush3.bf16.msra.mxu0 %v2326_v53  ;;  %v2009_v53 = vld [vmem:[#allocation2 + $0xb2] sm:$0xff] }
 0x163   : > { %v1300_v51 = vpop.permute.xlu1 %1299  ;;  %v1306_v8 = vpop.permute.xlu0 %1305  ;;  %7401 = vmatprep.subr.bf16.mxu0 %v7543_v15 }
 0x164   : > { %1391 = vst.msk [vmem:[#allocation3 + $0x28] sm:$0xff] %vm1385_vm6, %v1300_v51  ;;  %1394 = vst.msk [vmem:[#allocation3 + $0x40] sm:$0xff] %vm1385_vm6, %v1306_v8  ;;  %v1624_v51 = vld [vmem:[#allocation2 + $0xc0] sm:$0xff] }
 0x165   : > { %1544 = vrot.lane.b32.xlu1 %v8597_v63, %s11614_s28  ;;  %1680 = vrot.lane.b32.xlu0 %v7938_v55, %s7622_s29 }
 0x166   : > { %7402 = vmatpush3.bf16.msra.mxu0 %v7543_v15 }
 0x167   : > { %v1304_v7 = vpop.permute.xlu1 %1303  ;;  %v1310_v52 = vpop.permute.xlu0 %1309  ;;  %7403 = vmatprep.subr.bf16.mxu0 %v7544_v28 }
 0x168   : > { %1393 = vst.msk [vmem:[#allocation3 + $0x38] sm:$0xff] %vm1385_vm6, %v1304_v7  ;;  %1396 = vst.msk [vmem:[#allocation3 + $0x50] sm:$0xff] %vm1385_vm6, %v1310_v52  ;;  %v1626_v7 = vld [vmem:[#allocation2 + $0xd8] sm:$0xff] }
 0x169   : > { %1678 = vrot.lane.b32.xlu1 %v7969_v17, %s7622_s29  ;;  %1684 = vrot.lane.b32.xlu0 %v7971_v18, %s7622_s29  ;;  %v1808_v17 = vld [vmem:[#allocation2 + $0x51] sm:$0xff] }
 0x16a   : > { %7404 = vmatpush3.bf16.msra.mxu0 %v7544_v28 }
 0x16b   : > { %v1308_v55 = vpop.permute.xlu1 %1307  ;;  %v1314_v59 = vpop.permute.xlu0 %1313  ;;  %7405 = vmatprep.subr.bf16.mxu0 %v7545_v30 }
 0x16c   : > { %1395 = vst.msk [vmem:[#allocation3 + $0x48] sm:$0xff] %vm1385_vm6, %v1308_v55  ;;  %1398 = vst.msk [vmem:[#allocation3 + $0x60] sm:$0xff] %vm1385_vm6, %v1314_v59  ;;  %v1625_v55 = vld [vmem:[#allocation2 + $0xc8] sm:$0xff] }
 0x16d   : > { %1682 = vrot.lane.b32.xlu1 %v7993_v21, %s7622_s29  ;;  %1871 = vrot.lane.b32.xlu0 %v8413_v16, %s11618_s19  ;;  %v1999_v21 = vld [vmem:[#allocation2 + $0x3a] sm:$0xff] }
 0x16e   : > { %7406 = vmatpush3.bf16.msra.mxu0 %v7545_v30  ;;  %v1817_v59 = vld [vmem:[#allocation2 + $0xc1] sm:$0xff] }
 0x16f   : > { %v1312_v18 = vpop.permute.xlu1 %1311  ;;  %v1318_v3 = vpop.permute.xlu0 %1317  ;;  %7407 = vmatprep.subr.bf16.mxu0 %v7546_v36 }
 0x170   : > { %1397 = vst.msk [vmem:[#allocation3 + $0x58] sm:$0xff] %vm1385_vm6, %v1312_v18  ;;  %1400 = vst.msk [vmem:[#allocation3 + $0x70] sm:$0xff] %vm1385_vm6, %v1318_v3  ;;  %v1627_v18 = vld [vmem:[#allocation2 + $0xe0] sm:$0xff] }
 0x171   : > { %1869 = vrot.lane.b32.xlu1 %v8399_v58, %s11618_s19  ;;  %1875 = vrot.lane.b32.xlu0 %v1808_v17, %s11618_s19  ;;  %v1998_v58 = vld [vmem:[#allocation2 + $0x32] sm:$0xff] }
 0x172   : > { %7408 = vmatpush3.bf16.msra.mxu0 %v7546_v36  ;;  %v1819_v3 = vld [vmem:[#allocation2 + $0xd9] sm:$0xff] }
 0x173   : > { %v1316_v16 = vpop.permute.xlu1 %1315  ;;  %v1322_v34 = vpop.permute.xlu0 %1321 }
 0x174   : > { %1399 = vst.msk [vmem:[#allocation3 + $0x68] sm:$0xff] %vm1385_vm6, %v1316_v16  ;;  %1402 = vst.msk [vmem:[#allocation3 + $0x80] sm:$0xff] %vm1385_vm6, %v1322_v34  ;;  %v1818_v16 = vld [vmem:[#allocation2 + $0xc9] sm:$0xff] }
 0x175   : > { %1873 = vrot.lane.b32.xlu1 %v8406_v54, %s11618_s19  ;;  %2064 = vrot.lane.b32.xlu0 %v1999_v21, %s7624_s11  ;;  %v2010_v34 = vld [vmem:[#allocation2 + $0xc2] sm:$0xff] }
 0x177   : > { %v1320_v37 = vpop.permute.xlu1 %1319  ;;  %v1326_v38 = vpop.permute.xlu0 %1325 }
 0x178   : > { %1401 = vst.msk [vmem:[#allocation3 + $0x78] sm:$0xff] %vm1385_vm6, %v1320_v37  ;;  %1404 = vst.msk [vmem:[#allocation3 + $0x90] sm:$0xff] %vm1385_vm6, %v1326_v38  ;;  %v2012_v37 = vld [vmem:[#allocation2 + $0xda] sm:$0xff] }
 0x179   : > { %2062 = vrot.lane.b32.xlu1 %v1998_v58, %s7624_s11  ;;  %2068 = vrot.lane.b32.xlu0 %v2001_v49, %s7624_s11  ;;  %v1820_v49 = vld [vmem:[#allocation2 + $0xe1] sm:$0xff] }
 0x17b   : > { %v1324_v40 = vpop.permute.xlu1 %1323  ;;  %v1330_v54 = vpop.permute.xlu0 %1329 }
 0x17c   : > { %1403 = vst.msk [vmem:[#allocation3 + $0x88] sm:$0xff] %vm1385_vm6, %v1324_v40  ;;  %1406 = vst.msk [vmem:[#allocation3 + $0xa0] sm:$0xff] %vm1385_vm6, %v1330_v54  ;;  %v2011_v40 = vld [vmem:[#allocation2 + $0xca] sm:$0xff] }
 0x17d   : > { %2066 = vrot.lane.b32.xlu1 %v2000_v39, %s7624_s11  ;;  %1688 = vrot.lane.b32.xlu0 %v7995_v22, %s7622_s29  ;;  %v1810_v22 = vld [vmem:[#allocation2 + $0x69] sm:$0xff] }
 0x17e   : > { %v1628_v54 = vld [vmem:[#allocation2 + $0xf0] sm:$0xff] }
 0x17f   : > { %v1328_v41 = vpop.permute.xlu1 %1327  ;;  %v1334_v11 = vpop.permute.xlu0 %1333 }
 0x180   : > { %1405 = vst.msk [vmem:[#allocation3 + $0x98] sm:$0xff] %vm1385_vm6, %v1328_v41  ;;  %1408 = vst.msk [vmem:[#allocation3 + $0xb0] sm:$0xff] %vm1385_vm6, %v1334_v11 }
 0x181   : > { %1686 = vrot.lane.b32.xlu1 %v8013_v27, %s7622_s29  ;;  %1877 = vrot.lane.b32.xlu0 %v8415_v33, %s11618_s19  ;;  %v1812_v27 = vld [vmem:[#allocation2 + $0x81] sm:$0xff] }
 0x182   : > { %v2004_v33 = vld [vmem:[#allocation2 + $0x7a] sm:$0xff] }
 0x183   : > { %v1332_v19 = vpop.permute.xlu1 %1331  ;;  %v1338_v20 = vpop.permute.xlu0 %1337 }
 0x184   : > { %1407 = vst.msk [vmem:[#allocation3 + $0xa8] sm:$0xff] %vm1385_vm6, %v1332_v19  ;;  %1410 = vst.msk [vmem:[#allocation3 + $0xc0] sm:$0xff] %vm1385_vm6, %v1338_v20  ;;  %v1630_v19 = vld [vmem:[#allocation2 + $0x108] sm:$0xff] }
 0x185   : > { %1690 = vrot.lane.b32.xlu1 %v8019_v29, %s7622_s29  ;;  %1881 = vrot.lane.b32.xlu0 %v1811_v12, %s11618_s19  ;;  %v2003_v29 = vld [vmem:[#allocation2 + $0x6a] sm:$0xff]  ;;  %v2013_v12 = vld [vmem:[#allocation2 + $0xe2] sm:$0xff] }
 0x187   : > { %v1336_v24 = vpop.permute.xlu1 %1335  ;;  %v1342_v25 = vpop.permute.xlu0 %1341 }
 0x188   : > { %1409 = vst.msk [vmem:[#allocation3 + $0xb8] sm:$0xff] %vm1385_vm6, %v1336_v24  ;;  %1412 = vst.msk [vmem:[#allocation3 + $0xd0] sm:$0xff] %vm1385_vm6, %v1342_v25  ;;  %v1821_v24 = vld [vmem:[#allocation2 + $0xf1] sm:$0xff] }
 0x189   : > { %1879 = vrot.lane.b32.xlu1 %v1810_v22, %s11618_s19  ;;  %2070 = vrot.lane.b32.xlu0 %v2002_v23, %s7624_s11  ;;  %v1629_v23 = vld [vmem:[#allocation2 + $0xf8] sm:$0xff] }
 0x18b   : > { %v1340_v26 = vpop.permute.xlu1 %1339  ;;  %v1346_v31 = vpop.permute.xlu0 %1345 }
 0x18c   : > { %1411 = vst.msk [vmem:[#allocation3 + $0xc8] sm:$0xff] %vm1385_vm6, %v1340_v26  ;;  %1414 = vst.msk [vmem:[#allocation3 + $0xe0] sm:$0xff] %vm1385_vm6, %v1346_v31  ;;  %v1823_v26 = vld [vmem:[#allocation2 + $0x109] sm:$0xff] }
 0x18d   : > { %1883 = vrot.lane.b32.xlu1 %v1812_v27, %s11618_s19  ;;  %2074 = vrot.lane.b32.xlu0 %v2004_v33, %s7624_s11  ;;  %v1631_v33 = vld [vmem:[#allocation2 + $0x110] sm:$0xff] }
 0x18f   : > { %v1344_v44 = vpop.permute.xlu1 %1343  ;;  %v1350_v45 = vpop.permute.xlu0 %1349 }
 0x190   : > { %1413 = vst.msk [vmem:[#allocation3 + $0xd8] sm:$0xff] %vm1385_vm6, %v1344_v44  ;;  %1416 = vst.msk [vmem:[#allocation3 + $0xf0] sm:$0xff] %vm1385_vm6, %v1350_v45  ;;  %v2014_v44 = vld [vmem:[#allocation2 + $0xf2] sm:$0xff] }
 0x191   : > { %2072 = vrot.lane.b32.xlu1 %v2003_v29, %s7624_s11  ;;  %1692 = vrot.lane.b32.xlu0 %v1620_v32, %s7622_s29  ;;  %v1822_v32 = vld [vmem:[#allocation2 + $0xf9] sm:$0xff] }
 0x193   : > { %v1348_v56 = vpop.permute.xlu1 %1347  ;;  %v1483_v57 = vpop.permute.xlu0 %1482 }
 0x194   : > { %1415 = vst.msk [vmem:[#allocation3 + $0xe8] sm:$0xff] %vm1385_vm6, %v1348_v56  ;;  %v2016_v56 = vld [vmem:[#allocation2 + $0x10a] sm:$0xff] }
 0x195   : > { %1579 = vst.msk [vmem:[#allocation3] sm:$0xff] %vm1578_vm8, %v1483_v57  ;;  %2076 = vrot.lane.b32.xlu1 %v2005_v48, %s7624_s11  ;;  %1696 = vrot.lane.b32.xlu0 %v1622_v50, %s7622_s29  ;;  %v1824_v50 = vld [vmem:[#allocation2 + $0x111] sm:$0xff] }
 0x197   : > { %v1352_v42 = vpop.permute.xlu1 %1351  ;;  %v1487_v5 = vpop.permute.xlu0 %1486 }
 0x198   : > { %1417 = vst.msk [vmem:[#allocation3 + $0xf8] sm:$0xff] %vm1385_vm6, %v1352_v42  ;;  %v1632_v42 = vld [vmem:[#allocation2 + $0x120] sm:$0xff] }
 0x199   : > { %1581 = vst.msk [vmem:[#allocation3 + $0x10] sm:$0xff] %vm1578_vm8, %v1487_v5  ;;  %1694 = vrot.lane.b32.xlu1 %v1621_v60, %s7622_s29  ;;  %1885 = vrot.lane.b32.xlu0 %v1813_v61, %s11618_s19  ;;  %v2015_v61 = vld [vmem:[#allocation2 + $0xfa] sm:$0xff] }
 0x19b   : > { %v1485_v13 = vpop.permute.xlu1 %1484  ;;  %v1491_v14 = vpop.permute.xlu0 %1490 }
 0x19c   : > { %1580 = vst.msk [vmem:[#allocation3 + $0x8] sm:$0xff] %vm1578_vm8, %v1485_v13  ;;  %1583 = vst.msk [vmem:[#allocation3 + $0x20] sm:$0xff] %vm1578_vm8, %v1491_v14  ;;  %v2017_v13 = vld [vmem:[#allocation2 + $0x112] sm:$0xff] }
 0x19d   : > { %1698 = vrot.lane.b32.xlu1 %v8037_v35, %s7622_s29  ;;  %1889 = vrot.lane.b32.xlu0 %v1815_v6, %s11618_s19  ;;  %v2007_v35 = vld [vmem:[#allocation2 + $0x9a] sm:$0xff] }
 0x19e   : > { %v1634_v14 = vld [vmem:[#allocation2 + $0x138] sm:$0xff] }
 0x19f   : > { %v1489_v46 = vpop.permute.xlu1 %1488  ;;  %v1495_v10 = vpop.permute.xlu0 %1494 }
 0x1a0   : > { %1582 = vst.msk [vmem:[#allocation3 + $0x18] sm:$0xff] %vm1578_vm8, %v1489_v46  ;;  %1585 = vst.msk [vmem:[#allocation3 + $0x30] sm:$0xff] %vm1578_vm8, %v1495_v10  ;;  %v1633_v46 = vld [vmem:[#allocation2 + $0x128] sm:$0xff] }
 0x1a1   : > { %1887 = vrot.lane.b32.xlu1 %v1814_v43, %s11618_s19  ;;  %2078 = vrot.lane.b32.xlu0 %v2006_v1, %s7624_s11  ;;  %v1825_v10 = vld [vmem:[#allocation2 + $0x121] sm:$0xff] }
 0x1a3   : > { %v1493_v47 = vpop.permute.xlu1 %1492  ;;  %v1499_v4 = vpop.permute.xlu0 %1498 }
 0x1a4   : > { %1584 = vst.msk [vmem:[#allocation3 + $0x28] sm:$0xff] %vm1578_vm8, %v1493_v47  ;;  %1587 = vst.msk [vmem:[#allocation3 + $0x40] sm:$0xff] %vm1578_vm8, %v1499_v4  ;;  %v1635_v47 = vld [vmem:[#allocation2 + $0x140] sm:$0xff] }
 0x1a5   : > { %1891 = vrot.lane.b32.xlu1 %v1816_v62, %s11618_s19  ;;  %2082 = vrot.lane.b32.xlu0 %v2008_v0, %s7624_s11  ;;  %v1827_v4 = vld [vmem:[#allocation2 + $0x139] sm:$0xff] }
 0x1a7   : > { %v1497_v8 = vpop.permute.xlu1 %1496  ;;  %v1503_v9 = vpop.permute.xlu0 %1502 }
 0x1a8   : > { %1586 = vst.msk [vmem:[#allocation3 + $0x38] sm:$0xff] %vm1578_vm8, %v1497_v8  ;;  %1589 = vst.msk [vmem:[#allocation3 + $0x50] sm:$0xff] %vm1578_vm8, %v1503_v9  ;;  %v1826_v8 = vld [vmem:[#allocation2 + $0x129] sm:$0xff] }
 0x1a9   : > { %2080 = vrot.lane.b32.xlu1 %v2007_v35, %s7624_s11  ;;  %1700 = vrot.lane.b32.xlu0 %v1624_v51, %s7622_s29  ;;  %v2018_v9 = vld [vmem:[#allocation2 + $0x122] sm:$0xff] }
 0x1ab   : > { %v1501_v52 = vpop.permute.xlu1 %1500  ;;  %v1507_v15 = vpop.permute.xlu0 %1506 }
 0x1ac   : > { %1588 = vst.msk [vmem:[#allocation3 + $0x48] sm:$0xff] %vm1578_vm8, %v1501_v52  ;;  %1591 = vst.msk [vmem:[#allocation3 + $0x60] sm:$0xff] %vm1578_vm8, %v1507_v15  ;;  %v1828_v52 = vld [vmem:[#allocation2 + $0x141] sm:$0xff] }
 0x1ad   : > { %2084 = vrot.lane.b32.xlu1 %v2009_v53, %s7624_s11  ;;  %1704 = vrot.lane.b32.xlu0 %v1626_v7, %s7622_s29  ;;  %v2020_v15 = vld [vmem:[#allocation2 + $0x13a] sm:$0xff] }
 0x1af   : > { %v1505_v28 = vpop.permute.xlu1 %1504  ;;  %v1511_v17 = vpop.permute.xlu0 %1510 }
 0x1b0   : > { %1590 = vst.msk [vmem:[#allocation3 + $0x58] sm:$0xff] %vm1578_vm8, %v1505_v28  ;;  %1593 = vst.msk [vmem:[#allocation3 + $0x70] sm:$0xff] %vm1578_vm8, %v1511_v17  ;;  %v2019_v28 = vld [vmem:[#allocation2 + $0x12a] sm:$0xff] }
 0x1b1   : > { %1702 = vrot.lane.b32.xlu1 %v1625_v55, %s7622_s29  ;;  %1893 = vrot.lane.b32.xlu0 %v1817_v59, %s11618_s19  ;;  %v1636_v17 = vld [vmem:[#allocation2 + $0x150] sm:$0xff] }
 0x1b3   : > { %v1509_v30 = vpop.permute.xlu1 %1508  ;;  %v1515_v21 = vpop.permute.xlu0 %1514 }
 0x1b4   : > { %1592 = vst.msk [vmem:[#allocation3 + $0x68] sm:$0xff] %vm1578_vm8, %v1509_v30  ;;  %1595 = vst.msk [vmem:[#allocation3 + $0x80] sm:$0xff] %vm1578_vm8, %v1515_v21  ;;  %v2021_v21 = vld [vmem:[#allocation2 + $0x142] sm:$0xff] }
 0x1b5   : > { %1706 = vrot.lane.b32.xlu1 %v1627_v18, %s7622_s29  ;;  %1897 = vrot.lane.b32.xlu0 %v1819_v3, %s11618_s19 }
 0x1b7   : > { %v1513_v36 = vpop.permute.xlu1 %1512  ;;  %v1519_v58 = vpop.permute.xlu0 %1518 }
 0x1b8   : > { %1594 = vst.msk [vmem:[#allocation3 + $0x78] sm:$0xff] %vm1578_vm8, %v1513_v36  ;;  %1597 = vst.msk [vmem:[#allocation3 + $0x90] sm:$0xff] %vm1578_vm8, %v1519_v58 }
 0x1b9   : > { %1895 = vrot.lane.b32.xlu1 %v1818_v16, %s11618_s19  ;;  %2086 = vrot.lane.b32.xlu0 %v2010_v34, %s7624_s11  ;;  %v1638_v16 = vld [vmem:[#allocation2 + $0x168] sm:$0xff] }
 0x1bb   : > { %v1517_v38 = vpop.permute.xlu1 %1516  ;;  %v1523_v39 = vpop.permute.xlu0 %1522 }
 0x1bc   : > { %1596 = vst.msk [vmem:[#allocation3 + $0x88] sm:$0xff] %vm1578_vm8, %v1517_v38  ;;  %1599 = vst.msk [vmem:[#allocation3 + $0xa0] sm:$0xff] %vm1578_vm8, %v1523_v39  ;;  %v1637_v38 = vld [vmem:[#allocation2 + $0x158] sm:$0xff] }
 0x1bd   : > { %1899 = vrot.lane.b32.xlu1 %v1820_v49, %s11618_s19  ;;  %2090 = vrot.lane.b32.xlu0 %v2012_v37, %s7624_s11  ;;  %v1829_v39 = vld [vmem:[#allocation2 + $0x151] sm:$0xff] }
 0x1bf   : > { %v1521_v41 = vpop.permute.xlu1 %1520  ;;  %v1527_v11 = vpop.permute.xlu0 %1526 }
 0x1c0   : > { %1598 = vst.msk [vmem:[#allocation3 + $0x98] sm:$0xff] %vm1578_vm8, %v1521_v41  ;;  %1601 = vst.msk [vmem:[#allocation3 + $0xb0] sm:$0xff] %vm1578_vm8, %v1527_v11 }
 0x1c1   : > { %2088 = vrot.lane.b32.xlu1 %v2011_v40, %s7624_s11  ;;  %1708 = vrot.lane.b32.xlu0 %v1628_v54, %s7622_s29 }
 0x1c3   : > { %v1525_v20 = vpop.permute.xlu1 %1524  ;;  %v1531_v22 = vpop.permute.xlu0 %1530 }
 0x1c4   : > { %1600 = vst.msk [vmem:[#allocation3 + $0xa8] sm:$0xff] %vm1578_vm8, %v1525_v20  ;;  %1603 = vst.msk [vmem:[#allocation3 + $0xc0] sm:$0xff] %vm1578_vm8, %v1531_v22 }
 0x1c5   : > { %2092 = vrot.lane.b32.xlu1 %v2013_v12, %s7624_s11  ;;  %1712 = vrot.lane.b32.xlu0 %v1630_v19, %s7622_s29  ;;  %v1639_v12 = vld [vmem:[#allocation2 + $0x170] sm:$0xff] }
 0x1c6   : > { %v1831_v19 = vld [vmem:[#allocation2 + $0x169] sm:$0xff] }
 0x1c7   : > { %v1529_v25 = vpop.permute.xlu1 %1528  ;;  %v1535_v27 = vpop.permute.xlu0 %1534 }
 0x1c8   : > { %1602 = vst.msk [vmem:[#allocation3 + $0xb8] sm:$0xff] %vm1578_vm8, %v1529_v25  ;;  %1605 = vst.msk [vmem:[#allocation3 + $0xd0] sm:$0xff] %vm1578_vm8, %v1535_v27 }
 0x1c9   : > { %1710 = vrot.lane.b32.xlu1 %v1629_v23, %s7622_s29  ;;  %1901 = vrot.lane.b32.xlu0 %v1821_v24, %s11618_s19  ;;  %v1830_v23 = vld [vmem:[#allocation2 + $0x159] sm:$0xff] }
 0x1ca   : > { %v2022_v24 = vld [vmem:[#allocation2 + $0x152] sm:$0xff] }
 0x1cb   : > { %v1533_v31 = vpop.permute.xlu1 %1532  ;;  %v1539_v29 = vpop.permute.xlu0 %1538 }
 0x1cc   : > { %1604 = vst.msk [vmem:[#allocation3 + $0xc8] sm:$0xff] %vm1578_vm8, %v1533_v31  ;;  %1607 = vst.msk [vmem:[#allocation3 + $0xe0] sm:$0xff] %vm1578_vm8, %v1539_v29 }
 0x1cd   : > { %1714 = vrot.lane.b32.xlu1 %v1631_v33, %s7622_s29  ;;  %1905 = vrot.lane.b32.xlu0 %v1823_v26, %s11618_s19  ;;  %v1832_v33 = vld [vmem:[#allocation2 + $0x171] sm:$0xff] }
 0x1ce   : > { %v2024_v26 = vld [vmem:[#allocation2 + $0x16a] sm:$0xff] }
 0x1cf   : > { %v1537_v45 = vpop.permute.xlu1 %1536  ;;  %v1543_v48 = vpop.permute.xlu0 %1542 }
 0x1d0   : > { %1606 = vst.msk [vmem:[#allocation3 + $0xd8] sm:$0xff] %vm1578_vm8, %v1537_v45  ;;  %1609 = vst.msk [vmem:[#allocation3 + $0xf0] sm:$0xff] %vm1578_vm8, %v1543_v48 }
 0x1d1   : > { %1903 = vrot.lane.b32.xlu1 %v1822_v32, %s11618_s19  ;;  %2094 = vrot.lane.b32.xlu0 %v2014_v44, %s7624_s11  ;;  %v2023_v32 = vld [vmem:[#allocation2 + $0x15a] sm:$0xff] }
 0x1d2   : > { %v1640_v44 = vld [vmem:[#allocation2 + $0x180] sm:$0xff] }
 0x1d3   : > { %v1541_v57 = vpop.permute.xlu1 %1540  ;;  %v1677_v60 = vpop.permute.xlu0 %1676 }
 0x1d4   : > { %1608 = vst.msk [vmem:[#allocation3 + $0xe8] sm:$0xff] %vm1578_vm8, %v1541_v57  ;;  %v1642_v57 = vld [vmem:[#allocation2 + $0x198] sm:$0xff] }
 0x1d5   : > { %1773 = vst.msk [vmem:[#allocation3] sm:$0xff] %vm1772_vm9, %v1677_v60  ;;  %1907 = vrot.lane.b32.xlu1 %v1824_v50, %s11618_s19  ;;  %2098 = vrot.lane.b32.xlu0 %v2016_v56, %s7624_s11  ;;  %v2025_v56 = vld [vmem:[#allocation2 + $0x172] sm:$0xff] }
 0x1d7   : > { %v1545_v5 = vpop.permute.xlu1 %1544  ;;  %v1681_v6 = vpop.permute.xlu0 %1680 }
 0x1d8   : > { %1610 = vst.msk [vmem:[#allocation3 + $0xf8] sm:$0xff] %vm1578_vm8, %v1545_v5 }
 0x1d9   : > { %1775 = vst.msk [vmem:[#allocation3 + $0x10] sm:$0xff] %vm1772_vm9, %v1681_v6  ;;  %2096 = vrot.lane.b32.xlu1 %v2015_v61, %s7624_s11  ;;  %1716 = vrot.lane.b32.xlu0 %v1632_v42, %s7622_s29 }
 0x1db   : > { %v1679_v43 = vpop.permute.xlu1 %1678  ;;  %v1685_v1 = vpop.permute.xlu0 %1684 }
 0x1dc   : > { %1774 = vst.msk [vmem:[#allocation3 + $0x8] sm:$0xff] %vm1772_vm9, %v1679_v43  ;;  %1777 = vst.msk [vmem:[#allocation3 + $0x20] sm:$0xff] %vm1772_vm9, %v1685_v1 }
 0x1dd   : > { %2100 = vrot.lane.b32.xlu1 %v2017_v13, %s7624_s11  ;;  %1720 = vrot.lane.b32.xlu0 %v1634_v14, %s7622_s29  ;;  %v1641_v13 = vld [vmem:[#allocation2 + $0x188] sm:$0xff] }
 0x1de   : > { %v1833_v14 = vld [vmem:[#allocation2 + $0x181] sm:$0xff] }
 0x1df   : > { %v1683_v62 = vpop.permute.xlu1 %1682  ;;  %v1872_v0 = vpop.permute.xlu0 %1871 }
 0x1e0   : > { %1776 = vst.msk [vmem:[#allocation3 + $0x18] sm:$0xff] %vm1772_vm9, %v1683_v62  ;;  %v1643_v62 = vld [vmem:[#allocation2 + $0x1a0] sm:$0xff] }
 0x1e1   : > { %1967 = vst.msk [vmem:[#allocation3 + $0x8] sm:$0xff] %vm1965_vm10, %v1872_v0  ;;  %1718 = vrot.lane.b32.xlu1 %v1633_v46, %s7622_s29  ;;  %1909 = vrot.lane.b32.xlu0 %v1825_v10, %s11618_s19  ;;  %v1835_v0 = vld [vmem:[#allocation2 + $0x199] sm:$0xff] }
 0x1e3   : > { %v1870_v35 = vpop.permute.xlu1 %1869  ;;  %v1876_v51 = vpop.permute.xlu0 %1875 }
 0x1e4   : > { %1966 = vst.msk [vmem:[#allocation3] sm:$0xff] %vm1965_vm10, %v1870_v35  ;;  %1969 = vst.msk [vmem:[#allocation3 + $0x18] sm:$0xff] %vm1965_vm10, %v1876_v51  ;;  %v1834_v35 = vld [vmem:[#allocation2 + $0x189] sm:$0xff] }
 0x1e5   : > { %1722 = vrot.lane.b32.xlu1 %v1635_v47, %s7622_s29  ;;  %1913 = vrot.lane.b32.xlu0 %v1827_v4, %s11618_s19 }
 0x1e7   : > { %v1874_v53 = vpop.permute.xlu1 %1873  ;;  %v2065_v7 = vpop.permute.xlu0 %2064 }
 0x1e8   : > { %1968 = vst.msk [vmem:[#allocation3 + $0x10] sm:$0xff] %vm1965_vm10, %v1874_v53  ;;  %v2028_v53 = vld [vmem:[#allocation2 + $0x19a] sm:$0xff] }
 0x1e9   : > { %2160 = vst.msk [vmem:[#allocation3 + $0x8] sm:$0xff] %vm2158_vm11, %v2065_v7  ;;  %1911 = vrot.lane.b32.xlu1 %v1826_v8, %s11618_s19  ;;  %2102 = vrot.lane.b32.xlu0 %v2018_v9, %s7624_s11  ;;  %v1836_v9 = vld [vmem:[#allocation2 + $0x1a1] sm:$0xff] }
 0x1eb   : > { %v2063_v55 = vpop.permute.xlu1 %2062  ;;  %v2069_v59 = vpop.permute.xlu0 %2068 }
 0x1ec   : > { %2159 = vst.msk [vmem:[#allocation3] sm:$0xff] %vm2158_vm11, %v2063_v55  ;;  %2162 = vst.msk [vmem:[#allocation3 + $0x18] sm:$0xff] %vm2158_vm11, %v2069_v59  ;;  %v2029_v59 = vld [vmem:[#allocation2 + $0x1a2] sm:$0xff] }
 0x1ed   : > { %1915 = vrot.lane.b32.xlu1 %v1828_v52, %s11618_s19  ;;  %2106 = vrot.lane.b32.xlu0 %v2020_v15, %s7624_s11 }
 0x1ef   : > { %v2067_v18 = vpop.permute.xlu1 %2066  ;;  %v1689_v3 = vpop.permute.xlu0 %1688 }
 0x1f0   : > { %2161 = vst.msk [vmem:[#allocation3 + $0x10] sm:$0xff] %vm2158_vm11, %v2067_v18  ;;  %v2192_v30 = vld [vmem:[#allocation3 + $0x8] sm:$0xff] }
 0x1f1   : > { %1779 = vst.msk [vmem:[#allocation3 + $0x30] sm:$0xff] %vm1772_vm9, %v1689_v3  ;;  %2104 = vrot.lane.b32.xlu1 %v2019_v28, %s7624_s11  ;;  %1724 = vrot.lane.b32.xlu0 %v1636_v17, %s7622_s29 }
 0x1f3   : > { %v1687_v34 = vpop.permute.xlu1 %1686  ;;  %v2191_v36 = vld [vmem:[#allocation3] sm:$0xff]  ;;  %v1878_v58 = vpop.permute.xlu0 %1877  ;;  %v2194_v37 = vld [vmem:[#allocation3 + $0x18] sm:$0xff] }
 0x1f4   : > { %1778 = vst.msk [vmem:[#allocation3 + $0x28] sm:$0xff] %vm1772_vm9, %v1687_v34  ;;  %v2223_v49 = vpack.c.bf16 %v2192_v30, %v2191_v36 }
 0x1f5   : > { %1970 = vst.msk [vmem:[#allocation3 + $0x20] sm:$0xff] %vm1965_vm10, %v1878_v58  ;;  %2108 = vrot.lane.b32.xlu1 %v2021_v21, %s7624_s11  ;;  %1728 = vrot.lane.b32.xlu0 %v1638_v16, %s7622_s29 }
 0x1f6   : > { %7409 = vmatprep.mubr.msk.bf16.mxu0 %vm2275_vm12, %v2223_v49 }
 0x1f7   : > { %v1691_v40 = vpop.permute.xlu1 %1690  ;;  %v2193_v54 = vld [vmem:[#allocation3 + $0x10] sm:$0xff]  ;;  %v1882_v41 = vpop.permute.xlu0 %1881 }
 0x1f8   : > { %1780 = vst.msk [vmem:[#allocation3 + $0x38] sm:$0xff] %vm1772_vm9, %v1691_v40  ;;  %v2224_v11 = vpack.c.bf16 %v2194_v37, %v2193_v54 }
 0x1f9   : > { %1972 = vst.msk [vmem:[#allocation3 + $0x30] sm:$0xff] %vm1965_vm10, %v1882_v41  ;;  %1726 = vrot.lane.b32.xlu1 %v1637_v38, %s7622_s29  ;;  %1917 = vrot.lane.b32.xlu0 %v1829_v39, %s11618_s19 }
 0x1fa   : > { %7410 = vmatmul.mubr.msk.bf16.vlgmr.msra.gmra.mxu0 %vm2275_vm12, %v2224_v11 }
 0x1fb   : > { %v1880_v20 = vpop.permute.xlu1 %1879  ;;  %v2071_v22 = vpop.permute.xlu0 %2070 }
 0x1fc   : > { %1971 = vst.msk [vmem:[#allocation3 + $0x28] sm:$0xff] %vm1965_vm10, %v1880_v20 }
 0x1fd   : > { %2163 = vst.msk [vmem:[#allocation3 + $0x20] sm:$0xff] %vm2158_vm11, %v2071_v22  ;;  %1730 = vrot.lane.b32.xlu1 %v1639_v12, %s7622_s29  ;;  %1921 = vrot.lane.b32.xlu0 %v1831_v19, %s11618_s19 }
 0x1ff   : > { %v1884_v25 = vpop.permute.xlu1 %1883  ;;  %v2075_v27 = vpop.permute.xlu0 %2074 }
 0x200   : > { %1973 = vst.msk [vmem:[#allocation3 + $0x38] sm:$0xff] %vm1965_vm10, %v1884_v25 }
 0x201   : > { %2165 = vst.msk [vmem:[#allocation3 + $0x30] sm:$0xff] %vm2158_vm11, %v2075_v27  ;;  %1919 = vrot.lane.b32.xlu1 %v1830_v23, %s11618_s19  ;;  %2110 = vrot.lane.b32.xlu0 %v2022_v24, %s7624_s11 }
 0x203   : > { %v2073_v31 = vpop.permute.xlu1 %2072  ;;  %v1693_v29 = vpop.permute.xlu0 %1692 }
 0x204   : > { %2164 = vst.msk [vmem:[#allocation3 + $0x28] sm:$0xff] %vm2158_vm11, %v2073_v31  ;;  %v2195_v50 = vld [vmem:[#allocation3 + $0x20] sm:$0xff]  ;;  %v2695_v31 = vld [vmem:[#allocation2 + $0x1] sm:$0xff] }
 0x205   : > { %1781 = vst.msk [vmem:[#allocation3 + $0x40] sm:$0xff] %vm1772_vm9, %v1693_v29  ;;  %1923 = vrot.lane.b32.xlu1 %v1832_v33, %s11618_s19  ;;  %2114 = vrot.lane.b32.xlu0 %v2024_v26, %s7624_s11 }
 0x207   : > { %v2077_v45 = vpop.permute.xlu1 %2076  ;;  %v1697_v48 = vpop.permute.xlu0 %1696 }
 0x208   : > { %2166 = vst.msk [vmem:[#allocation3 + $0x38] sm:$0xff] %vm2158_vm11, %v2077_v45  ;;  %v2197_v6 = vld [vmem:[#allocation3 + $0x30] sm:$0xff] }
 0x209   : > { %1783 = vst.msk [vmem:[#allocation3 + $0x50] sm:$0xff] %vm1772_vm9, %v1697_v48  ;;  %2112 = vrot.lane.b32.xlu1 %v2023_v32, %s7624_s11  ;;  %1732 = vrot.lane.b32.xlu0 %v1640_v44, %s7622_s29  ;;  %v2696_v44 = vld [vmem:[#allocation2 + $0x9] sm:$0xff] }
 0x20b   : > { %v1695_v60 = vpop.permute.xlu1 %1694  ;;  %v2196_v61 = vld [vmem:[#allocation3 + $0x28] sm:$0xff]  ;;  %v1886_v42 = vpop.permute.xlu0 %1885 }
 0x20c   : > { %1782 = vst.msk [vmem:[#allocation3 + $0x48] sm:$0xff] %vm1772_vm9, %v1695_v60  ;;  %v2225_v5 = vpack.c.bf16 %v2196_v61, %v2195_v50 }
 0x20d   : > { %1974 = vst.msk [vmem:[#allocation3 + $0x40] sm:$0xff] %vm1965_vm10, %v1886_v42  ;;  %2116 = vrot.lane.b32.xlu1 %v2025_v56, %s7624_s11  ;;  %1736 = vrot.lane.b32.xlu0 %v1642_v57, %s7622_s29 }
 0x20e   : > { %7413 = vmatprep.mubr.msk.bf16.mxu0 %vm2275_vm12, %v2225_v5 }
 0x20f   : > { %v1699_v43 = vpop.permute.xlu1 %1698  ;;  %v2198_v1 = vld [vmem:[#allocation3 + $0x38] sm:$0xff]  ;;  %v1890_v46 = vpop.permute.xlu0 %1889 }
 0x210   : > { %1784 = vst.msk [vmem:[#allocation3 + $0x58] sm:$0xff] %vm1772_vm9, %v1699_v43  ;;  %v2226_v10 = vpack.c.bf16 %v2198_v1, %v2197_v6 }
 0x211   : > { %1976 = vst.msk [vmem:[#allocation3 + $0x50] sm:$0xff] %vm1965_vm10, %v1890_v46  ;;  %1734 = vrot.lane.b32.xlu1 %v1641_v13, %s7622_s29  ;;  %1925 = vrot.lane.b32.xlu0 %v1833_v14, %s11618_s19 }
 0x212   : > { %7414 = vmatmul.mubr.msk.bf16.gmra.mxu0 %vm2275_vm12, %v2226_v10 }
 0x213   : > { %v1888_v47 = vpop.permute.xlu1 %1887  ;;  %v2079_v4 = vpop.permute.xlu0 %2078 }
 0x214   : > { %1975 = vst.msk [vmem:[#allocation3 + $0x48] sm:$0xff] %vm1965_vm10, %v1888_v47 }
 0x215   : > { %2167 = vst.msk [vmem:[#allocation3 + $0x40] sm:$0xff] %vm2158_vm11, %v2079_v4  ;;  %1738 = vrot.lane.b32.xlu1 %v1643_v62, %s7622_s29  ;;  %1929 = vrot.lane.b32.xlu0 %v1835_v0, %s11618_s19 }
 0x217   : > { %v1892_v51 = vpop.permute.xlu1 %1891  ;;  %v2083_v8 = vpop.permute.xlu0 %2082 }
 0x218   : > { %1977 = vst.msk [vmem:[#allocation3 + $0x58] sm:$0xff] %vm1965_vm10, %v1892_v51 }
 0x219   : > { %2169 = vst.msk [vmem:[#allocation3 + $0x50] sm:$0xff] %vm2158_vm11, %v2083_v8  ;;  %1927 = vrot.lane.b32.xlu1 %v1834_v35, %s11618_s19  ;;  %2118 = vrot.lane.b32.xlu0 %v8583_v2, %s7624_s11 }
 0x21b   : > { %v2081_v7 = vpop.permute.xlu1 %2080  ;;  %v1701_v52 = vpop.permute.xlu0 %1700 }
 0x21c   : > { %2168 = vst.msk [vmem:[#allocation3 + $0x48] sm:$0xff] %vm2158_vm11, %v2081_v7  ;;  %v2199_v2 = vld [vmem:[#allocation3 + $0x40] sm:$0xff] }
 0x21d   : > { %1785 = vst.msk [vmem:[#allocation3 + $0x60] sm:$0xff] %vm1772_vm9, %v1701_v52  ;;  %1931 = vrot.lane.b32.xlu1 %v1836_v9, %s11618_s19  ;;  %2122 = vrot.lane.b32.xlu0 %v2028_v53, %s7624_s11 }
 0x21f   : > { %v2085_v15 = vpop.permute.xlu1 %2084  ;;  %v1705_v55 = vpop.permute.xlu0 %1704 }
 0x220   : > { %2170 = vst.msk [vmem:[#allocation3 + $0x58] sm:$0xff] %vm2158_vm11, %v2085_v15  ;;  %v2201_v30 = vld [vmem:[#allocation3 + $0x50] sm:$0xff] }
 0x221   : > { %1787 = vst.msk [vmem:[#allocation3 + $0x70] sm:$0xff] %vm1772_vm9, %v1705_v55  ;;  %2120 = vrot.lane.b32.xlu1 %v8597_v63, %s7624_s11  ;;  %2759 = vrot.lane.b32.xlu0 %v2695_v31, %s11620_s24 }
 0x223   : > { %v1703_v28 = vpop.permute.xlu1 %1702  ;;  %v2200_v17 = vld [vmem:[#allocation3 + $0x48] sm:$0xff]  ;;  %v1894_v18 = vpop.permute.xlu0 %1893 }
 0x224   : > { %1786 = vst.msk [vmem:[#allocation3 + $0x68] sm:$0xff] %vm1772_vm9, %v1703_v28  ;;  %v2227_v3 = vpack.c.bf16 %v2200_v17, %v2199_v2 }
 0x225   : > { %1978 = vst.msk [vmem:[#allocation3 + $0x60] sm:$0xff] %vm1965_vm10, %v1894_v18  ;;  %2124 = vrot.lane.b32.xlu1 %v2029_v59, %s7624_s11 }
 0x226   : > { %7417 = vmatprep.mubr.msk.bf16.mxu0 %vm2275_vm12, %v2227_v3 }
 0x227   : > { %v1707_v21 = vpop.permute.xlu1 %1706  ;;  %v2202_v16 = vld [vmem:[#allocation3 + $0x58] sm:$0xff]  ;;  %v1898_v34 = vpop.permute.xlu0 %1897 }
 0x228   : > { %1788 = vst.msk [vmem:[#allocation3 + $0x78] sm:$0xff] %vm1772_vm9, %v1707_v21  ;;  %v2228_v63 = vpack.c.bf16 %v2202_v16, %v2201_v30 }
 0x229   : > { %1980 = vst.msk [vmem:[#allocation3 + $0x70] sm:$0xff] %vm1965_vm10, %v1898_v34  ;;  %2761 = vrot.lane.b32.xlu1 %v2696_v44, %s11620_s24 }
 0x22a   : > { %7418 = vmatmul.mubr.msk.bf16.gmra.mxu0 %vm2275_vm12, %v2228_v63 }
 0x22b   : > { %v1896_v36 = vpop.permute.xlu1 %1895  ;;  %v2087_v58 = vpop.permute.xlu0 %2086 }
 0x22c   : > { %1979 = vst.msk [vmem:[#allocation3 + $0x68] sm:$0xff] %vm1965_vm10, %v1896_v36 }
 0x22d   : > { %2171 = vst.msk [vmem:[#allocation3 + $0x60] sm:$0xff] %vm2158_vm11, %v2087_v58 }
 0x22f   : > { %v1900_v49 = vpop.permute.xlu1 %1899  ;;  %v2091_v37 = vpop.permute.xlu0 %2090 }
 0x230   : > { %1981 = vst.msk [vmem:[#allocation3 + $0x78] sm:$0xff] %vm1965_vm10, %v1900_v49 }
 0x231   : > { %2173 = vst.msk [vmem:[#allocation3 + $0x70] sm:$0xff] %vm2158_vm11, %v2091_v37 }
 0x233   : > { %v2089_v38 = vpop.permute.xlu1 %2088  ;;  %v1709_v39 = vpop.permute.xlu0 %1708 }
 0x234   : > { %2172 = vst.msk [vmem:[#allocation3 + $0x68] sm:$0xff] %vm2158_vm11, %v2089_v38  ;;  %v2203_v41 = vld [vmem:[#allocation3 + $0x60] sm:$0xff] }
 0x235   : > { %1789 = vst.msk [vmem:[#allocation3 + $0x80] sm:$0xff] %vm1772_vm9, %v1709_v39 }
 0x237   : > { %v2093_v40 = vpop.permute.xlu1 %2092  ;;  %v1713_v54 = vpop.permute.xlu0 %1712 }
 0x238   : > { %2174 = vst.msk [vmem:[#allocation3 + $0x78] sm:$0xff] %vm2158_vm11, %v2093_v40  ;;  %v2205_v22 = vld [vmem:[#allocation3 + $0x70] sm:$0xff] }
 0x239   : > { %1791 = vst.msk [vmem:[#allocation3 + $0x90] sm:$0xff] %vm1772_vm9, %v1713_v54 }
 0x23b   : > { %v1711_v11 = vpop.permute.xlu1 %1710  ;;  %v2204_v12 = vld [vmem:[#allocation3 + $0x68] sm:$0xff]  ;;  %v1902_v19 = vpop.permute.xlu0 %1901 }
 0x23c   : > { %1790 = vst.msk [vmem:[#allocation3 + $0x88] sm:$0xff] %vm1772_vm9, %v1711_v11  ;;  %v2229_v20 = vpack.c.bf16 %v2204_v12, %v2203_v41 }
 0x23d   : > { %1982 = vst.msk [vmem:[#allocation3 + $0x80] sm:$0xff] %vm1965_vm10, %v1902_v19 }
 0x23e   : > { %7421 = vmatprep.mubr.msk.bf16.mxu0 %vm2275_vm12, %v2229_v20 }
 0x23f   : > { %v1715_v23 = vpop.permute.xlu1 %1714  ;;  %v2206_v24 = vld [vmem:[#allocation3 + $0x78] sm:$0xff]  ;;  %v1906_v25 = vpop.permute.xlu0 %1905 }
 0x240   : > { %1792 = vst.msk [vmem:[#allocation3 + $0x98] sm:$0xff] %vm1772_vm9, %v1715_v23  ;;  %v2230_v27 = vpack.c.bf16 %v2206_v24, %v2205_v22 }
 0x241   : > { %1984 = vst.msk [vmem:[#allocation3 + $0x90] sm:$0xff] %vm1965_vm10, %v1906_v25 }
 0x242   : > { %7422 = vmatmul.mubr.msk.bf16.gmra.mxu0 %vm2275_vm12, %v2230_v27 }
 0x243   : > { %v1904_v33 = vpop.permute.xlu1 %1903  ;;  %v2095_v26 = vpop.permute.xlu0 %2094 }
 0x244   : > { %1983 = vst.msk [vmem:[#allocation3 + $0x88] sm:$0xff] %vm1965_vm10, %v1904_v33 }
 0x245   : > { %2175 = vst.msk [vmem:[#allocation3 + $0x80] sm:$0xff] %vm2158_vm11, %v2095_v26 }
 0x247   : > { %v1908_v29 = vpop.permute.xlu1 %1907  ;;  %v2099_v32 = vpop.permute.xlu0 %2098 }
 0x248   : > { %1985 = vst.msk [vmem:[#allocation3 + $0x98] sm:$0xff] %vm1965_vm10, %v1908_v29 }
 0x249   : > { %2177 = vst.msk [vmem:[#allocation3 + $0x90] sm:$0xff] %vm2158_vm11, %v2099_v32  ;;  %v8902_v32 = vld [vmem:[%s11545_s4] ss:$0 sm:$0xff] }
 0x24b   : > { %v2097_v45 = vpop.permute.xlu1 %2096  ;;  %v1717_v48 = vpop.permute.xlu0 %1716 }
 0x24c   : > { %2176 = vst.msk [vmem:[#allocation3 + $0x88] sm:$0xff] %vm2158_vm11, %v2097_v45  ;;  %v2207_v57 = vld [vmem:[#allocation3 + $0x80] sm:$0xff]  ;;  %v8907_v45 = vld [vmem:[%s11546_s5] ss:$0 sm:$0xff] }
 0x24d   : > { %1793 = vst.msk [vmem:[#allocation3 + $0xa0] sm:$0xff] %vm1772_vm9, %v1717_v48 }
 0x24f   : > { %v2101_v50 = vpop.permute.xlu1 %2100  ;;  %v1721_v56 = vpop.permute.xlu0 %1720 }
 0x250   : > { %2178 = vst.msk [vmem:[#allocation3 + $0x98] sm:$0xff] %vm2158_vm11, %v2101_v50  ;;  %v2209_v6 = vld [vmem:[#allocation3 + $0x90] sm:$0xff] }
 0x251   : > { %1795 = vst.msk [vmem:[#allocation3 + $0xb0] sm:$0xff] %vm1772_vm9, %v1721_v56 }
 0x253   : > { %v1719_v60 = vpop.permute.xlu1 %1718  ;;  %v2208_v61 = vld [vmem:[#allocation3 + $0x88] sm:$0xff]  ;;  %v1910_v42 = vpop.permute.xlu0 %1909 }
 0x254   : > { %1794 = vst.msk [vmem:[#allocation3 + $0xa8] sm:$0xff] %vm1772_vm9, %v1719_v60  ;;  %v2231_v5 = vpack.c.bf16 %v2208_v61, %v2207_v57 }
 0x255   : > { %1986 = vst.msk [vmem:[#allocation3 + $0xa0] sm:$0xff] %vm1965_vm10, %v1910_v42 }
 0x256   : > { %7425 = vmatprep.mubr.msk.bf16.mxu0 %vm2275_vm12, %v2231_v5 }
 0x257   : > { %v1723_v13 = vpop.permute.xlu1 %1722  ;;  %v2210_v14 = vld [vmem:[#allocation3 + $0x98] sm:$0xff]  ;;  %v1914_v43 = vpop.permute.xlu0 %1913 }
 0x258   : > { %1796 = vst.msk [vmem:[#allocation3 + $0xb8] sm:$0xff] %vm1772_vm9, %v1723_v13  ;;  %v2232_v1 = vpack.c.bf16 %v2210_v14, %v2209_v6  ;;  %v2631_v6 = vld [vmem:[#allocation2] sm:$0xff]  ;;  %v2632_v14 = vld [vmem:[#allocation2 + $0x8] sm:$0xff] }
 0x259   : > { %1988 = vst.msk [vmem:[#allocation3 + $0xb0] sm:$0xff] %vm1965_vm10, %v1914_v43 }
 0x25a   : > { %7426 = vmatmul.mubr.msk.bf16.gmra.mxu0 %vm2275_vm12, %v2232_v1  ;;  %2663 = vst.msk [vmem:[#allocation3] sm:$0xff] %vm11622_vm0, %v2631_v6  ;;  %2664 = vst.msk [vmem:[#allocation3 + $0x8] sm:$0xff] %vm11622_vm0, %v2632_v14 }
 0x25b   : > { %v1912_v46 = vpop.permute.xlu1 %1911  ;;  %v2103_v10 = vpop.permute.xlu0 %2102 }
 0x25c   : > { %1987 = vst.msk [vmem:[#allocation3 + $0xa8] sm:$0xff] %vm1965_vm10, %v1912_v46 }
 0x25d   : > { %2179 = vst.msk [vmem:[#allocation3 + $0xa0] sm:$0xff] %vm2158_vm11, %v2103_v10 }
 0x25f   : > { %v1916_v62 = vpop.permute.xlu1 %1915  ;;  %v2107_v0 = vpop.permute.xlu0 %2106 }
 0x260   : > { %1989 = vst.msk [vmem:[#allocation3 + $0xb8] sm:$0xff] %vm1965_vm10, %v1916_v62 }
 0x261   : > { %2181 = vst.msk [vmem:[#allocation3 + $0xb0] sm:$0xff] %vm2158_vm11, %v2107_v0 }
 0x263   : > { %v2105_v47 = vpop.permute.xlu1 %2104  ;;  %v1725_v4 = vpop.permute.xlu0 %1724 }
 0x264   : > { %2180 = vst.msk [vmem:[#allocation3 + $0xa8] sm:$0xff] %vm2158_vm11, %v2105_v47  ;;  %v2211_v8 = vld [vmem:[#allocation3 + $0xa0] sm:$0xff] }
 0x265   : > { %1797 = vst.msk [vmem:[#allocation3 + $0xc0] sm:$0xff] %vm1772_vm9, %v1725_v4 }
 0x267   : > { %v2109_v35 = vpop.permute.xlu1 %2108  ;;  %v1729_v51 = vpop.permute.xlu0 %1728 }
 0x268   : > { %2182 = vst.msk [vmem:[#allocation3 + $0xb8] sm:$0xff] %vm2158_vm11, %v2109_v35  ;;  %v2213_v15 = vld [vmem:[#allocation3 + $0xb0] sm:$0xff] }
 0x269   : > { %1799 = vst.msk [vmem:[#allocation3 + $0xd0] sm:$0xff] %vm1772_vm9, %v1729_v51 }
 0x26b   : > { %v1727_v9 = vpop.permute.xlu1 %1726  ;;  %v2212_v53 = vld [vmem:[#allocation3 + $0xa8] sm:$0xff]  ;;  %v1918_v7 = vpop.permute.xlu0 %1917 }
 0x26c   : > { %1798 = vst.msk [vmem:[#allocation3 + $0xc8] sm:$0xff] %vm1772_vm9, %v1727_v9  ;;  %v2233_v52 = vpack.c.bf16 %v2212_v53, %v2211_v8 }
 0x26d   : > { %1990 = vst.msk [vmem:[#allocation3 + $0xc0] sm:$0xff] %vm1965_vm10, %v1918_v7 }
 0x26e   : > { %7429 = vmatprep.mubr.msk.bf16.mxu0 %vm2275_vm12, %v2233_v52 }
 0x26f   : > { %v1731_v55 = vpop.permute.xlu1 %1730  ;;  %v2214_v2 = vld [vmem:[#allocation3 + $0xb8] sm:$0xff]  ;;  %v1922_v59 = vpop.permute.xlu0 %1921 }
 0x270   : > { %1800 = vst.msk [vmem:[#allocation3 + $0xd8] sm:$0xff] %vm1772_vm9, %v1731_v55  ;;  %v2234_v28 = vpack.c.bf16 %v2214_v2, %v2213_v15 }
 0x271   : > { %1992 = vst.msk [vmem:[#allocation3 + $0xd0] sm:$0xff] %vm1965_vm10, %v1922_v59 }
 0x272   : > { %7430 = vmatmul.mubr.msk.bf16.gmra.mxu0 %vm2275_vm12, %v2234_v28 }
 0x273   : > { %v1920_v17 = vpop.permute.xlu1 %1919  ;;  %v2111_v18 = vpop.permute.xlu0 %2110 }
 0x274   : > { %1991 = vst.msk [vmem:[#allocation3 + $0xc8] sm:$0xff] %vm1965_vm10, %v1920_v17 }
 0x275   : > { %2183 = vst.msk [vmem:[#allocation3 + $0xc0] sm:$0xff] %vm2158_vm11, %v2111_v18 }
 0x277   : > { %v1924_v3 = vpop.permute.xlu1 %1923  ;;  %v2115_v30 = vpop.permute.xlu0 %2114 }
 0x278   : > { %1993 = vst.msk [vmem:[#allocation3 + $0xd8] sm:$0xff] %vm1965_vm10, %v1924_v3 }
 0x279   : > { %2185 = vst.msk [vmem:[#allocation3 + $0xd0] sm:$0xff] %vm2158_vm11, %v2115_v30 }
 0x27b   : > { %v2113_v21 = vpop.permute.xlu1 %2112  ;;  %v1733_v16 = vpop.permute.xlu0 %1732 }
 0x27c   : > { %2184 = vst.msk [vmem:[#allocation3 + $0xc8] sm:$0xff] %vm2158_vm11, %v2113_v21  ;;  %v2215_v36 = vld [vmem:[#allocation3 + $0xc0] sm:$0xff] }
 0x27d   : > { %1801 = vst.msk [vmem:[#allocation3 + $0xe0] sm:$0xff] %vm1772_vm9, %v1733_v16 }
 0x27f   : > { %v2117_v34 = vpop.permute.xlu1 %2116  ;;  %v1737_v63 = vpop.permute.xlu0 %1736 }
 0x280   : > { %2186 = vst.msk [vmem:[#allocation3 + $0xd8] sm:$0xff] %vm2158_vm11, %v2117_v34  ;;  %v2217_v39 = vld [vmem:[#allocation3 + $0xd0] sm:$0xff] }
 0x281   : > { %1803 = vst.msk [vmem:[#allocation3 + $0xf0] sm:$0xff] %vm1772_vm9, %v1737_v63 }
 0x283   : > { %v1735_v58 = vpop.permute.xlu1 %1734  ;;  %v2216_v49 = vld [vmem:[#allocation3 + $0xc8] sm:$0xff]  ;;  %v1926_v37 = vpop.permute.xlu0 %1925 }
 0x284   : > { %1802 = vst.msk [vmem:[#allocation3 + $0xe8] sm:$0xff] %vm1772_vm9, %v1735_v58  ;;  %v2235_v38 = vpack.c.bf16 %v2216_v49, %v2215_v36 }
 0x285   : > { %1994 = vst.msk [vmem:[#allocation3 + $0xe0] sm:$0xff] %vm1965_vm10, %v1926_v37 }
 0x286   : > { %7433 = vmatprep.mubr.msk.bf16.mxu0 %vm2275_vm12, %v2235_v38 }
 0x287   : > { %v1739_v40 = vpop.permute.xlu1 %1738  ;;  %v2218_v54 = vld [vmem:[#allocation3 + $0xd8] sm:$0xff]  ;;  %v1930_v41 = vpop.permute.xlu0 %1929 }
 0x288   : > { %1804 = vst.msk [vmem:[#allocation3 + $0xf8] sm:$0xff] %vm1772_vm9, %v1739_v40  ;;  %v2236_v11 = vpack.c.bf16 %v2218_v54, %v2217_v39 }
 0x289   : > { %1996 = vst.msk [vmem:[#allocation3 + $0xf0] sm:$0xff] %vm1965_vm10, %v1930_v41 }
 0x28a   : > { %7434 = vmatmul.mubr.msk.bf16.gmra.mxu0 %vm2275_vm12, %v2236_v11 }
 0x28b   : > { %v1928_v12 = vpop.permute.xlu1 %1927  ;;  %v2119_v19 = vpop.permute.xlu0 %2118 }
 0x28c   : > { %1995 = vst.msk [vmem:[#allocation3 + $0xe8] sm:$0xff] %vm1965_vm10, %v1928_v12 }
 0x28d   : > { %2187 = vst.msk [vmem:[#allocation3 + $0xe0] sm:$0xff] %vm2158_vm11, %v2119_v19 }
 0x28f   : > { %v1932_v20 = vpop.permute.xlu1 %1931  ;;  %v2123_v22 = vpop.permute.xlu0 %2122 }
 0x290   : > { %1997 = vst.msk [vmem:[#allocation3 + $0xf8] sm:$0xff] %vm1965_vm10, %v1932_v20 }
 0x291   : > { %2189 = vst.msk [vmem:[#allocation3 + $0xf0] sm:$0xff] %vm2158_vm11, %v2123_v22 }
 0x293   : > { %v2121_v23 = vpop.permute.xlu1 %2120  ;;  %v2760_v13 = vpop.permute.xlu0 %2759 }
 0x294   : > { %2188 = vst.msk [vmem:[#allocation3 + $0xe8] sm:$0xff] %vm2158_vm11, %v2121_v23  ;;  %v2219_v25 = vld [vmem:[#allocation3 + $0xe0] sm:$0xff] }
 0x295   : > { %2855 = vst.msk [vmem:[#allocation3] sm:$0xff] %vm806_vm3, %v2760_v13 }
 0x297   : > { %v2125_v24 = vpop.permute.xlu1 %2124 }
 0x298   : > { %2190 = vst.msk [vmem:[#allocation3 + $0xf8] sm:$0xff] %vm2158_vm11, %v2125_v24  ;;  %v2221_v26 = vld [vmem:[#allocation3 + $0xf0] sm:$0xff] }
 0x29b   : > { %v2220_v27 = vld [vmem:[#allocation3 + $0xe8] sm:$0xff]  ;;  %v2762_v1 = vpop.permute.xlu1 %2761 }
 0x29c   : > { %v2237_v33 = vpack.c.bf16 %v2220_v27, %v2219_v25  ;;  %2856 = vst.msk [vmem:[#allocation3 + $0x8] sm:$0xff] %vm806_vm3, %v2762_v1 }
 0x29e   : > { %7437 = vmatprep.mubr.msk.bf16.mxu0 %vm2275_vm12, %v2237_v33 }
 0x29f   : > { %v2222_v31 = vld [vmem:[#allocation3 + $0xf8] sm:$0xff] }
 0x2a0   : > { %v2238_v29 = vpack.c.bf16 %v2222_v31, %v2221_v26 }
 0x2a2   : > { %7438 = vmatmul.mubr.msk.bf16.gmra.mxu0 %vm2275_vm12, %v2238_v29 }
 0x2ba   : > { %v7411_v44 = vpop.f32.mrf.mxu0 }
 0x2bb   : > { %v2498_v48 = vmul.f32 %v7411_v44, %v8902_v32 }
 0x2bc   : > { %v2362_v50 = vpop.f32.mrf.mxu0 }
 0x2bd   : > { %v2537_v56 = vadd.f32 %v8907_v45, %v2498_v48  ;;  %v2496_v57 = vmul.f32 %v8902_v32, %v2362_v50 }
 0x2be   : > { %v7412_v60 = vpop.f32.mrf.mxu0 }
 0x2bf   : > { %v2569_v61 = vmax.f32 %v2537_v56, 0.0  ;;  %v2535_v42 = vadd.f32 %v8907_v45, %v2496_v57  ;;  %v2499_v5 = vmul.f32 %v7412_v60, %v8902_v32 }
 0x2c0   : > { %v2365_v43 = vpop.f32.mrf.mxu0 }
 0x2c1   : > { %2601 = vst.msk [vmem:[#allocation2 + $0x31] sm:$0xff] %vm11622_vm0, %v2569_v61  ;;  %v2567_v46 = vmax.f32 %v2535_v42, 0.0  ;;  %v2538_v10 = vadd.f32 %v8907_v45, %v2499_v5  ;;  %v2497_v62 = vmul.f32 %v8902_v32, %v2365_v43 }
 0x2c3   : > { %2599 = vst.msk [vmem:[#allocation2 + $0x19] sm:$0xff] %vm11622_vm0, %v2567_v46  ;;  %v2570_v0 = vmax.f32 %v2538_v10, 0.0  ;;  %v2536_v47 = vadd.f32 %v8907_v45, %v2497_v62 }
 0x2c5   : > { %2602 = vst.msk [vmem:[#allocation2 + $0x39] sm:$0xff] %vm11622_vm0, %v2570_v0  ;;  %v2568_v4 = vmax.f32 %v2536_v47, 0.0 }
 0x2c7   : > { %2600 = vst.msk [vmem:[#allocation2 + $0x21] sm:$0xff] %vm11622_vm0, %v2568_v4 }
 0x2c8   : > { %v8925_v35 = vld [vmem:[#allocation2 + $0x30] sm:$0xff] }
 0x2c9   : > { %2667 = vst.msk [vmem:[#allocation3 + $0x20] sm:$0xff] %vm11622_vm0, %v8925_v35  ;;  %v8941_v53 = vld [vmem:[#allocation2 + $0x31] sm:$0xff] }
 0x2ca   : > { %v8929_v51 = vld [vmem:[#allocation2 + $0x19] sm:$0xff] }
 0x2cb   : > { %v8931_v8 = vld [vmem:[#allocation2 + $0x18] sm:$0xff]  ;;  %2763 = vrot.lane.b32.xlu0 %v8929_v51, %s11620_s24 }
 0x2cc   : > { %2665 = vst.msk [vmem:[#allocation3 + $0x10] sm:$0xff] %vm11622_vm0, %v8931_v8  ;;  %v8937_v9 = vld [vmem:[#allocation2 + $0x38] sm:$0xff] }
 0x2cd   : > { %2668 = vst.msk [vmem:[#allocation3 + $0x28] sm:$0xff] %vm11622_vm0, %v8937_v9  ;;  %v8953_v55 = vld [vmem:[#allocation2 + $0x39] sm:$0xff] }
 0x2ce   : > { %v8943_v7 = vld [vmem:[#allocation2 + $0x21] sm:$0xff] }
 0x2cf   : > { %v8945_v52 = vld [vmem:[#allocation2 + $0x20] sm:$0xff]  ;;  %2767 = vrot.lane.b32.xlu0 %v8941_v53, %s11620_s24  ;;  %2765 = vrot.lane.b32.xlu1 %v8943_v7, %s11620_s24 }
 0x2d0   : > { %2666 = vst.msk [vmem:[#allocation3 + $0x18] sm:$0xff] %vm11622_vm0, %v8945_v52 }
 0x2d2   : > { %v7415_v15 = vpop.f32.mrf.mxu0 }
 0x2d3   : > { %v2502_v2 = vmul.f32 %v7415_v15, %v8902_v32  ;;  %2769 = vrot.lane.b32.xlu1 %v8953_v55, %s11620_s24 }
 0x2d4   : > { %v2378_v59 = vpop.f32.mrf.mxu0 }
 0x2d5   : > { %v2541_v28 = vadd.f32 %v8907_v45, %v2502_v2  ;;  %v2500_v17 = vmul.f32 %v8902_v32, %v2378_v59 }
 0x2d6   : > { %v7416_v18 = vpop.f32.mrf.mxu0 }
 0x2d7   : > { %v2573_v3 = vmax.f32 %v2541_v28, 0.0  ;;  %v2539_v30 = vadd.f32 %v8907_v45, %v2500_v17  ;;  %v2503_v21 = vmul.f32 %v7416_v18, %v8902_v32 }
 0x2d8   : > { %v2381_v16 = vpop.f32.mrf.mxu0 }
 0x2d9   : > { %2605 = vst.msk [vmem:[#allocation2 + $0x61] sm:$0xff] %vm11622_vm0, %v2573_v3  ;;  %v2571_v34 = vmax.f32 %v2539_v30, 0.0  ;;  %v2542_v63 = vadd.f32 %v8907_v45, %v2503_v21  ;;  %v2501_v36 = vmul.f32 %v8902_v32, %v2381_v16 }
 0x2db   : > { %2603 = vst.msk [vmem:[#allocation2 + $0x49] sm:$0xff] %vm11622_vm0, %v2571_v34  ;;  %v2574_v58 = vmax.f32 %v2542_v63, 0.0  ;;  %v2540_v49 = vadd.f32 %v8907_v45, %v2501_v36 }
 0x2dd   : > { %2606 = vst.msk [vmem:[#allocation2 + $0x69] sm:$0xff] %vm11622_vm0, %v2574_v58  ;;  %v2572_v37 = vmax.f32 %v2540_v49, 0.0 }
 0x2df   : > { %2604 = vst.msk [vmem:[#allocation2 + $0x51] sm:$0xff] %vm11622_vm0, %v2572_v37 }
 0x2e0   : > { %v8969_v38 = vld [vmem:[#allocation2 + $0x60] sm:$0xff] }
 0x2e1   : > { %2671 = vst.msk [vmem:[#allocation3 + $0x40] sm:$0xff] %vm11622_vm0, %v8969_v38  ;;  %v8985_v41 = vld [vmem:[#allocation2 + $0x61] sm:$0xff] }
 0x2e2   : > { %v8973_v39 = vld [vmem:[#allocation2 + $0x49] sm:$0xff] }
 0x2e3   : > { %v8975_v40 = vld [vmem:[#allocation2 + $0x48] sm:$0xff]  ;;  %2771 = vrot.lane.b32.xlu0 %v8973_v39, %s11620_s24 }
 0x2e4   : > { %2669 = vst.msk [vmem:[#allocation3 + $0x30] sm:$0xff] %vm11622_vm0, %v8975_v40  ;;  %v8981_v54 = vld [vmem:[#allocation2 + $0x68] sm:$0xff] }
 0x2e5   : > { %2672 = vst.msk [vmem:[#allocation3 + $0x48] sm:$0xff] %vm11622_vm0, %v8981_v54  ;;  %v8997_v20 = vld [vmem:[#allocation2 + $0x69] sm:$0xff] }
 0x2e6   : > { %v8987_v11 = vld [vmem:[#allocation2 + $0x51] sm:$0xff] }
 0x2e7   : > { %v8989_v12 = vld [vmem:[#allocation2 + $0x50] sm:$0xff]  ;;  %2775 = vrot.lane.b32.xlu0 %v8985_v41, %s11620_s24  ;;  %2773 = vrot.lane.b32.xlu1 %v8987_v11, %s11620_s24 }
 0x2e8   : > { %2670 = vst.msk [vmem:[#allocation3 + $0x38] sm:$0xff] %vm11622_vm0, %v8989_v12 }
 0x2ea   : > { %v7419_v19 = vpop.f32.mrf.mxu0 }
 0x2eb   : > { %v2506_v22 = vmul.f32 %v7419_v19, %v8902_v32  ;;  %2777 = vrot.lane.b32.xlu1 %v8997_v20, %s11620_s24 }
 0x2ec   : > { %v2394_v23 = vpop.f32.mrf.mxu0 }
 0x2ed   : > { %v2545_v24 = vadd.f32 %v8907_v45, %v2506_v22  ;;  %v2504_v25 = vmul.f32 %v8902_v32, %v2394_v23 }
 0x2ee   : > { %v7420_v27 = vpop.f32.mrf.mxu0 }
 0x2ef   : > { %v2577_v33 = vmax.f32 %v2545_v24, 0.0  ;;  %v2543_v26 = vadd.f32 %v8907_v45, %v2504_v25  ;;  %v2507_v31 = vmul.f32 %v7420_v27, %v8902_v32 }
 0x2f0   : > { %v2397_v29 = vpop.f32.mrf.mxu0 }
 0x2f1   : > { %2609 = vst.msk [vmem:[#allocation2 + $0x91] sm:$0xff] %vm11622_vm0, %v2577_v33  ;;  %v2575_v44 = vmax.f32 %v2543_v26, 0.0  ;;  %v2546_v48 = vadd.f32 %v8907_v45, %v2507_v31  ;;  %v2505_v50 = vmul.f32 %v8902_v32, %v2397_v29 }
 0x2f3   : > { %2607 = vst.msk [vmem:[#allocation2 + $0x79] sm:$0xff] %vm11622_vm0, %v2575_v44  ;;  %v2578_v56 = vmax.f32 %v2546_v48, 0.0  ;;  %v2544_v57 = vadd.f32 %v8907_v45, %v2505_v50 }
 0x2f5   : > { %2610 = vst.msk [vmem:[#allocation2 + $0x99] sm:$0xff] %vm11622_vm0, %v2578_v56  ;;  %v2576_v60 = vmax.f32 %v2544_v57, 0.0 }
 0x2f7   : > { %2608 = vst.msk [vmem:[#allocation2 + $0x81] sm:$0xff] %vm11622_vm0, %v2576_v60 }
 0x2f8   : > { %v9013_v61 = vld [vmem:[#allocation2 + $0x90] sm:$0xff] }
 0x2f9   : > { %2675 = vst.msk [vmem:[#allocation3 + $0x60] sm:$0xff] %vm11622_vm0, %v9013_v61  ;;  %v9029_v13 = vld [vmem:[#allocation2 + $0x91] sm:$0xff] }
 0x2fa   : > { %v9017_v42 = vld [vmem:[#allocation2 + $0x79] sm:$0xff] }
 0x2fb   : > { %v9019_v5 = vld [vmem:[#allocation2 + $0x78] sm:$0xff]  ;;  %2779 = vrot.lane.b32.xlu0 %v9017_v42, %s11620_s24 }
 0x2fc   : > { %2673 = vst.msk [vmem:[#allocation3 + $0x50] sm:$0xff] %vm11622_vm0, %v9019_v5  ;;  %v9025_v6 = vld [vmem:[#allocation2 + $0x98] sm:$0xff] }
 0x2fd   : > { %2676 = vst.msk [vmem:[#allocation3 + $0x68] sm:$0xff] %vm11622_vm0, %v9025_v6  ;;  %v9041_v46 = vld [vmem:[#allocation2 + $0x99] sm:$0xff] }
 0x2fe   : > { %v9031_v14 = vld [vmem:[#allocation2 + $0x81] sm:$0xff] }
 0x2ff   : > { %v9033_v43 = vld [vmem:[#allocation2 + $0x80] sm:$0xff]  ;;  %2783 = vrot.lane.b32.xlu0 %v9029_v13, %s11620_s24  ;;  %2781 = vrot.lane.b32.xlu1 %v9031_v14, %s11620_s24 }
 0x300   : > { %2674 = vst.msk [vmem:[#allocation3 + $0x58] sm:$0xff] %vm11622_vm0, %v9033_v43 }
 0x302   : > { %v7423_v1 = vpop.f32.mrf.mxu0 }
 0x303   : > { %v2510_v10 = vmul.f32 %v7423_v1, %v8902_v32  ;;  %2785 = vrot.lane.b32.xlu1 %v9041_v46, %s11620_s24 }
 0x304   : > { %v2410_v62 = vpop.f32.mrf.mxu0 }
 0x305   : > { %v2549_v0 = vadd.f32 %v8907_v45, %v2510_v10  ;;  %v2508_v47 = vmul.f32 %v8902_v32, %v2410_v62 }
 0x306   : > { %v7424_v4 = vpop.f32.mrf.mxu0 }
 0x307   : > { %v2581_v15 = vmax.f32 %v2549_v0, 0.0  ;;  %v2547_v2 = vadd.f32 %v8907_v45, %v2508_v47  ;;  %v2511_v59 = vmul.f32 %v7424_v4, %v8902_v32 }
 0x308   : > { %v2413_v28 = vpop.f32.mrf.mxu0 }
 0x309   : > { %2613 = vst.msk [vmem:[#allocation2 + $0xc1] sm:$0xff] %vm11622_vm0, %v2581_v15  ;;  %v2579_v17 = vmax.f32 %v2547_v2, 0.0  ;;  %v2550_v18 = vadd.f32 %v8907_v45, %v2511_v59  ;;  %v2509_v3 = vmul.f32 %v8902_v32, %v2413_v28 }
 0x30b   : > { %2611 = vst.msk [vmem:[#allocation2 + $0xa9] sm:$0xff] %vm11622_vm0, %v2579_v17  ;;  %v2582_v30 = vmax.f32 %v2550_v18, 0.0  ;;  %v2548_v21 = vadd.f32 %v8907_v45, %v2509_v3 }
 0x30d   : > { %2614 = vst.msk [vmem:[#allocation2 + $0xc9] sm:$0xff] %vm11622_vm0, %v2582_v30  ;;  %v2580_v16 = vmax.f32 %v2548_v21, 0.0 }
 0x30f   : > { %2612 = vst.msk [vmem:[#allocation2 + $0xb1] sm:$0xff] %vm11622_vm0, %v2580_v16 }
 0x310   : > { %v9057_v34 = vld [vmem:[#allocation2 + $0xc0] sm:$0xff] }
 0x311   : > { %2679 = vst.msk [vmem:[#allocation3 + $0x80] sm:$0xff] %vm11622_vm0, %v9057_v34  ;;  %v2711_v49 = vld [vmem:[#allocation2 + $0xc1] sm:$0xff] }
 0x312   : > { %v9061_v63 = vld [vmem:[#allocation2 + $0xa9] sm:$0xff] }
 0x313   : > { %v9063_v36 = vld [vmem:[#allocation2 + $0xa8] sm:$0xff]  ;;  %2787 = vrot.lane.b32.xlu0 %v9061_v63, %s11620_s24 }
 0x314   : > { %2677 = vst.msk [vmem:[#allocation3 + $0x70] sm:$0xff] %vm11622_vm0, %v9063_v36  ;;  %v9069_v58 = vld [vmem:[#allocation2 + $0xc8] sm:$0xff] }
 0x315   : > { %2680 = vst.msk [vmem:[#allocation3 + $0x88] sm:$0xff] %vm11622_vm0, %v9069_v58  ;;  %v2712_v23 = vld [vmem:[#allocation2 + $0xc9] sm:$0xff] }
 0x316   : > { %v9073_v37 = vld [vmem:[#allocation2 + $0xb1] sm:$0xff] }
 0x317   : > { %v9075_v19 = vld [vmem:[#allocation2 + $0xb0] sm:$0xff]  ;;  %2791 = vrot.lane.b32.xlu0 %v2711_v49, %s11620_s24  ;;  %2789 = vrot.lane.b32.xlu1 %v9073_v37, %s11620_s24 }
 0x318   : > { %2678 = vst.msk [vmem:[#allocation3 + $0x78] sm:$0xff] %vm11622_vm0, %v9075_v19 }
 0x31a   : > { %v7427_v22 = vpop.f32.mrf.mxu0 }
 0x31b   : > { %v2514_v24 = vmul.f32 %v7427_v22, %v8902_v32  ;;  %2793 = vrot.lane.b32.xlu1 %v2712_v23, %s11620_s24 }
 0x31c   : > { %v2426_v25 = vpop.f32.mrf.mxu0 }
 0x31d   : > { %v2553_v27 = vadd.f32 %v8907_v45, %v2514_v24  ;;  %v2512_v33 = vmul.f32 %v8902_v32, %v2426_v25 }
 0x31e   : > { %v7428_v26 = vpop.f32.mrf.mxu0 }
 0x31f   : > { %v2585_v31 = vmax.f32 %v2553_v27, 0.0  ;;  %v2551_v29 = vadd.f32 %v8907_v45, %v2512_v33  ;;  %v2515_v44 = vmul.f32 %v7428_v26, %v8902_v32 }
 0x320   : > { %v2429_v48 = vpop.f32.mrf.mxu0 }
 0x321   : > { %2617 = vst.msk [vmem:[#allocation2 + $0xf1] sm:$0xff] %vm11622_vm0, %v2585_v31  ;;  %v2583_v50 = vmax.f32 %v2551_v29, 0.0  ;;  %v2554_v56 = vadd.f32 %v8907_v45, %v2515_v44  ;;  %v2513_v57 = vmul.f32 %v8902_v32, %v2429_v48 }
 0x323   : > { %2615 = vst.msk [vmem:[#allocation2 + $0xd9] sm:$0xff] %vm11622_vm0, %v2583_v50  ;;  %v2586_v60 = vmax.f32 %v2554_v56, 0.0  ;;  %v2552_v1 = vadd.f32 %v8907_v45, %v2513_v57 }
 0x325   : > { %2618 = vst.msk [vmem:[#allocation2 + $0xf9] sm:$0xff] %vm11622_vm0, %v2586_v60  ;;  %v2584_v10 = vmax.f32 %v2552_v1, 0.0 }
 0x327   : > { %2616 = vst.msk [vmem:[#allocation2 + $0xe1] sm:$0xff] %vm11622_vm0, %v2584_v10 }
 0x328   : > { %v9095_v62 = vld [vmem:[#allocation2 + $0xf0] sm:$0xff] }
 0x329   : > { %2683 = vst.msk [vmem:[#allocation3 + $0xa0] sm:$0xff] %vm11622_vm0, %v9095_v62  ;;  %v2715_v15 = vld [vmem:[#allocation2 + $0xf1] sm:$0xff] }
 0x32a   : > { %v2713_v0 = vld [vmem:[#allocation2 + $0xd9] sm:$0xff] }
 0x32b   : > { %v9099_v47 = vld [vmem:[#allocation2 + $0xd8] sm:$0xff]  ;;  %2795 = vrot.lane.b32.xlu0 %v2713_v0, %s11620_s24 }
 0x32c   : > { %2681 = vst.msk [vmem:[#allocation3 + $0x90] sm:$0xff] %vm11622_vm0, %v9099_v47  ;;  %v9104_v4 = vld [vmem:[#allocation2 + $0xf8] sm:$0xff] }
 0x32d   : > { %2684 = vst.msk [vmem:[#allocation3 + $0xa8] sm:$0xff] %vm11622_vm0, %v9104_v4  ;;  %v2716_v17 = vld [vmem:[#allocation2 + $0xf9] sm:$0xff] }
 0x32e   : > { %v2714_v2 = vld [vmem:[#allocation2 + $0xe1] sm:$0xff] }
 0x32f   : > { %2799 = vrot.lane.b32.xlu0 %v2715_v15, %s11620_s24  ;;  %2797 = vrot.lane.b32.xlu1 %v2714_v2, %s11620_s24  ;;  %v9110_v59 = vld [vmem:[#allocation2 + $0xe0] sm:$0xff] }
 0x330   : > { %2682 = vst.msk [vmem:[#allocation3 + $0x98] sm:$0xff] %vm11622_vm0, %v9110_v59 }
 0x332   : > { %v7431_v28 = vpop.f32.mrf.mxu0 }
 0x333   : > { %v2518_v18 = vmul.f32 %v7431_v28, %v8902_v32  ;;  %2801 = vrot.lane.b32.xlu1 %v2716_v17, %s11620_s24 }
 0x334   : > { %v2442_v3 = vpop.f32.mrf.mxu0 }
 0x335   : > { %v2557_v30 = vadd.f32 %v8907_v45, %v2518_v18  ;;  %v2516_v21 = vmul.f32 %v8902_v32, %v2442_v3 }
 0x336   : > { %v7432_v16 = vpop.f32.mrf.mxu0 }
 0x337   : > { %v2589_v49 = vmax.f32 %v2557_v30, 0.0  ;;  %v2555_v22 = vadd.f32 %v8907_v45, %v2516_v21  ;;  %v2519_v23 = vmul.f32 %v7432_v16, %v8902_v32 }
 0x338   : > { %v2445_v24 = vpop.f32.mrf.mxu0 }
 0x339   : > { %2621 = vst.msk [vmem:[#allocation2 + $0x121] sm:$0xff] %vm11622_vm0, %v2589_v49  ;;  %v2587_v25 = vmax.f32 %v2555_v22, 0.0  ;;  %v2558_v27 = vadd.f32 %v8907_v45, %v2519_v23  ;;  %v2517_v33 = vmul.f32 %v8902_v32, %v2445_v24 }
 0x33b   : > { %2619 = vst.msk [vmem:[#allocation2 + $0x109] sm:$0xff] %vm11622_vm0, %v2587_v25  ;;  %v2590_v26 = vmax.f32 %v2558_v27, 0.0  ;;  %v2556_v31 = vadd.f32 %v8907_v45, %v2517_v33 }
 0x33d   : > { %2622 = vst.msk [vmem:[#allocation2 + $0x129] sm:$0xff] %vm11622_vm0, %v2590_v26  ;;  %v2588_v29 = vmax.f32 %v2556_v31, 0.0  ;;  %v2764_v44 = vpop.permute.xlu0 %2763 }
 0x33e   : > { %2857 = vst.msk [vmem:[#allocation3 + $0x10] sm:$0xff] %vm806_vm3, %v2764_v44 }
 0x33f   : > { %2620 = vst.msk [vmem:[#allocation2 + $0x111] sm:$0xff] %vm11622_vm0, %v2588_v29 }
 0x340   : > { %v9128_v48 = vld [vmem:[#allocation2 + $0x120] sm:$0xff] }
 0x341   : > { %v2768_v50 = vpop.permute.xlu0 %2767  ;;  %v2766_v56 = vpop.permute.xlu1 %2765  ;;  %2687 = vst.msk [vmem:[#allocation3 + $0xc0] sm:$0xff] %vm11622_vm0, %v9128_v48  ;;  %v2719_v0 = vld [vmem:[#allocation2 + $0x121] sm:$0xff] }
 0x342   : > { %2859 = vst.msk [vmem:[#allocation3 + $0x20] sm:$0xff] %vm806_vm3, %v2768_v50  ;;  %2858 = vst.msk [vmem:[#allocation3 + $0x18] sm:$0xff] %vm806_vm3, %v2766_v56  ;;  %v2717_v57 = vld [vmem:[#allocation2 + $0x109] sm:$0xff] }
 0x343   : > { %v9134_v60 = vld [vmem:[#allocation2 + $0x108] sm:$0xff]  ;;  %2803 = vrot.lane.b32.xlu0 %v2717_v57, %s11620_s24 }
 0x344   : > { %2685 = vst.msk [vmem:[#allocation3 + $0xb0] sm:$0xff] %vm11622_vm0, %v9134_v60  ;;  %v9139_v1 = vld [vmem:[#allocation2 + $0x128] sm:$0xff] }
 0x345   : > { %v2770_v10 = vpop.permute.xlu1 %2769  ;;  %2688 = vst.msk [vmem:[#allocation3 + $0xc8] sm:$0xff] %vm11622_vm0, %v9139_v1  ;;  %v2720_v17 = vld [vmem:[#allocation2 + $0x129] sm:$0xff] }
 0x346   : > { %2860 = vst.msk [vmem:[#allocation3 + $0x28] sm:$0xff] %vm806_vm3, %v2770_v10  ;;  %v2718_v15 = vld [vmem:[#allocation2 + $0x111] sm:$0xff] }
 0x347   : > { %v9144_v2 = vld [vmem:[#allocation2 + $0x110] sm:$0xff]  ;;  %2807 = vrot.lane.b32.xlu0 %v2719_v0, %s11620_s24  ;;  %2805 = vrot.lane.b32.xlu1 %v2718_v15, %s11620_s24 }
 0x348   : > { %2686 = vst.msk [vmem:[#allocation3 + $0xb8] sm:$0xff] %vm11622_vm0, %v9144_v2 }
 0x34a   : > { %v7435_v28 = vpop.f32.mrf.mxu0 }
 0x34b   : > { %v2522_v18 = vmul.f32 %v7435_v28, %v8902_v32  ;;  %2809 = vrot.lane.b32.xlu1 %v2720_v17, %s11620_s24 }
 0x34c   : > { %v2458_v3 = vpop.f32.mrf.mxu0 }
 0x34d   : > { %v2561_v30 = vadd.f32 %v8907_v45, %v2522_v18  ;;  %v2520_v21 = vmul.f32 %v8902_v32, %v2458_v3 }
 0x34e   : > { %v7436_v16 = vpop.f32.mrf.mxu0 }
 0x34f   : > { %v2593_v49 = vmax.f32 %v2561_v30, 0.0  ;;  %v2559_v22 = vadd.f32 %v8907_v45, %v2520_v21  ;;  %v2523_v23 = vmul.f32 %v7436_v16, %v8902_v32 }
 0x350   : > { %v2461_v24 = vpop.f32.mrf.mxu0 }
 0x351   : > { %2625 = vst.msk [vmem:[#allocation2 + $0x151] sm:$0xff] %vm11622_vm0, %v2593_v49  ;;  %v2591_v25 = vmax.f32 %v2559_v22, 0.0  ;;  %v2562_v27 = vadd.f32 %v8907_v45, %v2523_v23  ;;  %v2521_v33 = vmul.f32 %v8902_v32, %v2461_v24 }
 0x353   : > { %2623 = vst.msk [vmem:[#allocation2 + $0x139] sm:$0xff] %vm11622_vm0, %v2591_v25  ;;  %v2594_v26 = vmax.f32 %v2562_v27, 0.0  ;;  %v2560_v31 = vadd.f32 %v8907_v45, %v2521_v33 }
 0x355   : > { %2626 = vst.msk [vmem:[#allocation2 + $0x159] sm:$0xff] %vm11622_vm0, %v2594_v26  ;;  %v2592_v29 = vmax.f32 %v2560_v31, 0.0  ;;  %v2772_v44 = vpop.permute.xlu0 %2771 }
 0x356   : > { %2861 = vst.msk [vmem:[#allocation3 + $0x30] sm:$0xff] %vm806_vm3, %v2772_v44 }
 0x357   : > { %2624 = vst.msk [vmem:[#allocation2 + $0x141] sm:$0xff] %vm11622_vm0, %v2592_v29 }
 0x358   : > { %v2659_v50 = vld [vmem:[#allocation2 + $0x150] sm:$0xff] }
 0x359   : > { %v2776_v56 = vpop.permute.xlu0 %2775  ;;  %v2774_v57 = vpop.permute.xlu1 %2773  ;;  %2691 = vst.msk [vmem:[#allocation3 + $0xe0] sm:$0xff] %vm11622_vm0, %v2659_v50  ;;  %v2723_v17 = vld [vmem:[#allocation2 + $0x151] sm:$0xff] }
 0x35a   : > { %2863 = vst.msk [vmem:[#allocation3 + $0x40] sm:$0xff] %vm806_vm3, %v2776_v56  ;;  %2862 = vst.msk [vmem:[#allocation3 + $0x38] sm:$0xff] %vm806_vm3, %v2774_v57  ;;  %v2721_v10 = vld [vmem:[#allocation2 + $0x139] sm:$0xff] }
 0x35b   : > { %v9167_v0 = vld [vmem:[#allocation2 + $0x138] sm:$0xff]  ;;  %2811 = vrot.lane.b32.xlu0 %v2721_v10, %s11620_s24 }
 0x35c   : > { %2689 = vst.msk [vmem:[#allocation3 + $0xd0] sm:$0xff] %vm11622_vm0, %v9167_v0  ;;  %v2660_v15 = vld [vmem:[#allocation2 + $0x158] sm:$0xff] }
 0x35d   : > { %v2778_v28 = vpop.permute.xlu1 %2777  ;;  %2692 = vst.msk [vmem:[#allocation3 + $0xe8] sm:$0xff] %vm11622_vm0, %v2660_v15  ;;  %v2724_v21 = vld [vmem:[#allocation2 + $0x159] sm:$0xff] }
 0x35e   : > { %2864 = vst.msk [vmem:[#allocation3 + $0x48] sm:$0xff] %vm806_vm3, %v2778_v28  ;;  %v2722_v18 = vld [vmem:[#allocation2 + $0x141] sm:$0xff] }
 0x35f   : > { %v9174_v3 = vld [vmem:[#allocation2 + $0x140] sm:$0xff]  ;;  %2815 = vrot.lane.b32.xlu0 %v2723_v17, %s11620_s24  ;;  %2813 = vrot.lane.b32.xlu1 %v2722_v18, %s11620_s24 }
 0x360   : > { %2690 = vst.msk [vmem:[#allocation3 + $0xd8] sm:$0xff] %vm11622_vm0, %v9174_v3 }
 0x362   : > { %v7439_v30 = vpop.f32.mrf.mxu0 }
 0x363   : > { %v2526_v16 = vmul.f32 %v7439_v30, %v8902_v32  ;;  %2817 = vrot.lane.b32.xlu1 %v2724_v21, %s11620_s24 }
 0x364   : > { %v2474_v49 = vpop.f32.mrf.mxu0 }
 0x365   : > { %v2565_v22 = vadd.f32 %v8907_v45, %v2526_v16  ;;  %v2524_v23 = vmul.f32 %v8902_v32, %v2474_v49  ;;  %v2888_v16 = vld [vmem:[#allocation2 + $0xa] sm:$0xff]  ;;  %v2889_v49 = vld [vmem:[#allocation2 + $0x1a] sm:$0xff] }
 0x366   : > { %v7440_v24 = vpop.f32.mrf.mxu0 }
 0x367   : > { %v2597_v25 = vmax.f32 %v2565_v22, 0.0  ;;  %v2563_v27 = vadd.f32 %v8907_v45, %v2524_v23  ;;  %v2527_v33 = vmul.f32 %v7440_v24, %v8902_v32  ;;  %v9204_v22 = vld [vmem:[#allocation2 + $0x32] sm:$0xff]  ;;  %v2890_v23 = vld [vmem:[#allocation2 + $0x22] sm:$0xff]  ;;  %v9209_v24 = vld [vmem:[#allocation2 + $0x4a] sm:$0xff] }
 0x368   : > { %v2477_v26 = vpop.f32.mrf.mxu0 }
 0x369   : > { %2629 = vst.msk [vmem:[#allocation2 + $0x181] sm:$0xff] %vm11622_vm0, %v2597_v25  ;;  %v2595_v31 = vmax.f32 %v2563_v27, 0.0  ;;  %v2566_v29 = vadd.f32 %v8907_v45, %v2527_v33  ;;  %v2525_v44 = vmul.f32 %v8902_v32, %v2477_v26  ;;  %v9211_v25 = vld [vmem:[#allocation2 + $0x3a] sm:$0xff]  ;;  %v9218_v33 = vld [vmem:[#allocation2 + $0x62] sm:$0xff]  ;;  %v9220_v26 = vld [vmem:[#allocation2 + $0x52] sm:$0xff] }
 0x36b   : > { %2627 = vst.msk [vmem:[#allocation2 + $0x169] sm:$0xff] %vm11622_vm0, %v2595_v31  ;;  %v2598_v50 = vmax.f32 %v2566_v29, 0.0  ;;  %v2564_v56 = vadd.f32 %v8907_v45, %v2525_v44  ;;  %v2887_v45 = vld [vmem:[#allocation2 + $0x2] sm:$0xff]  ;;  %v9228_v44 = vld [vmem:[#allocation2 + $0x7a] sm:$0xff] }
 0x36d   : > { %2630 = vst.msk [vmem:[#allocation2 + $0x189] sm:$0xff] %vm11622_vm0, %v2598_v50  ;;  %v2596_v57 = vmax.f32 %v2564_v56, 0.0  ;;  %v2780_v10 = vpop.permute.xlu0 %2779  ;;  %v9230_v50 = vld [vmem:[#allocation2 + $0x6a] sm:$0xff] }
 0x36e   : > { %2865 = vst.msk [vmem:[#allocation3 + $0x50] sm:$0xff] %vm806_vm3, %v2780_v10  ;;  %v9239_v10 = vld [vmem:[#allocation2 + $0x82] sm:$0xff] }
 0x36f   : > { %2628 = vst.msk [vmem:[#allocation2 + $0x171] sm:$0xff] %vm11622_vm0, %v2596_v57  ;;  %v9237_v57 = vld [vmem:[#allocation2 + $0x92] sm:$0xff] }
 0x371   : > { %v2784_v15 = vpop.permute.xlu0 %2783  ;;  %v2782_v28 = vpop.permute.xlu1 %2781 }
 0x372   : > { %2867 = vst.msk [vmem:[#allocation3 + $0x60] sm:$0xff] %vm806_vm3, %v2784_v15  ;;  %2866 = vst.msk [vmem:[#allocation3 + $0x58] sm:$0xff] %vm806_vm3, %v2782_v28  ;;  %v2725_v32 = vld [vmem:[#allocation2 + $0x169] sm:$0xff]  ;;  %v9247_v28 = vld [vmem:[#allocation2 + $0x9a] sm:$0xff] }
 0x373   : > { %v2661_v17 = vld [vmem:[#allocation2 + $0x168] sm:$0xff]  ;;  %2819 = vrot.lane.b32.xlu0 %v2725_v32, %s11620_s24 }
 0x374   : > { %2693 = vst.msk [vmem:[#allocation3 + $0xf0] sm:$0xff] %vm11622_vm0, %v2661_v17  ;;  %v9245_v15 = vld [vmem:[#allocation2 + $0xaa] sm:$0xff]  ;;  %v9253_v32 = vld [vmem:[#allocation2 + $0xc2] sm:$0xff]  ;;  %v9255_v17 = vld [vmem:[#allocation2 + $0xb2] sm:$0xff] }
 0x375   : > { %v2786_v18 = vpop.permute.xlu1 %2785 }
 0x376   : > { %2868 = vst.msk [vmem:[#allocation3 + $0x68] sm:$0xff] %vm806_vm3, %v2786_v18  ;;  %v2726_v30 = vld [vmem:[#allocation2 + $0x171] sm:$0xff] }
 0x377   : > { %v2662_v21 = vld [vmem:[#allocation2 + $0x170] sm:$0xff]  ;;  %2951 = vrot.lane.b32.xlu0 %v2887_v45, %s7618_s25  ;;  %2821 = vrot.lane.b32.xlu1 %v2726_v30, %s11620_s24  ;;  %v9261_v45 = vld [vmem:[#allocation2 + $0xda] sm:$0xff] }
 0x378   : > { %2694 = vst.msk [vmem:[#allocation3 + $0xf8] sm:$0xff] %vm11622_vm0, %v2662_v21  ;;  %v9263_v18 = vld [vmem:[#allocation2 + $0xca] sm:$0xff]  ;;  %v9270_v21 = vld [vmem:[#allocation2 + $0xe2] sm:$0xff] }
 0x37b   : > { %2955 = vrot.lane.b32.xlu0 %v2889_v49, %s7618_s25  ;;  %2953 = vrot.lane.b32.xlu1 %v2888_v16, %s7618_s25 }
 0x37f   : > { %2959 = vrot.lane.b32.xlu0 %v9204_v22, %s7618_s25  ;;  %2957 = vrot.lane.b32.xlu1 %v2890_v23, %s7618_s25 }
 0x383   : > { %2963 = vrot.lane.b32.xlu0 %v9209_v24, %s7618_s25  ;;  %2961 = vrot.lane.b32.xlu1 %v9211_v25, %s7618_s25 }
 0x385   : > { %v2788_v27 = vpop.permute.xlu0 %2787 }
 0x386   : > { %2869 = vst.msk [vmem:[#allocation3 + $0x70] sm:$0xff] %vm806_vm3, %v2788_v27 }
 0x387   : > { %2967 = vrot.lane.b32.xlu0 %v9218_v33, %s7618_s25  ;;  %2965 = vrot.lane.b32.xlu1 %v9220_v26, %s7618_s25 }
 0x389   : > { %v2792_v31 = vpop.permute.xlu0 %2791  ;;  %v2790_v29 = vpop.permute.xlu1 %2789 }
 0x38a   : > { %2871 = vst.msk [vmem:[#allocation3 + $0x80] sm:$0xff] %vm806_vm3, %v2792_v31  ;;  %2870 = vst.msk [vmem:[#allocation3 + $0x78] sm:$0xff] %vm806_vm3, %v2790_v29  ;;  %v7549_v29 = vld [vmem:[%s11547_s6 + $0x10] sm:$0xff]  }
 0x38b   : > { %2971 = vrot.lane.b32.xlu0 %v9228_v44, %s7618_s25  ;;  %2969 = vrot.lane.b32.xlu1 %v9230_v50, %s7618_s25 }
 0x38d   : > { %v2794_v56 = vpop.permute.xlu1 %2793 }
 0x38e   : > { %2872 = vst.msk [vmem:[#allocation3 + $0x88] sm:$0xff] %vm806_vm3, %v2794_v56 }
 0x38f   : > { %2975 = vrot.lane.b32.xlu0 %v9237_v57, %s7618_s25  ;;  %2973 = vrot.lane.b32.xlu1 %v9239_v10, %s7618_s25 }
 0x393   : > { %2979 = vrot.lane.b32.xlu0 %v9245_v15, %s7618_s25  ;;  %2977 = vrot.lane.b32.xlu1 %v9247_v28, %s7618_s25 }
 0x397   : > { %2983 = vrot.lane.b32.xlu0 %v9253_v32, %s7618_s25  ;;  %2981 = vrot.lane.b32.xlu1 %v9255_v17, %s7618_s25 }
 0x39b   : > { %2987 = vrot.lane.b32.xlu0 %v9261_v45, %s7618_s25  ;;  %2985 = vrot.lane.b32.xlu1 %v9263_v18, %s7618_s25 }
 0x39d   : > { %v2796_v30 = vpop.permute.xlu0 %2795 }
 0x39e   : > { %2873 = vst.msk [vmem:[#allocation3 + $0x90] sm:$0xff] %vm806_vm3, %v2796_v30 }
 0x39f   : > { %3143 = vrot.lane.b32.xlu0 %v8931_v8, %s7619_s26  ;;  %2989 = vrot.lane.b32.xlu1 %v9270_v21, %s7618_s25  ;;  %v7547_v8 = vld [vmem:[%s11547_s6 + $0x20] ss:$0 sps:$4 sm:$0xff]  }
 0x3a0   : > { %7501 = vmatprep.subr.msk.bf16.mxu1 %vm2324_vm7, %v7547_v8 }
 0x3a1   : > { %v2800_v16 = vpop.permute.xlu0 %2799  ;;  %v2798_v27 = vpop.permute.xlu1 %2797 }
 0x3a2   : > { %2875 = vst.msk [vmem:[#allocation3 + $0xa0] sm:$0xff] %vm806_vm3, %v2800_v16  ;;  %2874 = vst.msk [vmem:[#allocation3 + $0x98] sm:$0xff] %vm806_vm3, %v2798_v27 }
 0x3a3   : > { %3147 = vrot.lane.b32.xlu0 %v8925_v35, %s7619_s26  ;;  %3145 = vrot.lane.b32.xlu1 %v8945_v52, %s7619_s26 }
 0x3a5   : > { %v2802_v31 = vpop.permute.xlu1 %2801 }
 0x3a6   : > { %2876 = vst.msk [vmem:[#allocation3 + $0xa8] sm:$0xff] %vm806_vm3, %v2802_v31 }
 0x3a7   : > { %3335 = vrot.lane.b32.xlu0 %v8929_v51, %s7620_s27  ;;  %3149 = vrot.lane.b32.xlu1 %v8937_v9, %s7619_s26 }
 0x3ab   : > { %3339 = vrot.lane.b32.xlu0 %v8941_v53, %s7620_s27  ;;  %3337 = vrot.lane.b32.xlu1 %v8943_v7, %s7620_s27 }
 0x3af   : > { %3527 = vrot.lane.b32.xlu0 %v2889_v49, %s11614_s28  ;;  %3341 = vrot.lane.b32.xlu1 %v8953_v55, %s7620_s27  ;;  %v4364_v49 = vsel %vm2324_vm7, %v7547_v8, 0  ;;  %vm4768_vm7 = vcmask 177304  }
 0x3b0   : > { %7442 = vmatpush3.bf16.msra.mxu1 %v4364_v49 }
 0x3b3   : > { %3531 = vrot.lane.b32.xlu0 %v9204_v22, %s11614_s28  ;;  %3529 = vrot.lane.b32.xlu1 %v2890_v23, %s11614_s28 }
 0x3b5   : > { %v2804_v51 = vpop.permute.xlu0 %2803 }
 0x3b6   : > { %2877 = vst.msk [vmem:[#allocation3 + $0xb0] sm:$0xff] %vm806_vm3, %v2804_v51 }
 0x3b7   : > { %3719 = vrot.lane.b32.xlu0 %v8925_v35, %s7622_s29  ;;  %3533 = vrot.lane.b32.xlu1 %v9211_v25, %s11614_s28  ;;  %v7548_v35 = vld [vmem:[%s11547_s6 + $0x18] sm:$0xff]  }
 0x3b8   : > { %7443 = vmatprep.subr.bf16.mxu1 %v7548_v35 }
 0x3b9   : > { %v2808_v7 = vpop.permute.xlu0 %2807  ;;  %v2806_v52 = vpop.permute.xlu1 %2805  ;;  %7444 = vmatpush3.bf16.msra.mxu1 %v7548_v35 }
 0x3ba   : > { %2879 = vst.msk [vmem:[#allocation3 + $0xc0] sm:$0xff] %vm806_vm3, %v2808_v7  ;;  %2878 = vst.msk [vmem:[#allocation3 + $0xb8] sm:$0xff] %vm806_vm3, %v2806_v52  ;;  %7445 = vmatprep.subr.bf16.mxu1 %v7549_v29 }
 0x3bb   : > { %3723 = vrot.lane.b32.xlu0 %v8975_v40, %s7622_s29  ;;  %3721 = vrot.lane.b32.xlu1 %v8937_v9, %s7622_s29  ;;  %v7550_v9 = vld [vmem:[%s11547_s6 + $0x8] sm:$0xff]  }
 0x3bd   : > { %v2810_v23 = vpop.permute.xlu1 %2809  ;;  %7446 = vmatpush3.bf16.msra.mxu1 %v7549_v29 }
 0x3be   : > { %2880 = vst.msk [vmem:[#allocation3 + $0xc8] sm:$0xff] %vm806_vm3, %v2810_v23  ;;  %7447 = vmatprep.subr.bf16.mxu1 %v7550_v9 }
 0x3bf   : > { %3911 = vrot.lane.b32.xlu0 %v8941_v53, %s11618_s19  ;;  %3725 = vrot.lane.b32.xlu1 %v8989_v12, %s7622_s29  ;;  %v7551_v53 = vld [vmem:[%s11547_s6] sm:$0xff]  }
 0x3c1   : > { %7448 = vmatpush3.bf16.msra.mxu1 %v7550_v9 }
 0x3c2   : > { %7449 = vmatprep.subr.bf16.mxu1 %v7551_v53 }
 0x3c3   : > { %3915 = vrot.lane.b32.xlu0 %v8973_v39, %s11618_s19  ;;  %3913 = vrot.lane.b32.xlu1 %v8953_v55, %s11618_s19 }
 0x3c5   : > { %7450 = vmatpush3.bf16.msra.mxu1 %v7551_v53 }
 0x3c7   : > { %4103 = vrot.lane.b32.xlu0 %v9204_v22, %s7624_s11  ;;  %3917 = vrot.lane.b32.xlu1 %v8987_v11, %s11618_s19 }
 0x3cb   : > { %4107 = vrot.lane.b32.xlu0 %v9209_v24, %s7624_s11  ;;  %4105 = vrot.lane.b32.xlu1 %v9211_v25, %s7624_s11 }
 0x3cd   : > { %v2812_v55 = vpop.permute.xlu0 %2811 }
 0x3ce   : > { %2881 = vst.msk [vmem:[#allocation3 + $0xd0] sm:$0xff] %vm806_vm3, %v2812_v55 }
 0x3cf   : > { %3151 = vrot.lane.b32.xlu0 %v8975_v40, %s7619_s26  ;;  %4109 = vrot.lane.b32.xlu1 %v9220_v26, %s7624_s11 }
 0x3d1   : > { %v2816_v22 = vpop.permute.xlu0 %2815  ;;  %v2814_v56 = vpop.permute.xlu1 %2813 }
 0x3d2   : > { %2883 = vst.msk [vmem:[#allocation3 + $0xe0] sm:$0xff] %vm806_vm3, %v2816_v22  ;;  %2882 = vst.msk [vmem:[#allocation3 + $0xd8] sm:$0xff] %vm806_vm3, %v2814_v56 }
 0x3d3   : > { %3155 = vrot.lane.b32.xlu0 %v8969_v38, %s7619_s26  ;;  %3153 = vrot.lane.b32.xlu1 %v8989_v12, %s7619_s26 }
 0x3d5   : > { %v2818_v25 = vpop.permute.xlu1 %2817 }
 0x3d6   : > { %2884 = vst.msk [vmem:[#allocation3 + $0xe8] sm:$0xff] %vm806_vm3, %v2818_v25  ;;  %v3285_v25 = vld [vmem:[#allocation2 + $0xc1] sm:$0xff] }
 0x3d7   : > { %3343 = vrot.lane.b32.xlu0 %v8973_v39, %s7620_s27  ;;  %3157 = vrot.lane.b32.xlu1 %v8981_v54, %s7619_s26 }
 0x3db   : > { %3347 = vrot.lane.b32.xlu0 %v8985_v41, %s7620_s27  ;;  %3345 = vrot.lane.b32.xlu1 %v8987_v11, %s7620_s27 }
 0x3df   : > { %3535 = vrot.lane.b32.xlu0 %v9209_v24, %s11614_s28  ;;  %3349 = vrot.lane.b32.xlu1 %v8997_v20, %s7620_s27 }
 0x3e3   : > { %3539 = vrot.lane.b32.xlu0 %v9218_v33, %s11614_s28  ;;  %3537 = vrot.lane.b32.xlu1 %v9220_v26, %s11614_s28 }
 0x3e5   : > { %v2820_v39 = vpop.permute.xlu0 %2819 }
 0x3e6   : > { %2885 = vst.msk [vmem:[#allocation3 + $0xf0] sm:$0xff] %vm806_vm3, %v2820_v39 }
 0x3e7   : > { %3727 = vrot.lane.b32.xlu0 %v8969_v38, %s7622_s29  ;;  %3541 = vrot.lane.b32.xlu1 %v9230_v50, %s11614_s28 }
 0x3e9   : > { %v2952_v40 = vpop.permute.xlu0 %2951  ;;  %v2822_v11 = vpop.permute.xlu1 %2821 }
 0x3ea   : > { %3047 = vst.msk [vmem:[#allocation3] sm:$0xff] %vm999_vm4, %v2952_v40 }
 0x3eb   : > { %2886 = vst.msk [vmem:[#allocation3 + $0xf8] sm:$0xff] %vm806_vm3, %v2822_v11  ;;  %3731 = vrot.lane.b32.xlu0 %v9019_v5, %s7622_s29  ;;  %3729 = vrot.lane.b32.xlu1 %v8981_v54, %s7622_s29  ;;  %vm4752_vm3 = vcmask 174080  }
 0x3ed   : > { %v2956_v12 = vpop.permute.xlu0 %2955  ;;  %v2954_v24 = vpop.permute.xlu1 %2953 }
 0x3ee   : > { %3049 = vst.msk [vmem:[#allocation3 + $0x10] sm:$0xff] %vm999_vm4, %v2956_v12  ;;  %3048 = vst.msk [vmem:[#allocation3 + $0x8] sm:$0xff] %vm999_vm4, %v2954_v24 }
 0x3ef   : > { %3919 = vrot.lane.b32.xlu0 %v8985_v41, %s11618_s19  ;;  %3733 = vrot.lane.b32.xlu1 %v9033_v43, %s7622_s29 }
 0x3f1   : > { %v2960_v38 = vpop.permute.xlu0 %2959  ;;  %v2958_v26 = vpop.permute.xlu1 %2957 }
 0x3f2   : > { %3051 = vst.msk [vmem:[#allocation3 + $0x20] sm:$0xff] %vm999_vm4, %v2960_v38  ;;  %3050 = vst.msk [vmem:[#allocation3 + $0x18] sm:$0xff] %vm999_vm4, %v2958_v26 }
 0x3f3   : > { %3923 = vrot.lane.b32.xlu0 %v9017_v42, %s11618_s19  ;;  %3921 = vrot.lane.b32.xlu1 %v8997_v20, %s11618_s19 }
 0x3f5   : > { %v2964_v54 = vpop.permute.xlu0 %2963  ;;  %v2962_v30 = vpop.permute.xlu1 %2961 }
 0x3f6   : > { %3053 = vst.msk [vmem:[#allocation3 + $0x30] sm:$0xff] %vm999_vm4, %v2964_v54  ;;  %3052 = vst.msk [vmem:[#allocation3 + $0x28] sm:$0xff] %vm999_vm4, %v2962_v30 }
 0x3f7   : > { %4111 = vrot.lane.b32.xlu0 %v9218_v33, %s7624_s11  ;;  %3925 = vrot.lane.b32.xlu1 %v9031_v14, %s11618_s19 }
 0x3f9   : > { %v2968_v41 = vpop.permute.xlu0 %2967  ;;  %v2966_v16 = vpop.permute.xlu1 %2965 }
 0x3fa   : > { %3055 = vst.msk [vmem:[#allocation3 + $0x40] sm:$0xff] %vm999_vm4, %v2968_v41  ;;  %3054 = vst.msk [vmem:[#allocation3 + $0x38] sm:$0xff] %vm999_vm4, %v2966_v16 }
 0x3fb   : > { %4115 = vrot.lane.b32.xlu0 %v9228_v44, %s7624_s11  ;;  %4113 = vrot.lane.b32.xlu1 %v9230_v50, %s7624_s11 }
 0x3fd   : > { %v2972_v20 = vpop.permute.xlu0 %2971  ;;  %v2970_v27 = vpop.permute.xlu1 %2969 }
 0x3fe   : > { %3057 = vst.msk [vmem:[#allocation3 + $0x50] sm:$0xff] %vm999_vm4, %v2972_v20  ;;  %3056 = vst.msk [vmem:[#allocation3 + $0x48] sm:$0xff] %vm999_vm4, %v2970_v27 }
 0x3ff   : > { %3159 = vrot.lane.b32.xlu0 %v9019_v5, %s7619_s26  ;;  %4117 = vrot.lane.b32.xlu1 %v9239_v10, %s7624_s11 }
 0x401   : > { %v2976_v33 = vpop.permute.xlu0 %2975  ;;  %v2974_v31 = vpop.permute.xlu1 %2973 }
 0x402   : > { %3059 = vst.msk [vmem:[#allocation3 + $0x60] sm:$0xff] %vm999_vm4, %v2976_v33  ;;  %3058 = vst.msk [vmem:[#allocation3 + $0x58] sm:$0xff] %vm999_vm4, %v2974_v31 }
 0x403   : > { %3163 = vrot.lane.b32.xlu0 %v9013_v61, %s7619_s26  ;;  %3161 = vrot.lane.b32.xlu1 %v9033_v43, %s7619_s26 }
 0x405   : > { %v2980_v50 = vpop.permute.xlu0 %2979  ;;  %v2978_v51 = vpop.permute.xlu1 %2977 }
 0x406   : > { %3061 = vst.msk [vmem:[#allocation3 + $0x70] sm:$0xff] %vm999_vm4, %v2980_v50  ;;  %3060 = vst.msk [vmem:[#allocation3 + $0x68] sm:$0xff] %vm999_vm4, %v2978_v51 }
 0x407   : > { %3351 = vrot.lane.b32.xlu0 %v9017_v42, %s7620_s27  ;;  %3165 = vrot.lane.b32.xlu1 %v9025_v6, %s7619_s26 }
 0x409   : > { %v2984_v5 = vpop.permute.xlu0 %2983  ;;  %v2982_v8 = vpop.permute.xlu1 %2981 }
 0x40a   : > { %3063 = vst.msk [vmem:[#allocation3 + $0x80] sm:$0xff] %vm999_vm4, %v2984_v5  ;;  %3062 = vst.msk [vmem:[#allocation3 + $0x78] sm:$0xff] %vm999_vm4, %v2982_v8  ;;  %v3862_v5 = vld [vmem:[#allocation2 + $0xe1] sm:$0xff] }
 0x40b   : > { %3355 = vrot.lane.b32.xlu0 %v9029_v13, %s7620_s27  ;;  %3353 = vrot.lane.b32.xlu1 %v9031_v14, %s7620_s27 }
 0x40d   : > { %v2988_v43 = vpop.permute.xlu0 %2987  ;;  %v2986_v7 = vpop.permute.xlu1 %2985 }
 0x40e   : > { %3065 = vst.msk [vmem:[#allocation3 + $0x90] sm:$0xff] %vm999_vm4, %v2988_v43  ;;  %3064 = vst.msk [vmem:[#allocation3 + $0x88] sm:$0xff] %vm999_vm4, %v2986_v7 }
 0x40f   : > { %3543 = vrot.lane.b32.xlu0 %v9228_v44, %s11614_s28  ;;  %3357 = vrot.lane.b32.xlu1 %v9041_v46, %s7620_s27 }
 0x411   : > { %v3144_v42 = vpop.permute.xlu0 %3143  ;;  %v2990_v52 = vpop.permute.xlu1 %2989 }
 0x412   : > { %3239 = vst.msk [vmem:[#allocation3] sm:$0xff] %vm1192_vm5, %v3144_v42 }
 0x413   : > { %3066 = vst.msk [vmem:[#allocation3 + $0x98] sm:$0xff] %vm999_vm4, %v2990_v52  ;;  %3547 = vrot.lane.b32.xlu0 %v9237_v57, %s11614_s28  ;;  %3545 = vrot.lane.b32.xlu1 %v9239_v10, %s11614_s28 }
 0x415   : > { %v3148_v14 = vpop.permute.xlu0 %3147  ;;  %v3146_v49 = vpop.permute.xlu1 %3145 }
 0x416   : > { %3241 = vst.msk [vmem:[#allocation3 + $0x10] sm:$0xff] %vm1192_vm5, %v3148_v14  ;;  %3240 = vst.msk [vmem:[#allocation3 + $0x8] sm:$0xff] %vm1192_vm5, %v3146_v49 }
 0x417   : > { %3735 = vrot.lane.b32.xlu0 %v9013_v61, %s7622_s29  ;;  %3549 = vrot.lane.b32.xlu1 %v9247_v28, %s11614_s28 }
 0x419   : > { %v3336_v44 = vpop.permute.xlu0 %3335  ;;  %v3150_v35 = vpop.permute.xlu1 %3149 }
 0x41a   : > { %3431 = vst.msk [vmem:[#allocation3] sm:$0xff] %vm1385_vm6, %v3336_v44  ;;  %v3289_v44 = vld [vmem:[#allocation2 + $0xf1] sm:$0xff] }
 0x41b   : > { %3242 = vst.msk [vmem:[#allocation3 + $0x18] sm:$0xff] %vm1192_vm5, %v3150_v35  ;;  %3739 = vrot.lane.b32.xlu0 %v9063_v36, %s7622_s29  ;;  %3737 = vrot.lane.b32.xlu1 %v9025_v6, %s7622_s29 }
 0x41d   : > { %v3340_v10 = vpop.permute.xlu0 %3339  ;;  %v3338_v23 = vpop.permute.xlu1 %3337 }
 0x41e   : > { %3433 = vst.msk [vmem:[#allocation3 + $0x10] sm:$0xff] %vm1385_vm6, %v3340_v10  ;;  %3432 = vst.msk [vmem:[#allocation3 + $0x8] sm:$0xff] %vm1385_vm6, %v3338_v23  ;;  %v3290_v10 = vld [vmem:[#allocation2 + $0xf9] sm:$0xff] }
 0x41f   : > { %3927 = vrot.lane.b32.xlu0 %v9029_v13, %s11618_s19  ;;  %3741 = vrot.lane.b32.xlu1 %v9075_v19, %s7622_s29 }
 0x421   : > { %v3528_v61 = vpop.permute.xlu0 %3527  ;;  %v3342_v29 = vpop.permute.xlu1 %3341 }
 0x422   : > { %3623 = vst.msk [vmem:[#allocation3] sm:$0xff] %vm1578_vm8, %v3528_v61 }
 0x423   : > { %3434 = vst.msk [vmem:[#allocation3 + $0x18] sm:$0xff] %vm1385_vm6, %v3342_v29  ;;  %3931 = vrot.lane.b32.xlu0 %v9061_v63, %s11618_s19  ;;  %3929 = vrot.lane.b32.xlu1 %v9041_v46, %s11618_s19  ;;  %v3481_v29 = vld [vmem:[#allocation2 + $0xf2] sm:$0xff] }
 0x425   : > { %v3532_v6 = vpop.permute.xlu0 %3531  ;;  %v3530_v9 = vpop.permute.xlu1 %3529 }
 0x426   : > { %3625 = vst.msk [vmem:[#allocation3 + $0x10] sm:$0xff] %vm1578_vm8, %v3532_v6  ;;  %3624 = vst.msk [vmem:[#allocation3 + $0x8] sm:$0xff] %vm1578_vm8, %v3530_v9 }
 0x427   : > { %4119 = vrot.lane.b32.xlu0 %v9237_v57, %s7624_s11  ;;  %3933 = vrot.lane.b32.xlu1 %v9073_v37, %s11618_s19 }
 0x429   : > { %v3720_v13 = vpop.permute.xlu0 %3719  ;;  %v3534_v53 = vpop.permute.xlu1 %3533 }
 0x42a   : > { %3815 = vst.msk [vmem:[#allocation3] sm:$0xff] %vm1772_vm9, %v3720_v13 }
 0x42b   : > { %3626 = vst.msk [vmem:[#allocation3 + $0x18] sm:$0xff] %vm1578_vm8, %v3534_v53  ;;  %4123 = vrot.lane.b32.xlu0 %v9245_v15, %s7624_s11  ;;  %4121 = vrot.lane.b32.xlu1 %v9247_v28, %s7624_s11 }
 0x42d   : > { %v3724_v46 = vpop.permute.xlu0 %3723  ;;  %v3722_v55 = vpop.permute.xlu1 %3721 }
 0x42e   : > { %3817 = vst.msk [vmem:[#allocation3 + $0x10] sm:$0xff] %vm1772_vm9, %v3724_v46  ;;  %3816 = vst.msk [vmem:[#allocation3 + $0x8] sm:$0xff] %vm1772_vm9, %v3722_v55 }
 0x42f   : > { %3167 = vrot.lane.b32.xlu0 %v9063_v36, %s7619_s26  ;;  %4125 = vrot.lane.b32.xlu1 %v9255_v17, %s7624_s11 }
 0x431   : > { %v3912_v37 = vpop.permute.xlu0 %3911  ;;  %v3726_v57 = vpop.permute.xlu1 %3725 }
 0x432   : > { %4007 = vst.msk [vmem:[#allocation3] sm:$0xff] %vm1965_vm10, %v3912_v37 }
 0x433   : > { %3818 = vst.msk [vmem:[#allocation3 + $0x18] sm:$0xff] %vm1772_vm9, %v3726_v57  ;;  %3171 = vrot.lane.b32.xlu0 %v9057_v34, %s7619_s26  ;;  %3169 = vrot.lane.b32.xlu1 %v9075_v19, %s7619_s26  ;;  %v3284_v19 = vld [vmem:[#allocation2 + $0xb1] sm:$0xff] }
 0x435   : > { %v3916_v28 = vpop.permute.xlu0 %3915  ;;  %v3914_v22 = vpop.permute.xlu1 %3913 }
 0x436   : > { %4009 = vst.msk [vmem:[#allocation3 + $0x10] sm:$0xff] %vm1965_vm10, %v3916_v28  ;;  %4008 = vst.msk [vmem:[#allocation3 + $0x8] sm:$0xff] %vm1965_vm10, %v3914_v22 }
 0x437   : > { %3359 = vrot.lane.b32.xlu0 %v9061_v63, %s7620_s27  ;;  %3173 = vrot.lane.b32.xlu1 %v9069_v58, %s7619_s26  ;;  %v3286_v63 = vld [vmem:[#allocation2 + $0xc9] sm:$0xff] }
 0x439   : > { %v4104_v36 = vpop.permute.xlu0 %4103  ;;  %v3918_v56 = vpop.permute.xlu1 %3917 }
 0x43a   : > { %4199 = vst.msk [vmem:[#allocation3] sm:$0xff] %vm2158_vm11, %v4104_v36 }
 0x43b   : > { %4010 = vst.msk [vmem:[#allocation3 + $0x18] sm:$0xff] %vm1965_vm10, %v3918_v56  ;;  %3363 = vrot.lane.b32.xlu0 %v3285_v25, %s7620_s27  ;;  %3361 = vrot.lane.b32.xlu1 %v3284_v19, %s7620_s27 }
 0x43d   : > { %v4108_v39 = vpop.permute.xlu0 %4107  ;;  %v4106_v40 = vpop.permute.xlu1 %4105 }
 0x43e   : > { %4201 = vst.msk [vmem:[#allocation3 + $0x10] sm:$0xff] %vm2158_vm11, %v4108_v39  ;;  %4200 = vst.msk [vmem:[#allocation3 + $0x8] sm:$0xff] %vm2158_vm11, %v4106_v40  ;;  %v3866_v39 = vld [vmem:[#allocation2 + $0x111] sm:$0xff] }
 0x43f   : > { %3551 = vrot.lane.b32.xlu0 %v9245_v15, %s11614_s28  ;;  %3365 = vrot.lane.b32.xlu1 %v3286_v63, %s7620_s27 }
 0x441   : > { %v3152_v11 = vpop.permute.xlu0 %3151  ;;  %v4110_v12 = vpop.permute.xlu1 %4109  ;;  %v4231_v26 = vld [vmem:[#allocation3] sm:$0xff] }
 0x442   : > { %3243 = vst.msk [vmem:[#allocation3 + $0x20] sm:$0xff] %vm1192_vm5, %v3152_v11  ;;  %v4057_v11 = vld [vmem:[#allocation2 + $0x10a] sm:$0xff] }
 0x443   : > { %4202 = vst.msk [vmem:[#allocation3 + $0x18] sm:$0xff] %vm2158_vm11, %v4110_v12  ;;  %3555 = vrot.lane.b32.xlu0 %v9253_v32, %s11614_s28  ;;  %3553 = vrot.lane.b32.xlu1 %v9255_v17, %s11614_s28 }
 0x445   : > { %v3156_v24 = vpop.permute.xlu0 %3155  ;;  %v3154_v38 = vpop.permute.xlu1 %3153  ;;  %v4232_v54 = vld [vmem:[#allocation3 + $0x8] sm:$0xff]  ;;  %v4233_v17 = vld [vmem:[#allocation3 + $0x10] sm:$0xff] }
 0x446   : > { %3245 = vst.msk [vmem:[#allocation3 + $0x30] sm:$0xff] %vm1192_vm5, %v3156_v24  ;;  %3244 = vst.msk [vmem:[#allocation3 + $0x28] sm:$0xff] %vm1192_vm5, %v3154_v38  ;;  %v4263_v15 = vpack.c.bf16 %v4232_v54, %v4231_v26  ;;  %v4058_v38 = vld [vmem:[#allocation2 + $0x112] sm:$0xff] }
 0x447   : > { %3743 = vrot.lane.b32.xlu0 %v9057_v34, %s7622_s29  ;;  %3557 = vrot.lane.b32.xlu1 %v9263_v18, %s11614_s28 }
 0x448   : > { %7451 = vmatprep.mubr.msk.bf16.mxu1 %vm2275_vm12, %v4263_v15 }
 0x449   : > { %v3344_v30 = vpop.permute.xlu0 %3343  ;;  %v3158_v41 = vpop.permute.xlu1 %3157 }
 0x44a   : > { %v4234_v16 = vld [vmem:[#allocation3 + $0x18] sm:$0xff]  ;;  %3435 = vst.msk [vmem:[#allocation3 + $0x20] sm:$0xff] %vm1385_vm6, %v3344_v30 }
 0x44b   : > { %3246 = vst.msk [vmem:[#allocation3 + $0x38] sm:$0xff] %vm1192_vm5, %v3158_v41  ;;  %v4264_v20 = vpack.c.bf16 %v4234_v16, %v4233_v17  ;;  %3747 = vrot.lane.b32.xlu0 %v9099_v47, %s7622_s29  ;;  %3745 = vrot.lane.b32.xlu1 %v9069_v58, %s7622_s29  ;;  %v3861_v58 = vld [vmem:[#allocation2 + $0xd9] sm:$0xff] }
 0x44d   : > { %7452 = vmatmul.mubr.msk.bf16.vlgmr.msra.gmra.mxu1 %vm2275_vm12, %v4264_v20  ;;  %v3348_v34 = vpop.permute.xlu0 %3347  ;;  %v3346_v27 = vpop.permute.xlu1 %3345 }
 0x44e   : > { %3437 = vst.msk [vmem:[#allocation3 + $0x30] sm:$0xff] %vm1385_vm6, %v3348_v34  ;;  %3436 = vst.msk [vmem:[#allocation3 + $0x28] sm:$0xff] %vm1385_vm6, %v3346_v27 }
 0x44f   : > { %3935 = vrot.lane.b32.xlu0 %v3285_v25, %s11618_s19  ;;  %3749 = vrot.lane.b32.xlu1 %v9110_v59, %s7622_s29 }
 0x451   : > { %v3536_v33 = vpop.permute.xlu0 %3535  ;;  %v3350_v31 = vpop.permute.xlu1 %3349 }
 0x452   : > { %3627 = vst.msk [vmem:[#allocation3 + $0x20] sm:$0xff] %vm1578_vm8, %v3536_v33 }
 0x453   : > { %3438 = vst.msk [vmem:[#allocation3 + $0x38] sm:$0xff] %vm1385_vm6, %v3350_v31  ;;  %3939 = vrot.lane.b32.xlu0 %v3861_v58, %s11618_s19  ;;  %3937 = vrot.lane.b32.xlu1 %v3286_v63, %s11618_s19 }
 0x455   : > { %v3540_v50 = vpop.permute.xlu0 %3539  ;;  %v3538_v51 = vpop.permute.xlu1 %3537 }
 0x456   : > { %3629 = vst.msk [vmem:[#allocation3 + $0x30] sm:$0xff] %vm1578_vm8, %v3540_v50  ;;  %3628 = vst.msk [vmem:[#allocation3 + $0x28] sm:$0xff] %vm1578_vm8, %v3538_v51 }
 0x457   : > { %4127 = vrot.lane.b32.xlu0 %v9253_v32, %s7624_s11  ;;  %3941 = vrot.lane.b32.xlu1 %v3862_v5, %s11618_s19 }
 0x459   : > { %v3728_v8 = vpop.permute.xlu0 %3727  ;;  %v3542_v43 = vpop.permute.xlu1 %3541 }
 0x45a   : > { %3819 = vst.msk [vmem:[#allocation3 + $0x20] sm:$0xff] %vm1772_vm9, %v3728_v8 }
 0x45b   : > { %3630 = vst.msk [vmem:[#allocation3 + $0x38] sm:$0xff] %vm1578_vm8, %v3542_v43  ;;  %4131 = vrot.lane.b32.xlu0 %v9261_v45, %s7624_s11  ;;  %4129 = vrot.lane.b32.xlu1 %v9263_v18, %s7624_s11  ;;  %v3485_v43 = vld [vmem:[#allocation2 + $0x122] sm:$0xff] }
 0x45d   : > { %v3732_v7 = vpop.permute.xlu0 %3731  ;;  %v3730_v42 = vpop.permute.xlu1 %3729 }
 0x45e   : > { %3821 = vst.msk [vmem:[#allocation3 + $0x30] sm:$0xff] %vm1772_vm9, %v3732_v7  ;;  %3820 = vst.msk [vmem:[#allocation3 + $0x28] sm:$0xff] %vm1772_vm9, %v3730_v42 }
 0x45f   : > { %3175 = vrot.lane.b32.xlu0 %v9099_v47, %s7619_s26  ;;  %4133 = vrot.lane.b32.xlu1 %v9270_v21, %s7624_s11 }
 0x461   : > { %v3920_v32 = vpop.permute.xlu0 %3919  ;;  %v3734_v52 = vpop.permute.xlu1 %3733 }
 0x462   : > { %4011 = vst.msk [vmem:[#allocation3 + $0x20] sm:$0xff] %vm1965_vm10, %v3920_v32 }
 0x463   : > { %3822 = vst.msk [vmem:[#allocation3 + $0x38] sm:$0xff] %vm1772_vm9, %v3734_v52  ;;  %3179 = vrot.lane.b32.xlu0 %v9095_v62, %s7619_s26  ;;  %3177 = vrot.lane.b32.xlu1 %v9110_v59, %s7619_s26  ;;  %v3675_v52 = vld [vmem:[#allocation2 + $0x120] sm:$0xff] }
 0x465   : > { %v3924_v18 = vpop.permute.xlu0 %3923  ;;  %v3922_v14 = vpop.permute.xlu1 %3921 }
 0x466   : > { %4013 = vst.msk [vmem:[#allocation3 + $0x30] sm:$0xff] %vm1965_vm10, %v3924_v18  ;;  %4012 = vst.msk [vmem:[#allocation3 + $0x28] sm:$0xff] %vm1965_vm10, %v3922_v14  ;;  %v3486_v18 = vld [vmem:[#allocation2 + $0x12a] sm:$0xff] }
 0x467   : > { %3367 = vrot.lane.b32.xlu0 %v3861_v58, %s7620_s27  ;;  %3181 = vrot.lane.b32.xlu1 %v9104_v4, %s7619_s26 }
 0x469   : > { %v4112_v47 = vpop.permute.xlu0 %4111  ;;  %v3926_v49 = vpop.permute.xlu1 %3925 }
 0x46a   : > { %4203 = vst.msk [vmem:[#allocation3 + $0x20] sm:$0xff] %vm2158_vm11, %v4112_v47 }
 0x46b   : > { %4014 = vst.msk [vmem:[#allocation3 + $0x38] sm:$0xff] %vm1965_vm10, %v3926_v49  ;;  %3371 = vrot.lane.b32.xlu0 %v3289_v44, %s7620_s27  ;;  %3369 = vrot.lane.b32.xlu1 %v3862_v5, %s7620_s27  ;;  %v3676_v49 = vld [vmem:[#allocation2 + $0x128] sm:$0xff] }
 0x46d   : > { %v4116_v59 = vpop.permute.xlu0 %4115  ;;  %v4114_v35 = vpop.permute.xlu1 %4113 }
 0x46e   : > { %4205 = vst.msk [vmem:[#allocation3 + $0x30] sm:$0xff] %vm2158_vm11, %v4116_v59  ;;  %4204 = vst.msk [vmem:[#allocation3 + $0x28] sm:$0xff] %vm2158_vm11, %v4114_v35 }
 0x46f   : > { %3559 = vrot.lane.b32.xlu0 %v9261_v45, %s11614_s28  ;;  %3373 = vrot.lane.b32.xlu1 %v3290_v10, %s7620_s27  ;;  %v3482_v45 = vld [vmem:[#allocation2 + $0xfa] sm:$0xff] }
 0x471   : > { %v3160_v23 = vpop.permute.xlu0 %3159  ;;  %v4118_v61 = vpop.permute.xlu1 %4117  ;;  %v4235_v13 = vld [vmem:[#allocation3 + $0x20] sm:$0xff] }
 0x472   : > { %3247 = vst.msk [vmem:[#allocation3 + $0x40] sm:$0xff] %vm1192_vm5, %v3160_v23 }
 0x473   : > { %4206 = vst.msk [vmem:[#allocation3 + $0x38] sm:$0xff] %vm2158_vm11, %v4118_v61  ;;  %3563 = vrot.lane.b32.xlu0 %v3481_v29, %s11614_s28  ;;  %3561 = vrot.lane.b32.xlu1 %v9270_v21, %s11614_s28 }
 0x475   : > { %v3164_v6 = vpop.permute.xlu0 %3163  ;;  %v3162_v9 = vpop.permute.xlu1 %3161  ;;  %v4236_v53 = vld [vmem:[#allocation3 + $0x28] sm:$0xff]  ;;  %v4237_v21 = vld [vmem:[#allocation3 + $0x30] sm:$0xff] }
 0x476   : > { %3249 = vst.msk [vmem:[#allocation3 + $0x50] sm:$0xff] %vm1192_vm5, %v3164_v6  ;;  %3248 = vst.msk [vmem:[#allocation3 + $0x48] sm:$0xff] %vm1192_vm5, %v3162_v9  ;;  %v4265_v46 = vpack.c.bf16 %v4236_v53, %v4235_v13  ;;  %v4061_v9 = vld [vmem:[#allocation2 + $0x13a] sm:$0xff] }
 0x477   : > { %3751 = vrot.lane.b32.xlu0 %v9095_v62, %s7622_s29  ;;  %3565 = vrot.lane.b32.xlu1 %v3482_v45, %s11614_s28 }
 0x478   : > { %7455 = vmatprep.mubr.msk.bf16.mxu1 %vm2275_vm12, %v4265_v46 }
 0x479   : > { %v3352_v55 = vpop.permute.xlu0 %3351  ;;  %v3166_v37 = vpop.permute.xlu1 %3165 }
 0x47a   : > { %v4238_v57 = vld [vmem:[#allocation3 + $0x38] sm:$0xff]  ;;  %3439 = vst.msk [vmem:[#allocation3 + $0x40] sm:$0xff] %vm1385_vm6, %v3352_v55 }
 0x47b   : > { %3250 = vst.msk [vmem:[#allocation3 + $0x58] sm:$0xff] %vm1192_vm5, %v3166_v37  ;;  %v4266_v28 = vpack.c.bf16 %v4238_v57, %v4237_v21  ;;  %3755 = vrot.lane.b32.xlu0 %v9134_v60, %s7622_s29  ;;  %3753 = vrot.lane.b32.xlu1 %v9104_v4, %s7622_s29  ;;  %v3865_v4 = vld [vmem:[#allocation2 + $0x109] sm:$0xff]  ;;  %v3103_v57 = vld [vmem:[#allocation2 + $0x138] sm:$0xff] }
 0x47d   : > { %7456 = vmatmul.mubr.msk.bf16.gmra.mxu1 %vm2275_vm12, %v4266_v28  ;;  %v3356_v62 = vpop.permute.xlu0 %3355  ;;  %v3354_v22 = vpop.permute.xlu1 %3353 }
 0x47e   : > { %3441 = vst.msk [vmem:[#allocation3 + $0x50] sm:$0xff] %vm1385_vm6, %v3356_v62  ;;  %3440 = vst.msk [vmem:[#allocation3 + $0x48] sm:$0xff] %vm1385_vm6, %v3354_v22  ;;  %v3105_v22 = vld [vmem:[#allocation2 + $0x150] sm:$0xff] }
 0x47f   : > { %3943 = vrot.lane.b32.xlu0 %v3289_v44, %s11618_s19  ;;  %3757 = vrot.lane.b32.xlu1 %v9144_v2, %s7622_s29 }
 0x481   : > { %v3544_v36 = vpop.permute.xlu0 %3543  ;;  %v3358_v56 = vpop.permute.xlu1 %3357 }
 0x482   : > { %3631 = vst.msk [vmem:[#allocation3 + $0x40] sm:$0xff] %vm1578_vm8, %v3544_v36  ;;  %v3104_v36 = vld [vmem:[#allocation2 + $0x140] sm:$0xff] }
 0x483   : > { %3442 = vst.msk [vmem:[#allocation3 + $0x58] sm:$0xff] %vm1385_vm6, %v3358_v56  ;;  %3947 = vrot.lane.b32.xlu0 %v3865_v4, %s11618_s19  ;;  %3945 = vrot.lane.b32.xlu1 %v3290_v10, %s11618_s19 }
 0x485   : > { %v3548_v25 = vpop.permute.xlu0 %3547  ;;  %v3546_v19 = vpop.permute.xlu1 %3545 }
 0x486   : > { %3633 = vst.msk [vmem:[#allocation3 + $0x50] sm:$0xff] %vm1578_vm8, %v3548_v25  ;;  %3632 = vst.msk [vmem:[#allocation3 + $0x48] sm:$0xff] %vm1578_vm8, %v3546_v19 }
 0x487   : > { %4135 = vrot.lane.b32.xlu0 %v3481_v29, %s7624_s11  ;;  %3949 = vrot.lane.b32.xlu1 %v3866_v39, %s11618_s19 }
 0x489   : > { %v3736_v40 = vpop.permute.xlu0 %3735  ;;  %v3550_v63 = vpop.permute.xlu1 %3549 }
 0x48a   : > { %3823 = vst.msk [vmem:[#allocation3 + $0x40] sm:$0xff] %vm1772_vm9, %v3736_v40 }
 0x48b   : > { %3634 = vst.msk [vmem:[#allocation3 + $0x58] sm:$0xff] %vm1578_vm8, %v3550_v63  ;;  %4139 = vrot.lane.b32.xlu0 %v4057_v11, %s7624_s11  ;;  %4137 = vrot.lane.b32.xlu1 %v3482_v45, %s7624_s11 }
 0x48d   : > { %v3740_v12 = vpop.permute.xlu0 %3739  ;;  %v3738_v24 = vpop.permute.xlu1 %3737 }
 0x48e   : > { %3825 = vst.msk [vmem:[#allocation3 + $0x50] sm:$0xff] %vm1772_vm9, %v3740_v12  ;;  %3824 = vst.msk [vmem:[#allocation3 + $0x48] sm:$0xff] %vm1772_vm9, %v3738_v24 }
 0x48f   : > { %2991 = vrot.lane.b32.xlu0 %v3481_v29, %s7618_s25  ;;  %4141 = vrot.lane.b32.xlu1 %v4058_v38, %s7624_s11  ;;  %v3870_v29 = vld [vmem:[#allocation2 + $0x141] sm:$0xff] }
 0x491   : > { %v3928_v26 = vpop.permute.xlu0 %3927  ;;  %v3742_v54 = vpop.permute.xlu1 %3741 }
 0x492   : > { %4015 = vst.msk [vmem:[#allocation3 + $0x40] sm:$0xff] %vm1965_vm10, %v3928_v26 }
 0x493   : > { %3826 = vst.msk [vmem:[#allocation3 + $0x58] sm:$0xff] %vm1772_vm9, %v3742_v54  ;;  %2995 = vrot.lane.b32.xlu0 %v4057_v11, %s7618_s25  ;;  %2993 = vrot.lane.b32.xlu1 %v3482_v45, %s7618_s25  ;;  %v4062_v45 = vld [vmem:[#allocation2 + $0x142] sm:$0xff] }
 0x495   : > { %v3932_v15 = vpop.permute.xlu0 %3931  ;;  %v3930_v30 = vpop.permute.xlu1 %3929 }
 0x496   : > { %4017 = vst.msk [vmem:[#allocation3 + $0x50] sm:$0xff] %vm1965_vm10, %v3932_v15  ;;  %4016 = vst.msk [vmem:[#allocation3 + $0x48] sm:$0xff] %vm1965_vm10, %v3930_v30  ;;  %v3298_v30 = vld [vmem:[#allocation2 + $0x159] sm:$0xff] }
 0x497   : > { %3183 = vrot.lane.b32.xlu0 %v9134_v60, %s7619_s26  ;;  %2997 = vrot.lane.b32.xlu1 %v4058_v38, %s7618_s25 }
 0x499   : > { %v4120_v41 = vpop.permute.xlu0 %4119  ;;  %v3934_v17 = vpop.permute.xlu1 %3933 }
 0x49a   : > { %4207 = vst.msk [vmem:[#allocation3 + $0x40] sm:$0xff] %vm2158_vm11, %v4120_v41 }
 0x49b   : > { %4018 = vst.msk [vmem:[#allocation3 + $0x58] sm:$0xff] %vm1965_vm10, %v3934_v17  ;;  %3187 = vrot.lane.b32.xlu0 %v9128_v48, %s7619_s26  ;;  %3185 = vrot.lane.b32.xlu1 %v9144_v2, %s7619_s26  ;;  %v3293_v48 = vld [vmem:[#allocation2 + $0x121] sm:$0xff] }
 0x49d   : > { %v4124_v16 = vpop.permute.xlu0 %4123  ;;  %v4122_v20 = vpop.permute.xlu1 %4121 }
 0x49e   : > { %4209 = vst.msk [vmem:[#allocation3 + $0x50] sm:$0xff] %vm2158_vm11, %v4124_v16  ;;  %4208 = vst.msk [vmem:[#allocation3 + $0x48] sm:$0xff] %vm2158_vm11, %v4122_v20  ;;  %v3489_v16 = vld [vmem:[#allocation2 + $0x152] sm:$0xff] }
 0x49f   : > { %3375 = vrot.lane.b32.xlu0 %v3865_v4, %s7620_s27  ;;  %3189 = vrot.lane.b32.xlu1 %v9139_v1, %s7619_s26  ;;  %v3294_v1 = vld [vmem:[#allocation2 + $0x129] sm:$0xff] }
 0x4a1   : > { %v3168_v60 = vpop.permute.xlu0 %3167  ;;  %v4126_v34 = vpop.permute.xlu1 %4125  ;;  %v4239_v33 = vld [vmem:[#allocation3 + $0x40] sm:$0xff] }
 0x4a2   : > { %3251 = vst.msk [vmem:[#allocation3 + $0x60] sm:$0xff] %vm1192_vm5, %v3168_v60 }
 0x4a3   : > { %4210 = vst.msk [vmem:[#allocation3 + $0x58] sm:$0xff] %vm2158_vm11, %v4126_v34  ;;  %3379 = vrot.lane.b32.xlu0 %v3293_v48, %s7620_s27  ;;  %3377 = vrot.lane.b32.xlu1 %v3866_v39, %s7620_s27  ;;  %v3106_v39 = vld [vmem:[#allocation2 + $0x158] sm:$0xff] }
 0x4a4   : > { %v3490_v34 = vld [vmem:[#allocation2 + $0x15a] sm:$0xff] }
 0x4a5   : > { %v3172_v2 = vpop.permute.xlu0 %3171  ;;  %v3170_v27 = vpop.permute.xlu1 %3169  ;;  %v4240_v31 = vld [vmem:[#allocation3 + $0x48] sm:$0xff]  ;;  %v4241_v5 = vld [vmem:[#allocation3 + $0x50] sm:$0xff] }
 0x4a6   : > { %3253 = vst.msk [vmem:[#allocation3 + $0x70] sm:$0xff] %vm1192_vm5, %v3172_v2  ;;  %3252 = vst.msk [vmem:[#allocation3 + $0x68] sm:$0xff] %vm1192_vm5, %v3170_v27  ;;  %v4267_v58 = vpack.c.bf16 %v4240_v31, %v4239_v33  ;;  %v3681_v27 = vld [vmem:[#allocation2 + $0x168] sm:$0xff] }
 0x4a7   : > { %3567 = vrot.lane.b32.xlu0 %v4057_v11, %s11614_s28  ;;  %3381 = vrot.lane.b32.xlu1 %v3294_v1, %s7620_s27 }
 0x4a8   : > { %7459 = vmatprep.mubr.msk.bf16.mxu1 %vm2275_vm12, %v4267_v58 }
 0x4a9   : > { %v3360_v50 = vpop.permute.xlu0 %3359  ;;  %v3174_v51 = vpop.permute.xlu1 %3173 }
 0x4aa   : > { %v4242_v8 = vld [vmem:[#allocation3 + $0x58] sm:$0xff]  ;;  %3443 = vst.msk [vmem:[#allocation3 + $0x60] sm:$0xff] %vm1385_vm6, %v3360_v50 }
 0x4ab   : > { %3254 = vst.msk [vmem:[#allocation3 + $0x78] sm:$0xff] %vm1192_vm5, %v3174_v51  ;;  %v4268_v7 = vpack.c.bf16 %v4242_v8, %v4241_v5  ;;  %3571 = vrot.lane.b32.xlu0 %v3485_v43, %s11614_s28  ;;  %3569 = vrot.lane.b32.xlu1 %v4058_v38, %s11614_s28  ;;  %v3297_v38 = vld [vmem:[#allocation2 + $0x151] sm:$0xff]  ;;  %v3873_v51 = vld [vmem:[#allocation2 + $0x169] sm:$0xff] }
 0x4ad   : > { %7460 = vmatmul.mubr.msk.bf16.gmra.mxu1 %vm2275_vm12, %v4268_v7  ;;  %v3364_v42 = vpop.permute.xlu0 %3363  ;;  %v3362_v32 = vpop.permute.xlu1 %3361 }
 0x4ae   : > { %3445 = vst.msk [vmem:[#allocation3 + $0x70] sm:$0xff] %vm1385_vm6, %v3364_v42  ;;  %3444 = vst.msk [vmem:[#allocation3 + $0x68] sm:$0xff] %vm1385_vm6, %v3362_v32  ;;  %v4065_v32 = vld [vmem:[#allocation2 + $0x16a] sm:$0xff] }
 0x4af   : > { %3759 = vrot.lane.b32.xlu0 %v3675_v52, %s7622_s29  ;;  %3573 = vrot.lane.b32.xlu1 %v3486_v18, %s11614_s28 }
 0x4b1   : > { %v3552_v14 = vpop.permute.xlu0 %3551  ;;  %v3366_v47 = vpop.permute.xlu1 %3365 }
 0x4b2   : > { %3635 = vst.msk [vmem:[#allocation3 + $0x60] sm:$0xff] %vm1578_vm8, %v3552_v14  ;;  %v4066_v14 = vld [vmem:[#allocation2 + $0x172] sm:$0xff] }
 0x4b3   : > { %3446 = vst.msk [vmem:[#allocation3 + $0x78] sm:$0xff] %vm1385_vm6, %v3366_v47  ;;  %3763 = vrot.lane.b32.xlu0 %v9167_v0, %s7622_s29  ;;  %3761 = vrot.lane.b32.xlu1 %v3676_v49, %s7622_s29  ;;  %v3869_v0 = vld [vmem:[#allocation2 + $0x139] sm:$0xff] }
 0x4b5   : > { %v3556_v44 = vpop.permute.xlu0 %3555  ;;  %v3554_v59 = vpop.permute.xlu1 %3553 }
 0x4b6   : > { %3637 = vst.msk [vmem:[#allocation3 + $0x70] sm:$0xff] %vm1578_vm8, %v3556_v44  ;;  %3636 = vst.msk [vmem:[#allocation3 + $0x68] sm:$0xff] %vm1578_vm8, %v3554_v59 }
 0x4b7   : > { %3951 = vrot.lane.b32.xlu0 %v3293_v48, %s11618_s19  ;;  %3765 = vrot.lane.b32.xlu1 %v9174_v3, %s7622_s29 }
 0x4b9   : > { %v3744_v35 = vpop.permute.xlu0 %3743  ;;  %v3558_v10 = vpop.permute.xlu1 %3557 }
 0x4ba   : > { %3827 = vst.msk [vmem:[#allocation3 + $0x60] sm:$0xff] %vm1772_vm9, %v3744_v35 }
 0x4bb   : > { %3638 = vst.msk [vmem:[#allocation3 + $0x78] sm:$0xff] %vm1578_vm8, %v3558_v10  ;;  %3955 = vrot.lane.b32.xlu0 %v3869_v0, %s11618_s19  ;;  %3953 = vrot.lane.b32.xlu1 %v3294_v1, %s11618_s19  ;;  %v3682_v1 = vld [vmem:[#allocation2 + $0x170] sm:$0xff] }
 0x4bd   : > { %v3748_v23 = vpop.permute.xlu0 %3747  ;;  %v3746_v61 = vpop.permute.xlu1 %3745 }
 0x4be   : > { %3829 = vst.msk [vmem:[#allocation3 + $0x70] sm:$0xff] %vm1772_vm9, %v3748_v23  ;;  %3828 = vst.msk [vmem:[#allocation3 + $0x68] sm:$0xff] %vm1772_vm9, %v3746_v61 }
 0x4bf   : > { %4143 = vrot.lane.b32.xlu0 %v3485_v43, %s7624_s11  ;;  %3957 = vrot.lane.b32.xlu1 %v3870_v29, %s11618_s19 }
 0x4c1   : > { %v3936_v3 = vpop.permute.xlu0 %3935  ;;  %v3750_v6 = vpop.permute.xlu1 %3749 }
 0x4c2   : > { %4019 = vst.msk [vmem:[#allocation3 + $0x60] sm:$0xff] %vm1965_vm10, %v3936_v3 }
 0x4c3   : > { %3830 = vst.msk [vmem:[#allocation3 + $0x78] sm:$0xff] %vm1772_vm9, %v3750_v6  ;;  %4147 = vrot.lane.b32.xlu0 %v4061_v9, %s7624_s11  ;;  %4145 = vrot.lane.b32.xlu1 %v3486_v18, %s7624_s11  ;;  %v3109_v6 = vld [vmem:[#allocation2 + $0x180] sm:$0xff] }
 0x4c5   : > { %v3940_v13 = vpop.permute.xlu0 %3939  ;;  %v3938_v53 = vpop.permute.xlu1 %3937 }
 0x4c6   : > { %4021 = vst.msk [vmem:[#allocation3 + $0x70] sm:$0xff] %vm1965_vm10, %v3940_v13  ;;  %4020 = vst.msk [vmem:[#allocation3 + $0x68] sm:$0xff] %vm1965_vm10, %v3938_v53 }
 0x4c7   : > { %2999 = vrot.lane.b32.xlu0 %v3485_v43, %s7618_s25  ;;  %4149 = vrot.lane.b32.xlu1 %v4062_v45, %s7624_s11  ;;  %v3874_v43 = vld [vmem:[#allocation2 + $0x171] sm:$0xff] }
 0x4c9   : > { %v4128_v46 = vpop.permute.xlu0 %4127  ;;  %v3942_v55 = vpop.permute.xlu1 %3941 }
 0x4ca   : > { %4211 = vst.msk [vmem:[#allocation3 + $0x60] sm:$0xff] %vm2158_vm11, %v4128_v46 }
 0x4cb   : > { %4022 = vst.msk [vmem:[#allocation3 + $0x78] sm:$0xff] %vm1965_vm10, %v3942_v55  ;;  %3003 = vrot.lane.b32.xlu0 %v4061_v9, %s7618_s25  ;;  %3001 = vrot.lane.b32.xlu1 %v3486_v18, %s7618_s25 }
 0x4cd   : > { %v4132_v37 = vpop.permute.xlu0 %4131  ;;  %v4130_v21 = vpop.permute.xlu1 %4129 }
 0x4ce   : > { %4213 = vst.msk [vmem:[#allocation3 + $0x70] sm:$0xff] %vm2158_vm11, %v4132_v37  ;;  %4212 = vst.msk [vmem:[#allocation3 + $0x68] sm:$0xff] %vm2158_vm11, %v4130_v21  ;;  %v3301_v37 = vld [vmem:[#allocation2 + $0x181] sm:$0xff] }
 0x4cf   : > { %3191 = vrot.lane.b32.xlu0 %v3103_v57, %s7619_s26  ;;  %3005 = vrot.lane.b32.xlu1 %v4062_v45, %s7618_s25 }
 0x4d1   : > { %v3176_v28 = vpop.permute.xlu0 %3175  ;;  %v4134_v62 = vpop.permute.xlu1 %4133  ;;  %v4243_v25 = vld [vmem:[#allocation3 + $0x60] sm:$0xff] }
 0x4d2   : > { %3255 = vst.msk [vmem:[#allocation3 + $0x80] sm:$0xff] %vm1192_vm5, %v3176_v28  ;;  %v3302_v28 = vld [vmem:[#allocation2 + $0x189] sm:$0xff] }
 0x4d3   : > { %4214 = vst.msk [vmem:[#allocation3 + $0x78] sm:$0xff] %vm2158_vm11, %v4134_v62  ;;  %3195 = vrot.lane.b32.xlu0 %v3105_v22, %s7619_s26  ;;  %3193 = vrot.lane.b32.xlu1 %v3104_v36, %s7619_s26  ;;  %v3493_v36 = vld [vmem:[#allocation2 + $0x182] sm:$0xff] }
 0x4d5   : > { %v3180_v56 = vpop.permute.xlu0 %3179  ;;  %v3178_v4 = vpop.permute.xlu1 %3177  ;;  %v4244_v19 = vld [vmem:[#allocation3 + $0x68] sm:$0xff]  ;;  %v4245_v12 = vld [vmem:[#allocation3 + $0x70] sm:$0xff] }
 0x4d6   : > { %3257 = vst.msk [vmem:[#allocation3 + $0x90] sm:$0xff] %vm1192_vm5, %v3180_v56  ;;  %3256 = vst.msk [vmem:[#allocation3 + $0x88] sm:$0xff] %vm1192_vm5, %v3178_v4  ;;  %v4269_v40 = vpack.c.bf16 %v4244_v19, %v4243_v25  ;;  %v3494_v25 = vld [vmem:[#allocation2 + $0x18a] sm:$0xff]  ;;  %v3685_v19 = vld [vmem:[#allocation2 + $0x198] sm:$0xff] }
 0x4d7   : > { %3383 = vrot.lane.b32.xlu0 %v3869_v0, %s7620_s27  ;;  %3197 = vrot.lane.b32.xlu1 %v3106_v39, %s7619_s26 }
 0x4d8   : > { %7463 = vmatprep.mubr.msk.bf16.mxu1 %vm2275_vm12, %v4269_v40 }
 0x4d9   : > { %v3368_v63 = vpop.permute.xlu0 %3367  ;;  %v3182_v11 = vpop.permute.xlu1 %3181 }
 0x4da   : > { %v4246_v24 = vld [vmem:[#allocation3 + $0x78] sm:$0xff]  ;;  %3447 = vst.msk [vmem:[#allocation3 + $0x80] sm:$0xff] %vm1385_vm6, %v3368_v63  ;;  %v3686_v63 = vld [vmem:[#allocation2 + $0x1a0] sm:$0xff] }
 0x4db   : > { %3258 = vst.msk [vmem:[#allocation3 + $0x98] sm:$0xff] %vm1192_vm5, %v3182_v11  ;;  %v4270_v26 = vpack.c.bf16 %v4246_v24, %v4245_v12  ;;  %3387 = vrot.lane.b32.xlu0 %v3297_v38, %s7620_s27  ;;  %3385 = vrot.lane.b32.xlu1 %v3870_v29, %s7620_s27  ;;  %v3877_v24 = vld [vmem:[#allocation2 + $0x199] sm:$0xff] }
 0x4dd   : > { %7464 = vmatmul.mubr.msk.bf16.gmra.mxu1 %vm2275_vm12, %v4270_v26  ;;  %v3372_v54 = vpop.permute.xlu0 %3371  ;;  %v3370_v15 = vpop.permute.xlu1 %3369 }
 0x4de   : > { %3449 = vst.msk [vmem:[#allocation3 + $0x90] sm:$0xff] %vm1385_vm6, %v3372_v54  ;;  %3448 = vst.msk [vmem:[#allocation3 + $0x88] sm:$0xff] %vm1385_vm6, %v3370_v15  ;;  %v3878_v54 = vld [vmem:[#allocation2 + $0x1a1] sm:$0xff] }
 0x4df   : > { %3575 = vrot.lane.b32.xlu0 %v4061_v9, %s11614_s28  ;;  %3389 = vrot.lane.b32.xlu1 %v3298_v30, %s7620_s27 }
 0x4e1   : > { %v3560_v41 = vpop.permute.xlu0 %3559  ;;  %v3374_v17 = vpop.permute.xlu1 %3373 }
 0x4e2   : > { %3639 = vst.msk [vmem:[#allocation3 + $0x80] sm:$0xff] %vm1578_vm8, %v3560_v41  ;;  %v4069_v41 = vld [vmem:[#allocation2 + $0x19a] sm:$0xff] }
 0x4e3   : > { %3450 = vst.msk [vmem:[#allocation3 + $0x98] sm:$0xff] %vm1385_vm6, %v3374_v17  ;;  %3579 = vrot.lane.b32.xlu0 %v3489_v16, %s11614_s28  ;;  %3577 = vrot.lane.b32.xlu1 %v4062_v45, %s11614_s28  ;;  %v3110_v45 = vld [vmem:[#allocation2 + $0x188] sm:$0xff] }
 0x4e5   : > { %v3564_v20 = vpop.permute.xlu0 %3563  ;;  %v3562_v60 = vpop.permute.xlu1 %3561 }
 0x4e6   : > { %3641 = vst.msk [vmem:[#allocation3 + $0x90] sm:$0xff] %vm1578_vm8, %v3564_v20  ;;  %3640 = vst.msk [vmem:[#allocation3 + $0x88] sm:$0xff] %vm1578_vm8, %v3562_v60  ;;  %v4070_v20 = vld [vmem:[#allocation2 + $0x1a2] sm:$0xff] }
 0x4e7   : > { %3767 = vrot.lane.b32.xlu0 %v3105_v22, %s7622_s29  ;;  %3581 = vrot.lane.b32.xlu1 %v3490_v34, %s11614_s28 }
 0x4e9   : > { %v3752_v48 = vpop.permute.xlu0 %3751  ;;  %v3566_v2 = vpop.permute.xlu1 %3565 }
 0x4ea   : > { %3831 = vst.msk [vmem:[#allocation3 + $0x80] sm:$0xff] %vm1772_vm9, %v3752_v48 }
 0x4eb   : > { %3642 = vst.msk [vmem:[#allocation3 + $0x98] sm:$0xff] %vm1578_vm8, %v3566_v2  ;;  %3771 = vrot.lane.b32.xlu0 %v3681_v27, %s7622_s29  ;;  %3769 = vrot.lane.b32.xlu1 %v3106_v39, %s7622_s29 }
 0x4ed   : > { %v3756_v33 = vpop.permute.xlu0 %3755  ;;  %v3754_v31 = vpop.permute.xlu1 %3753 }
 0x4ee   : > { %3833 = vst.msk [vmem:[#allocation3 + $0x90] sm:$0xff] %vm1772_vm9, %v3756_v33  ;;  %3832 = vst.msk [vmem:[#allocation3 + $0x88] sm:$0xff] %vm1772_vm9, %v3754_v31 }
 0x4ef   : > { %3959 = vrot.lane.b32.xlu0 %v3297_v38, %s11618_s19  ;;  %3773 = vrot.lane.b32.xlu1 %v3682_v1, %s7622_s29 }
 0x4f1   : > { %v3944_v58 = vpop.permute.xlu0 %3943  ;;  %v3758_v50 = vpop.permute.xlu1 %3757 }
 0x4f2   : > { %4023 = vst.msk [vmem:[#allocation3 + $0x80] sm:$0xff] %vm1965_vm10, %v3944_v58 }
 0x4f3   : > { %3834 = vst.msk [vmem:[#allocation3 + $0x98] sm:$0xff] %vm1772_vm9, %v3758_v50  ;;  %3963 = vrot.lane.b32.xlu0 %v3873_v51, %s11618_s19  ;;  %3961 = vrot.lane.b32.xlu1 %v3298_v30, %s11618_s19 }
 0x4f5   : > { %v3948_v5 = vpop.permute.xlu0 %3947  ;;  %v3946_v8 = vpop.permute.xlu1 %3945 }
 0x4f6   : > { %4025 = vst.msk [vmem:[#allocation3 + $0x90] sm:$0xff] %vm1965_vm10, %v3948_v5  ;;  %4024 = vst.msk [vmem:[#allocation3 + $0x88] sm:$0xff] %vm1965_vm10, %v3946_v8 }
 0x4f7   : > { %4151 = vrot.lane.b32.xlu0 %v3489_v16, %s7624_s11  ;;  %3965 = vrot.lane.b32.xlu1 %v3874_v43, %s11618_s19 }
 0x4f9   : > { %v4136_v7 = vpop.permute.xlu0 %4135  ;;  %v3950_v42 = vpop.permute.xlu1 %3949 }
 0x4fa   : > { %4215 = vst.msk [vmem:[#allocation3 + $0x80] sm:$0xff] %vm2158_vm11, %v4136_v7 }
 0x4fb   : > { %4026 = vst.msk [vmem:[#allocation3 + $0x98] sm:$0xff] %vm1965_vm10, %v3950_v42  ;;  %4155 = vrot.lane.b32.xlu0 %v4065_v32, %s7624_s11  ;;  %4153 = vrot.lane.b32.xlu1 %v3490_v34, %s7624_s11 }
 0x4fd   : > { %v4140_v52 = vpop.permute.xlu0 %4139  ;;  %v4138_v18 = vpop.permute.xlu1 %4137 }
 0x4fe   : > { %4217 = vst.msk [vmem:[#allocation3 + $0x90] sm:$0xff] %vm2158_vm11, %v4140_v52  ;;  %4216 = vst.msk [vmem:[#allocation3 + $0x88] sm:$0xff] %vm2158_vm11, %v4138_v18 }
 0x4ff   : > { %3007 = vrot.lane.b32.xlu0 %v3489_v16, %s7618_s25  ;;  %4157 = vrot.lane.b32.xlu1 %v4066_v14, %s7624_s11 }
 0x501   : > { %v2992_v47 = vpop.permute.xlu0 %2991  ;;  %v4142_v49 = vpop.permute.xlu1 %4141  ;;  %v4247_v35 = vld [vmem:[#allocation3 + $0x80] sm:$0xff] }
 0x502   : > { %3067 = vst.msk [vmem:[#allocation3 + $0xa0] sm:$0xff] %vm999_vm4, %v2992_v47 }
 0x503   : > { %4218 = vst.msk [vmem:[#allocation3 + $0x98] sm:$0xff] %vm2158_vm11, %v4142_v49  ;;  %3011 = vrot.lane.b32.xlu0 %v4065_v32, %s7618_s25  ;;  %3009 = vrot.lane.b32.xlu1 %v3490_v34, %s7618_s25 }
 0x505   : > { %v2996_v44 = vpop.permute.xlu0 %2995  ;;  %v2994_v59 = vpop.permute.xlu1 %2993  ;;  %v4248_v10 = vld [vmem:[#allocation3 + $0x88] sm:$0xff]  ;;  %v4249_v29 = vld [vmem:[#allocation3 + $0x90] sm:$0xff] }
 0x506   : > { %3069 = vst.msk [vmem:[#allocation3 + $0xb0] sm:$0xff] %vm999_vm4, %v2996_v44  ;;  %3068 = vst.msk [vmem:[#allocation3 + $0xa8] sm:$0xff] %vm999_vm4, %v2994_v59  ;;  %v4271_v0 = vpack.c.bf16 %v4248_v10, %v4247_v35 }
 0x507   : > { %3199 = vrot.lane.b32.xlu0 %v3681_v27, %s7619_s26  ;;  %3013 = vrot.lane.b32.xlu1 %v4066_v14, %s7618_s25  ;;  %s7625_s25 = smov 3  }
 0x508   : > { %7467 = vmatprep.mubr.msk.bf16.mxu1 %vm2275_vm12, %v4271_v0 }
 0x509   : > { %v3184_v23 = vpop.permute.xlu0 %3183  ;;  %v2998_v61 = vpop.permute.xlu1 %2997 }
 0x50a   : > { %v4250_v3 = vld [vmem:[#allocation3 + $0x98] sm:$0xff]  ;;  %3259 = vst.msk [vmem:[#allocation3 + $0xa0] sm:$0xff] %vm1192_vm5, %v3184_v23 }
 0x50b   : > { %3070 = vst.msk [vmem:[#allocation3 + $0xb8] sm:$0xff] %vm999_vm4, %v2998_v61  ;;  %v4272_v9 = vpack.c.bf16 %v4250_v3, %v4249_v29  ;;  %3203 = vrot.lane.b32.xlu0 %v3109_v6, %s7619_s26  ;;  %3201 = vrot.lane.b32.xlu1 %v3682_v1, %s7619_s26 }
 0x50d   : > { %7468 = vmatmul.mubr.msk.bf16.gmra.mxu1 %vm2275_vm12, %v4272_v9  ;;  %v3188_v13 = vpop.permute.xlu0 %3187  ;;  %v3186_v53 = vpop.permute.xlu1 %3185 }
 0x50e   : > { %3261 = vst.msk [vmem:[#allocation3 + $0xb0] sm:$0xff] %vm1192_vm5, %v3188_v13  ;;  %3260 = vst.msk [vmem:[#allocation3 + $0xa8] sm:$0xff] %vm1192_vm5, %v3186_v53  ;;  %v9798_v18 = vpop.f32.mrf.mxu1 }
 0x50f   : > { %3391 = vrot.lane.b32.xlu0 %v3873_v51, %s7620_s27  ;;  %3205 = vrot.lane.b32.xlu1 %v3110_v45, %s7619_s26  ;;  %11673 = vst [vmem:[#allocation10_spill] sm:$0xff] %v9798_v18  ;;  %v9817_v61 = vsel %vm11622_vm0, %v9798_v18, -inf  ;;  %s7629_s26 = smov 22  }
 0x510   : > { %v9802_v49 = vpop.f32.mrf.mxu1 }
 0x511   : > { %v3376_v46 = vpop.permute.xlu0 %3375  ;;  %v3190_v55 = vpop.permute.xlu1 %3189  ;;  %11674 = vst [vmem:[#allocation11_spill] sm:$0xff] %v9802_v49  ;;  %v9808_v35 = vsel %vm11622_vm0, %v9802_v49, -inf }
 0x512   : > { %3451 = vst.msk [vmem:[#allocation3 + $0xa0] sm:$0xff] %vm1385_vm6, %v3376_v46  ;;  %v9813_v10 = vpop.f32.mrf.mxu1 }
 0x513   : > { %3262 = vst.msk [vmem:[#allocation3 + $0xb8] sm:$0xff] %vm1192_vm5, %v3190_v55  ;;  %3395 = vrot.lane.b32.xlu0 %v3301_v37, %s7620_s27  ;;  %3393 = vrot.lane.b32.xlu1 %v3874_v43, %s7620_s27  ;;  %11675 = vst [vmem:[#allocation12_spill] sm:$0xff] %v9813_v10  ;;  %v9826_v9 = vsel %vm11622_vm0, %v9813_v10, -inf }
 0x514   : > { %v9822_v29 = vpop.f32.mrf.mxu1 }
 0x515   : > { %v3380_v21 = vpop.permute.xlu0 %3379  ;;  %v3378_v57 = vpop.permute.xlu1 %3377  ;;  %11676 = vst [vmem:[#allocation13_spill] sm:$0xff] %v9822_v29  ;;  %v9833_v13 = vsel %vm11622_vm0, %v9822_v29, -inf }
 0x516   : > { %3453 = vst.msk [vmem:[#allocation3 + $0xb0] sm:$0xff] %vm1385_vm6, %v3380_v21  ;;  %3452 = vst.msk [vmem:[#allocation3 + $0xa8] sm:$0xff] %vm1385_vm6, %v3378_v57 }
 0x517   : > { %3583 = vrot.lane.b32.xlu0 %v4065_v32, %s11614_s28  ;;  %3397 = vrot.lane.b32.xlu1 %v3302_v28, %s7620_s27  ;;  %s11723_s27 = smov 26  }
 0x519   : > { %v3568_v62 = vpop.permute.xlu0 %3567  ;;  %v3382_v22 = vpop.permute.xlu1 %3381 }
 0x51a   : > { %3643 = vst.msk [vmem:[#allocation3 + $0xa0] sm:$0xff] %vm1578_vm8, %v3568_v62 }
 0x51b   : > { %3454 = vst.msk [vmem:[#allocation3 + $0xb8] sm:$0xff] %vm1385_vm6, %v3382_v22  ;;  %3587 = vrot.lane.b32.xlu0 %v3493_v36, %s11614_s28  ;;  %3585 = vrot.lane.b32.xlu1 %v4066_v14, %s11614_s28 }
 0x51d   : > { %v3572_v56 = vpop.permute.xlu0 %3571  ;;  %v3570_v4 = vpop.permute.xlu1 %3569 }
 0x51e   : > { %3645 = vst.msk [vmem:[#allocation3 + $0xb0] sm:$0xff] %vm1578_vm8, %v3572_v56  ;;  %3644 = vst.msk [vmem:[#allocation3 + $0xa8] sm:$0xff] %vm1578_vm8, %v3570_v4 }
 0x51f   : > { %3775 = vrot.lane.b32.xlu0 %v3109_v6, %s7622_s29  ;;  %3589 = vrot.lane.b32.xlu1 %v3494_v25, %s11614_s28  ;;  %s7633_s28 = smov 92  }
 0x521   : > { %v3760_v39 = vpop.permute.xlu0 %3759  ;;  %v3574_v40 = vpop.permute.xlu1 %3573 }
 0x522   : > { %3835 = vst.msk [vmem:[#allocation3 + $0xa0] sm:$0xff] %vm1772_vm9, %v3760_v39 }
 0x523   : > { %3646 = vst.msk [vmem:[#allocation3 + $0xb8] sm:$0xff] %vm1578_vm8, %v3574_v40  ;;  %3779 = vrot.lane.b32.xlu0 %v3685_v19, %s7622_s29  ;;  %3777 = vrot.lane.b32.xlu1 %v3110_v45, %s7622_s29 }
 0x525   : > { %v3764_v11 = vpop.permute.xlu0 %3763  ;;  %v3762_v12 = vpop.permute.xlu1 %3761 }
 0x526   : > { %3837 = vst.msk [vmem:[#allocation3 + $0xb0] sm:$0xff] %vm1772_vm9, %v3764_v11  ;;  %3836 = vst.msk [vmem:[#allocation3 + $0xa8] sm:$0xff] %vm1772_vm9, %v3762_v12 }
 0x527   : > { %3967 = vrot.lane.b32.xlu0 %v3301_v37, %s11618_s19  ;;  %3781 = vrot.lane.b32.xlu1 %v3686_v63, %s7622_s29 }
 0x529   : > { %v3952_v38 = vpop.permute.xlu0 %3951  ;;  %v3766_v26 = vpop.permute.xlu1 %3765 }
 0x52a   : > { %4027 = vst.msk [vmem:[#allocation3 + $0xa0] sm:$0xff] %vm1965_vm10, %v3952_v38 }
 0x52b   : > { %3838 = vst.msk [vmem:[#allocation3 + $0xb8] sm:$0xff] %vm1772_vm9, %v3766_v26  ;;  %3971 = vrot.lane.b32.xlu0 %v3877_v24, %s11618_s19  ;;  %3969 = vrot.lane.b32.xlu1 %v3302_v28, %s11618_s19 }
 0x52d   : > { %v3956_v15 = vpop.permute.xlu0 %3955  ;;  %v3954_v30 = vpop.permute.xlu1 %3953 }
 0x52e   : > { %4029 = vst.msk [vmem:[#allocation3 + $0xb0] sm:$0xff] %vm1965_vm10, %v3956_v15  ;;  %4028 = vst.msk [vmem:[#allocation3 + $0xa8] sm:$0xff] %vm1965_vm10, %v3954_v30 }
 0x52f   : > { %4159 = vrot.lane.b32.xlu0 %v3493_v36, %s7624_s11  ;;  %3973 = vrot.lane.b32.xlu1 %v3878_v54, %s11618_s19 }
 0x531   : > { %v4144_v17 = vpop.permute.xlu0 %4143  ;;  %v3958_v16 = vpop.permute.xlu1 %3957 }
 0x532   : > { %4219 = vst.msk [vmem:[#allocation3 + $0xa0] sm:$0xff] %vm2158_vm11, %v4144_v17 }
 0x533   : > { %4030 = vst.msk [vmem:[#allocation3 + $0xb8] sm:$0xff] %vm1965_vm10, %v3958_v16  ;;  %4163 = vrot.lane.b32.xlu0 %v4069_v41, %s7624_s11  ;;  %4161 = vrot.lane.b32.xlu1 %v3494_v25, %s7624_s11 }
 0x535   : > { %v4148_v60 = vpop.permute.xlu0 %4147  ;;  %v4146_v34 = vpop.permute.xlu1 %4145 }
 0x536   : > { %4221 = vst.msk [vmem:[#allocation3 + $0xb0] sm:$0xff] %vm2158_vm11, %v4148_v60  ;;  %4220 = vst.msk [vmem:[#allocation3 + $0xa8] sm:$0xff] %vm2158_vm11, %v4146_v34 }
 0x537   : > { %4165 = vrot.lane.b32.xlu1 %v4070_v20, %s7624_s11  ;;  %s7630_s11 = smov 44  }
 0x539   : > { %v3000_v48 = vpop.permute.xlu0 %2999  ;;  %v4150_v2 = vpop.permute.xlu1 %4149  ;;  %v4251_v31 = vld [vmem:[#allocation3 + $0xa0] sm:$0xff] }
 0x53a   : > { %3071 = vst.msk [vmem:[#allocation3 + $0xc0] sm:$0xff] %vm999_vm4, %v3000_v48 }
 0x53b   : > { %4222 = vst.msk [vmem:[#allocation3 + $0xb8] sm:$0xff] %vm2158_vm11, %v4150_v2 }
 0x53d   : > { %v3004_v27 = vpop.permute.xlu0 %3003  ;;  %v3002_v33 = vpop.permute.xlu1 %3001  ;;  %v4252_v1 = vld [vmem:[#allocation3 + $0xa8] sm:$0xff]  ;;  %v4253_v5 = vld [vmem:[#allocation3 + $0xb0] sm:$0xff] }
 0x53e   : > { %3073 = vst.msk [vmem:[#allocation3 + $0xd0] sm:$0xff] %vm999_vm4, %v3004_v27  ;;  %3072 = vst.msk [vmem:[#allocation3 + $0xc8] sm:$0xff] %vm999_vm4, %v3002_v33  ;;  %v4273_v58 = vpack.c.bf16 %v4252_v1, %v4251_v31 }
 0x540   : > { %7471 = vmatprep.mubr.msk.bf16.mxu1 %vm2275_vm12, %v4273_v58 }
 0x541   : > { %v3192_v50 = vpop.permute.xlu0 %3191  ;;  %v3006_v51 = vpop.permute.xlu1 %3005 }
 0x542   : > { %v4254_v8 = vld [vmem:[#allocation3 + $0xb8] sm:$0xff]  ;;  %3263 = vst.msk [vmem:[#allocation3 + $0xc0] sm:$0xff] %vm1192_vm5, %v3192_v50 }
 0x543   : > { %3074 = vst.msk [vmem:[#allocation3 + $0xd8] sm:$0xff] %vm999_vm4, %v3006_v51  ;;  %v4274_v43 = vpack.c.bf16 %v4254_v8, %v4253_v5  ;;  %v9872_v8 = vpop.f32.mrf.mxu1 }
 0x544   : > { %11677 = vst [vmem:[#allocation14_spill] sm:$0xff] %v9872_v8 }
 0x545   : > { %7472 = vmatmul.mubr.msk.bf16.gmra.mxu1 %vm2275_vm12, %v4274_v43  ;;  %v3196_v7 = vpop.permute.xlu0 %3195  ;;  %v3194_v42 = vpop.permute.xlu1 %3193 }
 0x546   : > { %3265 = vst.msk [vmem:[#allocation3 + $0xd0] sm:$0xff] %vm1192_vm5, %v3196_v7  ;;  %3264 = vst.msk [vmem:[#allocation3 + $0xc8] sm:$0xff] %vm1192_vm5, %v3194_v42  ;;  %v9876_v42 = vpop.f32.mrf.mxu1 }
 0x547   : > { %11678 = vst [vmem:[#allocation15_spill] sm:$0xff] %v9876_v42 }
 0x549   : > { %v3384_v32 = vpop.permute.xlu0 %3383  ;;  %v3198_v52 = vpop.permute.xlu1 %3197 }
 0x54a   : > { %3455 = vst.msk [vmem:[#allocation3 + $0xc0] sm:$0xff] %vm1385_vm6, %v3384_v32 }
 0x54b   : > { %3266 = vst.msk [vmem:[#allocation3 + $0xd8] sm:$0xff] %vm1192_vm5, %v3198_v52  ;;  %v9880_v52 = vpop.f32.mrf.mxu1 }
 0x54c   : > { %11679 = vst [vmem:[#allocation16_spill] sm:$0xff] %v9880_v52 }
 0x54d   : > { %v3388_v14 = vpop.permute.xlu0 %3387  ;;  %v3386_v47 = vpop.permute.xlu1 %3385 }
 0x54e   : > { %3457 = vst.msk [vmem:[#allocation3 + $0xd0] sm:$0xff] %vm1385_vm6, %v3388_v14  ;;  %3456 = vst.msk [vmem:[#allocation3 + $0xc8] sm:$0xff] %vm1385_vm6, %v3386_v47 }
 0x551   : > { %v3576_v44 = vpop.permute.xlu0 %3575  ;;  %v3390_v59 = vpop.permute.xlu1 %3389 }
 0x552   : > { %3647 = vst.msk [vmem:[#allocation3 + $0xc0] sm:$0xff] %vm1578_vm8, %v3576_v44  ;;  %4528 = vmax.xlane.f32.xlu0 %v9808_v35  ;;  %v9883_v44 = vpop.f32.mrf.mxu1 }
 0x553   : > { %3458 = vst.msk [vmem:[#allocation3 + $0xd8] sm:$0xff] %vm1385_vm6, %v3390_v59  ;;  %11680 = vst [vmem:[#allocation17_spill] sm:$0xff] %v9883_v44 }
 0x555   : > { %v3580_v0 = vpop.permute.xlu0 %3579  ;;  %v3578_v23 = vpop.permute.xlu1 %3577 }
 0x556   : > { %3649 = vst.msk [vmem:[#allocation3 + $0xd0] sm:$0xff] %vm1578_vm8, %v3580_v0  ;;  %3648 = vst.msk [vmem:[#allocation3 + $0xc8] sm:$0xff] %vm1578_vm8, %v3578_v23  ;;  %4534 = vmax.xlane.f32.xlu0 %v9817_v61 }
 0x559   : > { %v3768_v3 = vpop.permute.xlu0 %3767  ;;  %v3582_v6 = vpop.permute.xlu1 %3581 }
 0x55a   : > { %3839 = vst.msk [vmem:[#allocation3 + $0xc0] sm:$0xff] %vm1772_vm9, %v3768_v3  ;;  %4537 = vmax.xlane.f32.xlu0 %v9826_v9 }
 0x55b   : > { %3650 = vst.msk [vmem:[#allocation3 + $0xd8] sm:$0xff] %vm1578_vm8, %v3582_v6  ;;  %4531 = vmax.xlane.f32.xlu1 %v9833_v13 }
 0x55d   : > { %v3772_v53 = vpop.permute.xlu0 %3771  ;;  %v3770_v45 = vpop.permute.xlu1 %3769 }
 0x55e   : > { %3841 = vst.msk [vmem:[#allocation3 + $0xd0] sm:$0xff] %vm1772_vm9, %v3772_v53  ;;  %3840 = vst.msk [vmem:[#allocation3 + $0xc8] sm:$0xff] %vm1772_vm9, %v3770_v45 }
 0x561   : > { %v3960_v46 = vpop.permute.xlu0 %3959  ;;  %v3774_v55 = vpop.permute.xlu1 %3773 }
 0x562   : > { %4031 = vst.msk [vmem:[#allocation3 + $0xc0] sm:$0xff] %vm1965_vm10, %v3960_v46 }
 0x563   : > { %3842 = vst.msk [vmem:[#allocation3 + $0xd8] sm:$0xff] %vm1772_vm9, %v3774_v55 }
 0x565   : > { %v3964_v37 = vpop.permute.xlu0 %3963  ;;  %v3962_v21 = vpop.permute.xlu1 %3961 }
 0x566   : > { %4033 = vst.msk [vmem:[#allocation3 + $0xd0] sm:$0xff] %vm1965_vm10, %v3964_v37  ;;  %4032 = vst.msk [vmem:[#allocation3 + $0xc8] sm:$0xff] %vm1965_vm10, %v3962_v21 }
 0x569   : > { %v4152_v57 = vpop.permute.xlu0 %4151  ;;  %v3966_v28 = vpop.permute.xlu1 %3965 }
 0x56a   : > { %4223 = vst.msk [vmem:[#allocation3 + $0xc0] sm:$0xff] %vm2158_vm11, %v4152_v57 }
 0x56b   : > { %4034 = vst.msk [vmem:[#allocation3 + $0xd8] sm:$0xff] %vm1965_vm10, %v3966_v28 }
 0x56d   : > { %v4156_v62 = vpop.permute.xlu0 %4155  ;;  %v4154_v22 = vpop.permute.xlu1 %4153 }
 0x56e   : > { %4225 = vst.msk [vmem:[#allocation3 + $0xd0] sm:$0xff] %vm2158_vm11, %v4156_v62  ;;  %4224 = vst.msk [vmem:[#allocation3 + $0xc8] sm:$0xff] %vm2158_vm11, %v4154_v22  ;;  %v9885_v23 = vpop.f32.mrf.mxu1  ;;  %v5575_v62 = vmax.f32 %v9808_v35, %v9817_v61 }
 0x56f   : > { %11681 = vst [vmem:[#allocation18_spill] sm:$0xff] %v9885_v23 }
 0x570   : > { %v9888_v53 = vpop.f32.mrf.mxu1 }
 0x571   : > { %v3008_v36 = vpop.permute.xlu0 %3007  ;;  %v4158_v56 = vpop.permute.xlu1 %4157  ;;  %v4255_v19 = vld [vmem:[#allocation3 + $0xc0] sm:$0xff]  ;;  %11682 = vst [vmem:[#allocation19_spill] sm:$0xff] %v9888_v53 }
 0x572   : > { %3075 = vst.msk [vmem:[#allocation3 + $0xe0] sm:$0xff] %vm999_vm4, %v3008_v36  ;;  %v9891_v45 = vpop.f32.mrf.mxu1 }
 0x573   : > { %4226 = vst.msk [vmem:[#allocation3 + $0xd8] sm:$0xff] %vm2158_vm11, %v4158_v56  ;;  %11683 = vst [vmem:[#allocation20_spill] sm:$0xff] %v9891_v45 }
 0x574   : > { %v9893_v46 = vpop.f32.mrf.mxu1 }
 0x575   : > { %v3012_v4 = vpop.permute.xlu0 %3011  ;;  %v3010_v25 = vpop.permute.xlu1 %3009  ;;  %v4256_v39 = vld [vmem:[#allocation3 + $0xc8] sm:$0xff]  ;;  %v4257_v12 = vld [vmem:[#allocation3 + $0xd0] sm:$0xff]  ;;  %11684 = vst [vmem:[#allocation21_spill] sm:$0xff] %v9893_v46 }
 0x576   : > { %3077 = vst.msk [vmem:[#allocation3 + $0xf0] sm:$0xff] %vm999_vm4, %v3012_v4  ;;  %3076 = vst.msk [vmem:[#allocation3 + $0xe8] sm:$0xff] %vm999_vm4, %v3010_v25  ;;  %v4275_v40 = vpack.c.bf16 %v4256_v39, %v4255_v19  ;;  %v5590_v39 = vmax.f32 %v9833_v13, %v9826_v9 }
 0x578   : > { %7475 = vmatprep.mubr.msk.bf16.mxu1 %vm2275_vm12, %v4275_v40 }
 0x579   : > { %v3200_v63 = vpop.permute.xlu0 %3199  ;;  %v3014_v11 = vpop.permute.xlu1 %3013 }
 0x57a   : > { %v4258_v24 = vld [vmem:[#allocation3 + $0xd8] sm:$0xff]  ;;  %3267 = vst.msk [vmem:[#allocation3 + $0xe0] sm:$0xff] %vm1192_vm5, %v3200_v63 }
 0x57b   : > { %3078 = vst.msk [vmem:[#allocation3 + $0xf8] sm:$0xff] %vm999_vm4, %v3014_v11  ;;  %v4276_v38 = vpack.c.bf16 %v4258_v24, %v4257_v12  ;;  %vm4757_vm4 = vcmask 23552  }
 0x57d   : > { %7476 = vmatmul.mubr.msk.bf16.gmra.mxu1 %vm2275_vm12, %v4276_v38  ;;  %v3204_v26 = vpop.permute.xlu0 %3203  ;;  %v3202_v54 = vpop.permute.xlu1 %3201 }
 0x57e   : > { %3269 = vst.msk [vmem:[#allocation3 + $0xf0] sm:$0xff] %vm1192_vm5, %v3204_v26  ;;  %3268 = vst.msk [vmem:[#allocation3 + $0xe8] sm:$0xff] %vm1192_vm5, %v3202_v54 }
 0x581   : > { %v3392_v15 = vpop.permute.xlu0 %3391  ;;  %v3206_v30 = vpop.permute.xlu1 %3205 }
 0x582   : > { %3459 = vst.msk [vmem:[#allocation3 + $0xe0] sm:$0xff] %vm1385_vm6, %v3392_v15 }
 0x583   : > { %3270 = vst.msk [vmem:[#allocation3 + $0xf8] sm:$0xff] %vm1192_vm5, %v3206_v30  ;;  %vm4765_vm5 = vcmask 179352  }
 0x585   : > { %v3396_v41 = vpop.permute.xlu0 %3395  ;;  %v3394_v17 = vpop.permute.xlu1 %3393 }
 0x586   : > { %3461 = vst.msk [vmem:[#allocation3 + $0xf0] sm:$0xff] %vm1385_vm6, %v3396_v41  ;;  %3460 = vst.msk [vmem:[#allocation3 + $0xe8] sm:$0xff] %vm1385_vm6, %v3394_v17  ;;  %v9925_v41 = vsel %vm11622_vm0, %v9802_v49, 0.0 }
 0x589   : > { %v3584_v16 = vpop.permute.xlu0 %3583  ;;  %v3398_v20 = vpop.permute.xlu1 %3397 }
 0x58a   : > { %3651 = vst.msk [vmem:[#allocation3 + $0xe0] sm:$0xff] %vm1578_vm8, %v3584_v16 }
 0x58b   : > { %3462 = vst.msk [vmem:[#allocation3 + $0xf8] sm:$0xff] %vm1385_vm6, %v3398_v20  ;;  %vm4760_vm6 = vcmask 21504  }
 0x58d   : > { %v3588_v60 = vpop.permute.xlu0 %3587  ;;  %v3586_v34 = vpop.permute.xlu1 %3585 }
 0x58e   : > { %3653 = vst.msk [vmem:[#allocation3 + $0xf0] sm:$0xff] %vm1578_vm8, %v3588_v60  ;;  %3652 = vst.msk [vmem:[#allocation3 + $0xe8] sm:$0xff] %vm1578_vm8, %v3586_v34  ;;  %v9930_v34 = vsel %vm11622_vm0, %v9798_v18, 0.0 }
 0x591   : > { %v3776_v48 = vpop.permute.xlu0 %3775  ;;  %v3590_v2 = vpop.permute.xlu1 %3589 }
 0x592   : > { %3843 = vst.msk [vmem:[#allocation3 + $0xe0] sm:$0xff] %vm1772_vm9, %v3776_v48  ;;  %v9934_v48 = vsel %vm11622_vm0, %v9822_v29, 0.0 }
 0x593   : > { %3654 = vst.msk [vmem:[#allocation3 + $0xf8] sm:$0xff] %vm1578_vm8, %v3590_v2  ;;  %vm4964_vm8 = vcmask 1046534  }
 0x595   : > { %v3780_v27 = vpop.permute.xlu0 %3779  ;;  %v3778_v33 = vpop.permute.xlu1 %3777 }
 0x596   : > { %3845 = vst.msk [vmem:[#allocation3 + $0xf0] sm:$0xff] %vm1772_vm9, %v3780_v27  ;;  %3844 = vst.msk [vmem:[#allocation3 + $0xe8] sm:$0xff] %vm1772_vm9, %v3778_v33 }
 0x599   : > { %v3968_v31 = vpop.permute.xlu0 %3967  ;;  %v3782_v1 = vpop.permute.xlu1 %3781 }
 0x59a   : > { %4035 = vst.msk [vmem:[#allocation3 + $0xe0] sm:$0xff] %vm1965_vm10, %v3968_v31  ;;  %v9940_v31 = vsel %vm11622_vm0, %v9876_v42, -inf }
 0x59b   : > { %3846 = vst.msk [vmem:[#allocation3 + $0xf8] sm:$0xff] %vm1772_vm9, %v3782_v1  ;;  %v9944_v1 = vsel %vm11622_vm0, %v9813_v10, 0.0  ;;  %vm4966_vm9 = vcmask 1047559  }
 0x59d   : > { %v3972_v58 = vpop.permute.xlu0 %3971  ;;  %v3970_v50 = vpop.permute.xlu1 %3969 }
 0x59e   : > { %4037 = vst.msk [vmem:[#allocation3 + $0xf0] sm:$0xff] %vm1965_vm10, %v3972_v58  ;;  %4036 = vst.msk [vmem:[#allocation3 + $0xe8] sm:$0xff] %vm1965_vm10, %v3970_v50  ;;  %v9895_v55 = vpop.f32.mrf.mxu1 }
 0x59f   : > { %11685 = vst [vmem:[#allocation22_spill] sm:$0xff] %v9895_v55 }
 0x5a0   : > { %v9897_v37 = vpop.f32.mrf.mxu1 }
 0x5a1   : > { %v4160_v51 = vpop.permute.xlu0 %4159  ;;  %v3974_v5 = vpop.permute.xlu1 %3973  ;;  %11686 = vst [vmem:[#allocation23_spill] sm:$0xff] %v9897_v37 }
 0x5a2   : > { %4227 = vst.msk [vmem:[#allocation3 + $0xe0] sm:$0xff] %vm2158_vm11, %v4160_v51  ;;  %v9899_v21 = vpop.f32.mrf.mxu1 }
 0x5a3   : > { %4038 = vst.msk [vmem:[#allocation3 + $0xf8] sm:$0xff] %vm1965_vm10, %v3974_v5  ;;  %11687 = vst [vmem:[#allocation24_spill] sm:$0xff] %v9899_v21  ;;  %v9951_v5 = vsel %vm11622_vm0, %v9883_v44, -inf  ;;  %vm5638_vm10 = vcmask 108544  }
 0x5a4   : > { %v9901_v57 = vpop.f32.mrf.mxu1 }
 0x5a5   : > { %v4162_v43 = vpop.permute.xlu1 %4161  ;;  %v4164_v7 = vpop.permute.xlu0 %4163  ;;  %11688 = vst [vmem:[#allocation25_spill] sm:$0xff] %v9901_v57 }
 0x5a6   : > { %4228 = vst.msk [vmem:[#allocation3 + $0xe8] sm:$0xff] %vm2158_vm11, %v4162_v43  ;;  %4229 = vst.msk [vmem:[#allocation3 + $0xf0] sm:$0xff] %vm2158_vm11, %v4164_v7 }
 0x5a9   : > { %v4166_v32 = vpop.permute.xlu1 %4165  ;;  %v4259_v14 = vld [vmem:[#allocation3 + $0xe0] sm:$0xff] }
 0x5aa   : > { %4230 = vst.msk [vmem:[#allocation3 + $0xf8] sm:$0xff] %vm2158_vm11, %v4166_v32  ;;  %vm5649_vm11 = vcmask 113752  }
 0x5ad   : > { %v4260_v47 = vld [vmem:[#allocation3 + $0xe8] sm:$0xff]  ;;  %v4261_v0 = vld [vmem:[#allocation3 + $0xf0] sm:$0xff] }
 0x5ae   : > { %v4277_v59 = vpack.c.bf16 %v4260_v47, %v4259_v14 }
 0x5b0   : > { %7479 = vmatprep.mubr.msk.bf16.mxu1 %vm2275_vm12, %v4277_v59 }
 0x5b1   : > { %v4262_v3 = vld [vmem:[#allocation3 + $0xf8] sm:$0xff] }
 0x5b2   : > { %v4278_v6 = vpack.c.bf16 %v4262_v3, %v4261_v0  ;;  %v9965_v0 = vsel %vm11622_vm0, %v9872_v8, -inf }
 0x5b4   : > { %7480 = vmatmul.mubr.msk.bf16.gmra.mxu1 %vm2275_vm12, %v4278_v6  ;;  %vm5652_vm12 = vcmask 111704  }
 0x5cd   : > { %v9903_v28 = vpop.f32.mrf.mxu1 }
 0x5ce   : > { %11689 = vst [vmem:[#allocation26_spill] sm:$0xff] %v9903_v28  ;;  %v4581_v25 = vsel %vm11622_vm0, %v9903_v28, -inf }
 0x5cf   : > { %v9907_v22 = vpop.f32.mrf.mxu1 }
 0x5d0   : > { %11690 = vst [vmem:[#allocation27_spill] sm:$0xff] %v9907_v22  ;;  %v4575_v36 = vsel %vm11622_vm0, %v9907_v22, -inf }
 0x5d1   : > { %v5576_v56 = vmax.f32 %v4575_v36, %v5575_v62  ;;  %4576 = vmax.xlane.f32.xlu1 %v4575_v36  ;;  %v9911_v4 = vpop.f32.mrf.mxu1 }
 0x5d2   : > { %11691 = vst [vmem:[#allocation28_spill] sm:$0xff] %v9911_v4  ;;  %v4584_v19 = vsel %vm11622_vm0, %v9911_v4, -inf }
 0x5d3   : > { %v9919_v40 = vpop.f32.mrf.mxu1  ;;  %v5577_v63 = vmax.f32 %v4581_v25, %v5576_v56  ;;  %v6048_v11 = vmax.f32 %v4581_v25, %v4584_v19 }
 0x5d4   : > { %11692 = vst [vmem:[#allocation29_spill] sm:$0xff] %v9919_v40  ;;  %v4578_v12 = vsel %vm11622_vm0, %v9919_v40, -inf }
 0x5d5   : > { %4582 = vmax.xlane.f32.xlu1 %v4581_v25  ;;  %v5591_v24 = vmax.f32 %v4578_v12, %v5590_v39  ;;  %4579 = vmax.xlane.f32.xlu0 %v4578_v12  ;;  %v6041_v38 = vmax.f32 %v4575_v36, %v4578_v12  ;;  %v6049_v26 = vrot.slane %v6048_v11, 4  ;;  %v5578_v7 = vmax.f32 %v9940_v31, %v5577_v63 }
 0x5d7   : > { %v6042_v54 = vrot.slane %v6041_v38, 4  ;;  %v5592_v15 = vmax.f32 %v4584_v19, %v5591_v24  ;;  %v6050_v30 = vmax.f32 %v6048_v11, %v6049_v26 }
 0x5d9   : > { %v6043_v17 = vmax.f32 %v6041_v38, %v6042_v54  ;;  %4624 = vadd.xlane.f32.xlu1 %v9925_v41  ;;  %v6051_v16 = vrot.slane %v6050_v30, 2  ;;  %4585 = vmax.xlane.f32.xlu0 %v4584_v19  ;;  %v5593_v62 = vmax.f32 %v9951_v5, %v5592_v15  ;;  %v9977_v19 = vsel %vm11622_vm0, %v9876_v42, 0.0 }
 0x5da   : > { %v9984_v38 = vsel %vm11622_vm0, %v9880_v52, -inf }
 0x5db   : > { %v6044_v20 = vrot.slane %v6043_v17, 2  ;;  %v6052_v60 = vmax.f32 %v6050_v30, %v6051_v16  ;;  %v9989_v30 = vsel %vm11622_vm0, %v9883_v44, 0.0 }
 0x5dd   : > { %v6045_v2 = vmax.f32 %v6043_v17, %v6044_v20  ;;  %v6053_v27 = vrot.slane %v6052_v60, 1  ;;  %4630 = vadd.xlane.f32.xlu1 %v9930_v34  ;;  %4627 = vadd.xlane.f32.xlu0 %v9934_v48 }
 0x5df   : > { %v6046_v33 = vrot.slane %v6045_v2, 1  ;;  %v6054_v50 = vmax.f32 %v6052_v60, %v6053_v27 }
 0x5e1   : > { %v6047_v58 = vmax.f32 %v6045_v2, %v6046_v33  ;;  %4540 = vmax.xlane.f32.xlu1 %v9940_v31  ;;  %4633 = vadd.xlane.f32.xlu0 %v9944_v1 }
 0x5e3   : > { %v6264_v51 = vsel %vm4954_vm13, %v6054_v50, %v6047_v58  ;;  %v9996_v50 = vsel %vm11622_vm0, %v9872_v8, 0.0 }
 0x5e5   : > { %4543 = vmax.xlane.f32.xlu0 %v9951_v5 }
 0x605   : > { %v9954_v43 = vpop.f32.mrf.mxu1 }
 0x606   : > { %11693 = vst [vmem:[#allocation30_spill] sm:$0xff] %v9954_v43  ;;  %v4593_v3 = vsel %vm11622_vm0, %v9954_v43, -inf }
 0x607   : > { %v9957_v32 = vpop.f32.mrf.mxu1 }
 0x608   : > { %11694 = vst [vmem:[#allocation31_spill] sm:$0xff] %v9957_v32  ;;  %v4587_v14 = vsel %vm11622_vm0, %v9957_v32, -inf }
 0x609   : > { %v5579_v47 = vmax.f32 %v4587_v14, %v5578_v7  ;;  %4588 = vmax.xlane.f32.xlu1 %v4587_v14  ;;  %v9961_v59 = vpop.f32.mrf.mxu1 }
 0x60a   : > { %11695 = vst [vmem:[#allocation32_spill] sm:$0xff] %v9961_v59  ;;  %v4596_v6 = vsel %vm11622_vm0, %v9961_v59, -inf }
 0x60b   : > { %v9972_v36 = vpop.f32.mrf.mxu1  ;;  %v5581_v56 = vmax.f32 %v5579_v47, %v9965_v0  ;;  %v6062_v25 = vmax.f32 %v4593_v3, %v4596_v6 }
 0x60c   : > { %11696 = vst [vmem:[#allocation33_spill] sm:$0xff] %v9972_v36  ;;  %v4590_v39 = vsel %vm11622_vm0, %v9972_v36, -inf  ;;  %v10162_v44 = vsel %vm11622_vm0, %v9972_v36, 0.0 }
 0x60d   : > { %4636 = vadd.xlane.f32.xlu1 %v9977_v19  ;;  %v5594_v63 = vmax.f32 %v4590_v39, %v5593_v62  ;;  %4591 = vmax.xlane.f32.xlu0 %v4590_v39  ;;  %v6055_v11 = vmax.f32 %v4587_v14, %v4590_v39  ;;  %v5583_v12 = vmax.f32 %v5581_v56, %v4593_v3  ;;  %v6063_v24 = vrot.slane %v6062_v25, 4 }
 0x60e   : > { %v10006_v62 = vsel %vm11622_vm0, %v9880_v52, 0.0 }
 0x60f   : > { %v6056_v26 = vrot.slane %v6055_v11, 4  ;;  %v5596_v54 = vmax.f32 %v5594_v63, %v9984_v38  ;;  %v6064_v15 = vmax.f32 %v6062_v25, %v6063_v24 }
 0x611   : > { %v6057_v17 = vmax.f32 %v6055_v11, %v6056_v26  ;;  %4546 = vmax.xlane.f32.xlu1 %v9965_v0  ;;  %4639 = vadd.xlane.f32.xlu0 %v9989_v30  ;;  %v5598_v16 = vmax.f32 %v5596_v54, %v4596_v6  ;;  %v6065_v20 = vrot.slane %v6064_v15, 2  ;;  %v10027_v26 = vsel %vm11622_vm0, %v9885_v23, -inf }
 0x613   : > { %v6058_v60 = vrot.slane %v6057_v17, 2  ;;  %v6066_v2 = vmax.f32 %v6064_v15, %v6065_v20 }
 0x615   : > { %v6059_v27 = vmax.f32 %v6057_v17, %v6058_v60  ;;  %4594 = vmax.xlane.f32.xlu1 %v4593_v3  ;;  %4549 = vmax.xlane.f32.xlu0 %v9984_v38  ;;  %v6067_v33 = vrot.slane %v6066_v2, 1  ;;  %v10002_v3 = vsel %vm11622_vm0, %v9888_v53, -inf }
 0x616   : > { %v5585_v25 = vmax.f32 %v5583_v12, %v10002_v3 }
 0x617   : > { %v6060_v58 = vrot.slane %v6059_v27, 1  ;;  %v6068_v14 = vmax.f32 %v6066_v2, %v6067_v33  ;;  %v10047_v2 = vsel %vm11622_vm0, %v9888_v53, 0.0  ;;  %v10063_v53 = vsel %vm11622_vm0, %v9893_v46, 0.0 }
 0x619   : > { %v6061_v7 = vmax.f32 %v6059_v27, %v6060_v58  ;;  %4642 = vadd.xlane.f32.xlu1 %v9996_v50  ;;  %4597 = vmax.xlane.f32.xlu0 %v4596_v6  ;;  %v10013_v6 = vsel %vm11622_vm0, %v9893_v46, -inf }
 0x61a   : > { %v5600_v15 = vmax.f32 %v5598_v16, %v10013_v6 }
 0x61b   : > { %v6265_v47 = vsel %vm4956_vm14, %v6061_v7, %v6264_v51 }
 0x61c   : > { %v6266_v56 = vsel %vm4958_vm15, %v6068_v14, %v6265_v47  ;;  %v10056_v14 = vsel %vm11622_vm0, %v9891_v45, -inf }
 0x61d   : > { %4552 = vmax.xlane.f32.xlu1 %v10002_v3  ;;  %4645 = vadd.xlane.f32.xlu0 %v10006_v62 }
 0x621   : > { %4555 = vmax.xlane.f32.xlu0 %v10013_v6 }
 0x63d   : > { %v10016_v51 = vpop.f32.mrf.mxu1 }
 0x63e   : > { %11697 = vst [vmem:[#allocation34_spill] sm:$0xff] %v10016_v51  ;;  %v10031_v54 = vsel %vm11622_vm0, %v10016_v51, -inf }
 0x63f   : > { %v10019_v39 = vpop.f32.mrf.mxu1 }
 0x640   : > { %11698 = vst [vmem:[#allocation35_spill] sm:$0xff] %v10019_v39  ;;  %v4599_v63 = vsel %vm11622_vm0, %v10019_v39, -inf }
 0x641   : > { %v5587_v11 = vmax.f32 %v5585_v25, %v4599_v63  ;;  %4600 = vmax.xlane.f32.xlu1 %v4599_v63  ;;  %v10023_v24 = vpop.f32.mrf.mxu1 }
 0x642   : > { %11699 = vst [vmem:[#allocation36_spill] sm:$0xff] %v10023_v24  ;;  %v10035_v12 = vsel %vm11622_vm0, %v10023_v24, -inf }
 0x643   : > { %v10038_v17 = vpop.f32.mrf.mxu1  ;;  %v10041_v20 = vmax.f32 %v10027_v26, %v5587_v11  ;;  %v6076_v60 = vmax.f32 %v10031_v54, %v10035_v12 }
 0x644   : > { %11700 = vst [vmem:[#allocation37_spill] sm:$0xff] %v10038_v17  ;;  %v4602_v27 = vsel %vm11622_vm0, %v10038_v17, -inf }
 0x645   : > { %4648 = vadd.xlane.f32.xlu1 %v10047_v2  ;;  %v5602_v33 = vmax.f32 %v5600_v15, %v4602_v27  ;;  %4603 = vmax.xlane.f32.xlu0 %v4602_v27  ;;  %v6069_v16 = vmax.f32 %v4599_v63, %v4602_v27  ;;  %v6077_v7 = vrot.slane %v6076_v60, 4  ;;  %v10115_v63 = vsel %vm11622_vm0, %v9911_v4, 0.0 }
 0x647   : > { %v6070_v47 = vrot.slane %v6069_v16, 4  ;;  %v10059_v25 = vmax.f32 %v10056_v14, %v5602_v33  ;;  %v6078_v11 = vmax.f32 %v6076_v60, %v6077_v7 }
 0x649   : > { %v6071_v15 = vmax.f32 %v6069_v16, %v6070_v47  ;;  %4558 = vmax.xlane.f32.xlu1 %v10027_v26  ;;  %4651 = vadd.xlane.f32.xlu0 %v10063_v53  ;;  %v6079_v27 = vrot.slane %v6078_v11, 2  ;;  %v10073_v16 = vsel %vm11622_vm0, %v9885_v23, 0.0  ;;  %v10146_v23 = vsel %vm11622_vm0, %v9899_v21, 0.0 }
 0x64b   : > { %v6072_v58 = vrot.slane %v6071_v15, 2  ;;  %v6080_v52 = vmax.f32 %v6078_v11, %v6079_v27  ;;  %v10086_v27 = vsel %vm11622_vm0, %v9891_v45, 0.0 }
 0x64d   : > { %v6073_v8 = vmax.f32 %v6071_v15, %v6072_v58  ;;  %4606 = vmax.xlane.f32.xlu1 %v10031_v54  ;;  %4561 = vmax.xlane.f32.xlu0 %v10056_v14  ;;  %v6081_v60 = vrot.slane %v6080_v52, 1  ;;  %v5605_v58 = vadd.f32 %v9930_v34, %v9925_v41  ;;  %v10082_v15 = vsel %vm11622_vm0, %v9907_v22, 0.0 }
 0x64e   : > { %v10134_v22 = vsel %vm11622_vm0, %v9901_v57, 0.0 }
 0x64f   : > { %v6074_v33 = vrot.slane %v6073_v8, 1  ;;  %v6082_v47 = vmax.f32 %v6080_v52, %v6081_v60  ;;  %v5606_v52 = vadd.f32 %v5605_v58, %v9977_v19  ;;  %v10098_v60 = vsel %vm11622_vm0, %v9903_v28, 0.0 }
 0x650   : > { %v10122_v28 = vsel %vm11622_vm0, %v9897_v37, 0.0 }
 0x651   : > { %v6075_v7 = vmax.f32 %v6073_v8, %v6074_v33  ;;  %4654 = vadd.xlane.f32.xlu1 %v10073_v16  ;;  %4609 = vmax.xlane.f32.xlu0 %v10035_v12  ;;  %v10102_v33 = vsel %vm11622_vm0, %v9919_v40, 0.0  ;;  %v10128_v40 = vsel %vm11622_vm0, %v9901_v57, -inf }
 0x653   : > { %v6267_v11 = vsel %vm4960_vm1, %v6075_v7, %v6266_v56  ;;  %v5620_v56 = vadd.f32 %v9944_v1, %v9934_v48  ;;  %v5607_v7 = vadd.f32 %v5606_v52, %v9996_v50 }
 0x654   : > { %v10089_v8 = vsel %vm4962_vm2, %v6082_v47, %v6267_v11  ;;  %v10111_v11 = vsel %vm11622_vm0, %v9897_v37, -inf  ;;  %v10139_v37 = vsel %vm11622_vm0, %v9895_v55, 0.0 }
 0x655   : > { %4672 = vadd.xlane.f32.xlu1 %v10082_v15  ;;  %4657 = vadd.xlane.f32.xlu0 %v10086_v27  ;;  %v5621_v47 = vadd.f32 %v5620_v56, %v9989_v30  ;;  %v5608_v58 = vadd.f32 %v5607_v7, %v10047_v2 }
 0x657   : > { %v5622_v52 = vadd.f32 %v5621_v47, %v10006_v62  ;;  %v5609_v56 = vadd.f32 %v5608_v58, %v10073_v16 }
 0x659   : > { %4678 = vadd.xlane.f32.xlu1 %v10098_v60  ;;  %4675 = vadd.xlane.f32.xlu0 %v10102_v33  ;;  %v5623_v7 = vadd.f32 %v5622_v52, %v10063_v53  ;;  %v5610_v4 = vadd.f32 %v5609_v56, %v10122_v28  ;;  %v10150_v56 = vsel %vm11622_vm0, %v9957_v32, 0.0  ;;  %v6104_v32 = vadd.f32 %v9944_v1, %v9930_v34 }
 0x65b   : > { %v5624_v47 = vadd.f32 %v5623_v7, %v10086_v27  ;;  %v5611_v58 = vadd.f32 %v5610_v4, %v10139_v37  ;;  %v6097_v4 = vadd.f32 %v9934_v48, %v9925_v41  ;;  %v5999_v48 = vmax.f32 %v9940_v31, %v9951_v5 }
 0x65c   : > { %v10194_v31 = vsel %vm11622_vm0, %v10038_v17, 0.0 }
 0x65d   : > { %4564 = vmax.xlane.f32.xlu1 %v10111_v11  ;;  %4681 = vadd.xlane.f32.xlu0 %v10115_v63  ;;  %v5625_v52 = vadd.f32 %v5624_v47, %v10134_v22  ;;  %v5612_v45 = vadd.f32 %v5611_v58, %v10082_v15  ;;  %v5992_v58 = vmax.f32 %v9817_v61, %v9826_v9  ;;  %v6098_v9 = vrot.slane %v6097_v4, 4 }
 0x65e   : > { %v5985_v61 = vmax.f32 %v9808_v35, %v9833_v13  ;;  %v6000_v5 = vrot.slane %v5999_v48, 4 }
 0x65f   : > { %v5626_v7 = vadd.f32 %v5625_v52, %v10146_v23  ;;  %v5613_v57 = vadd.f32 %v5612_v45, %v10098_v60  ;;  %v10168_v45 = vsel %vm11622_vm0, %v9954_v43, 0.0  ;;  %v10172_v52 = vsel %vm11622_vm0, %v10019_v39, 0.0 }
 0x660   : > { %v5993_v1 = vrot.slane %v5992_v58, 4  ;;  %v6105_v43 = vrot.slane %v6104_v32, 4  ;;  %v5986_v36 = vrot.slane %v5985_v61, 4  ;;  %v6099_v35 = vadd.f32 %v6098_v9, %v6097_v4 }
 0x661   : > { %4567 = vmax.xlane.f32.xlu0 %v10128_v40  ;;  %v5627_v46 = vadd.f32 %v5626_v7, %v10102_v33  ;;  %v5614_v47 = vadd.f32 %v5613_v57, %v10150_v56  ;;  %v6118_v7 = vadd.f32 %v10006_v62, %v9996_v50  ;;  %v6006_v50 = vmax.f32 %v9965_v0, %v9984_v38 }
 0x663   : > { %v5628_v57 = vadd.f32 %v5627_v46, %v10115_v63  ;;  %v5615_v41 = vadd.f32 %v5614_v47, %v10168_v45  ;;  %v6111_v46 = vadd.f32 %v9989_v30, %v9977_v19  ;;  %v10190_v47 = vsel %vm11622_vm0, %v9961_v59, 0.0 }
 0x664   : > { %v10201_v19 = vsel %vm11622_vm0, %v10016_v51, 0.0  ;;  %v5994_v30 = vmax.f32 %v5992_v58, %v5993_v1  ;;  %v6119_v4 = vrot.slane %v6118_v7, 4  ;;  %v6106_v1 = vadd.f32 %v6105_v43, %v6104_v32 }
 0x665   : > { %v5629_v34 = vadd.f32 %v5628_v57, %v10162_v44  ;;  %v5616_v39 = vadd.f32 %v5615_v41, %v10172_v52  ;;  %v11702_v57 = vmax.f32 %v10041_v20, %v10031_v54  ;;  %v6112_v59 = vrot.slane %v6111_v46, 4 }
 0x666   : > { %v6001_v51 = vmax.f32 %v5999_v48, %v6000_v5  ;;  %v6007_v42 = vrot.slane %v6006_v50, 4  ;;  %v11706_v43 = vmax.f32 %v10059_v25, %v10035_v12 }
 0x667   : > { %v5630_v62 = vadd.f32 %v5629_v34, %v10190_v47  ;;  %v10207_v9 = vmax.f32 %v11702_v57, %v10111_v11  ;;  %v5617_v17 = vadd.f32 %v5616_v39, %v10201_v19  ;;  %v5987_v34 = vmax.f32 %v5985_v61, %v5986_v36 }
 0x668   : > { %v6100_v57 = vrot.slane %v6099_v35, 2  ;;  %v5599_v32 = vmax.f32 %v11706_v43, %v10128_v40  ;;  %v10239_v61 = vsel %vm11622_vm0, %v10023_v24, 0.0  ;;  %v6113_v48 = vadd.f32 %v6112_v59, %v6111_v46 }
 0x669   : > { %11703 = vst [vmem:[#allocation39_spill] sm:$0xff] %v10207_v9  ;;  %v5631_v38 = vadd.f32 %v5630_v62, %v10194_v31  ;;  %v5988_v25 = vrot.slane %v5987_v34, 2  ;;  %v6002_v59 = vrot.slane %v6001_v51, 2  ;;  %v10258_v46 = vsel %vm11622_vm0, %v9899_v21, -inf }
 0x66a   : > { %v6101_v54 = vadd.f32 %v6100_v57, %v6099_v35  ;;  %v6008_v24 = vmax.f32 %v6006_v50, %v6007_v42 }
 0x66b   : > { %v5989_v49 = vmax.f32 %v5987_v34, %v5988_v25  ;;  %v6003_v35 = vmax.f32 %v6001_v51, %v6002_v59  ;;  %v10283_v34 = vsel %vm11622_vm0, %v9895_v55, -inf }
 0x66c   : > { %v6009_v57 = vrot.slane %v6008_v24, 2 }
 0x66d   : > { %v6004_v51 = vrot.slane %v6003_v35, 1 }
 0x674   : > { %v10186_v13 = vpop.f32.mrf.mxu1 }
 0x675   : > { %11701 = vst [vmem:[#allocation38_spill] sm:$0xff] %v10186_v13  ;;  %v10229_v62 = vsel %vm11622_vm0, %v10186_v13, 0.0 }
 0x676   : > { %v10209_v41 = vpop.f32.mrf.mxu1 }
 0x677   : > { %11704 = vst [vmem:[#allocation40_spill] sm:$0xff] %v10209_v41  ;;  %v10214_v0 = vsel %vm11622_vm0, %v10209_v41, -inf  ;;  %v10219_v58 = vsel %vm11622_vm0, %v10209_v41, 0.0  ;;  %v6120_v41 = vadd.f32 %v6119_v4, %v6118_v7  ;;  %v5632_v7 = vadd.f32 %v5631_v38, %v10239_v61 }
 0x678   : > { %4612 = vmax.xlane.f32.xlu1 %v10214_v0  ;;  %v10224_v20 = vpop.f32.mrf.mxu1  ;;  %v5618_v39 = vadd.f32 %v5617_v17, %v10219_v58  ;;  %v6107_v4 = vrot.slane %v6106_v1, 2 }
 0x679   : > { %11705 = vst [vmem:[#allocation41_spill] sm:$0xff] %v10224_v20  ;;  %v10266_v10 = vsel %vm11622_vm0, %v10224_v20, 0.0  ;;  %v6121_v18 = vrot.slane %v6120_v41, 2  ;;  %v10270_v29 = vsel %vm11622_vm0, %v10224_v20, -inf  ;;  %v6102_v20 = vrot.slane %v6101_v54, 1 }
 0x67a   : > { %v10235_v36 = vpop.f32.mrf.mxu1  ;;  %v10242_v17 = vadd.f32 %v5618_v39, %v10229_v62  ;;  %v5995_v39 = vrot.slane %v5994_v30, 2  ;;  %11710 = vst [vmem:[#allocation45_spill] sm:$0xff] %v10270_v29 }
 0x67b   : > { %11707 = vst [vmem:[#allocation42_spill] sm:$0xff] %v10235_v36  ;;  %v10246_v5 = vsel %vm11622_vm0, %v10235_v36, -inf  ;;  %v10251_v12 = vsel %vm11622_vm0, %v10235_v36, 0.0  ;;  %v6122_v9 = vadd.f32 %v6121_v18, %v6120_v41  ;;  %v6125_v18 = vadd.f32 %v10063_v53, %v10047_v2 }
 0x67c   : > { %11708 = vst [vmem:[#allocation43_spill] sm:$0xff] %v10242_v17  ;;  %4660 = vadd.xlane.f32.xlu1 %v10122_v28  ;;  %v5601_v43 = vmax.f32 %v5599_v32, %v10246_v5  ;;  %4615 = vmax.xlane.f32.xlu0 %v10246_v5  ;;  %v5633_v38 = vadd.f32 %v5632_v7, %v10251_v12  ;;  %v6114_v32 = vrot.slane %v6113_v48, 2 }
 0x67d   : > { %v6108_v7 = vadd.f32 %v6107_v4, %v6106_v1  ;;  %v5996_v50 = vmax.f32 %v5994_v30, %v5995_v39  ;;  %v5990_v1 = vrot.slane %v5989_v49, 1  ;;  %v6132_v4 = vadd.f32 %v10086_v27, %v10073_v16 }
 0x67e   : > { %v10262_v36 = vmax.f32 %v5601_v43, %v10258_v46  ;;  %v10273_v21 = vadd.f32 %v5633_v38, %v10266_v10  ;;  %v6020_v43 = vmax.f32 %v10027_v26, %v10056_v14  ;;  %v6115_v17 = vadd.f32 %v6114_v32, %v6113_v48 }
 0x67f   : > { %v6109_v25 = vrot.slane %v6108_v7, 1  ;;  %v6013_v26 = vmax.f32 %v10002_v3, %v10013_v6  ;;  %v5997_v14 = vrot.slane %v5996_v50, 1  ;;  %v6010_v30 = vmax.f32 %v6008_v24, %v6009_v57  ;;  %v10299_v3 = vpop.xlane.xlu0 %4528 }
 0x680   : > { %11709 = vst [vmem:[#allocation44_spill] sm:$0xff] %v10262_v36  ;;  %11711 = vst [vmem:[#allocation46_spill] sm:$0xff] %v10273_v21  ;;  %4684 = vadd.xlane.f32.xlu1 %v10150_v56  ;;  %4663 = vadd.xlane.f32.xlu0 %v10134_v22  ;;  %v6021_v41 = vrot.slane %v6020_v43, 4  ;;  %v6103_v48 = vadd.f32 %v6102_v20, %v6101_v54  ;;  %v6116_v39 = vrot.slane %v6115_v17, 1  ;;  %v6123_v59 = vrot.slane %v6122_v9, 1 }
 0x681   : > { %v10295_v16 = vsel %vm11622_vm0, %v10186_v13, -inf  ;;  %v5991_v27 = vmax.f32 %v5989_v49, %v5990_v1  ;;  %v6110_v38 = vadd.f32 %v6109_v25, %v6108_v7  ;;  %v6133_v32 = vrot.slane %v6132_v4, 4 }
 0x682   : > { %v6005_v53 = vmax.f32 %v6003_v35, %v6004_v51  ;;  %v6014_v6 = vrot.slane %v6013_v26, 4  ;;  %v6126_v24 = vrot.slane %v6125_v18, 4  ;;  %v5998_v2 = vmax.f32 %v5996_v50, %v5997_v14 }
 0x683   : > { %v6011_v54 = vrot.slane %v6010_v30, 1  ;;  %v6022_v20 = vmax.f32 %v6020_v43, %v6021_v41  ;;  %v6209_v57 = vmul.f32 0.0625, %v6103_v48  ;;  %v6117_v42 = vadd.f32 %v6116_v39, %v6115_v17 }
 0x684   : > { %4570 = vmax.xlane.f32.xlu1 %v10283_v34  ;;  %4687 = vadd.xlane.f32.xlu0 %v10162_v44  ;;  %v6124_v55 = vadd.f32 %v6123_v59, %v6122_v9  ;;  %v6153_v49 = vadd.f32 %v10102_v33, %v10082_v15  ;;  %v6257_v7 = vsel %vm4954_vm13, %v5998_v2, %v5991_v27  ;;  %v6210_v1 = vmul.f32 0.0625, %v6110_v38  ;;  %v10311_v33 = vpop.xlane.xlu0 %4534 }
 0x685   : > { %v6134_v25 = vadd.f32 %v6133_v32, %v6132_v4  ;;  %v6167_v13 = vadd.f32 %v10162_v44, %v10150_v56  ;;  %v6258_v35 = vsel %vm4956_vm14, %v6005_v53, %v6257_v7  ;;  %v6015_v50 = vmax.f32 %v6013_v26, %v6014_v6 }
 0x686   : > { %v6127_v43 = vadd.f32 %v6126_v24, %v6125_v18  ;;  %v6160_v9 = vadd.f32 %v10115_v63, %v10098_v60  ;;  %v6012_v17 = vmax.f32 %v6010_v30, %v6011_v54  ;;  %v6023_v15 = vrot.slane %v6022_v20, 2  ;;  %v10323_v60 = vpop.xlane.xlu1 %4531 }
 0x687   : > { %v6295_v4 = vsel %vm4954_vm13, %v6210_v1, %v6209_v57  ;;  %v6211_v51 = vmul.f32 0.0625, %v6117_v42  ;;  %v10314_v14 = vmul.f32 0.0625, %v6124_v55  ;;  %v6154_v44 = vrot.slane %v6153_v49, 4 }
 0x688   : > { %4618 = vmax.xlane.f32.xlu1 %v10295_v16  ;;  %4573 = vmax.xlane.f32.xlu0 %v10258_v46  ;;  %v6135_v56 = vrot.slane %v6134_v25, 2  ;;  %v6027_v41 = vmax.f32 %v10111_v11, %v10128_v40  ;;  %v6168_v48 = vrot.slane %v6167_v13, 4  ;;  %v10321_v63 = vsel %vm4958_vm15, %v6012_v17, %v6258_v35 }
 0x689   : > { %v6016_v26 = vrot.slane %v6015_v50, 2  ;;  %v6128_v18 = vrot.slane %v6127_v43, 2  ;;  %v6161_v42 = vrot.slane %v6160_v9, 4  ;;  %v6181_v55 = vadd.f32 %v10194_v31, %v10172_v52 }
 0x68a   : > { %v10327_v30 = vmax.f32 %v6022_v20, %v6023_v15  ;;  %v10331_v40 = vadd.f32 %v10134_v22, %v10122_v28  ;;  %v10335_v11 = vmax.f32 %v10283_v34, %v10258_v46  ;;  %v6174_v39 = vadd.f32 %v10190_v47, %v10168_v45 }
 0x68b   : > { %v6155_v59 = vadd.f32 %v6154_v44, %v6153_v49  ;;  %v10339_v27 = vadd.f32 %v6135_v56, %v6134_v25  ;;  %v6028_v38 = vrot.slane %v6027_v41, 4  ;;  %v6169_v32 = vadd.f32 %v6168_v48, %v6167_v13 }
 0x68c   : > { %4666 = vadd.xlane.f32.xlu1 %v10139_v37  ;;  %4621 = vmax.xlane.f32.xlu0 %v10270_v29  ;;  %v10344_v28 = vsel %vm4956_vm14, %v6211_v51, %v6295_v4  ;;  %v11712_v22 = vmov 0.0   ;;  %v6162_v13 = vadd.f32 %v6161_v42, %v6160_v9  ;;  %v6182_v46 = vrot.slane %v6181_v55, 4 }
 0x68d   : > { %4753 = vst.msk [vmem:[#allocation4] sm:$0x7] %vm4752_vm3, %v11712_v22  ;;  %4754 = vst.msk [vmem:[#allocation4 + $0x18] sm:$0x7] %vm4752_vm3, %v11712_v22  ;;  %v6195_v53 = vadd.f32 %v10251_v12, %v10219_v58  ;;  %v10378_v6 = vmax.f32 %v6015_v50, %v6016_v26  ;;  %v10380_v24 = vadd.f32 %v6128_v18, %v6127_v43  ;;  %v6025_v54 = vrot.slane %v10327_v30, 1 }
 0x68e   : > { %4759 = vst.msk [vmem:[#allocation4 + $0x8] sm:$0xff] %vm4757_vm4, %v11712_v22  ;;  %4763 = vst.msk [vmem:[#allocation4 + $0x20] sm:$0xff] %vm4757_vm4, %v11712_v22  ;;  %v6188_v2 = vadd.f32 %v10239_v61, %v10201_v19  ;;  %v6156_v20 = vrot.slane %v6155_v59, 2  ;;  %v6140_v57 = vrot.slane %v10331_v40, 4  ;;  %v6035_v49 = vrot.slane %v10335_v11, 4 }
 0x68f   : > { %4755 = vst.msk [vmem:[#allocation4 + $0x13] sm:$0x7] %vm4752_vm3, %v11712_v22  ;;  %4756 = vst.msk [vmem:[#allocation4 + $0x2b] sm:$0x7] %vm4752_vm3, %v11712_v22  ;;  %v6029_v7 = vmax.f32 %v6027_v41, %v6028_v38  ;;  %v6170_v1 = vrot.slane %v6169_v32, 2  ;;  %v6163_v25 = vrot.slane %v6162_v13, 2  ;;  %v6183_v43 = vadd.f32 %v6182_v46, %v6181_v55 }
 0x690   : > { %4690 = vadd.xlane.f32.xlu1 %v10168_v45  ;;  %4669 = vadd.xlane.f32.xlu0 %v10146_v23  ;;  %5644 = vst.msk [vmem:[#allocation5 + $0x8] sm:$0xff] %vm4757_vm4, %v11712_v22  ;;  %5647 = vst.msk [vmem:[#allocation5 + $0x20] sm:$0xff] %vm4757_vm4, %v11712_v22  ;;  %v10362_v45 = vpop.xlane.xlu0 %4537  ;;  %v6196_v9 = vrot.slane %v6195_v53, 4  ;;  %v6090_v17 = vmax.f32 %v10295_v16, %v10270_v29  ;;  %v6189_v15 = vrot.slane %v6188_v2, 4  ;;  %v6018_v4 = vrot.slane %v10378_v6, 1 }
 0x691   : > { %6230 = vst.msk [vmem:[#allocation6 + $0x8] sm:$0xff] %vm4757_vm4, %v11712_v22  ;;  %6233 = vst.msk [vmem:[#allocation6 + $0x20] sm:$0xff] %vm4757_vm4, %v11712_v22  ;;  %v6157_v44 = vadd.f32 %v6156_v20, %v6155_v59  ;;  %v6146_v41 = vadd.f32 %v10146_v23, %v10139_v37  ;;  %v6030_v48 = vrot.slane %v6029_v7, 2  ;;  %v6141_v26 = vadd.f32 %v6140_v57, %v10331_v40 }
 0x692   : > { %4758 = vst.msk [vmem:[#allocation4] sm:$0xff] %vm4757_vm4, %v11712_v22  ;;  %4762 = vst.msk [vmem:[#allocation4 + $0x18] sm:$0xff] %vm4757_vm4, %v11712_v22  ;;  %v6171_v18 = vadd.f32 %v6170_v1, %v6169_v32  ;;  %v6036_v42 = vmax.f32 %v10335_v11, %v6035_v49  ;;  %v6164_v55 = vadd.f32 %v6163_v25, %v6162_v13  ;;  %v6184_v38 = vrot.slane %v6183_v43, 2 }
 0x693   : > { %4767 = vst.msk [vmem:[#allocation4 + $0x8] sm:$0xff] %vm4765_vm5, %v11712_v22  ;;  %4771 = vst.msk [vmem:[#allocation4 + $0x20] sm:$0xff] %vm4765_vm5, %v11712_v22  ;;  %v6197_v46 = vadd.f32 %v6196_v9, %v6195_v53  ;;  %v6091_v59 = vrot.slane %v6090_v17, 4  ;;  %v6190_v20 = vadd.f32 %v6189_v15, %v6188_v2  ;;  %v6130_v23 = vrot.slane %v10380_v24, 1 }
 0x694   : > { %4696 = vadd.xlane.f32.xlu1 %v10172_v52  ;;  %4693 = vadd.xlane.f32.xlu0 %v10190_v47  ;;  %v10364_v52 = vpop.xlane.xlu1 %4576  ;;  %v6083_v47 = vmax.f32 %v10214_v0, %v10246_v5  ;;  %v6175_v5 = vrot.slane %v6174_v39, 4  ;;  %4766 = vst.msk [vmem:[#allocation4] sm:$0xff] %vm4765_vm5, %v11712_v22  ;;  %4770 = vst.msk [vmem:[#allocation4 + $0x18] sm:$0xff] %vm4765_vm5, %v11712_v22  ;;  %v10393_v35 = vpop.xlane.xlu0 %4579  ;;  %v6026_v37 = vmax.f32 %v10327_v30, %v6025_v54  ;;  %vm4817_vm3 = vcmask 154712  }
 0x695   : > { %4761 = vst.msk [vmem:[#allocation4 + $0x10] sm:$0x3f] %vm4760_vm6, %v11712_v22  ;;  %4764 = vst.msk [vmem:[#allocation4 + $0x28] sm:$0x3f] %vm4760_vm6, %v11712_v22  ;;  %v6158_v40 = vrot.slane %v6157_v44, 1  ;;  %v6147_v11 = vrot.slane %v6146_v41, 4  ;;  %v6031_v57 = vmax.f32 %v6029_v7, %v6030_v48  ;;  %v6185_v2 = vadd.f32 %v6184_v38, %v6183_v43 }
 0x696   : > { %v6084_v50 = vrot.slane %v6083_v47, 4  ;;  %4769 = vst.msk [vmem:[#allocation4 + $0x10] sm:$0x3f] %vm4768_vm7, %v11712_v22  ;;  %4772 = vst.msk [vmem:[#allocation4 + $0x28] sm:$0x3f] %vm4768_vm7, %v11712_v22  ;;  %v6172_v49 = vrot.slane %v6171_v18, 1  ;;  %v6092_v30 = vmax.f32 %v6090_v17, %v6091_v59  ;;  %v6019_v7 = vmax.f32 %v10378_v6, %v6018_v4 }
 0x697   : > { %v6165_v13 = vrot.slane %v6164_v55, 1  ;;  %v6198_v1 = vrot.slane %v6197_v46, 2  ;;  %v6191_v25 = vrot.slane %v6190_v20, 2  ;;  %v6131_v9 = vadd.f32 %v6130_v23, %v10380_v24  ;;  %6225 = vst.msk [vmem:[#allocation6] sm:$0x7] %vm5638_vm10, %v11712_v22 }
 0x698   : > { %4702 = vadd.xlane.f32.xlu1 %v10201_v19  ;;  %4699 = vadd.xlane.f32.xlu0 %v10194_v31  ;;  %v6176_v19 = vadd.f32 %v6175_v5, %v6174_v39  ;;  %v6202_v31 = vadd.f32 %v10266_v10, %v10229_v62  ;;  %v10407_v56 = vpop.xlane.xlu1 %4582  ;;  %v6085_v39 = vmax.f32 %v6083_v47, %v6084_v50  ;;  %v10417_v32 = vpop.xlane.xlu0 %4585  ;;  %v6186_v17 = vrot.slane %v6185_v2, 1 }
 0x699   : > { %v6159_v15 = vadd.f32 %v6158_v40, %v6157_v44  ;;  %v6148_v48 = vadd.f32 %v6147_v11, %v6146_v41  ;;  %v6166_v29 = vadd.f32 %v6165_v13, %v6164_v55  ;;  %v6192_v6 = vadd.f32 %v6191_v25, %v6190_v20  ;;  %5639 = vst.msk [vmem:[#allocation5] sm:$0x7] %vm5638_vm10, %v11712_v22 }
 0x69a   : > { %v6177_v5 = vrot.slane %v6176_v19, 2  ;;  %v6203_v51 = vrot.slane %v6202_v31, 4  ;;  %v6086_v53 = vrot.slane %v6085_v39, 2  ;;  %v10428_v24 = vmul.f32 0.0625, %v6131_v9  ;;  %5640 = vst.msk [vmem:[#allocation5 + $0x18] sm:$0x7] %vm5638_vm10, %v11712_v22 }
 0x69b   : > { %v6217_v44 = vmul.f32 0.0625, %v6159_v15  ;;  %v6218_v59 = vmul.f32 0.0625, %v6166_v29  ;;  %v6193_v11 = vrot.slane %v6192_v6, 1  ;;  %5641 = vst.msk [vmem:[#allocation5 + $0x13] sm:$0x7] %vm5638_vm10, %v11712_v22  ;;  %vm5409_vm5 = vcmask 1044480  }
 0x69c   : > { %4708 = vadd.xlane.f32.xlu1 %v10219_v58  ;;  %4705 = vadd.xlane.f32.xlu0 %v10239_v61  ;;  %v6142_v58 = vrot.slane %v6141_v26, 2  ;;  %v6037_v61 = vrot.slane %v6036_v42, 2  ;;  %v10421_v47 = vpop.xlane.xlu1 %4624  ;;  %v6178_v54 = vadd.f32 %v6177_v5, %v6176_v19  ;;  %v6204_v50 = vadd.f32 %v6203_v51, %v6202_v31  ;;  %v10426_v43 = vpop.xlane.xlu0 %4627  ;;  %5642 = vst.msk [vmem:[#allocation5 + $0x2b] sm:$0x7] %vm5638_vm10, %v11712_v22 }
 0x69d   : > { %v6087_v38 = vmax.f32 %v6085_v39, %v6086_v53  ;;  %v6199_v19 = vadd.f32 %v6198_v1, %v6197_v46  ;;  %v6093_v31 = vrot.slane %v6092_v30, 2  ;;  %v6187_v5 = vadd.f32 %v6186_v17, %v6185_v2  ;;  %6226 = vst.msk [vmem:[#allocation6 + $0x18] sm:$0x7] %vm5638_vm10, %v11712_v22  ;;  %6227 = vst.msk [vmem:[#allocation6 + $0x13] sm:$0x7] %vm5638_vm10, %v11712_v22 }
 0x69e   : > { %v6143_v21 = vadd.f32 %v6142_v58, %v6141_v26  ;;  %v6038_v36 = vmax.f32 %v6036_v42, %v6037_v61  ;;  %v6179_v51 = vrot.slane %v6178_v54, 1  ;;  %v6205_v4 = vrot.slane %v6204_v50, 2  ;;  %6228 = vst.msk [vmem:[#allocation6 + $0x2b] sm:$0x7] %vm5638_vm10, %v11712_v22 }
 0x69f   : > { %v6149_v26 = vrot.slane %v6148_v48, 2  ;;  %v6088_v46 = vrot.slane %v6087_v38, 1  ;;  %v6200_v23 = vrot.slane %v6199_v19, 1  ;;  %v6094_v40 = vmax.f32 %v6092_v30, %v6093_v31  ;;  %6229 = vst.msk [vmem:[#allocation6] sm:$0xff] %vm4757_vm4, %v11712_v22  ;;  %5643 = vst.msk [vmem:[#allocation5] sm:$0xff] %vm4757_vm4, %v11712_v22 }
 0x6a0   : > { %4714 = vadd.xlane.f32.xlu1 %v10229_v62  ;;  %4711 = vadd.xlane.f32.xlu0 %v10251_v12  ;;  %v6032_v62 = vrot.slane %v6031_v57, 1  ;;  %v6173_v12 = vadd.f32 %v6172_v49, %v6171_v18  ;;  %v10430_v41 = vpop.xlane.xlu1 %4630  ;;  %v6144_v42 = vrot.slane %v6143_v21, 1  ;;  %v6039_v39 = vrot.slane %v6038_v36, 1  ;;  %v10435_v61 = vpop.xlane.xlu0 %4633  ;;  %5645 = vst.msk [vmem:[#allocation5 + $0x10] sm:$0x3f] %vm4760_vm6, %v11712_v22 }
 0x6a1   : > { %v6180_v20 = vadd.f32 %v6179_v51, %v6178_v54  ;;  %v6206_v58 = vadd.f32 %v6205_v4, %v6204_v50  ;;  %v6302_v49 = vsel %vm4954_vm13, %v6218_v59, %v6217_v44  ;;  %v10437_v13 = vadd.f32 %v6149_v26, %v6148_v48  ;;  %5646 = vst.msk [vmem:[#allocation5 + $0x18] sm:$0xff] %vm4757_vm4, %v11712_v22 }
 0x6a2   : > { %v6033_v18 = vmax.f32 %v6031_v57, %v6032_v62  ;;  %v6219_v55 = vmul.f32 0.0625, %v6173_v12  ;;  %v6145_v57 = vadd.f32 %v6144_v42, %v6143_v21  ;;  %v6040_v53 = vmax.f32 %v6038_v36, %v6039_v39  ;;  %5648 = vst.msk [vmem:[#allocation5 + $0x28] sm:$0x3f] %vm4760_vm6, %v11712_v22  ;;  %6231 = vst.msk [vmem:[#allocation6 + $0x10] sm:$0x3f] %vm4760_vm6, %v11712_v22 }
 0x6a3   : > { %v6089_v36 = vmax.f32 %v6087_v38, %v6088_v46  ;;  %v6201_v1 = vadd.f32 %v6200_v23, %v6199_v19  ;;  %6232 = vst.msk [vmem:[#allocation6 + $0x18] sm:$0xff] %vm4757_vm4, %v11712_v22  ;;  %v6220_v30 = vmul.f32 0.0625, %v6180_v20  ;;  %v6194_v54 = vadd.f32 %v6193_v11, %v6192_v6 }
 0x6a4   : > { %4717 = vadd.xlane.f32.xlu0 %v10266_v10  ;;  %v6260_v10 = vsel %vm4960_vm1, %v6019_v7, %v10321_v63  ;;  %v6303_v2 = vsel %vm4956_vm14, %v6219_v55, %v6302_v49  ;;  %v10450_v21 = vpop.xlane.xlu1 %4540  ;;  %6234 = vst.msk [vmem:[#allocation6 + $0x28] sm:$0x3f] %vm4760_vm6, %v11712_v22  ;;  %v6207_v25 = vrot.slane %v6206_v58, 1  ;;  %v6095_v50 = vrot.slane %v6094_v40, 1  ;;  %v10495_v17 = vpop.xlane.xlu0 %4543 }
 0x6a5   : > { %v6261_v63 = vsel %vm4962_vm2, %v6026_v37, %v6260_v10  ;;  %v6221_v37 = vmul.f32 0.0625, %v6187_v5  ;;  %6235 = vst.msk [vmem:[#allocation6] sm:$0xff] %vm5649_vm11, %v11712_v22  ;;  %6236 = vst.msk [vmem:[#allocation6 + $0x8] sm:$0xff] %vm5649_vm11, %v11712_v22  ;;  %v11713_v7 = vrot.slane %v10339_v27, 1  ;;  %v6151_v15 = vrot.slane %v10437_v13, 1  ;;  %v11714_v5 = vld [vmem:[#allocation39_spill] sm:$0xff] }
 0x6a6   : > { %v6262_v29 = vsel %vm4964_vm8, %v6033_v18, %v6261_v63  ;;  %5651 = vst.msk [vmem:[#allocation5 + $0x8] sm:$0xff] %vm5649_vm11, %v11712_v22  ;;  %5655 = vst.msk [vmem:[#allocation5 + $0x20] sm:$0xff] %vm5649_vm11, %v11712_v22  ;;  %v6297_v48 = vsel %vm4958_vm15, %v10314_v14, %v10344_v28  ;;  %v6304_v12 = vsel %vm4958_vm15, %v6220_v30, %v6303_v2  ;;  %v6223_v31 = vmul.f32 0.0625, %v6201_v1 }
 0x6a7   : > { %6239 = vst.msk [vmem:[#allocation6 + $0x20] sm:$0xff] %vm5649_vm11, %v11712_v22  ;;  %5650 = vst.msk [vmem:[#allocation5] sm:$0xff] %vm5649_vm11, %v11712_v22  ;;  %v6138_v9 = vadd.f32 %v11713_v7, %v10339_v27  ;;  %v6263_v62 = vsel %vm4966_vm9, %v6040_v53, %v6262_v29  ;;  %v6298_v38 = vsel %vm4960_vm1, %v10428_v24, %v6297_v48  ;;  %v6222_v28 = vmul.f32 0.0625, %v6194_v54 }
 0x6a8   : > { %5654 = vst.msk [vmem:[#allocation5 + $0x18] sm:$0xff] %vm5649_vm11, %v11712_v22  ;;  %6238 = vst.msk [vmem:[#allocation6 + $0x18] sm:$0xff] %vm5649_vm11, %v11712_v22  ;;  %v10497_v19 = vpop.xlane.xlu1 %4588  ;;  %v6269_v27 = vsel %vm4964_vm8, %v6089_v36, %v10089_v8  ;;  %v6305_v14 = vsel %vm4960_vm1, %v6221_v37, %v6304_v12  ;;  %v6096_v51 = vmax.f32 %v6094_v40, %v6095_v50  ;;  %v6215_v4 = vmul.f32 0.0625, %v6145_v57  ;;  %v10510_v10 = vpop.xlane.xlu0 %4591 }
 0x6a9   : > { %v6208_v6 = vadd.f32 %v6207_v25, %v6206_v58  ;;  %6237 = vst.msk [vmem:[#allocation6 + $0x10] sm:$0x3f] %vm5652_vm12, %v11712_v22  ;;  %5653 = vst.msk [vmem:[#allocation5 + $0x10] sm:$0x3f] %vm5652_vm12, %v11712_v22  ;;  %v6214_v24 = vmul.f32 0.0625, %v6138_v9  ;;  %v6152_v44 = vadd.f32 %v6151_v15, %v10437_v13  ;;  %v6306_v26 = vsel %vm4962_vm2, %v6222_v28, %v6305_v14 }
 0x6aa   : > { %5656 = vst.msk [vmem:[#allocation5 + $0x28] sm:$0x3f] %vm5652_vm12, %v11712_v22  ;;  %6240 = vst.msk [vmem:[#allocation6 + $0x28] sm:$0x3f] %vm5652_vm12, %v11712_v22  ;;  %v6270_v8 = vsel %vm4966_vm9, %v6096_v51, %v6269_v27  ;;  %v6307_v18 = vsel %vm4964_vm8, %v6223_v31, %v6306_v26  ;;  %v11715_v23 = vmax.f32 %v11714_v5, %v10214_v0  ;;  %v4805_v15 = vlaneseq }
 0x6ab   : > { %v6299_v42 = vsel %vm4962_vm2, %v6214_v24, %v6298_v38  ;;  %v6224_v55 = vmul.f32 0.0625, %v6208_v6  ;;  %v6216_v46 = vmul.f32 0.0625, %v6152_v44  ;;  %v4722_v5 = vmul.f32 0.125, %v10430_v41 }
 0x6ac   : > { %v6300_v39 = vsel %vm4964_vm8, %v6215_v4, %v6299_v42  ;;  %v10516_v59 = vpop.xlane.xlu1 %4636  ;;  %v5588_v40 = vmax.f32 %v11715_v23, %v10283_v34  ;;  %v4640_v58 = vpop.xlane.xlu0 %4639  ;;  %v10568_v14 = vshrl.u32 %v4805_v15, 7  ;;  %v4721_v42 = vmul.f32 0.125, %v10426_v43 }
 0x6ad   : > { %v6308_v20 = vsel %vm4966_vm9, %v6224_v55, %v6307_v18  ;;  %v6301_v11 = vsel %vm4966_vm9, %v6216_v46, %v6300_v39  ;;  %vm4977_vm4 = vcmask 154648   ;;  %vm5177_vm6 = vcmask 179200  }
 0x6ae   : > { %v5589_v49 = vmax.f32 %v10295_v16, %v5588_v40  ;;  %vm5665_vm7 = vcmask 89112   ;;  %vm5297_vm10 = vcmask 753200   ;;  %vm5216_vm11 = vcmask 720400  }
 0x6af   : > { %vm5310_vm12 = vcmask 933600  }
 0x6b0   : > { %v10527_v13 = vpop.xlane.xlu1 %4546  ;;  %v10530_v63 = vpop.xlane.xlu0 %4549 }
 0x6b1   : > { %6271 = vrot.lane.b32.xlu1 %v6263_v62, %s7625_s25  ;;  %v4806_v62 = vand.u32 127, %v4805_v15  ;;  %v4725_v15 = vmul.f32 0.125, %v4640_v58 }
 0x6b3   : > { %v4812_v38 = vadd.s32 4294967285, %v4806_v62  ;;  %v4807_v31 = vadd.s32 4294967293, %v4806_v62 }
 0x6b4   : > { %v10532_v57 = vpop.xlane.xlu1 %4594  ;;  %v10534_v0 = vpop.xlane.xlu0 %4597 }
 0x6b5   : > { %6273 = vrot.lane.b32.xlu1 %v6270_v8, %s7625_s25  ;;  %v10571_v28 = vsub.s32 %v4812_v38, %v10568_v14  ;;  %v10576_v6 = vsub.s32 %v4807_v31, %v10568_v14  ;;  %v4724_v31 = vmul.f32 0.125, %v10516_v59 }
 0x6b7   : > { %v4826_v24 = vrot.slane %v10362_v45, %v10571_v28  ;;  %v4816_v44 = vrot.slane %v10323_v60, %v10571_v28  ;;  %v4898_v8 = vrot.slane %v10417_v32, %v10571_v28  ;;  %v4811_v26 = vrot.slane %v10299_v3, %v10576_v6 }
 0x6b8   : > { %v10536_v34 = vpop.xlane.xlu1 %4642  ;;  %v4646_v53 = vpop.xlane.xlu0 %4645  ;;  %v4822_v18 = vrot.slane %v10311_v33, %v10576_v6  ;;  %v4889_v55 = vrot.slane %v10393_v35, %v10571_v28  ;;  %v4894_v45 = vrot.slane %v10407_v56, %v10576_v6  ;;  %v4723_v60 = vmul.f32 0.125, %v10435_v61 }
 0x6b9   : > { %6311 = vrot.lane.b32.xlu1 %v6308_v20, %s7625_s25  ;;  %v4818_v3 = vsel %vm4817_vm3, %v4816_v44, %v4811_v26  ;;  %v4720_v33 = vmul.f32 0.125, %v10421_v47  ;;  %v4885_v43 = vrot.slane %v10364_v52, %v10576_v6  ;;  %v5019_v56 = vrot.slane %v4721_v42, %v10571_v28 }
 0x6ba   : > { %6309 = vrot.lane.b32.xlu0 %v6301_v11, %s7625_s25  ;;  %v4827_v32 = vsel %vm4817_vm3, %v4826_v24, %v4822_v18  ;;  %v4899_v35 = vsel %vm4817_vm3, %v4898_v8, %v4894_v45  ;;  %v4835_v61 = vrot.slane %v10495_v17, %v10571_v28  ;;  %v5028_v20 = vrot.slane %v4723_v60, %v10571_v28 }
 0x6bb   : > { %v4955_v23 = vsel %vm4954_vm13, %v4827_v32, %v4818_v3  ;;  %v4890_v40 = vsel %vm4817_vm3, %v4889_v55, %v4885_v43  ;;  %v4907_v47 = vrot.slane %v10510_v10, %v10571_v28  ;;  %v4831_v17 = vrot.slane %v10450_v21, %v10576_v6 }
 0x6bc   : > { %v10538_v29 = vpop.xlane.xlu1 %4552  ;;  %v10540_v2 = vpop.xlane.xlu0 %4555  ;;  %v4968_v41 = vsel %vm4954_vm13, %v4899_v35, %v4890_v40  ;;  %v5024_v62 = vrot.slane %v4722_v5, %v10576_v6  ;;  %v4903_v38 = vrot.slane %v10497_v19, %v10576_v6  ;;  %v4844_v10 = vrot.slane %v10530_v63, %v10571_v28 }
 0x6bd   : > { %v4836_v44 = vsel %vm4817_vm3, %v4835_v61, %v4831_v17  ;;  %v4916_v8 = vrot.slane %v10534_v0, %v10571_v28  ;;  %v4727_v21 = vmul.f32 0.125, %v4646_v53  ;;  %v4840_v19 = vrot.slane %v10527_v13, %v10576_v6 }
 0x6be   : > { %5659 = vrot.lane.b32.xlu0 %v5589_v49, %s7625_s25  ;;  %v5015_v49 = vrot.slane %v4720_v33, %v10576_v6  ;;  %v10636_v58 = vsel %vm4817_vm3, %v5028_v20, %v5024_v62  ;;  %v4908_v26 = vsel %vm4817_vm3, %v4907_v47, %v4903_v38  ;;  %v4853_v59 = vrot.slane %v10540_v2, %v10571_v28 }
 0x6bf   : > { %v5037_v42 = vrot.slane %v4725_v15, %v10571_v28  ;;  %v4912_v0 = vrot.slane %v10532_v57, %v10576_v6  ;;  %v4726_v53 = vmul.f32 0.125, %v10536_v34  ;;  %v4957_v45 = vsel %vm4956_vm14, %v4836_v44, %v4955_v23  ;;  %v5378_v44 = vld [vmem:[%s11548_s7 + $0x78] sm:$0xff] }
 0x6c0   : > { %v10630_v24 = vsel %vm4817_vm3, %v5019_v56, %v5015_v49  ;;  %v5033_v13 = vrot.slane %v4724_v31, %v10576_v6  ;;  %v4845_v60 = vsel %vm4817_vm3, %v4844_v10, %v4840_v19  ;;  %v4849_v2 = vrot.slane %v10538_v29, %v10576_v6 }
 0x6c1   : > { %v4917_v32 = vsel %vm4817_vm3, %v4916_v8, %v4912_v0  ;;  %v5046_v3 = vrot.slane %v4727_v21, %v10571_v28  ;;  %v5042_v56 = vrot.slane %v4726_v53, %v10576_v6  ;;  %v4959_v61 = vsel %vm4958_vm15, %v4845_v60, %v4957_v45 }
 0x6c2   : > { %v4854_v33 = vsel %vm4817_vm3, %v4853_v59, %v4849_v2  ;;  %v10669_v29 = vsel %vm4817_vm3, %v5037_v42, %v5033_v13 }
 0x6c3   : > { %v5047_v20 = vsel %vm4817_vm3, %v5046_v3, %v5042_v56  ;;  %v4961_v47 = vsel %vm4960_vm1, %v4854_v33, %v4959_v61 }
 0x6ca   : > { %v10542_v36 = vpop.xlane.xlu1 %4600 }
 0x6cb   : > { %v4921_v57 = vrot.slane %v10542_v36, %v10576_v6 }
 0x6ce   : > { %v10544_v16 = vpop.xlane.xlu0 %4603  ;;  %v10546_v37 = vpop.xlane.xlu1 %4648 }
 0x6cf   : > { %v4925_v55 = vrot.slane %v10544_v16, %v10571_v28  ;;  %v4969_v16 = vsel %vm4956_vm14, %v4908_v26, %v4968_v41  ;;  %v4728_v17 = vmul.f32 0.125, %v10546_v37  ;;  %v5394_v37 = vld [vmem:[%s11548_s7 + $0xf8] sm:$0xff] }
 0x6d0   : > { %v4970_v23 = vsel %vm4958_vm15, %v4917_v32, %v4969_v16  ;;  %7352 = vmatprep.subr.mxu0 %v5394_v37 }
 0x6d1   : > { %v4926_v36 = vsel %vm4817_vm3, %v4925_v55, %v4921_v57  ;;  %7353 = vmatpush3.msra.mxu0 %v5378_v44  ;;  %v5051_v2 = vrot.slane %v4728_v17, %v10576_v6 }
 0x6d2   : > { %v10548_v1 = vpop.xlane.xlu0 %4651  ;;  %v10550_v30 = vpop.xlane.xlu1 %4558 }
 0x6d6   : > { %v10552_v54 = vpop.xlane.xlu0 %4561  ;;  %v10554_v25 = vpop.xlane.xlu1 %4606 }
 0x6d7   : > { %v4862_v34 = vrot.slane %v10552_v54, %v10571_v28  ;;  %v4858_v54 = vrot.slane %v10550_v30, %v10576_v6  ;;  %v4971_v30 = vsel %vm4960_vm1, %v4926_v36, %v4970_v23  ;;  %v4930_v38 = vrot.slane %v10554_v25, %v10576_v6 }
 0x6d9   : > { %v4863_v41 = vsel %vm4817_vm3, %v4862_v34, %v4858_v54 }
 0x6da   : > { %v10556_v50 = vpop.xlane.xlu0 %4609  ;;  %v10558_v7 = vpop.xlane.xlu1 %4654  ;;  %v4963_v8 = vsel %vm4962_vm2, %v4863_v41, %v4961_v47  ;;  %v5376_v41 = vld [vmem:[%s11548_s7 + $0x68] sm:$0xff] }
 0x6db   : > { %v4934_v49 = vrot.slane %v10556_v50, %v10571_v28  ;;  %v4730_v26 = vmul.f32 0.125, %v10558_v7  ;;  %v5393_v7 = vld [vmem:[%s11548_s7 + $0xf0] sm:$0xff] }
 0x6dc   : > { %7354 = vmatprep.subr.mxu0 %v5393_v7 }
 0x6dd   : > { %v4935_v21 = vsel %vm4817_vm3, %v4934_v49, %v4930_v38  ;;  %v5060_v57 = vrot.slane %v4730_v26, %v10576_v6  ;;  %v11716_v26 = vld [vmem:[#allocation43_spill] sm:$0xff] }
 0x6de   : > { %v10560_v9 = vpop.xlane.xlu0 %4657  ;;  %v10562_v48 = vpop.xlane.xlu1 %4672  ;;  %v4972_v32 = vsel %vm4962_vm2, %v4935_v21, %v4971_v30 }
 0x6df   : > { %v4731_v31 = vmul.f32 0.125, %v10560_v9 }
 0x6e2   : > { %v10564_v12 = vpop.xlane.xlu0 %4675  ;;  %v10566_v27 = vpop.xlane.xlu1 %4678 }
 0x6e6   : > { %v10573_v51 = vpop.xlane.xlu0 %4681  ;;  %v10578_v4 = vpop.xlane.xlu1 %4564 }
 0x6e7   : > { %v4867_v40 = vrot.slane %v10578_v4, %v10576_v6 }
 0x6ea   : > { %v10596_v39 = vpop.xlane.xlu0 %4567 }
 0x6eb   : > { %v4871_v43 = vrot.slane %v10596_v39, %v10571_v28  ;;  %v4729_v39 = vmul.f32 0.125, %v10548_v1 }
 0x6ed   : > { %v4872_v15 = vsel %vm4817_vm3, %v4871_v43, %v4867_v40  ;;  %v5156_v43 = vsel %vm4954_vm13, %v10636_v58, %v10630_v24  ;;  %v5392_v58 = vld [vmem:[%s11548_s7 + $0xe8] sm:$0xff] }
 0x6ee   : > { %v4965_v19 = vsel %vm4964_vm8, %v4872_v15, %v4963_v8  ;;  %v5157_v23 = vsel %vm4956_vm14, %v10669_v29, %v5156_v43 }
 0x6ef   : > { %v5158_v47 = vsel %vm4958_vm15, %v5047_v20, %v5157_v23 }
 0x701   : > { %v10598_v46 = vpop.xlane.xlu1 %4612 }
 0x702   : > { %v4939_v25 = vrot.slane %v10598_v46, %v10576_v6  ;;  %v5401_v46 = vld [vmem:[%s11548_s7 + $0x130] sm:$0x1f] }
 0x703   : > { %7483 = vmatprep.subr.msk.mxu1 %vm5409_vm5, %v5401_v46 }
 0x704   : > { %7484 = vmatpush3.msk.msra.mxu1 %vm5409_vm5, %v5401_v46 }
 0x705   : > { %v10615_v11 = vpop.xlane.xlu1 %4660  ;;  %v10617_v52 = vpop.xlane.xlu0 %4615 }
 0x706   : > { %v4943_v1 = vrot.slane %v10617_v52, %v10571_v28  ;;  %v5055_v52 = vrot.slane %v4729_v39, %v10571_v28  ;;  %v4732_v42 = vmul.f32 0.125, %v10615_v11  ;;  %v5064_v11 = vrot.slane %v4731_v31, %v10571_v28  ;;  %v5391_v31 = vld [vmem:[%s11548_s7 + $0xe0] sm:$0xff] }
 0x708   : > { %v4944_v0 = vsel %vm4817_vm3, %v4943_v1, %v4939_v25  ;;  %v5069_v56 = vrot.slane %v4732_v42, %v10576_v6  ;;  %v5065_v39 = vsel %vm4817_vm3, %v5064_v11, %v5060_v57  ;;  %v4739_v25 = vmul.f32 0.125, %v10573_v51  ;;  %v5374_v51 = vld [vmem:[%s11548_s7 + $0x58] sm:$0xff]  ;;  %v5373_v57 = vld [vmem:[%s11548_s7 + $0x50] sm:$0xff] }
 0x709   : > { %v10643_v63 = vpop.xlane.xlu1 %4684  ;;  %v4664_v18 = vpop.xlane.xlu0 %4663  ;;  %v4973_v34 = vsel %vm4964_vm8, %v4944_v0, %v4972_v32  ;;  %v5390_v0 = vld [vmem:[%s11548_s7 + $0xd8] sm:$0xff] }
 0x70a   : > { %v4733_v9 = vmul.f32 0.125, %v4664_v18  ;;  %v5377_v18 = vld [vmem:[%s11548_s7 + $0x70] sm:$0xff] }
 0x70b   : > { %7355 = vmatpush3.msra.mxu0 %v5377_v18 }
 0x70c   : > { %v5073_v3 = vrot.slane %v4733_v9, %v10571_v28  ;;  %7356 = vmatprep.subr.mxu0 %v5392_v58  ;;  %v4737_v9 = vmul.f32 0.125, %v10564_v12  ;;  %v4740_v12 = vmul.f32 0.125, %v10643_v63 }
 0x70d   : > { %v4571_v35 = vpop.xlane.xlu1 %4570  ;;  %v10666_v5 = vpop.xlane.xlu0 %4687  ;;  %7357 = vmatpush3.msra.mxu0 %v5376_v41 }
 0x70e   : > { %v4876_v10 = vrot.slane %v4571_v35, %v10576_v6  ;;  %v5056_v35 = vsel %vm4817_vm3, %v5055_v52, %v5051_v2  ;;  %v5074_v24 = vsel %vm4817_vm3, %v5073_v3, %v5069_v56  ;;  %7358 = vmatprep.subr.mxu0 %v5391_v31  ;;  %v4741_v21 = vmul.f32 0.125, %v10666_v5  ;;  %v5389_v3 = vld [vmem:[%s11548_s7 + $0xd0] sm:$0xff] }
 0x70f   : > { %v5159_v49 = vsel %vm4960_vm1, %v5056_v35, %v5158_v47  ;;  %v5091_v11 = vrot.slane %v4737_v9, %v10571_v28  ;;  %v11717_v47 = vld [vmem:[#allocation45_spill] sm:$0xff] }
 0x710   : > { %v5160_v20 = vsel %vm4962_vm2, %v5065_v39, %v5159_v49 }
 0x711   : > { %v4619_v62 = vpop.xlane.xlu1 %4618  ;;  %v4574_v4 = vpop.xlane.xlu0 %4573  ;;  %v5161_v1 = vsel %vm4964_vm8, %v5074_v24, %v5160_v20  ;;  %v11718_v24 = vld [vmem:[#allocation44_spill] sm:$0xff]  ;;  %v5372_v20 = vld [vmem:[%s11548_s7 + $0x48] sm:$0xff] }
 0x712   : > { %v4880_v50 = vrot.slane %v4574_v4, %v10571_v28  ;;  %v4948_v13 = vrot.slane %v4619_v62, %v10576_v6  ;;  %v11719_v58 = vmax.f32 %v11717_v47, %v11718_v24  ;;  %v5365_v47 = vld [vmem:[%s11548_s7 + $0x10] sm:$0xff]  ;;  %v5380_v24 = vld [vmem:[%s11548_s7 + $0x88] sm:$0xff] }
 0x714   : > { %v4881_v59 = vsel %vm4817_vm3, %v4880_v50, %v4876_v10  ;;  %v5400_v10 = vld [vmem:[%s11548_s7 + $0x128] sm:$0xff]  ;;  %v5375_v50 = vld [vmem:[%s11548_s7 + $0x60] sm:$0xff] }
 0x715   : > { %v4967_v53 = vsel %vm4966_vm9, %v4881_v59, %v4965_v19  ;;  %v4667_v55 = vpop.xlane.xlu1 %4666  ;;  %v4622_v45 = vpop.xlane.xlu0 %4621  ;;  %7485 = vmatprep.subr.mxu1 %v5400_v10  ;;  %7359 = vmatpush3.msra.mxu0 %v5375_v50  ;;  %v5636_v19 = vmul.f32 0.0625, %v11716_v26  ;;  %v4738_v59 = vmul.f32 0.125, %v10566_v27  ;;  %v5100_v27 = vrot.slane %v4739_v25, %v10571_v28  ;;  %v11720_v25 = vld [vmem:[#allocation46_spill] sm:$0xff] }
 0x716   : > { %4978 = vst.msk [vmem:[#allocation4 + $0x3] sm:$0xff] %vm4977_vm4, %v4967_v53  ;;  %v4952_v60 = vrot.slane %v4622_v45, %v10571_v28  ;;  %v4734_v16 = vmul.f32 0.125, %v4667_v55  ;;  %7486 = vmatpush3.msra.mxu1 %v5400_v10  ;;  %v4736_v55 = vmul.f32 0.125, %v10562_v48  ;;  %7360 = vmatprep.subr.mxu0 %v5390_v0  ;;  %v5637_v9 = vmul.f32 0.0625, %v11720_v25  ;;  %v5370_v0 = vld [vmem:[%s11548_s7 + $0x38] sm:$0xff] }
 0x717   : > { %7361 = vmatpush3.msra.mxu0 %v5374_v51  ;;  %v5096_v63 = vrot.slane %v4738_v59, %v10576_v6  ;;  %v5385_v51 = vld [vmem:[%s11548_s7 + $0xb0] sm:$0xff] }
 0x718   : > { %v4953_v33 = vsel %vm4817_vm3, %v4952_v60, %v4948_v13  ;;  %v5078_v29 = vrot.slane %v4734_v16, %v10576_v6  ;;  %v5109_v13 = vrot.slane %v4741_v21, %v10571_v28  ;;  %v5105_v16 = vrot.slane %v4740_v12, %v10576_v6  ;;  %7362 = vmatprep.subr.mxu0 %v5389_v3 }
 0x719   : > { %v4974_v36 = vsel %vm4966_vm9, %v4953_v33, %v4973_v34  ;;  %v4691_v54 = vpop.xlane.xlu1 %4690  ;;  %v4670_v61 = vpop.xlane.xlu0 %4669  ;;  %v5087_v34 = vrot.slane %v4736_v55, %v10576_v6  ;;  %7363 = vmatpush3.msra.mxu0 %v5373_v57  ;;  %v5367_v57 = vld [vmem:[%s11548_s7 + $0x20] sm:$0xff] }
 0x71a   : > { %4979 = vst.msk [vmem:[#allocation4 + $0xb] sm:$0xff] %vm4977_vm4, %v4974_v36  ;;  %v4735_v40 = vmul.f32 0.125, %v4670_v61  ;;  %v4742_v7 = vmul.f32 0.125, %v4691_v54  ;;  %v5399_v36 = vld [vmem:[%s11548_s7 + $0x120] sm:$0xff]  ;;  %v5388_v54 = vld [vmem:[%s11548_s7 + $0xc8] sm:$0xff]  ;;  %v5101_v61 = vsel %vm4817_vm3, %v5100_v27, %v5096_v63  ;;  %v5110_v49 = vsel %vm4817_vm3, %v5109_v13, %v5105_v16 }
 0x71b   : > { %v5092_v41 = vsel %vm4817_vm3, %v5091_v11, %v5087_v34  ;;  %7487 = vmatprep.subr.mxu1 %v5399_v36  ;;  %7364 = vmatprep.subr.mxu0 %v5388_v54  ;;  %v5384_v11 = vld [vmem:[%s11548_s7 + $0xa8] sm:$0xff]  ;;  %v5383_v63 = vld [vmem:[%s11548_s7 + $0xa0] sm:$0xff]  ;;  %v5382_v34 = vld [vmem:[%s11548_s7 + $0x98] sm:$0xff] }
 0x71c   : > { %v5082_v30 = vrot.slane %v4735_v40, %v10571_v28  ;;  %v5114_v23 = vrot.slane %v4742_v7, %v10576_v6  ;;  %7488 = vmatpush3.msra.mxu1 %v5399_v36  ;;  %7365 = vmatpush3.msra.mxu0 %v5372_v20 }
 0x71d   : > { %v4697_v17 = vpop.xlane.xlu1 %4696  ;;  %v4694_v15 = vpop.xlane.xlu0 %4693  ;;  %v5175_v4 = vld [vmem:[#allocation4] sm:$0xff] }
 0x71e   : > { %v5083_v62 = vsel %vm4817_vm3, %v5082_v30, %v5078_v29  ;;  %5178 = vst.msk [vmem:[#allocation7] sm:$0xff] %vm5177_vm6, %v5175_v4  ;;  %v4743_v42 = vmul.f32 0.125, %v4694_v15  ;;  %v4744_v48 = vmul.f32 0.125, %v4697_v17  ;;  %v5180_v30 = vld [vmem:[#allocation4 + $0x1] sm:$0xff]  ;;  %v5387_v17 = vld [vmem:[%s11548_s7 + $0xc0] sm:$0xff] }
 0x71f   : > { %v5162_v38 = vsel %vm4966_vm9, %v5083_v62, %v5161_v1  ;;  %7366 = vmatprep.subr.mxu0 %v5387_v17  ;;  %v5193_v27 = vld [vmem:[#allocation4 + $0x2] sm:$0xff] }
 0x720   : > { %5173 = vst.msk [vmem:[#allocation4 + $0x1b] sm:$0xff] %vm4977_vm4, %v5162_v38  ;;  %v5118_v2 = vrot.slane %v4743_v42, %v10571_v28  ;;  %v5123_v29 = vrot.slane %v4744_v48, %v10576_v6  ;;  %v5163_v38 = vsel %vm4954_vm13, %v5101_v61, %v5092_v41  ;;  %vm5681_vm13 = vcmask 113664  }
 0x721   : > { %v4703_v37 = vpop.xlane.xlu1 %4702  ;;  %v4700_v44 = vpop.xlane.xlu0 %4699  ;;  %v5248_v52 = vld [vmem:[#allocation4 + $0x6] sm:$0xff]  ;;  %v5164_v21 = vsel %vm4956_vm14, %v5110_v49, %v5163_v38  ;;  %v5364_v49 = vld [vmem:[%s11548_s7 + $0x8] sm:$0xff]  ;;  %vm5244_vm14 = vcmask 31744  }
 0x722   : > { %v5232_v8 = vld [vmem:[#allocation4 + $0x5] sm:$0xff]  ;;  %5252 = vrot.lane.b32.xlu0 %v5248_v52, %s7626_s20  ;;  %v4745_v45 = vmul.f32 0.125, %v4700_v44  ;;  %v4746_v32 = vmul.f32 0.125, %v4703_v37  ;;  %v5119_v15 = vsel %vm4817_vm3, %v5118_v2, %v5114_v23  ;;  %v5371_v52 = vld [vmem:[%s11548_s7 + $0x40] sm:$0xff] }
 0x723   : > { %5236 = vrot.lane.b32.xlu1 %v5232_v8, %s7627_s21  ;;  %v5176_v53 = vld [vmem:[#allocation4 + $0x8] sm:$0xff]  ;;  %v5165_v59 = vsel %vm4958_vm15, %v5119_v15, %v5164_v21  ;;  %7367 = vmatpush3.msra.mxu0 %v5371_v52  ;;  %v5396_v15 = vld [vmem:[%s11548_s7 + $0x108] sm:$0xff]  ;;  %vm5258_vm15 = vcmask 212000  }
 0x724   : > { %5179 = vst.msk [vmem:[#allocation7 + $0x18] sm:$0xff] %vm5177_vm6, %v5176_v53  ;;  %v5127_v33 = vrot.slane %v4745_v45, %v10571_v28  ;;  %v5132_v1 = vrot.slane %v4746_v32, %v10576_v6  ;;  %v5386_v8 = vld [vmem:[%s11548_s7 + $0xb8] sm:$0xff]  ;;  %vm5323_vm6 = vcmask 1048464  }
 0x725   : > { %v4709_v5 = vpop.xlane.xlu1 %4708  ;;  %v4706_v46 = vpop.xlane.xlu0 %4705  ;;  %7368 = vmatprep.subr.mxu0 %v5386_v8  ;;  %v5233_v48 = vld [vmem:[#allocation4 + $0xd] sm:$0xff]  ;;  %v5219_v54 = vld [vmem:[#allocation4 + $0x4] sm:$0xff] }
 0x726   : > { %v4747_v18 = vmul.f32 0.125, %v4706_v46  ;;  %v4748_v43 = vmul.f32 0.125, %v4709_v5  ;;  %v5128_v31 = vsel %vm4817_vm3, %v5127_v33, %v5123_v29  ;;  %7369 = vmatpush3.msra.mxu0 %v5370_v0  ;;  %v5206_v33 = vld [vmem:[#allocation4 + $0x3] sm:$0xff]  ;;  %v5379_v29 = vld [vmem:[%s11548_s7 + $0x80] sm:$0xff] }
 0x727   : > { %5670 = vrot.lane.b32.xlu1 %v5636_v19, %s7625_s25  ;;  %v5261_v60 = vld [vmem:[#allocation4 + $0x18] sm:$0xff]  ;;  %v5166_v53 = vsel %vm4960_vm1, %v5128_v31, %v5165_v59  ;;  %7370 = vmatprep.subr.mxu0 %v5385_v51  ;;  %v5194_v41 = vld [vmem:[#allocation4 + $0xa] sm:$0xff]  ;;  %vm5271_vm1 = vcmask 392400  }
 0x728   : > { %5265 = vrot.lane.b32.xlu0 %v5261_v60, %s11616_s30  ;;  %v5136_v39 = vrot.slane %v4747_v18, %v10571_v28  ;;  %v5141_v10 = vrot.slane %v4748_v43, %v10576_v6  ;;  %v5274_v44 = vld [vmem:[#allocation4 + $0x19] sm:$0xff]  ;;  %v5366_v43 = vld [vmem:[%s11548_s7 + $0x18] sm:$0xff] }
 0x729   : > { %v4715_v35 = vpop.xlane.xlu1 %4714  ;;  %v4712_v56 = vpop.xlane.xlu0 %4711  ;;  %v5368_v60 = vld [vmem:[%s11548_s7 + $0x28] sm:$0xff]  ;;  %v5220_v31 = vld [vmem:[#allocation4 + $0xc] sm:$0xff] }
 0x72a   : > { %v4749_v40 = vmul.f32 0.125, %v4712_v56  ;;  %v4750_v62 = vmul.f32 0.125, %v4715_v35  ;;  %v5137_v26 = vsel %vm4817_vm3, %v5136_v39, %v5132_v1  ;;  %v5287_v3 = vld [vmem:[#allocation4 + $0x1a] sm:$0xff]  ;;  %v5249_v56 = vld [vmem:[#allocation4 + $0xe] sm:$0xff] }
 0x72b   : > { %5661 = vrot.lane.b32.xlu1 %v11719_v58, %s7625_s25  ;;  %v5167_v45 = vsel %vm4962_vm2, %v5137_v26, %v5166_v53  ;;  %v5381_v35 = vld [vmem:[%s11548_s7 + $0x90] sm:$0xff]  ;;  %v5181_v39 = vld [vmem:[#allocation4 + $0x9] sm:$0xff]  ;;  %vm5190_vm2 = vcmask 359600  }
 0x72c   : > { %v5145_v4 = vrot.slane %v4749_v40, %v10571_v28  ;;  %5184 = vrot.lane.b32.xlu0 %v5180_v30, %s7629_s26  ;;  %v5150_v55 = vrot.slane %v4750_v62, %v10576_v6  ;;  %v5398_v6 = vld [vmem:[%s11548_s7 + $0x118] sm:$0xff]  ;;  %v5300_v36 = vld [vmem:[#allocation4 + $0x1b] sm:$0xff]  ;;  %v5363_v30 = vld [vmem:[%s11548_s7] sm:$0xff] }
 0x72d   : > { %v6272_v50 = vpop.permute.xlu1 %6271  ;;  %v4718_v37 = vpop.xlane.xlu0 %4717  ;;  %7489 = vmatprep.subr.mxu1 %v5398_v6  ;;  %v5397_v58 = vld [vmem:[%s11548_s7 + $0x110] sm:$0xff]  ;;  %v5207_v62 = vld [vmem:[#allocation4 + $0xb] sm:$0xff] }
 0x72e   : > { %6277 = vst.msk [vmem:[#allocation6 + $0x3] sm:$0xff] %vm5665_vm7, %v6272_v50  ;;  %v4751_v19 = vmul.f32 0.125, %v4718_v37  ;;  %v5146_v42 = vsel %vm4817_vm3, %v5145_v4, %v5141_v10  ;;  %7490 = vmatpush3.msra.mxu1 %v5398_v6  ;;  %v5395_v4 = vld [vmem:[%s11548_s7 + $0x100] sm:$0xff] }
 0x72f   : > { %5278 = vrot.lane.b32.xlu1 %v5274_v44, %s7622_s29  ;;  %v5168_v7 = vsel %vm4964_vm8, %v5146_v42, %v5167_v45  ;;  %7491 = vmatprep.subr.mxu1 %v5397_v58  ;;  %vm5284_vm8 = vcmask 572800  }
 0x730   : > { %v5154_v12 = vrot.slane %v4751_v19, %v10571_v28  ;;  %5672 = vrot.lane.b32.xlu0 %v5637_v9, %s7625_s25  ;;  %v5369_v28 = vld [vmem:[%s11548_s7 + $0x30] sm:$0xff]  ;;  %s7632_s25 = smov 66   ;;  %7492 = vmatpush3.msra.mxu1 %v5397_v58 }
 0x731   : > { %v6310_v5 = vpop.permute.xlu0 %6309  ;;  %v6274_v46 = vpop.permute.xlu1 %6273  ;;  %7371 = vmatpush3.msra.mxu0 %v5369_v28  ;;  %7493 = vmatprep.subr.mxu1 %v5396_v15 }
 0x732   : > { %v5155_v18 = vsel %vm4817_vm3, %v5154_v12, %v5150_v55  ;;  %6316 = vst.msk [vmem:[#allocation6 + $0x1b] sm:$0xff] %vm5665_vm7, %v6310_v5  ;;  %6278 = vst.msk [vmem:[#allocation6 + $0xb] sm:$0xff] %vm5665_vm7, %v6274_v46  ;;  %7372 = vmatprep.subr.mxu0 %v5384_v11  ;;  %7494 = vmatpush3.msra.mxu1 %v5396_v15  ;;  %vm5229_vm3 = vcmask 900800  }
 0x733   : > { %5197 = vrot.lane.b32.xlu1 %v5193_v27, %s7630_s11  ;;  %v5169_v13 = vsel %vm4966_vm9, %v5155_v18, %v5168_v7  ;;  %7373 = vmatpush3.msra.mxu0 %v5368_v60  ;;  %vm5203_vm9 = vcmask 540000  }
 0x734   : > { %5174 = vst.msk [vmem:[#allocation4 + $0x23] sm:$0xff] %vm4977_vm4, %v5169_v13  ;;  %5238 = vrot.lane.b32.xlu0 %v5233_v48, %s7627_s21  ;;  %7374 = vmatprep.subr.mxu0 %v5383_v63  ;;  %s7635_s21 = smov 114   ;;  %vm5242_vm4 = vcmask 1048432  }
 0x735   : > { %v5660_v2 = vpop.permute.xlu0 %5659  ;;  %v6312_v32 = vpop.permute.xlu1 %6311  ;;  %v6318_v16 = vld [vmem:[#allocation6] sm:$0xff]  ;;  %7375 = vmatpush3.msra.mxu0 %v5367_v57  ;;  %7495 = vmatprep.subr.mxu1 %v5395_v4 }
 0x736   : > { %5666 = vst.msk [vmem:[#allocation5 + $0x3] sm:$0xff] %vm5665_vm7, %v5660_v2  ;;  %6317 = vst.msk [vmem:[#allocation6 + $0x23] sm:$0xff] %vm5665_vm7, %v6312_v32  ;;  %7376 = vmatprep.subr.mxu0 %v5382_v34  ;;  %7496 = vmatpush3.msra.mxu1 %v5395_v4  ;;  %v6322_v8 = vld [vmem:[#allocation6 + $0x1] sm:$0xff] }
 0x737   : > { %5291 = vrot.lane.b32.xlu1 %v5287_v3, %s7631_s18  ;;  %6320 = vst.msk [vmem:[#allocation9] sm:$0xff] %vm5681_vm13, %v6318_v16  ;;  %7377 = vmatpush3.msra.mxu0 %v5366_v43  ;;  %v6334_v25 = vld [vmem:[#allocation6 + $0x2] sm:$0xff] }
 0x738   : > { %5210 = vrot.lane.b32.xlu0 %v5206_v33, %s7632_s25  ;;  %7378 = vmatprep.subr.mxu0 %v5381_v35  ;;  %v6346_v9 = vld [vmem:[#allocation6 + $0x3] sm:$0xff] }
 0x739   : > { %7379 = vmatpush3.msra.mxu0 %v5365_v47  ;;  %v6319_v20 = vld [vmem:[#allocation6 + $0x8] sm:$0xff]  ;;  %6520 = vmatprep.subr.mxu1 %v11712_v22  ;;  %v6418_v21 = vld [vmem:[#allocation6 + $0x1a] sm:$0xff] }
 0x73a   : > { %7380 = vmatprep.subr.mxu0 %v5380_v24  ;;  %6321 = vst.msk [vmem:[#allocation9 + $0x10] sm:$0xff] %vm5681_vm13, %v6319_v20  ;;  %v6358_v26 = vld [vmem:[#allocation6 + $0x4] sm:$0xff]  ;;  %v6432_v19 = vld [vmem:[#allocation6 + $0x1b] sm:$0xff]  ;;  %v6359_v27 = vld [vmem:[#allocation6 + $0xc] sm:$0xff] }
 0x73b   : > { %5254 = vrot.lane.b32.xlu1 %v5249_v56, %s7626_s20  ;;  %v5262_v61 = vld [vmem:[#allocation4 + $0x20] sm:$0xff]  ;;  %7381 = vmatpush3.msra.mxu0 %v5364_v49  ;;  %v6323_v59 = vld [vmem:[#allocation6 + $0x9] sm:$0xff]  ;;  %s11724_s20 = smov 40   ;;  %v6394_v45 = vld [vmem:[#allocation6 + $0x18] sm:$0xff] }
 0x73c   : > { %5304 = vrot.lane.b32.xlu0 %v5300_v36, %s7633_s28  ;;  %v5313_v23 = vld [vmem:[#allocation4 + $0x1c] sm:$0xff]  ;;  %7382 = vmatprep.subr.mxu0 %v5379_v29  ;;  %v5314_v10 = vld [vmem:[#allocation4 + $0x24] sm:$0xff]  ;;  %v6371_v28 = vld [vmem:[#allocation6 + $0xd] sm:$0xff] }
 0x73d   : > { %v5275_v40 = vld [vmem:[#allocation4 + $0x21] sm:$0xff]  ;;  %v5679_v17 = vld [vmem:[#allocation5] sm:$0xff]  ;;  %7383 = vmatpush3.msra.mxu0 %v5363_v30  ;;  %v6406_v7 = vld [vmem:[#allocation6 + $0x19] sm:$0xff] }
 0x73e   : > { %5682 = vst.msk [vmem:[#allocation8] sm:$0xff] %vm5681_vm13, %v5679_v17  ;;  %v5288_v1 = vld [vmem:[#allocation4 + $0x22] sm:$0xff]  ;;  %5898 = vmatprep.subr.mxu0 %v11712_v22  ;;  %v6335_v51 = vld [vmem:[#allocation6 + $0xa] sm:$0xff]  ;;  %v5697_v2 = vld [vmem:[#allocation5 + $0x2] sm:$0xff] }
 0x73f   : > { %5223 = vrot.lane.b32.xlu1 %v5219_v54, %s7634_s22  ;;  %v5301_v38 = vld [vmem:[#allocation4 + $0x23] sm:$0xff]  ;;  %v6347_v12 = vld [vmem:[#allocation6 + $0xb] sm:$0xff]  ;;  %v5710_v3 = vld [vmem:[#allocation5 + $0x3] sm:$0xff] }
 0x740   : > { %5267 = vrot.lane.b32.xlu0 %v5262_v61, %s11616_s30  ;;  %v5328_v50 = vld [vmem:[#allocation4 + $0x1d] sm:$0xff]  ;;  %s11721_s30 = smov 8   ;;  %v5329_v37 = vld [vmem:[#allocation4 + $0x25] sm:$0xff]  ;;  %v6383_v11 = vld [vmem:[#allocation6 + $0xe] sm:$0xff] }
 0x741   : > { %v5341_v44 = vld [vmem:[#allocation4 + $0x1e] sm:$0xff]  ;;  %v5342_v52 = vld [vmem:[#allocation4 + $0x26] sm:$0xff]  ;;  %v5684_v48 = vld [vmem:[#allocation5 + $0x1] sm:$0xff] }
 0x742   : > { %v6370_v42 = vld [vmem:[#allocation6 + $0x5] sm:$0xff]  ;;  %v6444_v0 = vld [vmem:[#allocation6 + $0x1c] sm:$0xff] }
 0x743   : > { %5317 = vrot.lane.b32.xlu1 %v5313_v23, %s7635_s21  ;;  %v6382_v53 = vld [vmem:[#allocation6 + $0x6] sm:$0xff]  ;;  %v6456_v55 = vld [vmem:[#allocation6 + $0x1d] sm:$0xff] }
 0x744   : > { %5186 = vrot.lane.b32.xlu0 %v5181_v39, %s7629_s26  ;;  %s7642_s26 = smov 84   ;;  %v6419_v5 = vld [vmem:[#allocation6 + $0x22] sm:$0xff] }
 0x745   : > { %v6468_v46 = vld [vmem:[#allocation6 + $0x1e] sm:$0xff]  ;;  %v6469_v63 = vld [vmem:[#allocation6 + $0x26] sm:$0xff] }
 0x746   : > { %v6433_v18 = vld [vmem:[#allocation6 + $0x23] sm:$0xff] }
 0x747   : > { %5280 = vrot.lane.b32.xlu1 %v5275_v40, %s7622_s29  ;;  %s7644_s29 = smov 54   ;;  %v6445_v6 = vld [vmem:[#allocation6 + $0x24] sm:$0xff] }
 0x748   : > { %5199 = vrot.lane.b32.xlu0 %v5194_v41, %s7630_s11  ;;  %s7636_s11 = smov 30   ;;  %v6457_v13 = vld [vmem:[#allocation6 + $0x25] sm:$0xff] }
 0x749   : > { %v6395_v60 = vld [vmem:[#allocation6 + $0x20] sm:$0xff] }
 0x74a   : > { %v6407_v32 = vld [vmem:[#allocation6 + $0x21] sm:$0xff] }
 0x74b   : > { %5293 = vrot.lane.b32.xlu1 %v5288_v1, %s7631_s18 }
 0x74c   : > { %5212 = vrot.lane.b32.xlu0 %v5207_v62, %s7632_s25  ;;  %s7637_s25 = smov 14  }
 0x74f   : > { %5306 = vrot.lane.b32.xlu1 %v5301_v38, %s7633_s28  ;;  %s7638_s28 = smov 28  }
 0x750   : > { %5225 = vrot.lane.b32.xlu0 %v5220_v31, %s7634_s22  ;;  %s7639_s22 = smov 42  }
 0x753   : > { %5319 = vrot.lane.b32.xlu1 %v5314_v10, %s7635_s21  ;;  %s7640_s21 = smov 126  }
 0x754   : > { %5332 = vrot.lane.b32.xlu0 %v5328_v50, %s11721_s30 }
 0x757   : > { %5334 = vrot.lane.b32.xlu1 %v5329_v37, %s11721_s30 }
 0x758   : > { %5345 = vrot.lane.b32.xlu0 %v5341_v44, %s7636_s11 }
 0x75b   : > { %5347 = vrot.lane.b32.xlu1 %v5342_v52, %s7636_s11 }
 0x75c   : > { %6326 = vrot.lane.b32.xlu0 %v6322_v8, %s7637_s25 }
 0x75f   : > { %6338 = vrot.lane.b32.xlu1 %v6334_v25, %s7638_s28 }
 0x760   : > { %6350 = vrot.lane.b32.xlu0 %v6346_v9, %s7639_s22 }
 0x763   : > { %6422 = vrot.lane.b32.xlu1 %v6418_v21, %s7640_s21 }
 0x764   : > { %6362 = vrot.lane.b32.xlu0 %v6358_v26, %s11722_s16 }
 0x767   : > { %6436 = vrot.lane.b32.xlu1 %v6432_v19, %s7641_s17  ;;  %v5878_v19 = vld [vmem:[%s11549_s8 + $0x78] sm:$0xff] }
 0x768   : > { %6328 = vrot.lane.b32.xlu0 %v6323_v59, %s7637_s25 }
 0x76b   : > { %6374 = vrot.lane.b32.xlu1 %v6370_v42, %s7631_s18 }
 0x76c   : > { %6448 = vrot.lane.b32.xlu0 %v6444_v0, %s11723_s27 }
 0x76f   : > { %6340 = vrot.lane.b32.xlu1 %v6335_v51, %s7638_s28 }
 0x770   : > { %6386 = vrot.lane.b32.xlu0 %v6382_v53, %s7642_s26 }
 0x773   : > { %6460 = vrot.lane.b32.xlu1 %v6456_v55, %s11724_s20  ;;  %v5877_v55 = vld [vmem:[%s11549_s8 + $0x70] sm:$0xff] }
 0x774   : > { %6352 = vrot.lane.b32.xlu0 %v6347_v12, %s7639_s22 }
 0x777   : > { %6398 = vrot.lane.b32.xlu1 %v6394_v45, %s7643_s12  ;;  %v5876_v45 = vld [vmem:[%s11549_s8 + $0x68] sm:$0xff] }
 0x778   : > { %6424 = vrot.lane.b32.xlu0 %v6419_v5, %s7640_s21 }
 0x77b   : > { %6472 = vrot.lane.b32.xlu1 %v6468_v46, %s7644_s29 }
 0x77c   : > { %6364 = vrot.lane.b32.xlu0 %v6359_v27, %s11722_s16 }
 0x77f   : > { %6410 = vrot.lane.b32.xlu1 %v6406_v7, %s7645_s15  ;;  %v5875_v7 = vld [vmem:[%s11549_s8 + $0x60] sm:$0xff] }
 0x780   : > { %6438 = vrot.lane.b32.xlu0 %v6433_v18, %s7641_s17 }
 0x783   : > { %6376 = vrot.lane.b32.xlu1 %v6371_v28, %s7631_s18 }
 0x784   : > { %6450 = vrot.lane.b32.xlu0 %v6445_v6, %s11723_s27 }
 0x787   : > { %6388 = vrot.lane.b32.xlu1 %v6383_v11, %s7642_s26 }
 0x788   : > { %6462 = vrot.lane.b32.xlu0 %v6457_v13, %s11724_s20  ;;  %v5874_v13 = vld [vmem:[%s11549_s8 + $0x58] sm:$0xff] }
 0x78b   : > { %5688 = vrot.lane.b32.xlu1 %v5684_v48, %s7637_s25 }
 0x78c   : > { %6400 = vrot.lane.b32.xlu0 %v6395_v60, %s7643_s12  ;;  %v5873_v60 = vld [vmem:[%s11549_s8 + $0x50] sm:$0xff] }
 0x78f   : > { %6474 = vrot.lane.b32.xlu1 %v6469_v63, %s7644_s29  ;;  %v7646_v63 = vmov 1.0  }
 0x790   : > { %5701 = vrot.lane.b32.xlu0 %v5697_v2, %s7638_s28 }
 0x793   : > { %6412 = vrot.lane.b32.xlu1 %v6407_v32, %s7645_s15 }
 0x794   : > { %v5253_v57 = vpop.permute.xlu0 %5252  ;;  %5714 = vrot.lane.b32.xlu0 %v5710_v3, %s7639_s22 }
 0x795   : > { %v5237_v34 = vpop.permute.xlu1 %5236 }
 0x796   : > { %5245 = vst.msk [vmem:[#allocation7 + $0x8] sm:$0xff] %vm5244_vm14, %v5237_v34 }
 0x797   : > { %5259 = vst.msk [vmem:[#allocation7 + $0x8] sm:$0xff] %vm5258_vm15, %v5253_v57 }
 0x799   : > { %v5671_v16 = vpop.permute.xlu1 %5670 }
 0x79a   : > { %5677 = vst.msk [vmem:[#allocation5 + $0x1b] sm:$0xff] %vm5665_vm7, %v5671_v16  ;;  %v5266_v33 = vpop.permute.xlu0 %5265 }
 0x79b   : > { %5272 = vst.msk [vmem:[#allocation7 + $0x8] sm:$0xff] %vm5271_vm1, %v5266_v33 }
 0x79d   : > { %v5662_v43 = vpop.permute.xlu1 %5661 }
 0x79e   : > { %5667 = vst.msk [vmem:[#allocation5 + $0xb] sm:$0xff] %vm5665_vm7, %v5662_v43  ;;  %v5185_v35 = vpop.permute.xlu0 %5184  ;;  %v5871_v43 = vld [vmem:[%s11549_s8 + $0x40] sm:$0xff] }
 0x79f   : > { %5191 = vst.msk [vmem:[#allocation7] sm:$0xff] %vm5190_vm2, %v5185_v35 }
 0x7a1   : > { %v5279_v56 = vpop.permute.xlu1 %5278  ;;  %v5788_v36 = vld [vmem:[#allocation5 + $0x1a] sm:$0xff] }
 0x7a2   : > { %5285 = vst.msk [vmem:[#allocation7 + $0x8] sm:$0xff] %vm5284_vm8, %v5279_v56  ;;  %5792 = vrot.lane.b32.xlu1 %v5788_v36, %s7640_s21  ;;  %v5673_v54 = vpop.permute.xlu0 %5672  ;;  %v5804_v23 = vld [vmem:[#allocation5 + $0x1b] sm:$0xff] }
 0x7a3   : > { %5678 = vst.msk [vmem:[#allocation5 + $0x23] sm:$0xff] %vm5665_vm7, %v5673_v54  ;;  %v5762_v31 = vld [vmem:[#allocation5 + $0x18] sm:$0xff]  ;;  %vm5338_vm7 = vcmask 244800  }
 0x7a4   : > { %v5775_v9 = vld [vmem:[#allocation5 + $0x19] sm:$0xff] }
 0x7a5   : > { %v5198_v61 = vpop.permute.xlu1 %5197  ;;  %v5723_v39 = vld [vmem:[#allocation5 + $0x4] sm:$0xff]  ;;  %v5724_v21 = vld [vmem:[#allocation5 + $0xc] sm:$0xff]  ;;  %v5870_v56 = vld [vmem:[%s11549_s8 + $0x38] sm:$0xff] }
 0x7a6   : > { %5204 = vst.msk [vmem:[#allocation7] sm:$0xff] %vm5203_vm9, %v5198_v61  ;;  %5808 = vrot.lane.b32.xlu1 %v5804_v23, %s7641_s17  ;;  %5727 = vrot.lane.b32.xlu0 %v5723_v39, %s11722_s16  ;;  %v10978_v40 = vpop.permute.xlu0 %5238  ;;  %v5680_v47 = vld [vmem:[#allocation5 + $0x8] sm:$0xff]  ;;  %v5869_v61 = vld [vmem:[%s11549_s8 + $0x30] sm:$0xff]  ;;  %v6501_v39 = vld [vmem:[%s11550_s9 + $0x78] sm:$0xff] }
 0x7a7   : > { %5247 = vst.msk [vmem:[#allocation7 + $0x20] sm:$0xff] %vm5244_vm14, %v10978_v40  ;;  %v5736_v58 = vld [vmem:[#allocation5 + $0x5] sm:$0xff]  ;;  %v5737_v51 = vld [vmem:[#allocation5 + $0xd] sm:$0xff]  ;;  %vm5354_vm14 = vcmask 433568  }
 0x7a8   : > { %v5685_v41 = vld [vmem:[#allocation5 + $0x9] sm:$0xff]  ;;  %5683 = vst.msk [vmem:[#allocation8 + $0x10] sm:$0xff] %vm5681_vm13, %v5680_v47  ;;  %vm5351_vm13 = vcmask 425200  }
 0x7a9   : > { %v5292_v24 = vpop.permute.xlu1 %5291  ;;  %v5698_v30 = vld [vmem:[#allocation5 + $0xa] sm:$0xff] }
 0x7aa   : > { %5298 = vst.msk [vmem:[#allocation7 + $0x8] sm:$0xff] %vm5297_vm10, %v5292_v24  ;;  %5740 = vrot.lane.b32.xlu1 %v5736_v58, %s7631_s18  ;;  %5690 = vrot.lane.b32.xlu0 %v5685_v41, %s7637_s25  ;;  %v5211_v49 = vpop.permute.xlu0 %5210  ;;  %v5817_v20 = vld [vmem:[#allocation5 + $0x1c] sm:$0xff]  ;;  %v5749_v62 = vld [vmem:[#allocation5 + $0x6] sm:$0xff]  ;;  %v5750_v46 = vld [vmem:[#allocation5 + $0xe] sm:$0xff] }
 0x7ab   : > { %5217 = vst.msk [vmem:[#allocation7] sm:$0xff] %vm5216_vm11, %v5211_v49  ;;  %v5830_v1 = vld [vmem:[#allocation5 + $0x1d] sm:$0xff]  ;;  %v5711_v10 = vld [vmem:[#allocation5 + $0xb] sm:$0xff] }
 0x7ac   : > { %v5843_v44 = vld [vmem:[#allocation5 + $0x1e] sm:$0xff]  ;;  %v5844_v3 = vld [vmem:[#allocation5 + $0x26] sm:$0xff]  ;;  %v6500_v58 = vld [vmem:[%s11550_s9 + $0x70] sm:$0xff] }
 0x7ad   : > { %v5255_v29 = vpop.permute.xlu1 %5254  ;;  %v5789_v52 = vld [vmem:[#allocation5 + $0x22] sm:$0xff] }
 0x7ae   : > { %5260 = vst.msk [vmem:[#allocation7 + $0x20] sm:$0xff] %vm5258_vm15, %v5255_v29  ;;  %5703 = vrot.lane.b32.xlu1 %v5698_v30, %s7638_s28  ;;  %5821 = vrot.lane.b32.xlu0 %v5817_v20, %s11723_s27  ;;  %v5305_v17 = vpop.permute.xlu0 %5304  ;;  %v5805_v53 = vld [vmem:[#allocation5 + $0x23] sm:$0xff]  ;;  %vm5694_vm15 = vcmask 228464   ;;  %v5866_v30 = vld [vmem:[%s11549_s8 + $0x18] sm:$0xff] }
 0x7af   : > { %5311 = vst.msk [vmem:[#allocation7 + $0x8] sm:$0xff] %vm5310_vm12, %v5305_v17  ;;  %v5818_v27 = vld [vmem:[#allocation5 + $0x24] sm:$0xff] }
 0x7b0   : > { %v5763_v6 = vld [vmem:[#allocation5 + $0x20] sm:$0xff]  ;;  %v5868_v47 = vld [vmem:[%s11549_s8 + $0x28] sm:$0xff] }
 0x7b1   : > { %v5224_v15 = vpop.permute.xlu1 %5223  ;;  %v5831_v11 = vld [vmem:[#allocation5 + $0x25] sm:$0xff] }
 0x7b2   : > { %5230 = vst.msk [vmem:[#allocation7] sm:$0xff] %vm5229_vm3, %v5224_v15  ;;  %5834 = vrot.lane.b32.xlu1 %v5830_v1, %s11724_s20  ;;  %5753 = vrot.lane.b32.xlu0 %v5749_v62, %s7642_s26  ;;  %v5268_v4 = vpop.permute.xlu0 %5267  ;;  %v5776_v32 = vld [vmem:[#allocation5 + $0x21] sm:$0xff]  ;;  %v5865_v15 = vld [vmem:[%s11549_s8 + $0x10] sm:$0xff]  ;;  %v6497_v62 = vld [vmem:[%s11550_s9 + $0x58] sm:$0xff] }
 0x7b3   : > { %5243 = vst.msk [vmem:[#allocation7] sm:$0xff] %vm5242_vm4, %v5237_v34  ;;  %v5872_v34 = vld [vmem:[%s11549_s8 + $0x48] sm:$0xff]  ;;  %v5867_v41 = vld [vmem:[%s11549_s8 + $0x20] sm:$0xff] }
 0x7b4   : > { %5273 = vst.msk [vmem:[#allocation7 + $0x20] sm:$0xff] %vm5271_vm1, %v5268_v4  ;;  %vm5707_vm1 = vcmask 343264   ;;  %v6499_v29 = vld [vmem:[%s11550_s9 + $0x68] sm:$0xff]  ;;  %v6498_v17 = vld [vmem:[%s11550_s9 + $0x60] sm:$0xff] }
 0x7b5   : > { %v5318_v38 = vpop.permute.xlu1 %5317  ;;  %v5864_v4 = vld [vmem:[%s11549_s8 + $0x8] sm:$0xff] }
 0x7b6   : > { %5324 = vst.msk [vmem:[#allocation7 + $0x8] sm:$0xff] %vm5323_vm6, %v5318_v38  ;;  %5766 = vrot.lane.b32.xlu1 %v5762_v31, %s7643_s12  ;;  %5716 = vrot.lane.b32.xlu0 %v5711_v10, %s7639_s22  ;;  %v5187_v50 = vpop.permute.xlu0 %5186  ;;  %v6496_v31 = vld [vmem:[%s11550_s9 + $0x50] sm:$0xff]  ;;  %v5863_v10 = vld [vmem:[%s11549_s8] sm:$0xff] }
 0x7b7   : > { %5325 = vst.msk [vmem:[#allocation7 + $0x10] sm:$0xff] %vm11622_vm0, %v5318_v38 }
 0x7b8   : > { %5192 = vst.msk [vmem:[#allocation7 + $0x18] sm:$0xff] %vm5190_vm2, %v5187_v50  ;;  %vm5720_vm2 = vcmask 458064  }
 0x7b9   : > { %v5281_v37 = vpop.permute.xlu1 %5280 }
 0x7ba   : > { %5286 = vst.msk [vmem:[#allocation7 + $0x20] sm:$0xff] %vm5284_vm8, %v5281_v37  ;;  %5847 = vrot.lane.b32.xlu1 %v5843_v44, %s7644_s29  ;;  %5794 = vrot.lane.b32.xlu0 %v5789_v52, %s7640_s21  ;;  %v5200_v8 = vpop.permute.xlu0 %5199  ;;  %v5357_v42 = vld [vmem:[#allocation7] sm:$0xff]  ;;  %vm5402_vm8 = vcmask 433152   ;;  %v6495_v37 = vld [vmem:[%s11550_s9 + $0x48] sm:$0xff] }
 0x7bb   : > { %5205 = vst.msk [vmem:[#allocation7 + $0x18] sm:$0xff] %vm5203_vm9, %v5200_v8  ;;  %vm5800_vm9 = vcmask 97280   ;;  %v5887_v44 = vld [vmem:[%s11549_s8 + $0xc0] sm:$0x1f] }
 0x7bc   : > { %v6494_v8 = vld [vmem:[%s11550_s9 + $0x40] sm:$0xff] }
 0x7bd   : > { %v5294_v25 = vpop.permute.xlu1 %5293  ;;  %v5358_v26 = vld [vmem:[#allocation7 + $0x8] sm:$0xff] }
 0x7be   : > { %5299 = vst.msk [vmem:[#allocation7 + $0x20] sm:$0xff] %vm5297_vm10, %v5294_v25  ;;  %5779 = vrot.lane.b32.xlu1 %v5775_v9, %s7645_s15  ;;  %5729 = vrot.lane.b32.xlu0 %v5724_v21, %s11722_s16  ;;  %v5213_v59 = vpop.permute.xlu0 %5212  ;;  %vm11623_vm10 = vcmask 572864   ;;  %v5886_v25 = vld [vmem:[%s11549_s8 + $0xb8] sm:$0xff] }
 0x7bf   : > { %5477 = vmatprep.mubr.f32.mxu0 %v5358_v26  ;;  %5218 = vst.msk [vmem:[#allocation7 + $0x18] sm:$0xff] %vm5216_vm11, %v5213_v59  ;;  %vm5814_vm11 = vcmask 212064   ;;  %v6493_v21 = vld [vmem:[%s11550_s9 + $0x38] sm:$0xff]  ;;  %v5885_v26 = vld [vmem:[%s11549_s8 + $0xb0] sm:$0xff] }
 0x7c0   : > { %5478 = vmatmul.mubr.f32.vlgmr.msra.gmra.mxu0 %v5357_v42  ;;  %v6492_v59 = vld [vmem:[%s11550_s9 + $0x30] sm:$0xff]  ;;  %v5884_v42 = vld [vmem:[%s11549_s8 + $0xa8] sm:$0xff] }
 0x7c1   : > { %v5307_v0 = vpop.permute.xlu1 %5306  ;;  %5899 = vmatpush1.msra.mxu0 %v5878_v19 }
 0x7c2   : > { %5312 = vst.msk [vmem:[#allocation7 + $0x20] sm:$0xff] %vm5310_vm12, %v5307_v0  ;;  %5742 = vrot.lane.b32.xlu1 %v5737_v51, %s7631_s18  ;;  %5810 = vrot.lane.b32.xlu0 %v5805_v53, %s7641_s17  ;;  %v5226_v12 = vpop.permute.xlu0 %5225  ;;  %vm5746_vm12 = vcmask 687664   ;;  %v6491_v51 = vld [vmem:[%s11550_s9 + $0x28] sm:$0xff]  ;;  %v5883_v53 = vld [vmem:[%s11549_s8 + $0xa0] sm:$0xff] }
 0x7c3   : > { %5900 = vmatprep.subr.mxu0 %v11712_v22  ;;  %5231 = vst.msk [vmem:[#allocation7 + $0x18] sm:$0xff] %vm5229_vm3, %v5226_v12  ;;  %vm5827_vm3 = vcmask 326864   ;;  %v6490_v12 = vld [vmem:[%s11550_s9 + $0x20] sm:$0xff] }
 0x7c4   : > { %5901 = vmatpush1.msra.mxu0 %v5877_v55  ;;  %5246 = vst.msk [vmem:[#allocation7 + $0x18] sm:$0xff] %vm5242_vm4, %v10978_v40  ;;  %vm5759_vm4 = vcmask 802464  }
 0x7c5   : > { %v5320_v5 = vpop.permute.xlu1 %5319  ;;  %5902 = vmatprep.subr.mxu0 %v11712_v22 }
 0x7c6   : > { %5326 = vst.msk [vmem:[#allocation7 + $0x20] sm:$0xff] %vm5323_vm6, %v5320_v5  ;;  %5755 = vrot.lane.b32.xlu1 %v5750_v46, %s7642_s26  ;;  %5823 = vrot.lane.b32.xlu0 %v5818_v27, %s11723_s27  ;;  %v5333_v18 = vpop.permute.xlu0 %5332  ;;  %vm5840_vm6 = vcmask 441664   ;;  %v6489_v46 = vld [vmem:[%s11550_s9 + $0x18] sm:$0xff]  ;;  %v5881_v27 = vld [vmem:[%s11549_s8 + $0x90] sm:$0xff] }
 0x7c7   : > { %5327 = vst.msk [vmem:[#allocation7 + $0x28] sm:$0xff] %vm11622_vm0, %v5320_v5  ;;  %5903 = vmatpush1.msra.mxu0 %v5876_v45  ;;  %v5882_v45 = vld [vmem:[%s11549_s8 + $0x98] sm:$0xff]  ;;  %vm5798_vm0 = vcmask 1048560  }
 0x7c8   : > { %5339 = vst.msk [vmem:[#allocation7 + $0x10] sm:$0xff] %vm5338_vm7, %v5333_v18  ;;  %5904 = vmatprep.subr.mxu0 %v11712_v22  ;;  %v6488_v18 = vld [vmem:[%s11550_s9 + $0x10] sm:$0xff] }
 0x7c9   : > { %v5335_v28 = vpop.permute.xlu1 %5334  ;;  %5905 = vmatpush1.msra.mxu0 %v5875_v7 }
 0x7ca   : > { %5340 = vst.msk [vmem:[#allocation7 + $0x28] sm:$0xff] %vm5338_vm7, %v5335_v28  ;;  %5768 = vrot.lane.b32.xlu1 %v5763_v6, %s7643_s12  ;;  %5836 = vrot.lane.b32.xlu0 %v5831_v11, %s11724_s20  ;;  %v5346_v48 = vpop.permute.xlu0 %5345  ;;  %vm5772_vm7 = vcmask 917264   ;;  %v5880_v28 = vld [vmem:[%s11549_s8 + $0x88] sm:$0xff] }
 0x7cb   : > { %5906 = vmatprep.subr.mxu0 %v11712_v22  ;;  %5352 = vst.msk [vmem:[#allocation7 + $0x10] sm:$0xff] %vm5351_vm13, %v5346_v48  ;;  %v5360_v33 = vld [vmem:[#allocation7 + $0x18] sm:$0xff]  ;;  %v6487_v11 = vld [vmem:[%s11550_s9 + $0x8] sm:$0xff] }
 0x7cc   : > { %5907 = vmatpush1.msra.mxu0 %v5874_v13  ;;  %5355 = vst.msk [vmem:[#allocation7 + $0x10] sm:$0xff] %vm5354_vm14, %v7646_v63  ;;  %v5879_v13 = vld [vmem:[%s11549_s8 + $0x80] sm:$0xff] }
 0x7cd   : > { %v5348_v2 = vpop.permute.xlu1 %5347  ;;  %v5361_v57 = vld [vmem:[#allocation7 + $0x20] sm:$0xff]  ;;  %5908 = vmatprep.subr.mxu0 %v11712_v22 }
 0x7ce   : > { %5353 = vst.msk [vmem:[#allocation7 + $0x28] sm:$0xff] %vm5351_vm13, %v5348_v2  ;;  %5781 = vrot.lane.b32.xlu1 %v5776_v32, %s7645_s15  ;;  %5849 = vrot.lane.b32.xlu0 %v5844_v3, %s7644_s29  ;;  %v6327_v16 = vpop.permute.xlu0 %6326  ;;  %vm5853_vm13 = vcmask 556464   ;;  %v6510_v32 = vld [vmem:[%s11550_s9 + $0xc0] sm:$0x1f]  ;;  %s11729_s15 = sshll.u32 %s11792_s14, 8 }
 0x7cf   : > { %5356 = vst.msk [vmem:[#allocation7 + $0x28] sm:$0xff] %vm5354_vm14, %v7646_v63  ;;  %5482 = vmatprep.mubr.f32.mxu0 %v5361_v57  ;;  %5909 = vmatpush1.msra.mxu0 %v5873_v60  ;;  %vm5856_vm14 = vcmask 564768   ;;  %v6486_v60 = vld [vmem:[%s11550_s9] sm:$0xff]  ;;  %s11347_s19 = scalar_lea.vmem %s11551_s10, %s11729_s15 }
 0x7d0   : > { %6332 = vst.msk [vmem:[#allocation9] sm:$0xff] %vm5694_vm15, %v6327_v16  ;;  %5483 = vmatmul.mubr.f32.gmra.mxu0 %v5360_v33  ;;  %5910 = vmatprep.subr.mxu0 %v11712_v22  ;;  %v6508_v33 = vld [vmem:[%s11550_s9 + $0xb0] sm:$0xff] }
 0x7d1   : > { %v6339_v35 = vpop.permute.xlu1 %6338  ;;  %5911 = vmatpush1.msra.mxu0 %v5872_v34  ;;  %v6509_v34 = vld [vmem:[%s11550_s9 + $0xb8] sm:$0xff] }
 0x7d2   : > { %6344 = vst.msk [vmem:[#allocation9] sm:$0xff] %vm5707_vm1, %v6339_v35  ;;  %5912 = vmatprep.subr.mxu0 %v11712_v22  ;;  %v6351_v36 = vpop.permute.xlu0 %6350  ;;  %v6507_v35 = vld [vmem:[%s11550_s9 + $0xa8] sm:$0xff] }
 0x7d3   : > { %5913 = vmatpush1.msra.mxu0 %v5871_v43  ;;  %6356 = vst.msk [vmem:[#allocation9] sm:$0xff] %vm5720_vm2, %v6351_v36  ;;  %v5359_v54 = vld [vmem:[#allocation7 + $0x10] sm:$0xff]  ;;  %v6506_v36 = vld [vmem:[%s11550_s9 + $0xa0] sm:$0xff] }
 0x7d4   : > { %5914 = vmatprep.subr.mxu0 %v11712_v22  ;;  %7497 = vmatprep.mubr.msk.f32.mxu1 %vm5402_vm8, %v5359_v54 }
 0x7d5   : > { %v11072_v23 = vpop.permute.xlu1 %6422  ;;  %5915 = vmatpush1.msra.mxu0 %v5870_v56 }
 0x7d6   : > { %6429 = vst.msk [vmem:[#allocation9 + $0x8] sm:$0xff] %vm5800_vm9, %v11072_v23  ;;  %v5362_v40 = vld [vmem:[#allocation7 + $0x28] sm:$0xff]  ;;  %5916 = vmatprep.subr.mxu0 %v11712_v22  ;;  %v6363_v24 = vpop.permute.xlu0 %6362 }
 0x7d7   : > { %7498 = vmatmul.mubr.msk.f32.vlgmr.msra.gmra.mxu1 %vm5402_vm8, %v5362_v40  ;;  %5917 = vmatpush1.msra.mxu0 %v5869_v61  ;;  %6368 = vst.msk [vmem:[#allocation9] sm:$0xff] %vm11623_vm10, %v6363_v24  ;;  %vm5785_vm8 = vcmask 1032064   ;;  %v6505_v61 = vld [vmem:[%s11550_s9 + $0x98] sm:$0xff] }
 0x7d8   : > { %6521 = vmatpush1.msra.mxu1 %v6501_v39  ;;  %5918 = vmatprep.subr.mxu0 %v11712_v22  ;;  %v6504_v39 = vld [vmem:[%s11550_s9 + $0x90] sm:$0xff] }
 0x7d9   : > { %6522 = vmatprep.subr.mxu1 %v11712_v22  ;;  %v6437_v49 = vpop.permute.xlu1 %6436  ;;  %5919 = vmatpush1.msra.mxu0 %v5868_v47  ;;  %v6503_v47 = vld [vmem:[%s11550_s9 + $0x88] sm:$0xff] }
 0x7da   : > { %6523 = vmatpush1.msra.mxu1 %v6500_v58  ;;  %6442 = vst.msk [vmem:[#allocation9 + $0x8] sm:$0xff] %vm5814_vm11, %v6437_v49  ;;  %5920 = vmatprep.subr.mxu0 %v11712_v22  ;;  %v6329_v20 = vpop.permute.xlu0 %6328  ;;  %v6502_v58 = vld [vmem:[%s11550_s9 + $0x80] sm:$0xff] }
 0x7db   : > { %6524 = vmatprep.subr.mxu1 %v11712_v22  ;;  %5921 = vmatpush1.msra.mxu0 %v5867_v41  ;;  %6333 = vst.msk [vmem:[#allocation9 + $0x10] sm:$0xff] %vm5694_vm15, %v6329_v20 }
 0x7dc   : > { %6525 = vmatpush1.msra.mxu1 %v6499_v29  ;;  %5922 = vmatprep.subr.mxu0 %v11712_v22 }
 0x7dd   : > { %6526 = vmatprep.subr.mxu1 %v11712_v22  ;;  %v6375_v1 = vpop.permute.xlu1 %6374  ;;  %5923 = vmatpush1.msra.mxu0 %v5866_v30 }
 0x7de   : > { %6527 = vmatpush1.msra.mxu1 %v6498_v17  ;;  %6380 = vst.msk [vmem:[#allocation9] sm:$0xff] %vm5746_vm12, %v6375_v1  ;;  %5924 = vmatprep.subr.mxu0 %v11712_v22  ;;  %v6449_v38 = vpop.permute.xlu0 %6448 }
 0x7df   : > { %6528 = vmatprep.subr.mxu1 %v11712_v22  ;;  %5925 = vmatpush1.msra.mxu0 %v5865_v15  ;;  %6454 = vst.msk [vmem:[#allocation9 + $0x8] sm:$0xff] %vm5827_vm3, %v6449_v38 }
 0x7e0   : > { %6529 = vmatpush1.msra.mxu1 %v6497_v62  ;;  %5926 = vmatprep.subr.mxu0 %v11712_v22 }
 0x7e1   : > { %6530 = vmatprep.subr.mxu1 %v11712_v22  ;;  %v6341_v50 = vpop.permute.xlu1 %6340  ;;  %5927 = vmatpush1.msra.mxu0 %v5864_v4 }
 0x7e2   : > { %6531 = vmatpush1.msra.mxu1 %v6496_v31  ;;  %6345 = vst.msk [vmem:[#allocation9 + $0x10] sm:$0xff] %vm5707_vm1, %v6341_v50  ;;  %5928 = vmatprep.subr.mxu0 %v11712_v22  ;;  %v6387_v52 = vpop.permute.xlu0 %6386 }
 0x7e3   : > { %6532 = vmatprep.subr.mxu1 %v11712_v22  ;;  %5929 = vmatpush1.msra.mxu0 %v5863_v10  ;;  %6392 = vst.msk [vmem:[#allocation9] sm:$0xff] %vm5759_vm4, %v6387_v52 }
 0x7e4   : > { %6533 = vmatpush1.msra.mxu1 %v6495_v37  ;;  %5944 = vmatprep.subr.mxu0 %v11712_v22 }
 0x7e5   : > { %6534 = vmatprep.subr.mxu1 %v11712_v22  ;;  %v6461_v9 = vpop.permute.xlu1 %6460  ;;  %7300 = vmatpush2.msk.msra.mxu0 %vm5409_vm5, %v5887_v44 }
 0x7e6   : > { %6535 = vmatpush1.msra.mxu1 %v6494_v8  ;;  %6466 = vst.msk [vmem:[#allocation9 + $0x8] sm:$0xff] %vm5840_vm6, %v6461_v9  ;;  %5946 = vmatprep.subr.mxu0 %v11712_v22  ;;  %v6353_v19 = vpop.permute.xlu0 %6352 }
 0x7e7   : > { %6536 = vmatprep.subr.mxu1 %v11712_v22  ;;  %5947 = vmatpush2.msra.mxu0 %v5886_v25  ;;  %6357 = vst.msk [vmem:[#allocation9 + $0x10] sm:$0xff] %vm5720_vm2, %v6353_v19 }
 0x7e8   : > { %6537 = vmatpush1.msra.mxu1 %v6493_v21  ;;  %5948 = vmatprep.subr.mxu0 %v11712_v22 }
 0x7e9   : > { %6538 = vmatprep.subr.mxu1 %v11712_v22  ;;  %v6399_v0 = vpop.permute.xlu1 %6398  ;;  %5949 = vmatpush2.msra.mxu0 %v5885_v26 }
 0x7ea   : > { %6539 = vmatpush1.msra.mxu1 %v6492_v59  ;;  %6404 = vst.msk [vmem:[#allocation9] sm:$0xff] %vm5772_vm7, %v6399_v0  ;;  %5950 = vmatprep.subr.mxu0 %v11712_v22  ;;  %v11176_v55 = vpop.permute.xlu0 %6424 }
 0x7eb   : > { %6540 = vmatprep.subr.mxu1 %v11712_v22  ;;  %5951 = vmatpush2.msra.mxu0 %v5884_v42  ;;  %6431 = vst.msk [vmem:[#allocation9 + $0x18] sm:$0xff] %vm5800_vm9, %v11176_v55 }
 0x7ec   : > { %6541 = vmatpush1.msra.mxu1 %v6491_v51  ;;  %5952 = vmatprep.subr.mxu0 %v11712_v22 }
 0x7ed   : > { %6542 = vmatprep.subr.mxu1 %v11712_v22  ;;  %v6473_v5 = vpop.permute.xlu1 %6472  ;;  %5953 = vmatpush2.msra.mxu0 %v5883_v53 }
 0x7ee   : > { %6543 = vmatpush1.msra.mxu1 %v6490_v12  ;;  %6478 = vst.msk [vmem:[#allocation9 + $0x8] sm:$0xff] %vm5853_vm13, %v6473_v5  ;;  %5954 = vmatprep.subr.mxu0 %v11712_v22  ;;  %v6365_v7 = vpop.permute.xlu0 %6364 }
 0x7ef   : > { %6480 = vst.msk [vmem:[#allocation9 + $0x8] sm:$0xff] %vm5856_vm14, %v7646_v63  ;;  %6544 = vmatprep.subr.mxu1 %v11712_v22  ;;  %5955 = vmatpush2.msra.mxu0 %v5882_v45 }
 0x7f0   : > { %6369 = vst.msk [vmem:[#allocation9 + $0x10] sm:$0xff] %vm11623_vm10, %v6365_v7  ;;  %6545 = vmatpush1.msra.mxu1 %v6489_v46  ;;  %5956 = vmatprep.subr.mxu0 %v11712_v22  ;;  %vm5888_vm10 = vcmask 564224  }
 0x7f1   : > { %6546 = vmatprep.subr.mxu1 %v11712_v22  ;;  %v6411_v6 = vpop.permute.xlu1 %6410  ;;  %5957 = vmatpush2.msra.mxu0 %v5881_v27 }
 0x7f2   : > { %6547 = vmatpush1.msra.mxu1 %v6488_v18  ;;  %6416 = vst.msk [vmem:[#allocation9] sm:$0xff] %vm5785_vm8, %v6411_v6  ;;  %5958 = vmatprep.subr.mxu0 %v11712_v22  ;;  %v6439_v48 = vpop.permute.xlu0 %6438 }
 0x7f3   : > { %6428 = vst.msk [vmem:[#allocation9] sm:$0xff] %vm5798_vm0, %v11072_v23  ;;  %6548 = vmatprep.subr.mxu1 %v11712_v22  ;;  %5959 = vmatpush2.msra.mxu0 %v5880_v28 }
 0x7f4   : > { %6443 = vst.msk [vmem:[#allocation9 + $0x18] sm:$0xff] %vm5814_vm11, %v6439_v48  ;;  %6549 = vmatpush1.msra.mxu1 %v6487_v11  ;;  %5960 = vmatprep.subr.mxu0 %v11712_v22 }
 0x7f5   : > { %6550 = vmatprep.subr.mxu1 %v11712_v22  ;;  %v6377_v2 = vpop.permute.xlu1 %6376  ;;  %5961 = vmatpush2.msra.mxu0 %v5879_v13 }
 0x7f6   : > { %6551 = vmatpush1.msra.mxu1 %v6486_v60  ;;  %6381 = vst.msk [vmem:[#allocation9 + $0x10] sm:$0xff] %vm5746_vm12, %v6377_v2  ;;  %v6483_v3 = vld [vmem:[#allocation9 + $0x8] sm:$0xff]  ;;  %v6451_v57 = vpop.permute.xlu0 %6450 }
 0x7f7   : > { %6566 = vmatprep.subr.mxu1 %v11712_v22  ;;  %7304 = vmatprep.mubr.msk.f32.mxu1 %vm5888_vm10, %v6483_v3  ;;  %6455 = vst.msk [vmem:[#allocation9 + $0x18] sm:$0xff] %vm5827_vm3, %v6451_v57  ;;  %v11310_v57 = vsub.s32 0, %v10568_v14 }
 0x7f8   : > { %7303 = vmatpush2.msk.msra.mxu1 %vm5409_vm5, %v6510_v32  ;;  %vm11725_vm5 = vcmask 572864  }
 0x7f9   : > { %6568 = vmatprep.subr.mxu1 %v11712_v22  ;;  %v6389_v16 = vpop.permute.xlu1 %6388 }
 0x7fa   : > { %6569 = vmatpush2.msra.mxu1 %v6509_v34  ;;  %6393 = vst.msk [vmem:[#allocation9 + $0x10] sm:$0xff] %vm5759_vm4, %v6389_v16  ;;  %v6463_v43 = vpop.permute.xlu0 %6462  ;;  %v6482_v49 = vld [vmem:[#allocation9] sm:$0xff] }
 0x7fb   : > { %6570 = vmatprep.subr.mxu1 %v11712_v22  ;;  %6467 = vst.msk [vmem:[#allocation9 + $0x18] sm:$0xff] %vm5840_vm6, %v6463_v43 }
 0x7fc   : > { %6571 = vmatpush2.msra.mxu1 %v6508_v33  ;;  %v6620_v33 = vsub.s32 1, %v10568_v14 }
 0x7fd   : > { %6572 = vmatprep.subr.mxu1 %v11712_v22  ;;  %v5689_v56 = vpop.permute.xlu1 %5688 }
 0x7fe   : > { %6573 = vmatpush2.msra.mxu1 %v6507_v35  ;;  %5695 = vst.msk [vmem:[#allocation8] sm:$0xff] %vm5694_vm15, %v5689_v56  ;;  %v6401_v54 = vpop.permute.xlu0 %6400  ;;  %v6631_v35 = vsub.s32 2, %v10568_v14 }
 0x7ff   : > { %6574 = vmatprep.subr.mxu1 %v11712_v22  ;;  %6405 = vst.msk [vmem:[#allocation9 + $0x10] sm:$0xff] %vm5772_vm7, %v6401_v54  ;;  %v6642_v54 = vsub.s32 3, %v10568_v14 }
 0x800   : > { %6575 = vmatpush2.msra.mxu1 %v6506_v36 }
 0x801   : > { %6576 = vmatprep.subr.mxu1 %v11712_v22  ;;  %v6475_v23 = vpop.permute.xlu1 %6474 }
 0x802   : > { %6577 = vmatpush2.msra.mxu1 %v6505_v61  ;;  %6479 = vst.msk [vmem:[#allocation9 + $0x18] sm:$0xff] %vm5853_vm13, %v6475_v23  ;;  %v5702_v40 = vpop.permute.xlu0 %5701 }
 0x803   : > { %6481 = vst.msk [vmem:[#allocation9 + $0x18] sm:$0xff] %vm5856_vm14, %v7646_v63  ;;  %6578 = vmatprep.subr.mxu1 %v11712_v22 }
 0x804   : > { %5708 = vst.msk [vmem:[#allocation8] sm:$0xff] %vm5707_vm1, %v5702_v40  ;;  %6579 = vmatpush2.msra.mxu1 %v6504_v39 }
 0x805   : > { %6580 = vmatprep.subr.mxu1 %v11712_v22  ;;  %v6413_v24 = vpop.permute.xlu1 %6412 }
 0x806   : > { %6581 = vmatpush2.msra.mxu1 %v6503_v47  ;;  %6417 = vst.msk [vmem:[#allocation9 + $0x10] sm:$0xff] %vm5785_vm8, %v6413_v24  ;;  %v5715_v41 = vpop.permute.xlu0 %5714  ;;  %v6653_v47 = vsub.s32 4, %v10568_v14 }
 0x807   : > { %6430 = vst.msk [vmem:[#allocation9 + $0x10] sm:$0xff] %vm5798_vm0, %v11176_v55  ;;  %6582 = vmatprep.subr.mxu1 %v11712_v22 }
 0x808   : > { %5721 = vst.msk [vmem:[#allocation8] sm:$0xff] %vm5720_vm2, %v5715_v41  ;;  %6583 = vmatpush2.msra.mxu1 %v6502_v58  ;;  %v6664_v41 = vsub.s32 5, %v10568_v14 }
 0x809   : > { %6585 = vmatmul.mubr.f32.vlgmr.msra.gmra.mxu1 %v6482_v49 }
 0x80a   : > { %v6485_v29 = vld [vmem:[#allocation9 + $0x18] sm:$0xff] }
 0x80b   : > { %7305 = vmatprep.mubr.msk.f32.mxu1 %vm5888_vm10, %v6485_v29 }
 0x80e   : > { %v6484_v30 = vld [vmem:[#allocation9 + $0x10] sm:$0xff] }
 0x80f   : > { %6590 = vmatmul.mubr.f32.gmra.mxu1 %v6484_v30  ;;  %v6675_v30 = vsub.s32 6, %v10568_v14 }
 0x814   : > { %v5793_v20 = vpop.permute.xlu1 %5792 }
 0x815   : > { %5801 = vst.msk [vmem:[#allocation8 + $0x8] sm:$0xff] %vm5800_vm9, %v5793_v20 }
 0x818   : > { %v5728_v17 = vpop.permute.xlu0 %5727  ;;  %v5809_v15 = vpop.permute.xlu1 %5808 }
 0x819   : > { %5734 = vst.msk [vmem:[#allocation8] sm:$0xff] %vm11725_vm5, %v5728_v17  ;;  %v6686_v17 = vsub.s32 7, %v10568_v14 }
 0x81a   : > { %5815 = vst.msk [vmem:[#allocation8 + $0x8] sm:$0xff] %vm5814_vm11, %v5809_v15 }
 0x81c   : > { %v5691_v22 = vpop.permute.xlu0 %5690  ;;  %v5741_v1 = vpop.permute.xlu1 %5740 }
 0x81d   : > { %5696 = vst.msk [vmem:[#allocation8 + $0x10] sm:$0xff] %vm5694_vm15, %v5691_v22  ;;  %vm11726_vm15 = vmmov %vm11725_vm5 }
 0x81e   : > { %5747 = vst.msk [vmem:[#allocation8] sm:$0xff] %vm5746_vm12, %v5741_v1 }
 0x820   : > { %v5822_v62 = vpop.permute.xlu0 %5821  ;;  %v5704_v4 = vpop.permute.xlu1 %5703 }
 0x821   : > { %5828 = vst.msk [vmem:[#allocation8 + $0x8] sm:$0xff] %vm5827_vm3, %v5822_v62 }
 0x822   : > { %5709 = vst.msk [vmem:[#allocation8 + $0x10] sm:$0xff] %vm5707_vm1, %v5704_v4 }
 0x824   : > { %v5754_v38 = vpop.permute.xlu0 %5753  ;;  %v5835_v31 = vpop.permute.xlu1 %5834 }
 0x825   : > { %5760 = vst.msk [vmem:[#allocation8] sm:$0xff] %vm5759_vm4, %v5754_v38 }
 0x826   : > { %5841 = vst.msk [vmem:[#allocation8 + $0x8] sm:$0xff] %vm5840_vm6, %v5835_v31 }
 0x828   : > { %v5717_v10 = vpop.permute.xlu0 %5716  ;;  %v5767_v50 = vpop.permute.xlu1 %5766 }
 0x829   : > { %5722 = vst.msk [vmem:[#allocation8 + $0x10] sm:$0xff] %vm5720_vm2, %v5717_v10 }
 0x82a   : > { %5773 = vst.msk [vmem:[#allocation8] sm:$0xff] %vm5772_vm7, %v5767_v50 }
 0x82c   : > { %v5795_v37 = vpop.permute.xlu0 %5794  ;;  %v5848_v44 = vpop.permute.xlu1 %5847 }
 0x82d   : > { %5803 = vst.msk [vmem:[#allocation8 + $0x18] sm:$0xff] %vm5800_vm9, %v5795_v37 }
 0x82e   : > { %5854 = vst.msk [vmem:[#allocation8 + $0x8] sm:$0xff] %vm5853_vm13, %v5848_v44 }
 0x82f   : > { %5857 = vst.msk [vmem:[#allocation8 + $0x8] sm:$0xff] %vm5856_vm14, %v7646_v63 }
 0x830   : > { %v5730_v52 = vpop.permute.xlu0 %5729  ;;  %v5780_v8 = vpop.permute.xlu1 %5779 }
 0x831   : > { %5735 = vst.msk [vmem:[#allocation8 + $0x10] sm:$0xff] %vm11726_vm15, %v5730_v52 }
 0x832   : > { %5786 = vst.msk [vmem:[#allocation8] sm:$0xff] %vm5785_vm8, %v5780_v8 }
 0x833   : > { %5799 = vst.msk [vmem:[#allocation8] sm:$0xff] %vm5798_vm0, %v5793_v20 }
 0x834   : > { %v5811_v25 = vpop.permute.xlu0 %5810  ;;  %v5743_v9 = vpop.permute.xlu1 %5742 }
 0x835   : > { %5816 = vst.msk [vmem:[#allocation8 + $0x18] sm:$0xff] %vm5814_vm11, %v5811_v25 }
 0x836   : > { %5748 = vst.msk [vmem:[#allocation8 + $0x10] sm:$0xff] %vm5746_vm12, %v5743_v9  ;;  %v5860_v21 = vld [vmem:[#allocation8 + $0x8] sm:$0xff] }
 0x837   : > { %7301 = vmatprep.mubr.msk.f32.mxu0 %vm5888_vm10, %v5860_v21 }
 0x838   : > { %v5824_v26 = vpop.permute.xlu0 %5823  ;;  %v5756_v19 = vpop.permute.xlu1 %5755 }
 0x839   : > { %5829 = vst.msk [vmem:[#allocation8 + $0x18] sm:$0xff] %vm5827_vm3, %v5824_v26 }
 0x83a   : > { %5761 = vst.msk [vmem:[#allocation8 + $0x10] sm:$0xff] %vm5759_vm4, %v5756_v19  ;;  %v5859_v59 = vld [vmem:[#allocation8] sm:$0xff] }
 0x83b   : > { %5963 = vmatmul.mubr.f32.vlgmr.msra.gmra.mxu0 %v5859_v59 }
 0x83c   : > { %v5837_v42 = vpop.permute.xlu0 %5836  ;;  %v5769_v0 = vpop.permute.xlu1 %5768 }
 0x83d   : > { %5842 = vst.msk [vmem:[#allocation8 + $0x18] sm:$0xff] %vm5840_vm6, %v5837_v42 }
 0x83e   : > { %5774 = vst.msk [vmem:[#allocation8 + $0x10] sm:$0xff] %vm5772_vm7, %v5769_v0 }
 0x840   : > { %v5850_v51 = vpop.permute.xlu0 %5849  ;;  %v5782_v53 = vpop.permute.xlu1 %5781 }
 0x841   : > { %5855 = vst.msk [vmem:[#allocation8 + $0x18] sm:$0xff] %vm5853_vm13, %v5850_v51 }
 0x842   : > { %5787 = vst.msk [vmem:[#allocation8 + $0x10] sm:$0xff] %vm5785_vm8, %v5782_v53 }
 0x843   : > { %5858 = vst.msk [vmem:[#allocation8 + $0x18] sm:$0xff] %vm5856_vm14, %v7646_v63 }
 0x844   : > { %5802 = vst.msk [vmem:[#allocation8 + $0x10] sm:$0xff] %vm5798_vm0, %v5795_v37  ;;  %vm11732_vm0 = vcmask 64512  }
 0x845   : > { %vm11733_vm1 = vmmov %vm11732_vm0 }
 0x846   : > { %vm11736_vm2 = vmmov %vm11732_vm0 }
 0x847   : > { %vm11737_vm9 = vmmov %vm11732_vm0 }
 0x848   : > { %vm11741_vm11 = vmmov %vm11732_vm0 }
 0x849   : > { %vm11744_vm12 = vmmov %vm11732_vm0 }
 0x84a   : > { %v5862_v55 = vld [vmem:[#allocation8 + $0x18] sm:$0xff]  ;;  %vm11745_vm3 = vmmov %vm11732_vm0 }
 0x84b   : > { %v5861_v12 = vld [vmem:[#allocation8 + $0x10] sm:$0xff]  ;;  %7302 = vmatprep.mubr.msk.f32.mxu0 %vm5888_vm10, %v5862_v55  ;;  %vm11740_vm10 = vmmov %vm11732_vm0 }
 0x84c   : > { %5968 = vmatmul.mubr.f32.gmra.mxu0 %v5861_v12  ;;  %vm11748_vm4 = vmmov %vm11732_vm0 }
 0x84d   : > { %vm11749_vm6 = vmmov %vm11732_vm0 }
 0x84e   : > { %vm11752_vm7 = vmmov %vm11732_vm0 }
 0x84f   : > { %vm11753_vm13 = vmmov %vm11732_vm0 }
 0x850   : > { %vm11756_vm14 = vmmov %vm11732_vm0 }
 0x851   : > { %vm11757_vm8 = vmmov %vm11732_vm0 }
 0x852   : > { %vm11760_vm5 = vmmov %vm11732_vm0 }
 0x853   : > { %vm11761_vm15 = vmmov %vm11732_vm0 }
 0x880   : > { %v7384_v45 = vpop.f32.mrf.mxu0 }
 0x882   : > { %v7385_v5 = vpop.f32.mrf.mxu0 }
 0x883   : > { %v7386_v27 = vadd.f32 %v7385_v5, %v7384_v45  ;;  %v7647_v45 = vmov 1966171168  }
 0x884   : > { %v6819_v5 = vunpack.c.l.s4 %v7647_v45  ;;  %v7578_v45 = vld [vmem:[%s7821_s23 + $0x10] sm:$0xff] }
 0x890   : > { %v7387_v11 = vpop.f32.mrf.mxu0 }
 0x892   : > { %v7388_v13 = vpop.f32.mrf.mxu0 }
 0x893   : > { %v7389_v48 = vadd.f32 %v7388_v13, %v7387_v11 }
 0x897   : > { %v7499_v46 = vpop.f32.mrf.mxu1 }
 0x898   : > { %v5560_v60 = vadd.f32 %v7499_v46, %v7389_v48 }
 0x899   : > { %v5554_v7 = vpop.f32.mrf.mxu1 }
 0x89a   : > { %v5555_v18 = vadd.f32 %v7386_v27, %v5554_v7  ;;  %v5564_v32 = vsub.f32 0.0, %v5560_v60 }
 0x89c   : > { %v5563_v28 = vsub.f32 0.0, %v5555_v18  ;;  %v5567_v3 = vmul.f32 1.442695, %v5564_v32  ;;  %v6820_v18 = vunpack.c.0.s8 %v6819_v5 }
 0x89e   : > { %v5565_v6 = vmul.f32 1.442695, %v5563_v28  ;;  %v11322_v28 = vsub.s32 %v6820_v18, %v10568_v14 }
 0x8a0   : > { %7552 = vpow2.f32 %v5565_v6 }
 0x8ad   : > { %v7553_v63 = vpop.eup %7552 }
 0x8ae   : > { %v5569_v2 = vadd.f32 1.0, %v7553_v63 }
 0x8b0   : > { %7554 = vrcp.f32 %v5569_v2 }
 0x8b1   : > { %7556 = vpow2.f32 %v5567_v3 }
 0x8bd   : > { %v7555_v34 = vpop.eup %7554 }
 0x8be   : > { %v6610_v16 = vrot.slane %v7555_v34, %v11310_v57  ;;  %v6621_v43 = vrot.slane %v7555_v34, %v6620_v33  ;;  %v6632_v56 = vrot.slane %v7555_v34, %v6631_v35  ;;  %v7557_v36 = vpop.eup %7556  ;;  %v6643_v39 = vrot.slane %v7555_v34, %v6642_v54 }
 0x8bf   : > { %v5570_v23 = vadd.f32 1.0, %v7557_v36  ;;  %v6654_v24 = vrot.slane %v7555_v34, %v6653_v47  ;;  %v6665_v29 = vrot.slane %v7555_v34, %v6664_v41  ;;  %v6676_v20 = vrot.slane %v7555_v34, %v6675_v30 }
 0x8c0   : > { %6616 = vbcast.lane.b32.xlu1 %v6610_v16, 264  ;;  %6612 = vbcast.lane.b32.xlu0 %v6610_v16, 256  ;;  %v6687_v15 = vrot.slane %v7555_v34, %v6686_v17 }
 0x8c1   : > { %7558 = vrcp.f32 %v5570_v23 }
 0x8c4   : > { %6627 = vbcast.lane.b32.xlu1 %v6621_v43, 264  ;;  %6623 = vbcast.lane.b32.xlu0 %v6621_v43, 256 }
 0x8c8   : > { %6638 = vbcast.lane.b32.xlu1 %v6632_v56, 264  ;;  %6634 = vbcast.lane.b32.xlu0 %v6632_v56, 256 }
 0x8c9   : > { %v6586_v61 = vpop.f32.mrf.mxu1 }
 0x8ca   : > { %v6595_v8 = vsub.f32 0.0, %v6586_v61 }
 0x8cb   : > { %v6588_v40 = vpop.f32.mrf.mxu1 }
 0x8cc   : > { %6649 = vbcast.lane.b32.xlu1 %v6643_v39, 264  ;;  %6645 = vbcast.lane.b32.xlu0 %v6643_v39, 256  ;;  %v6597_v25 = vmul.f32 1.442695, %v6595_v8 }
 0x8ce   : > { %v7559_v22 = vpop.eup %7558  ;;  %7560 = vpow2.f32 %v6597_v25 }
 0x8cf   : > { %v6591_v58 = vpop.f32.mrf.mxu1  ;;  %v6698_v1 = vrot.slane %v7559_v22, %v11310_v57  ;;  %v6709_v62 = vrot.slane %v7559_v22, %v6620_v33  ;;  %v6720_v4 = vrot.slane %v7559_v22, %v6631_v35  ;;  %v6731_v38 = vrot.slane %v7559_v22, %v6642_v54 }
 0x8d0   : > { %6660 = vbcast.lane.b32.xlu1 %v6654_v24, 264  ;;  %6656 = vbcast.lane.b32.xlu0 %v6654_v24, 256  ;;  %v6742_v31 = vrot.slane %v7559_v22, %v6653_v47  ;;  %v6753_v10 = vrot.slane %v7559_v22, %v6664_v41  ;;  %v6764_v50 = vrot.slane %v7559_v22, %v6675_v30  ;;  %v6596_v53 = vsub.f32 0.0, %v6591_v58  ;;  %v11727_v41 = vld [vmem:[#allocation11_spill] sm:$0xff] }
 0x8d1   : > { %v6593_v49 = vpop.f32.mrf.mxu1  ;;  %v6775_v44 = vrot.slane %v7559_v22, %v6686_v17 }
 0x8d2   : > { %v6599_v46 = vmul.f32 1.442695, %v6596_v53 }
 0x8d4   : > { %6671 = vbcast.lane.b32.xlu1 %v6665_v29, 264  ;;  %6667 = vbcast.lane.b32.xlu0 %v6665_v29, 256  ;;  %v11728_v29 = vld [vmem:[#allocation13_spill] sm:$0xff] }
 0x8d8   : > { %6682 = vbcast.lane.b32.xlu1 %v6676_v20, 264  ;;  %6678 = vbcast.lane.b32.xlu0 %v6676_v20, 256 }
 0x8db   : > { %v7561_v0 = vpop.eup %7560 }
 0x8dc   : > { %6693 = vbcast.lane.b32.xlu1 %v6687_v15, 264  ;;  %6689 = vbcast.lane.b32.xlu0 %v6687_v15, 256  ;;  %v6601_v51 = vadd.f32 1.0, %v7561_v0 }
 0x8e0   : > { %6704 = vbcast.lane.b32.xlu1 %v6698_v1, 264  ;;  %6700 = vbcast.lane.b32.xlu0 %v6698_v1, 256 }
 0x8e4   : > { %6715 = vbcast.lane.b32.xlu1 %v6709_v62, 264  ;;  %6711 = vbcast.lane.b32.xlu0 %v6709_v62, 256 }
 0x8e8   : > { %6726 = vbcast.lane.b32.xlu1 %v6720_v4, 264  ;;  %6722 = vbcast.lane.b32.xlu0 %v6720_v4, 256  ;;  %v7576_v4 = vld [vmem:[%s7821_s23] sm:$0xff] }
 0x8ec   : > { %6737 = vbcast.lane.b32.xlu1 %v6731_v38, 264  ;;  %6733 = vbcast.lane.b32.xlu0 %v6731_v38, 256 }
 0x8f0   : > { %6748 = vbcast.lane.b32.xlu1 %v6742_v31, 264  ;;  %6744 = vbcast.lane.b32.xlu0 %v6742_v31, 256  ;;  %v7577_v31 = vld [vmem:[%s7821_s23 + $0x8] sm:$0xff] }
 0x8f4   : > { %6759 = vbcast.lane.b32.xlu1 %v6753_v10, 264  ;;  %6755 = vbcast.lane.b32.xlu0 %v6753_v10, 256 }
 0x8f8   : > { %6770 = vbcast.lane.b32.xlu1 %v6764_v50, 264  ;;  %6766 = vbcast.lane.b32.xlu0 %v6764_v50, 256 }
 0x8fb   : > { %v5964_v37 = vpop.f32.mrf.mxu0 }
 0x8fc   : > { %6781 = vbcast.lane.b32.xlu1 %v6775_v44, 264  ;;  %6777 = vbcast.lane.b32.xlu0 %v6775_v44, 256  ;;  %v5973_v9 = vsub.f32 0.0, %v5964_v37 }
 0x8fd   : > { %v5966_v52 = vpop.f32.mrf.mxu0 }
 0x8fe   : > { %v5975_v26 = vmul.f32 1.442695, %v5973_v9 }
 0x900   : > { %7562 = vpow2.f32 %v5975_v26 }
 0x90c   : > { %v5969_v21 = vpop.f32.mrf.mxu0 }
 0x90d   : > { %v5974_v19 = vsub.f32 0.0, %v5969_v21  ;;  %v7563_v55 = vpop.eup %7562  ;;  %v11730_v21 = vld [vmem:[#allocation10_spill] sm:$0xff] }
 0x90e   : > { %v5971_v59 = vpop.f32.mrf.mxu0  ;;  %v5979_v27 = vadd.f32 1.0, %v7563_v55 }
 0x90f   : > { %v5977_v42 = vmul.f32 1.442695, %v5974_v19  ;;  %v11731_v19 = vld [vmem:[#allocation12_spill] sm:$0xff] }
 0x911   : > { %7564 = vpow2.f32 %v5977_v42 }
 0x912   : > { %7566 = vrcp.f32 %v6601_v51 }
 0x913   : > { %7568 = vpow2.f32 %v6599_v46  ;;  %v7579_v46 = vld [vmem:[%s7821_s23 + $0x18] sm:$0xff] }
 0x914   : > { %7570 = vrcp.f32 %v5979_v27 }
 0x91e   : > { %v7565_v12 = vpop.eup %7564 }
 0x91f   : > { %v5980_v7 = vadd.f32 1.0, %v7565_v12  ;;  %v7567_v6 = vpop.eup %7566 }
 0x920   : > { %v6824_v11 = vrot.slane %v7567_v6, %v11322_v28  ;;  %v7569_v63 = vpop.eup %7568  ;;  %v6817_v23 = vcombine.high %v7567_v6, %v7567_v6 }
 0x921   : > { %7572 = vrcp.f32 %v5980_v7  ;;  %v11326_v60 = vpop.eup %7570  ;;  %v6602_v43 = vadd.f32 1.0, %v7569_v63 }
 0x922   : > { %v6832_v13 = vcombine.high %v6824_v11, %v6824_v11  ;;  %v6840_v48 = vrot.slane %v6824_v11, %v11322_v28  ;;  %v6831_v62 = vrot.slane %v6817_v23, %v11322_v28 }
 0x923   : > { %7574 = vrcp.f32 %v6602_v43 }
 0x924   : > { %v6854_v34 = vrot.slane %v6832_v13, %v11322_v28  ;;  %v6918_v14 = vrot.slane %v6840_v48, %v11310_v57  ;;  %v6862_v58 = vcombine.high %v6840_v48, %v6840_v48  ;;  %v6847_v12 = vrot.slane %v6831_v62, %v11322_v28 }
 0x925   : > { %v6833_v13 = vcombine.high %v6831_v62, %v6831_v62 }
 0x926   : > { %v6922_v54 = vrot.slane %v6854_v34, %v11310_v57  ;;  %v6864_v1 = vcombine.high %v6854_v34, %v6854_v34  ;;  %v6926_v52 = vrot.slane %v6862_v58, %v11310_v57  ;;  %v11734_v34 = vld [vmem:[#allocation15_spill] sm:$0xff] }
 0x927   : > { %v6861_v58 = vrot.slane %v6833_v13, %v11322_v28 }
 0x928   : > { %v6930_v53 = vrot.slane %v6864_v1, %v11310_v57 }
 0x92e   : > { %v11328_v2 = vpop.eup %7572 }
 0x932   : > { %v6613_v32 = vpop.permute.xlu0 %6612  ;;  %v6617_v3 = vpop.permute.xlu1 %6616 }
 0x933   : > { %v6783_v16 = vadd.f32 %v11326_v60, %v6613_v32  ;;  %v6784_v33 = vadd.f32 %v11328_v2, %v6617_v3 }
 0x935   : > { %v6995_v35 = vadd.f32 %v6918_v14, %v6783_v16  ;;  %v6996_v56 = vadd.f32 %v6918_v14, %v6784_v33  ;;  %v11735_v14 = vld [vmem:[#allocation17_spill] sm:$0xff] }
 0x936   : > { %v6624_v36 = vpop.permute.xlu0 %6623  ;;  %v6628_v61 = vpop.permute.xlu1 %6627 }
 0x937   : > { %v7027_v39 = vmul.f32 0.33333334, %v6995_v35  ;;  %v7028_v40 = vmul.f32 0.33333334, %v6996_v56  ;;  %v6785_v47 = vadd.f32 %v11326_v60, %v6624_v36  ;;  %v6786_v24 = vadd.f32 %v11328_v2, %v6628_v61 }
 0x938   : > { %v6934_v35 = vrot.slane %v6847_v12, %v11310_v57 }
 0x939   : > { %v7059_v49 = vmul.f32 %v7027_v39, %v11727_v41  ;;  %v7060_v30 = vmul.f32 %v7028_v40, %v11728_v29  ;;  %v6997_v20 = vadd.f32 %v6922_v54, %v6785_v47  ;;  %v6998_v17 = vadd.f32 %v6922_v54, %v6786_v24  ;;  %v7580_v39 = vld [vmem:[%s7821_s23 + $0x20] sm:$0xff]  ;;  %v7581_v47 = vld [vmem:[%s7821_s23 + $0x28] sm:$0xff]  ;;  %v11376_v41 = vpop.eup %7574 }
 0x93a   : > { %v6635_v15 = vpop.permute.xlu0 %6634  ;;  %v6639_v22 = vpop.permute.xlu1 %6638 }
 0x93b   : > { %v7091_v38 = vadd.f32 %v7576_v4, %v7059_v49  ;;  %v7092_v10 = vadd.f32 %v7577_v31, %v7060_v30  ;;  %v7029_v50 = vmul.f32 0.33333334, %v6997_v20  ;;  %v7030_v37 = vmul.f32 0.33333334, %v6998_v17  ;;  %v11738_v49 = vld [vmem:[#allocation14_spill] sm:$0xff]  ;;  %v11739_v30 = vld [vmem:[#allocation16_spill] sm:$0xff] }
 0x93c   : > { %v6787_v44 = vadd.f32 %v11326_v60, %v6635_v15  ;;  %v6788_v8 = vadd.f32 %v11328_v2, %v6639_v22  ;;  %v7582_v31 = vld [vmem:[%s7821_s23 + $0x30] sm:$0xff] }
 0x93d   : > { %v7123_v25 = vmax.f32 %v7091_v38, 0.0  ;;  %v7124_v9 = vmax.f32 %v7092_v10, 0.0  ;;  %v7061_v26 = vmul.f32 %v11730_v21, %v7029_v50  ;;  %v7062_v59 = vmul.f32 %v11731_v19, %v7030_v37  ;;  %v7583_v50 = vld [vmem:[%s7821_s23 + $0x38] sm:$0xff] }
 0x93e   : > { %v6999_v42 = vadd.f32 %v6926_v52, %v6787_v44  ;;  %v7000_v0 = vadd.f32 %v6926_v52, %v6788_v8  ;;  %v6646_v51 = vpop.permute.xlu0 %6645  ;;  %v6650_v55 = vpop.permute.xlu1 %6649  ;;  %v6863_v38 = vcombine.high %v6847_v12, %v6847_v12  ;;  %v6873_v21 = vrot.slane %v11376_v41, %v11322_v28 }
 0x93f   : > { %7155 = vst.msk [vmem:[%s11347_s19] sm:$0xff] %vm11732_vm0, %v7123_v25  ;;  %v7093_v5 = vadd.f32 %v7578_v45, %v7061_v26  ;;  %v7094_v27 = vadd.f32 %v7579_v46, %v7062_v59  ;;  %v6789_v7 = vadd.f32 %v11326_v60, %v6646_v51  ;;  %v6790_v18 = vadd.f32 %v11328_v2, %v6650_v55  ;;  %v11742_v59 = vld [vmem:[#allocation19_spill] sm:$0xff] }
 0x940   : > { %7156 = vst.msk [vmem:[%s11347_s19 + $0x8] sm:$0xff] %vm11733_vm1, %v7124_v9  ;;  %v7031_v6 = vmul.f32 0.33333334, %v6999_v42  ;;  %v7032_v11 = vmul.f32 0.33333334, %v7000_v0  ;;  %v6938_v25 = vrot.slane %v6861_v58, %v11310_v57  ;;  %v11743_v0 = vld [vmem:[#allocation21_spill] sm:$0xff]  ;;  %v6942_v45 = vrot.slane %v6863_v38, %v11310_v57  ;;  %vm11764_vm1 = vmmov %vm11732_vm0 }
 0x941   : > { %v7125_v48 = vmax.f32 %v7093_v5, 0.0  ;;  %v7126_v63 = vmax.f32 %v7094_v27, 0.0  ;;  %v7001_v32 = vadd.f32 %v6930_v53, %v6789_v7  ;;  %v7002_v3 = vadd.f32 %v6930_v53, %v6790_v18  ;;  %v7584_v27 = vld [vmem:[%s7821_s23 + $0x40] sm:$0xff]  ;;  %v7585_v18 = vld [vmem:[%s7821_s23 + $0x48] sm:$0xff] }
 0x942   : > { %v7063_v16 = vmul.f32 %v7031_v6, %v11734_v34  ;;  %v7064_v33 = vmul.f32 %v7032_v11, %v11735_v14  ;;  %v6657_v43 = vpop.permute.xlu0 %6656  ;;  %v6661_v56 = vpop.permute.xlu1 %6660  ;;  %v6865_v46 = vcombine.high %v6861_v58, %v6861_v58  ;;  %v11746_v14 = vld [vmem:[#allocation18_spill] sm:$0xff] }
 0x943   : > { %7157 = vst.msk [vmem:[%s11347_s19 + $0x10] sm:$0xff] %vm11736_vm2, %v7125_v48  ;;  %v7033_v36 = vmul.f32 0.33333334, %v7001_v32  ;;  %v7034_v54 = vmul.f32 0.33333334, %v7002_v3  ;;  %v6791_v61 = vadd.f32 %v11326_v60, %v6657_v43  ;;  %v6792_v23 = vadd.f32 %v11328_v2, %v6661_v56  ;;  %v11747_v43 = vld [vmem:[#allocation20_spill] sm:$0xff]  ;;  %vm11767_vm2 = vmmov %vm11732_vm0 }
 0x944   : > { %7158 = vst.msk [vmem:[%s11347_s19 + $0x18] sm:$0xff] %vm11737_vm9, %v7126_v63  ;;  %v7095_v40 = vadd.f32 %v7580_v39, %v7063_v16  ;;  %v7096_v24 = vadd.f32 %v7581_v47, %v7064_v33  ;;  %vm11768_vm9 = vmmov %vm11732_vm0 }
 0x945   : > { %v7065_v29 = vmul.f32 %v11738_v49, %v7033_v36  ;;  %v7066_v20 = vmul.f32 %v11739_v30, %v7034_v54  ;;  %v7003_v17 = vadd.f32 %v6934_v35, %v6791_v61  ;;  %v7004_v15 = vadd.f32 %v6934_v35, %v6792_v23  ;;  %v7587_v49 = vld [vmem:[%s7821_s23 + $0x58] sm:$0xff] }
 0x946   : > { %v7127_v22 = vmax.f32 %v7095_v40, 0.0  ;;  %v7128_v1 = vmax.f32 %v7096_v24, 0.0  ;;  %v6668_v62 = vpop.permute.xlu0 %6667  ;;  %v6672_v4 = vpop.permute.xlu1 %6671  ;;  %v6946_v36 = vrot.slane %v6865_v46, %v11310_v57  ;;  %v6881_v61 = vcombine.high %v6873_v21, %v6873_v21  ;;  %v7586_v24 = vld [vmem:[%s7821_s23 + $0x50] sm:$0xff] }
 0x947   : > { %v7097_v10 = vadd.f32 %v7582_v31, %v7065_v29  ;;  %v7098_v37 = vadd.f32 %v7583_v50, %v7066_v20  ;;  %v7035_v44 = vmul.f32 0.33333334, %v7003_v17  ;;  %v7036_v52 = vmul.f32 0.33333334, %v7004_v15  ;;  %v11750_v20 = vld [vmem:[#allocation23_spill] sm:$0xff]  ;;  %v11751_v15 = vld [vmem:[#allocation25_spill] sm:$0xff] }
 0x948   : > { %7159 = vst.msk [vmem:[%s11347_s19 + $0x20] sm:$0xff] %vm11740_vm10, %v7127_v22  ;;  %v6793_v8 = vadd.f32 %v11326_v60, %v6668_v62  ;;  %v6794_v9 = vadd.f32 %v11328_v2, %v6672_v4  ;;  %v6889_v30 = vrot.slane %v6873_v21, %v11322_v28  ;;  %v11417_v50 = vrot.slane %v6881_v61, %v11322_v28  ;;  %vm11771_vm10 = vmmov %vm11732_vm0 }
 0x949   : > { %7160 = vst.msk [vmem:[%s11347_s19 + $0x28] sm:$0xff] %vm11741_vm11, %v7128_v1  ;;  %v7129_v26 = vmax.f32 %v7097_v10, 0.0  ;;  %v7130_v19 = vmax.f32 %v7098_v37, 0.0  ;;  %v7067_v42 = vmul.f32 %v7035_v44, %v11742_v59  ;;  %v7068_v51 = vmul.f32 %v7036_v52, %v11743_v0  ;;  %v7588_v37 = vld [vmem:[%s7821_s23 + $0x60] sm:$0xff]  ;;  %v7589_v52 = vld [vmem:[%s7821_s23 + $0x68] sm:$0xff]  ;;  %vm11772_vm11 = vmmov %vm11732_vm0 }
 0x94a   : > { %v7005_v53 = vadd.f32 %v6938_v25, %v6793_v8  ;;  %v7006_v55 = vadd.f32 %v6938_v25, %v6794_v9  ;;  %v6679_v12 = vpop.permute.xlu0 %6678  ;;  %v6683_v5 = vpop.permute.xlu1 %6682  ;;  %v6866_v59 = vcombine.high %v11376_v41, %v11376_v41 }
 0x94b   : > { %7161 = vst.msk [vmem:[%s11347_s19 + $0x30] sm:$0xff] %vm11744_vm12, %v7129_v26  ;;  %v7099_v7 = vadd.f32 %v7584_v27, %v7067_v42  ;;  %v7100_v6 = vadd.f32 %v7585_v18, %v7068_v51  ;;  %v6795_v11 = vadd.f32 %v11326_v60, %v6679_v12  ;;  %v6796_v13 = vadd.f32 %v11328_v2, %v6683_v5  ;;  %v11754_v51 = vld [vmem:[#allocation22_spill] sm:$0xff]  ;;  %vm11775_vm12 = vmmov %vm11732_vm0 }
 0x94c   : > { %7162 = vst.msk [vmem:[%s11347_s19 + $0x38] sm:$0xff] %vm11745_vm3, %v7130_v19  ;;  %v7037_v48 = vmul.f32 0.33333334, %v7005_v53  ;;  %v7038_v63 = vmul.f32 0.33333334, %v7006_v55  ;;  %v6950_v26 = vrot.slane %v6889_v30, %v11310_v57  ;;  %v11755_v55 = vld [vmem:[#allocation24_spill] sm:$0xff]  ;;  %v6954_v27 = vrot.slane %v11417_v50, %v11310_v57  ;;  %vm11776_vm3 = vmmov %vm11732_vm0 }
 0x94d   : > { %v7131_v32 = vmax.f32 %v7099_v7, 0.0  ;;  %v7132_v3 = vmax.f32 %v7100_v6, 0.0  ;;  %v7007_v34 = vadd.f32 %v6942_v45, %v6795_v11  ;;  %v7008_v16 = vadd.f32 %v6942_v45, %v6796_v13  ;;  %v7590_v6 = vld [vmem:[%s7821_s23 + $0x70] sm:$0xff]  ;;  %v7591_v11 = vld [vmem:[%s7821_s23 + $0x78] sm:$0xff] }
 0x94e   : > { %v7069_v33 = vmul.f32 %v11746_v14, %v7037_v48  ;;  %v7070_v35 = vmul.f32 %v11747_v43, %v7038_v63  ;;  %v6690_v56 = vpop.permute.xlu0 %6689  ;;  %v6694_v54 = vpop.permute.xlu1 %6693  ;;  %v6911_v18 = vcombine.high %v6889_v30, %v6889_v30  ;;  %v11758_v43 = vld [vmem:[#allocation27_spill] sm:$0xff]  ;;  %v7593_v30 = vld [vmem:[%s7821_s23 + $0x88] sm:$0xff] }
 0x94f   : > { %7163 = vst.msk [vmem:[%s11347_s19 + $0x40] sm:$0xff] %vm11748_vm4, %v7131_v32  ;;  %v7039_v23 = vmul.f32 0.33333334, %v7007_v34  ;;  %v7040_v39 = vmul.f32 0.33333334, %v7008_v16  ;;  %v6797_v40 = vadd.f32 %v11326_v60, %v6690_v56  ;;  %v6798_v47 = vadd.f32 %v11328_v2, %v6694_v54  ;;  %v11759_v56 = vld [vmem:[#allocation29_spill] sm:$0xff]  ;;  %vm11779_vm4 = vmmov %vm11732_vm0 }
 0x950   : > { %7164 = vst.msk [vmem:[%s11347_s19 + $0x48] sm:$0xff] %vm11749_vm6, %v7132_v3  ;;  %v7101_v58 = vadd.f32 %v7586_v24, %v7069_v33  ;;  %v7102_v29 = vadd.f32 %v7587_v49, %v7070_v35  ;;  %v6958_v61 = vrot.slane %v6911_v18, %v11310_v57  ;;  %v7592_v49 = vld [vmem:[%s7821_s23 + $0x80] sm:$0xff]  ;;  %vm11780_vm6 = vmmov %vm11732_vm0 }
 0x951   : > { %v7071_v17 = vmul.f32 %v7039_v23, %v11750_v20  ;;  %v7072_v22 = vmul.f32 %v7040_v39, %v11751_v15  ;;  %v7009_v1 = vadd.f32 %v6946_v36, %v6797_v40  ;;  %v7010_v62 = vadd.f32 %v6946_v36, %v6798_v47  ;;  %v11762_v15 = vld [vmem:[#allocation26_spill] sm:$0xff] }
 0x952   : > { %v7133_v4 = vmax.f32 %v7101_v58, 0.0  ;;  %v7134_v38 = vmax.f32 %v7102_v29, 0.0  ;;  %v6701_v31 = vpop.permute.xlu0 %6700  ;;  %v6705_v10 = vpop.permute.xlu1 %6704  ;;  %v6880_v39 = vrot.slane %v6866_v59, %v11322_v28 }
 0x953   : > { %v7103_v44 = vadd.f32 %v7588_v37, %v7071_v17  ;;  %v7104_v8 = vadd.f32 %v7589_v52, %v7072_v22  ;;  %v7041_v25 = vmul.f32 0.33333334, %v7009_v1  ;;  %v7042_v9 = vmul.f32 0.33333334, %v7010_v62  ;;  %v11763_v1 = vld [vmem:[#allocation28_spill] sm:$0xff] }
 0x954   : > { %7165 = vst.msk [vmem:[%s11347_s19 + $0x50] sm:$0xff] %vm11752_vm7, %v7133_v4  ;;  %v6799_v21 = vadd.f32 %v11326_v60, %v6701_v31  ;;  %v6800_v19 = vadd.f32 %v11328_v2, %v6705_v10  ;;  %v6913_v17 = vcombine.high %v11417_v50, %v11417_v50  ;;  %v11459_v52 = vrot.slane %v6880_v39, %v11322_v28  ;;  %vm11783_vm7 = vmmov %vm11732_vm0 }
 0x955   : > { %7166 = vst.msk [vmem:[%s11347_s19 + $0x58] sm:$0xff] %vm11753_vm13, %v7134_v38  ;;  %v7135_v42 = vmax.f32 %v7103_v44, 0.0  ;;  %v7136_v0 = vmax.f32 %v7104_v8, 0.0  ;;  %v7073_v53 = vmul.f32 %v11754_v51, %v7041_v25  ;;  %v7074_v12 = vmul.f32 %v11755_v55, %v7042_v9  ;;  %v7594_v25 = vld [vmem:[%s7821_s23 + $0x90] sm:$0xff]  ;;  %v11765_v55 = vld [vmem:[#allocation31_spill] sm:$0xff]  ;;  %vm11784_vm13 = vmmov %vm11732_vm0 }
 0x956   : > { %v7011_v45 = vadd.f32 %v6950_v26, %v6799_v21  ;;  %v7012_v5 = vadd.f32 %v6950_v26, %v6800_v19  ;;  %v6712_v46 = vpop.permute.xlu0 %6711  ;;  %v6716_v7 = vpop.permute.xlu1 %6715  ;;  %v6882_v8 = vcombine.high %v6880_v39, %v6880_v39  ;;  %v7595_v21 = vld [vmem:[%s7821_s23 + $0x98] sm:$0xff]  ;;  %v6966_v18 = vrot.slane %v11459_v52, %v11310_v57 }
 0x957   : > { %7167 = vst.msk [vmem:[%s11347_s19 + $0x60] sm:$0xff] %vm11756_vm14, %v7135_v42  ;;  %v7105_v41 = vadd.f32 %v7590_v6, %v7073_v53  ;;  %v7106_v13 = vadd.f32 %v7591_v11, %v7074_v12  ;;  %v6801_v48 = vadd.f32 %v11326_v60, %v6712_v46  ;;  %v6802_v63 = vadd.f32 %v11328_v2, %v6716_v7  ;;  %v7596_v11 = vld [vmem:[%s7821_s23 + $0xa0] sm:$0xff]  ;;  %vm11787_vm14 = vmmov %vm11732_vm0 }
 0x958   : > { %7168 = vst.msk [vmem:[%s11347_s19 + $0x68] sm:$0xff] %vm11757_vm8, %v7136_v0  ;;  %v7043_v32 = vmul.f32 0.33333334, %v7011_v45  ;;  %v7044_v3 = vmul.f32 0.33333334, %v7012_v5  ;;  %v6962_v42 = vrot.slane %v6913_v17, %v11310_v57  ;;  %v11766_v45 = vld [vmem:[#allocation33_spill] sm:$0xff]  ;;  %v6912_v17 = vcombine.high %v11459_v52, %v11459_v52  ;;  %vm11788_vm8 = vmmov %vm11732_vm0 }
 0x959   : > { %v7137_v34 = vmax.f32 %v7105_v41, 0.0  ;;  %v7138_v16 = vmax.f32 %v7106_v13, 0.0  ;;  %v7013_v14 = vadd.f32 %v6954_v27, %v6801_v48  ;;  %v7014_v33 = vadd.f32 %v6954_v27, %v6802_v63  ;;  %v7597_v48 = vld [vmem:[%s7821_s23 + $0xa8] sm:$0xff] }
 0x95a   : > { %v7075_v35 = vmul.f32 %v7043_v32, %v11758_v43  ;;  %v7076_v36 = vmul.f32 %v7044_v3, %v11759_v56  ;;  %v6723_v54 = vpop.permute.xlu0 %6722  ;;  %v6727_v23 = vpop.permute.xlu1 %6726  ;;  %v6910_v41 = vrot.slane %v6882_v8, %v11322_v28 }
 0x95b   : > { %7169 = vst.msk [vmem:[%s11347_s19 + $0x70] sm:$0xff] %vm11760_vm5, %v7137_v34  ;;  %v7045_v40 = vmul.f32 0.33333334, %v7013_v14  ;;  %v7046_v47 = vmul.f32 0.33333334, %v7014_v33  ;;  %v6803_v24 = vadd.f32 %v11326_v60, %v6723_v54  ;;  %v6804_v58 = vadd.f32 %v11328_v2, %v6727_v23  ;;  %vm11789_vm5 = vmmov %vm11732_vm0 }
 0x95c   : > { %7170 = vst.msk [vmem:[%s11347_s19 + $0x78] sm:$0xff] %vm11761_vm15, %v7138_v16  ;;  %v7107_v29 = vadd.f32 %v7592_v49, %v7075_v35  ;;  %v7108_v20 = vadd.f32 %v7593_v30, %v7076_v36  ;;  %v11769_v35 = vld [vmem:[#allocation30_spill] sm:$0xff]  ;;  %v11770_v36 = vld [vmem:[#allocation32_spill] sm:$0xff]  ;;  %v6970_v23 = vrot.slane %v6910_v41, %v11310_v57  ;;  %v7599_v30 = vld [vmem:[%s7821_s23 + $0xb8] sm:$0xff]  ;;  %v6914_v8 = vcombine.high %v6910_v41, %v6910_v41 }
 0x95d   : > { %v7077_v22 = vmul.f32 %v11762_v15, %v7045_v40  ;;  %v7078_v62 = vmul.f32 %v11763_v1, %v7046_v47  ;;  %v7015_v4 = vadd.f32 %v6958_v61, %v6803_v24  ;;  %v7016_v38 = vadd.f32 %v6958_v61, %v6804_v58  ;;  %v7598_v49 = vld [vmem:[%s7821_s23 + $0xb0] sm:$0xff]  ;;  %v11773_v15 = vld [vmem:[#allocation35_spill] sm:$0xff]  ;;  %v11774_v1 = vld [vmem:[#allocation37_spill] sm:$0xff] }
 0x95e   : > { %v7139_v31 = vmax.f32 %v7107_v29, 0.0  ;;  %v7140_v10 = vmax.f32 %v7108_v20, 0.0  ;;  %v6734_v37 = vpop.permute.xlu0 %6733  ;;  %v6738_v44 = vpop.permute.xlu1 %6737  ;;  %vm11790_vm15 = vmmov %vm11732_vm0 }
 0x95f   : > { %v7109_v9 = vadd.f32 %v7594_v25, %v7077_v22  ;;  %v7110_v50 = vadd.f32 %v7595_v21, %v7078_v62  ;;  %v7047_v26 = vmul.f32 0.33333334, %v7015_v4  ;;  %v7048_v19 = vmul.f32 0.33333334, %v7016_v38  ;;  %v7600_v25 = vld [vmem:[%s7821_s23 + $0xc0] sm:$0xff]  ;;  %v7601_v21 = vld [vmem:[%s7821_s23 + $0xc8] sm:$0xff] }
 0x960   : > { %7171 = vst.msk [vmem:[%s11347_s19 + $0x80] sm:$0xff] %vm11732_vm0, %v7139_v31  ;;  %v6805_v59 = vadd.f32 %v11326_v60, %v6734_v37  ;;  %v6806_v0 = vadd.f32 %v11328_v2, %v6738_v44 }
 0x961   : > { %7172 = vst.msk [vmem:[%s11347_s19 + $0x88] sm:$0xff] %vm11764_vm1, %v7140_v10  ;;  %v7141_v51 = vmax.f32 %v7109_v9, 0.0  ;;  %v7142_v53 = vmax.f32 %v7110_v50, 0.0  ;;  %v7079_v12 = vmul.f32 %v7047_v26, %v11765_v55  ;;  %v7080_v5 = vmul.f32 %v7048_v19, %v11766_v45 }
 0x962   : > { %v7017_v46 = vadd.f32 %v6962_v42, %v6805_v59  ;;  %v7018_v27 = vadd.f32 %v6962_v42, %v6806_v0  ;;  %v6745_v7 = vpop.permute.xlu0 %6744  ;;  %v6749_v6 = vpop.permute.xlu1 %6748  ;;  %v6974_v59 = vrot.slane %v6912_v17, %v11310_v57 }
 0x963   : > { %7173 = vst.msk [vmem:[%s11347_s19 + $0x90] sm:$0xff] %vm11767_vm2, %v7141_v51  ;;  %v7111_v13 = vadd.f32 %v7596_v11, %v7079_v12  ;;  %v7112_v63 = vadd.f32 %v7597_v48, %v7080_v5  ;;  %v6807_v32 = vadd.f32 %v11326_v60, %v6745_v7  ;;  %v6808_v3 = vadd.f32 %v11328_v2, %v6749_v6  ;;  %v11778_v12 = vld [vmem:[#allocation36_spill] sm:$0xff]  ;;  %v7602_v6 = vld [vmem:[%s7821_s23 + $0xd0] sm:$0xff]  ;;  %v7603_v11 = vld [vmem:[%s7821_s23 + $0xd8] sm:$0xff] }
 0x964   : > { %7174 = vst.msk [vmem:[%s11347_s19 + $0x98] sm:$0xff] %vm11768_vm9, %v7142_v53  ;;  %v7049_v34 = vmul.f32 0.33333334, %v7017_v46  ;;  %v7050_v16 = vmul.f32 0.33333334, %v7018_v27  ;;  %v11777_v53 = vld [vmem:[#allocation34_spill] sm:$0xff]  ;;  %v6978_v7 = vrot.slane %v6914_v8, %v11310_v57 }
 0x965   : > { %v7143_v14 = vmax.f32 %v7111_v13, 0.0  ;;  %v7144_v33 = vmax.f32 %v7112_v63, 0.0  ;;  %v7019_v28 = vadd.f32 %v6966_v18, %v6807_v32  ;;  %v7020_v43 = vadd.f32 %v6966_v18, %v6808_v3 }
 0x966   : > { %v7081_v56 = vmul.f32 %v11769_v35, %v7049_v34  ;;  %v7082_v54 = vmul.f32 %v11770_v36, %v7050_v16  ;;  %v6756_v61 = vpop.permute.xlu0 %6755  ;;  %v6760_v39 = vpop.permute.xlu1 %6759 }
 0x967   : > { %7175 = vst.msk [vmem:[%s11347_s19 + $0xa0] sm:$0xff] %vm11771_vm10, %v7143_v14  ;;  %v7051_v40 = vmul.f32 0.33333334, %v7019_v28  ;;  %v7052_v47 = vmul.f32 0.33333334, %v7020_v43  ;;  %v6809_v24 = vadd.f32 %v11326_v60, %v6756_v61  ;;  %v6810_v58 = vadd.f32 %v11328_v2, %v6760_v39  ;;  %v11782_v43 = vld [vmem:[#allocation42_spill] sm:$0xff] }
 0x968   : > { %7176 = vst.msk [vmem:[%s11347_s19 + $0xa8] sm:$0xff] %vm11772_vm11, %v7144_v33  ;;  %v7113_v29 = vadd.f32 %v7598_v49, %v7081_v56  ;;  %v7114_v20 = vadd.f32 %v7599_v30, %v7082_v54  ;;  %v11781_v33 = vld [vmem:[#allocation40_spill] sm:$0xff]  ;;  %v7605_v54 = vld [vmem:[%s7821_s23 + $0xe8] sm:$0xff]  ;;  %v7606_v49 = vld [vmem:[%s7821_s23 + $0xf0] sm:$0xff] }
 0x969   : > { %v7083_v22 = vmul.f32 %v7051_v40, %v11773_v15  ;;  %v7084_v62 = vmul.f32 %v7052_v47, %v11774_v1  ;;  %v7021_v4 = vadd.f32 %v6970_v23, %v6809_v24  ;;  %v7022_v38 = vadd.f32 %v6970_v23, %v6810_v58  ;;  %v7604_v56 = vld [vmem:[%s7821_s23 + $0xe0] sm:$0xff]  ;;  %v11785_v23 = vld [vmem:[#allocation38_spill] sm:$0xff]  ;;  %v11786_v40 = vld [vmem:[#allocation41_spill] sm:$0xff] }
 0x96a   : > { %v7145_v31 = vmax.f32 %v7113_v29, 0.0  ;;  %v7146_v10 = vmax.f32 %v7114_v20, 0.0  ;;  %v6767_v37 = vpop.permute.xlu0 %6766  ;;  %v6771_v44 = vpop.permute.xlu1 %6770  ;;  %v7607_v30 = vld [vmem:[%s7821_s23 + $0xf8] sm:$0xff] }
 0x96b   : > { %v7115_v9 = vadd.f32 %v7600_v25, %v7083_v22  ;;  %v7116_v50 = vadd.f32 %v7601_v21, %v7084_v62  ;;  %v7053_v26 = vmul.f32 0.33333334, %v7021_v4  ;;  %v7054_v52 = vmul.f32 0.33333334, %v7022_v38 }
 0x96c   : > { %7177 = vst.msk [vmem:[%s11347_s19 + $0xb0] sm:$0xff] %vm11775_vm12, %v7145_v31  ;;  %v6811_v19 = vadd.f32 %v11326_v60, %v6767_v37  ;;  %v6812_v42 = vadd.f32 %v11328_v2, %v6771_v44 }
 0x96d   : > { %7178 = vst.msk [vmem:[%s11347_s19 + $0xb8] sm:$0xff] %vm11776_vm3, %v7146_v10  ;;  %v7147_v0 = vmax.f32 %v7115_v9, 0.0  ;;  %v7148_v51 = vmax.f32 %v7116_v50, 0.0  ;;  %v7085_v55 = vmul.f32 %v11777_v53, %v7053_v26  ;;  %v7086_v45 = vmul.f32 %v11778_v12, %v7054_v52 }
 0x96e   : > { %v7023_v5 = vadd.f32 %v6974_v59, %v6811_v19  ;;  %v7024_v46 = vadd.f32 %v6974_v59, %v6812_v42  ;;  %v6778_v27 = vpop.permute.xlu0 %6777  ;;  %v6782_v18 = vpop.permute.xlu1 %6781 }
 0x96f   : > { %7179 = vst.msk [vmem:[%s11347_s19 + $0xc0] sm:$0xff] %vm11779_vm4, %v7147_v0  ;;  %v7117_v41 = vadd.f32 %v7602_v6, %v7085_v55  ;;  %v7118_v13 = vadd.f32 %v7603_v11, %v7086_v45  ;;  %v6813_v48 = vadd.f32 %v11326_v60, %v6778_v27  ;;  %v6814_v63 = vadd.f32 %v11328_v2, %v6782_v18 }
 0x970   : > { %7180 = vst.msk [vmem:[%s11347_s19 + $0xc8] sm:$0xff] %vm11780_vm6, %v7148_v51  ;;  %v7055_v32 = vmul.f32 0.33333334, %v7023_v5  ;;  %v7056_v3 = vmul.f32 0.33333334, %v7024_v46 }
 0x971   : > { %v7149_v57 = vmax.f32 %v7117_v41, 0.0  ;;  %v7150_v34 = vmax.f32 %v7118_v13, 0.0  ;;  %v7025_v16 = vadd.f32 %v6978_v7, %v6813_v48  ;;  %v7026_v14 = vadd.f32 %v6978_v7, %v6814_v63 }
 0x972   : > { %v7087_v28 = vmul.f32 %v7055_v32, %v11781_v33  ;;  %v7088_v35 = vmul.f32 %v7056_v3, %v11782_v43 }
 0x973   : > { %7181 = vst.msk [vmem:[%s11347_s19 + $0xd0] sm:$0xff] %vm11783_vm7, %v7149_v57  ;;  %v7057_v60 = vmul.f32 0.33333334, %v7025_v16  ;;  %v7058_v2 = vmul.f32 0.33333334, %v7026_v14 }
 0x974   : > { %7182 = vst.msk [vmem:[%s11347_s19 + $0xd8] sm:$0xff] %vm11784_vm13, %v7150_v34  ;;  %v7119_v36 = vadd.f32 %v7604_v56, %v7087_v28  ;;  %v7120_v61 = vadd.f32 %v7605_v54, %v7088_v35 }
 0x975   : > { %v7089_v39 = vmul.f32 %v11785_v23, %v7057_v60  ;;  %v7090_v47 = vmul.f32 %v11786_v40, %v7058_v2 }
 0x976   : > { %v7151_v24 = vmax.f32 %v7119_v36, 0.0  ;;  %v7152_v58 = vmax.f32 %v7120_v61, 0.0 }
 0x977   : > { %v7121_v29 = vadd.f32 %v7606_v49, %v7089_v39  ;;  %v7122_v20 = vadd.f32 %v7607_v30, %v7090_v47 }
 0x978   : > { %7183 = vst.msk [vmem:[%s11347_s19 + $0xe0] sm:$0xff] %vm11787_vm14, %v7151_v24 }
 0x979   : > { %7184 = vst.msk [vmem:[%s11347_s19 + $0xe8] sm:$0xff] %vm11788_vm8, %v7152_v58  ;;  %v7153_v17 = vmax.f32 %v7121_v29, 0.0  ;;  %v7154_v15 = vmax.f32 %v7122_v20, 0.0 }
 0x97b   : > { %7185 = vst.msk [vmem:[%s11347_s19 + $0xf0] sm:$0xff] %vm11789_vm5, %v7153_v17 }
 0x97c   : > { %7186 = vst.msk [vmem:[%s11347_s19 + $0xf8] sm:$0xff] %vm11790_vm15, %v7154_v15 }
 0x97d PF: > { %s20_s13 = sadd.s32 1, %s7614_s13  }
 0x97e   : > { %p17_p4 = scmp.ge.s32.totalorder %s20_s13, 4  }
 0x980   :  { %19 = sbr.rel (!%p17_p4) target bundleno = 1 (0x1), region = 96 }

</bundles_post_ra>
